<compile_context>
chip_gen: v6e
topology: v6e:2x2x1
jax: 0.10.0
libtpu: 0.0.40
codegen_flags: <defaults>
</compile_context>

<pallas_src>
import jax
import jax.numpy as jnp
import numpy as np
from jax import lax
from jax.experimental import pallas as pl
from jax.experimental.pallas import tpu as pltpu

NEG_SLOPE = 0.2
BN_EPS = 1e-5
FC_K = 128 * 7 * 7          # 6272
FC_K_PAD = 6400             # 128 * 50: lane-aligned, splits into 2 x 3200
FC_TK = 3200                # 128 * 25
FC_N = 1024


def _leaky(z):
    return jnp.where(z >= 0, z, NEG_SLOPE * z)


def _is_v7():
    """Detect v7x-class chips (2 TensorCores) to enable the N-split."""
    try:
        kind = jax.devices()[0].device_kind.lower()
        return ("v7" in kind) or ("7x" in kind)
    except Exception:
        return False


# -------- Kernel A: out = LeakyReLU(X @ W + b)  (single tile, tiny) ---------
def matmul_bias_lrelu_kernel(x_ref, w_ref, b_ref, o_ref):
    y = jnp.dot(x_ref[...], w_ref[...], preferred_element_type=jnp.float32)
    o_ref[...] = _leaky(y + b_ref[...])


def matmul_bias_lrelu(x, w, b):
    M, K = x.shape
    _, N = w.shape
    return pl.pallas_call(
        matmul_bias_lrelu_kernel,
        out_shape=jax.ShapeDtypeStruct((M, N), jnp.float32),
        grid_spec=pltpu.PrefetchScalarGridSpec(
            num_scalar_prefetch=0,
            grid=(1,),
            in_specs=[
                pl.BlockSpec((M, K), lambda k: (0, 0)),
                pl.BlockSpec((K, N), lambda k: (0, 0)),
                pl.BlockSpec((1, N), lambda k: (0, 0)),
            ],
            out_specs=pl.BlockSpec((M, N), lambda k: (0, 0)),
        ),
    )(x, w, b.reshape(1, N))


# -- Kernel B: out = LeakyReLU(BatchNorm(X @ W + b)) with batch statistics ---
# Grid = (N tiles, K tiles).  K (reduction) is the last axis; the output block
# index is constant across K, so it stays VMEM-resident and doubles as the
# accumulator.  BN statistics are per-channel (reduction over rows only), so
# splitting N across the grid / megacore is exact.
def matmul_bn_lrelu_kernel(x_ref, w_ref, b_ref, g_ref, beta_ref, o_ref):
    k = pl.program_id(1)

    @pl.when(k == 0)
    def _():
        o_ref[...] = jnp.zeros_like(o_ref)

    o_ref[...] += jnp.dot(x_ref[...].astype(w_ref.dtype), w_ref[...],
                          preferred_element_type=jnp.float32)

    @pl.when(k == pl.num_programs(1) - 1)
    def _():
        y = o_ref[...] + b_ref[...]
        mean = jnp.mean(y, axis=0, keepdims=True)
        var = jnp.mean(jnp.square(y - mean), axis=0, keepdims=True)  # biased
        yhat = (y - mean) * lax.rsqrt(var + BN_EPS)
        o_ref[...] = _leaky(yhat * g_ref[...] + beta_ref[...])


def matmul_bn_lrelu(x, w, b, gamma, beta, *, tk=None, tn=None,
                    vmem_limit_bytes=None):
    M, K = x.shape
    Kw, N = w.shape
    assert K == Kw
    if tk is None or tk >= K:
        tk = K
    if tn is None or tn >= N:
        tn = N
    assert K % tk == 0 and N % tn == 0
    nk = K // tk
    nn = N // tn

    cost = pl.CostEstimate(
        flops=2 * M * K * N,
        transcendentals=0,
        bytes_accessed=(x.size * x.dtype.itemsize
                        + w.size * w.dtype.itemsize
                        + M * N * 4 + 3 * N * 4),
    )

    return pl.pallas_call(
        matmul_bn_lrelu_kernel,
        out_shape=jax.ShapeDtypeStruct((M, N), jnp.float32),
        grid_spec=pltpu.PrefetchScalarGridSpec(
            num_scalar_prefetch=0,
            grid=(nn, nk),
            in_specs=[
                pl.BlockSpec((M, tk), lambda j, k: (0, k)),
                pl.BlockSpec((tk, tn), lambda j, k: (k, j)),
                pl.BlockSpec((1, tn), lambda j, k: (0, j)),
                pl.BlockSpec((1, tn), lambda j, k: (0, j)),
                pl.BlockSpec((1, tn), lambda j, k: (0, j)),
            ],
            out_specs=pl.BlockSpec((M, tn), lambda j, k: (0, j)),
        ),
        compiler_params=pltpu.CompilerParams(
            dimension_semantics=("parallel", "arbitrary"),
            vmem_limit_bytes=vmem_limit_bytes),
        cost_estimate=cost,
    )(x, w, b.reshape(1, N), gamma.reshape(1, N), beta.reshape(1, N))


# ------------------------------ glue (plain JAX) ----------------------------
def im2col(x_nhwc, kh, kw, stride, pad):
    """Extract conv patches; flatten order (c, kh, kw) matches PyTorch
    weight.reshape(O, C*KH*KW)."""
    B, H, W, C = x_nhwc.shape
    xp = jnp.pad(x_nhwc, ((0, 0), (pad, pad), (pad, pad), (0, 0)))
    Ho = (H + 2 * pad - kh) // stride + 1
    Wo = (W + 2 * pad - kw) // stride + 1
    cols = []
    for di in range(kh):
        for dj in range(kw):
            cols.append(xp[:, di:di + stride * Ho:stride,
                           dj:dj + stride * Wo:stride, :])
    patches = jnp.stack(cols, axis=-1)                 # (B, Ho, Wo, C, KH*KW)
    patches = patches.reshape(B * Ho * Wo, C * kh * kw)
    return patches, Ho, Wo


def prepare_params(params):
    """One-time weight repacking (outside the hot path):
       * conv weights -> im2col-matmul layout,
       * fc weight rows permuted from NCHW-flatten to NHWC-flatten order,
         zero-padded K 6272 -> 6400, stored in bf16 (f32 accumulation)."""
    H = W = 7
    C = 128
    # NHWC flatten position p = h*W*C + w*C + c maps to NCHW index
    # idx[p] = c*H*W + h*W + w.
    idx = (np.arange(C)[None, None, :] * (H * W)
           + np.arange(H)[:, None, None] * W
           + np.arange(W)[None, :, None]).reshape(-1)
    wf = jnp.asarray(params["wf"])[:, idx].T                  # (6272, 1024)
    wf = jnp.pad(wf, ((0, FC_K_PAD - FC_K), (0, 0)))
    prep = dict(params)
    prep["w1_mat"] = params["w1"].reshape(64, -1).T           # (16, 64)
    prep["w2_mat"] = params["w2"].reshape(128, -1).T          # (1024, 128)
    # TODO(synk): bf16 fc weights are a precision tradeoff vs the f32 PyTorch
    # module (f32 accumulation is kept); drop the cast for exact f32 weights.
    prep["wf_mat"] = wf.astype(jnp.bfloat16)
    return prep


def fe_forward(x_nchw, pp):
    B = x_nchw.shape[0]
    x = jnp.transpose(x_nchw, (0, 2, 3, 1))                   # NCHW -> NHWC

    # conv1: Conv2d(1, 64, 4, stride=2, pad=1) + LeakyReLU(0.2)
    p1, H1, W1 = im2col(x, 4, 4, 2, 1)                        # (B*196, 16)
    y1 = matmul_bias_lrelu(p1, pp["w1_mat"], pp["b1"])        # (B*196, 64)
    y1 = y1.reshape(B, H1, W1, 64)

    # conv2 + BatchNorm2d(128) (training-mode batch stats) + LeakyReLU(0.2)
    # TODO(synk): BatchNorm running-stat updates (a training side effect) are
    # not materialized; outputs match the nn.Module default forward.
    p2, H2, W2 = im2col(y1, 4, 4, 2, 1)                       # (B*49, 1024)
    y2 = matmul_bn_lrelu(p2, pp["w2_mat"], pp["b2"],
                         pp["g2"], pp["be2"])                 # (B*49, 128)
    y2 = y2.reshape(B, H2, W2, 128)

    # Linear(6272, 1024) + BatchNorm1d(1024) + LeakyReLU(0.2).  The NCHW
    # flatten permutation is folded into wf_mat's rows, so the NHWC reshape
    # feeds the fc kernel directly; K is zero-padded to a lane-aligned size.
    flat = jnp.pad(y2.reshape(B, FC_K), ((0, 0), (0, FC_K_PAD - FC_K)))
    tn = 512 if _is_v7() else None     # split weight stream across the 2 TCs
    # TODO(synk): the x block (M, tk) and output (M, tn) stay fully M-resident
    # in VMEM; add M tiling (two-pass/Welford BN) before scaling the batch.
    out = matmul_bn_lrelu(flat, pp["wf_mat"], pp["bf"],
                          pp["gf"], pp["bef"],
                          tk=FC_TK, tn=tn,
                          vmem_limit_bytes=32 * 1024 * 1024)
    return out


# ------------------------- plain-JAX mirror (check) -------------------------
def _bn_lrelu_ref(y, gamma, beta):
    mean = jnp.mean(y, axis=0, keepdims=True)
    var = jnp.mean(jnp.square(y - mean), axis=0, keepdims=True)
    return _leaky((y - mean) * lax.rsqrt(var + BN_EPS) * gamma[None, :]
                  + beta[None, :])


def fe_reference(x_nchw, pp):
    """Plain-JAX mirror of the Pallas path (same prepared weights/layout)."""
    B = x_nchw.shape[0]
    x = jnp.transpose(x_nchw, (0, 2, 3, 1))
    p1, H1, W1 = im2col(x, 4, 4, 2, 1)
    y1 = _leaky(p1 @ pp["w1_mat"] + pp["b1"][None, :]).reshape(B, H1, W1, 64)
    p2, H2, W2 = im2col(y1, 4, 4, 2, 1)
    y2 = _bn_lrelu_ref(p2 @ pp["w2_mat"] + pp["b2"][None, :],
                       pp["g2"], pp["be2"]).reshape(B, H2, W2, 128)
    flat = jnp.pad(y2.reshape(B, FC_K), ((0, 0), (0, FC_K_PAD - FC_K)))
    y3 = jnp.dot(flat.astype(pp["wf_mat"].dtype), pp["wf_mat"],
                 preferred_element_type=jnp.float32) + pp["bf"][None, :]
    return _bn_lrelu_ref(y3, pp["gf"], pp["bef"])


def init_params(key):
    ks = jax.random.split(key, 6)
    return {
        "w1": jax.random.normal(ks[0], (64, 1, 4, 4), jnp.float32) * 0.1,
        "b1": jax.random.normal(ks[1], (64,), jnp.float32) * 0.1,
        "w2": jax.random.normal(ks[2], (128, 64, 4, 4), jnp.float32) * 0.05,
        "b2": jax.random.normal(ks[3], (128,), jnp.float32) * 0.05,
        "g2": jnp.ones((128,), jnp.float32),
        "be2": jnp.zeros((128,), jnp.float32),
        "wf": jax.random.normal(ks[4], (1024, 6272), jnp.float32) * 0.01,
        "bf": jax.random.normal(ks[5], (1024,), jnp.float32) * 0.01,
        "gf": jnp.ones((1024,), jnp.float32),
        "bef": jnp.zeros((1024,), jnp.float32),
    }


if __name__ == "__main__":
    key = jax.random.PRNGKey(0)
    pkey, xkey = jax.random.split(key)
    params = init_params(pkey)
    pparams = prepare_params(params)
    # 28x28 input is forced by the 128*7*7 Linear in the module.
    x = jax.random.normal(xkey, (2, 1, 28, 28), jnp.float32)

    out = jax.jit(fe_forward)(x, pparams)
    jax.block_until_ready(out)
    assert out.shape == (2, 1024), out.shape
    assert out.dtype == jnp.float32
    assert bool(jnp.all(jnp.isfinite(out)))

    ref = fe_reference(x, pparams)
    err = float(jnp.mean(jnp.abs(out - ref)))
    assert err < 5e-2, err
    print("KERNEL_OK")
</pallas_src>

<mosaic_0001>
module attributes {stable_mosaic.version = 11 : i64} {
  func.func @matmul_bias_lrelu_kernel(%arg0: i32, %arg1: memref<392x16xf32, #tpu.memory_space<vmem>>, %arg2: memref<16x64xf32, #tpu.memory_space<vmem>>, %arg3: memref<1x64xf32, #tpu.memory_space<vmem>>, %arg4: memref<392x64xf32, #tpu.memory_space<vmem>>) attributes {dimension_semantics = [#tpu.dimension_semantics<arbitrary>], iteration_bounds = array<i64: 1>, scalar_prefetch = 0 : i64, scratch_operands = 0 : i64, tpu.core_type = #tpu.core_type<tc>, window_params = [{pipeline_mode = #tpu.pipeline_mode<synchronous>, transform_indices = @transform_0, window_bounds = array<i64: 392, 16>}, {pipeline_mode = #tpu.pipeline_mode<synchronous>, transform_indices = @transform_1, window_bounds = array<i64: 16, 64>}, {pipeline_mode = #tpu.pipeline_mode<synchronous>, transform_indices = @transform_2, window_bounds = array<i64: 1, 64>}, {pipeline_mode = #tpu.pipeline_mode<synchronous>, transform_indices = @transform_3, window_bounds = array<i64: 392, 64>}]} {
    %c0 = arith.constant 0 : index
    %c0_0 = arith.constant 0 : index
    %0 = vector.load %arg1[%c0, %c0_0] : memref<392x16xf32, #tpu.memory_space<vmem>>, vector<392x16xf32>
    %c0_1 = arith.constant 0 : index
    %c0_2 = arith.constant 0 : index
    %1 = vector.load %arg2[%c0_1, %c0_2] : memref<16x64xf32, #tpu.memory_space<vmem>>, vector<16x64xf32>
    %cst = arith.constant dense<0.000000e+00> : vector<392x64xf32>
    %2 = tpu.matmul %0, %1, %cst {dimension_numbers = #tpu.dot_dimension_numbers<[1], [0], [0], [1], [0, 0, 1, 1], [], []>} : vector<392x16xf32>, vector<16x64xf32>, vector<392x64xf32> -> vector<392x64xf32>
    %c0_3 = arith.constant 0 : index
    %c0_4 = arith.constant 0 : index
    %3 = vector.load %arg3[%c0_3, %c0_4] : memref<1x64xf32, #tpu.memory_space<vmem>>, vector<1x64xf32>
    %4 = vector.broadcast %3 : vector<1x64xf32> to vector<392x64xf32>
    %5 = arith.addf %2, %4 : vector<392x64xf32>
    %cst_5 = arith.constant 0.000000e+00 : f32
    %6 = vector.broadcast %cst_5 : f32 to vector<392x64xf32>
    %7 = arith.cmpf oge, %5, %6 : vector<392x64xf32>
    %cst_6 = arith.constant 2.000000e-01 : f32
    %8 = vector.broadcast %cst_6 : f32 to vector<392x64xf32>
    %9 = arith.mulf %8, %5 : vector<392x64xf32>
    %10 = arith.select %7, %5, %9 : vector<392x64xi1>, vector<392x64xf32>
    %c0_7 = arith.constant 0 : index
    %c0_8 = arith.constant 0 : index
    %11 = vector.load %arg4[%c0_7, %c0_8] : memref<392x64xf32, #tpu.memory_space<vmem>>, vector<392x64xf32>
    tpu.vector_store %arg4[%c0_7, %c0_8], %10 {strides = array<i32>} : memref<392x64xf32, #tpu.memory_space<vmem>>, vector<392x64xf32>,
    return
  }
  func.func @transform_0(%arg0: i32) -> (i32, i32) {
    %c0_i32 = arith.constant 0 : i32
    %c0_i32_0 = arith.constant 0 : i32
    %c0_i32_1 = arith.constant 0 : i32
    return %c0_i32, %c0_i32_0 : i32, i32
  }
  func.func @transform_1(%arg0: i32) -> (i32, i32) {
    %c0_i32 = arith.constant 0 : i32
    %c0_i32_0 = arith.constant 0 : i32
    %c0_i32_1 = arith.constant 0 : i32
    return %c0_i32, %c0_i32_0 : i32, i32
  }
  func.func @transform_2(%arg0: i32) -> (i32, i32) {
    %c0_i32 = arith.constant 0 : i32
    %c0_i32_0 = arith.constant 0 : i32
    %c0_i32_1 = arith.constant 0 : i32
    return %c0_i32, %c0_i32_0 : i32, i32
  }
  func.func @transform_3(%arg0: i32) -> (i32, i32) {
    %c0_i32 = arith.constant 0 : i32
    %c0_i32_0 = arith.constant 0 : i32
    %c0_i32_1 = arith.constant 0 : i32
    return %c0_i32, %c0_i32_0 : i32, i32
  }
}

module attributes {stable_mosaic.version = 11 : i64} {
  func.func @matmul_bn_lrelu_kernel(%arg0: i32, %arg1: i32, %arg2: memref<98x1024xf32, #tpu.memory_space<vmem>>, %arg3: memref<1024x128xf32, #tpu.memory_space<vmem>>, %arg4: memref<1x128xf32, #tpu.memory_space<vmem>>, %arg5: memref<1x128xf32, #tpu.memory_space<vmem>>, %arg6: memref<1x128xf32, #tpu.memory_space<vmem>>, %arg7: memref<98x128xf32, #tpu.memory_space<vmem>>) attributes {dimension_semantics = [#tpu.dimension_semantics<parallel>, #tpu.dimension_semantics<arbitrary>], iteration_bounds = array<i64: 1, 1>, scalar_prefetch = 0 : i64, scratch_operands = 0 : i64, tpu.core_type = #tpu.core_type<tc>, window_params = [{transform_indices = @transform_0, window_bounds = array<i64: 98, 1024>}, {transform_indices = @transform_1, window_bounds = array<i64: 1024, 128>}, {transform_indices = @transform_2, window_bounds = array<i64: 1, 128>}, {transform_indices = @transform_3, window_bounds = array<i64: 1, 128>}, {transform_indices = @transform_4, window_bounds = array<i64: 1, 128>}, {transform_indices = @transform_5, window_bounds = array<i64: 98, 128>}]} {
    %c0_i32 = arith.constant 0 : i32
    %0 = arith.cmpi eq, %arg1, %c0_i32 : i32
    %1 = arith.extui %0 : i1 to i32
    %c0_i32_0 = arith.constant 0 : i32
    %2 = arith.cmpi ne, %1, %c0_i32_0 : i32
    scf.if %2 {
      %cst_10 = arith.constant 0.000000e+00 : f32
      %12 = vector.broadcast %cst_10 : f32 to vector<98x128xf32>
      %c0_11 = arith.constant 0 : index
      %c0_12 = arith.constant 0 : index
      %13 = vector.load %arg7[%c0_11, %c0_12] : memref<98x128xf32, #tpu.memory_space<vmem>>, vector<98x128xf32>
      tpu.vector_store %arg7[%c0_11, %c0_12], %12 {strides = array<i32>} : memref<98x128xf32, #tpu.memory_space<vmem>>, vector<98x128xf32>,
    } else {
    }
    %c0 = arith.constant 0 : index
    %c0_1 = arith.constant 0 : index
    %3 = vector.load %arg7[%c0, %c0_1] : memref<98x128xf32, #tpu.memory_space<vmem>>, vector<98x128xf32>
    %c0_2 = arith.constant 0 : index
    %c0_3 = arith.constant 0 : index
    %4 = vector.load %arg2[%c0_2, %c0_3] : memref<98x1024xf32, #tpu.memory_space<vmem>>, vector<98x1024xf32>
    %c0_4 = arith.constant 0 : index
    %c0_5 = arith.constant 0 : index
    %5 = vector.load %arg3[%c0_4, %c0_5] : memref<1024x128xf32, #tpu.memory_space<vmem>>, vector<1024x128xf32>
    %cst = arith.constant dense<0.000000e+00> : vector<98x128xf32>
    %6 = tpu.matmul %4, %5, %cst {dimension_numbers = #tpu.dot_dimension_numbers<[1], [0], [0], [1], [0, 0, 1, 1], [], []>} : vector<98x1024xf32>, vector<1024x128xf32>, vector<98x128xf32> -> vector<98x128xf32>
    %7 = arith.addf %3, %6 : vector<98x128xf32>
    %c0_6 = arith.constant 0 : index
    %c0_7 = arith.constant 0 : index
    %8 = vector.load %arg7[%c0_6, %c0_7] : memref<98x128xf32, #tpu.memory_space<vmem>>, vector<98x128xf32>
    tpu.vector_store %arg7[%c0_6, %c0_7], %7 {strides = array<i32>} : memref<98x128xf32, #tpu.memory_space<vmem>>, vector<98x128xf32>,
    %c0_i32_8 = arith.constant 0 : i32
    %9 = arith.cmpi eq, %arg1, %c0_i32_8 : i32
    %10 = arith.extui %9 : i1 to i32
    %c0_i32_9 = arith.constant 0 : i32
    %11 = arith.cmpi ne, %10, %c0_i32_9 : i32
    scf.if %11 {
      %c0_10 = arith.constant 0 : index
      %c0_11 = arith.constant 0 : index
      %12 = vector.load %arg7[%c0_10, %c0_11] : memref<98x128xf32, #tpu.memory_space<vmem>>, vector<98x128xf32>
      %c0_12 = arith.constant 0 : index
      %c0_13 = arith.constant 0 : index
      %13 = vector.load %arg4[%c0_12, %c0_13] : memref<1x128xf32, #tpu.memory_space<vmem>>, vector<1x128xf32>
      %14 = vector.broadcast %13 : vector<1x128xf32> to vector<98x128xf32>
      %15 = arith.addf %12, %14 : vector<98x128xf32>
      %cst_14 = arith.constant dense<0.000000e+00> : vector<128xf32>
      %16 = vector.multi_reduction <add>, %15, %cst_14 [0] : vector<98x128xf32> to vector<128xf32>
      %17 = vector.shape_cast %16 : vector<128xf32> to vector<1x128xf32>
      %cst_15 = arith.constant 9.800000e+01 : f32
      %18 = vector.broadcast %cst_15 : f32 to vector<1x128xf32>
      %19 = arith.divf %17, %18 : vector<1x128xf32>
      %20 = vector.broadcast %19 : vector<1x128xf32> to vector<98x128xf32>
      %21 = arith.subf %15, %20 : vector<98x128xf32>
      %22 = arith.mulf %21, %21 : vector<98x128xf32>
      %cst_16 = arith.constant dense<0.000000e+00> : vector<128xf32>
      %23 = vector.multi_reduction <add>, %22, %cst_16 [0] : vector<98x128xf32> to vector<128xf32>
      %24 = vector.shape_cast %23 : vector<128xf32> to vector<1x128xf32>
      %cst_17 = arith.constant 9.800000e+01 : f32
      %25 = vector.broadcast %cst_17 : f32 to vector<1x128xf32>
      %26 = arith.divf %24, %25 : vector<1x128xf32>
      %27 = vector.broadcast %19 : vector<1x128xf32> to vector<98x128xf32>
      %28 = arith.subf %15, %27 : vector<98x128xf32>
      %cst_18 = arith.constant 9.99999974E-6 : f32
      %29 = vector.broadcast %cst_18 : f32 to vector<1x128xf32>
      %30 = arith.addf %26, %29 : vector<1x128xf32>
      %31 = math.rsqrt %30 : vector<1x128xf32>
      %32 = vector.broadcast %31 : vector<1x128xf32> to vector<98x128xf32>
      %33 = arith.mulf %28, %32 : vector<98x128xf32>
      %c0_19 = arith.constant 0 : index
      %c0_20 = arith.constant 0 : index
      %34 = vector.load %arg5[%c0_19, %c0_20] : memref<1x128xf32, #tpu.memory_space<vmem>>, vector<1x128xf32>
      %35 = vector.broadcast %34 : vector<1x128xf32> to vector<98x128xf32>
      %36 = arith.mulf %33, %35 : vector<98x128xf32>
      %c0_21 = arith.constant 0 : index
      %c0_22 = arith.constant 0 : index
      %37 = vector.load %arg6[%c0_21, %c0_22] : memref<1x128xf32, #tpu.memory_space<vmem>>, vector<1x128xf32>
      %38 = vector.broadcast %37 : vector<1x128xf32> to vector<98x128xf32>
      %39 = arith.addf %36, %38 : vector<98x128xf32>
      %cst_23 = arith.constant 0.000000e+00 : f32
      %40 = vector.broadcast %cst_23 : f32 to vector<98x128xf32>
      %41 = arith.cmpf oge, %39, %40 : vector<98x128xf32>
      %cst_24 = arith.constant 2.000000e-01 : f32
      %42 = vector.broadcast %cst_24 : f32 to vector<98x128xf32>
      %43 = arith.mulf %42, %39 : vector<98x128xf32>
      %44 = arith.select %41, %39, %43 : vector<98x128xi1>, vector<98x128xf32>
      %c0_25 = arith.constant 0 : index
      %c0_26 = arith.constant 0 : index
      %45 = vector.load %arg7[%c0_25, %c0_26] : memref<98x128xf32, #tpu.memory_space<vmem>>, vector<98x128xf32>
      tpu.vector_store %arg7[%c0_25, %c0_26], %44 {strides = array<i32>} : memref<98x128xf32, #tpu.memory_space<vmem>>, vector<98x128xf32>,
    } else {
    }
    return
  }
  func.func @transform_0(%arg0: i32, %arg1: i32) -> (i32, i32) {
    %c0_i32 = arith.constant 0 : i32
    %c0_i32_0 = arith.constant 0 : i32
    return %c0_i32, %arg1 : i32, i32
  }
  func.func @transform_1(%arg0: i32, %arg1: i32) -> (i32, i32) {
    %c0_i32 = arith.constant 0 : i32
    return %arg1, %arg0 : i32, i32
  }
  func.func @transform_2(%arg0: i32, %arg1: i32) -> (i32, i32) {
    %c0_i32 = arith.constant 0 : i32
    %c0_i32_0 = arith.constant 0 : i32
    return %c0_i32, %arg0 : i32, i32
  }
  func.func @transform_3(%arg0: i32, %arg1: i32) -> (i32, i32) {
    %c0_i32 = arith.constant 0 : i32
    %c0_i32_0 = arith.constant 0 : i32
    return %c0_i32, %arg0 : i32, i32
  }
  func.func @transform_4(%arg0: i32, %arg1: i32) -> (i32, i32) {
    %c0_i32 = arith.constant 0 : i32
    %c0_i32_0 = arith.constant 0 : i32
    return %c0_i32, %arg0 : i32, i32
  }
  func.func @transform_5(%arg0: i32, %arg1: i32) -> (i32, i32) {
    %c0_i32 = arith.constant 0 : i32
    %c0_i32_0 = arith.constant 0 : i32
    return %c0_i32, %arg0 : i32, i32
  }
}

module attributes {stable_mosaic.version = 11 : i64} {
  func.func @matmul_bn_lrelu_kernel(%arg0: i32, %arg1: i32, %arg2: memref<2x3200xf32, #tpu.memory_space<vmem>>, %arg3: memref<3200x1024xbf16, #tpu.memory_space<vmem>>, %arg4: memref<1x1024xf32, #tpu.memory_space<vmem>>, %arg5: memref<1x1024xf32, #tpu.memory_space<vmem>>, %arg6: memref<1x1024xf32, #tpu.memory_space<vmem>>, %arg7: memref<2x1024xf32, #tpu.memory_space<vmem>>) attributes {dimension_semantics = [#tpu.dimension_semantics<parallel>, #tpu.dimension_semantics<arbitrary>], iteration_bounds = array<i64: 1, 2>, scalar_prefetch = 0 : i64, scratch_operands = 0 : i64, tpu.core_type = #tpu.core_type<tc>, window_params = [{transform_indices = @transform_0, window_bounds = array<i64: 2, 3200>}, {transform_indices = @transform_1, window_bounds = array<i64: 3200, 1024>}, {transform_indices = @transform_2, window_bounds = array<i64: 1, 1024>}, {transform_indices = @transform_3, window_bounds = array<i64: 1, 1024>}, {transform_indices = @transform_4, window_bounds = array<i64: 1, 1024>}, {transform_indices = @transform_5, window_bounds = array<i64: 2, 1024>}]} {
    %c0_i32 = arith.constant 0 : i32
    %0 = arith.cmpi eq, %arg1, %c0_i32 : i32
    %1 = arith.extui %0 : i1 to i32
    %c0_i32_0 = arith.constant 0 : i32
    %2 = arith.cmpi ne, %1, %c0_i32_0 : i32
    scf.if %2 {
      %cst_9 = arith.constant 0.000000e+00 : f32
      %13 = vector.broadcast %cst_9 : f32 to vector<2x1024xf32>
      %c0_10 = arith.constant 0 : index
      %c0_11 = arith.constant 0 : index
      %14 = vector.load %arg7[%c0_10, %c0_11] : memref<2x1024xf32, #tpu.memory_space<vmem>>, vector<2x1024xf32>
      tpu.vector_store %arg7[%c0_10, %c0_11], %13 {strides = array<i32>} : memref<2x1024xf32, #tpu.memory_space<vmem>>, vector<2x1024xf32>,
    } else {
    }
    %c0 = arith.constant 0 : index
    %c0_1 = arith.constant 0 : index
    %3 = vector.load %arg7[%c0, %c0_1] : memref<2x1024xf32, #tpu.memory_space<vmem>>, vector<2x1024xf32>
    %c0_2 = arith.constant 0 : index
    %c0_3 = arith.constant 0 : index
    %4 = vector.load %arg2[%c0_2, %c0_3] : memref<2x3200xf32, #tpu.memory_space<vmem>>, vector<2x3200xf32>
    %5 = arith.truncf %4 : vector<2x3200xf32> to vector<2x3200xbf16>
    %c0_4 = arith.constant 0 : index
    %c0_5 = arith.constant 0 : index
    %6 = vector.load %arg3[%c0_4, %c0_5] : memref<3200x1024xbf16, #tpu.memory_space<vmem>>, vector<3200x1024xbf16>
    %cst = arith.constant dense<0.000000e+00> : vector<2x1024xf32>
    %7 = tpu.matmul %5, %6, %cst {dimension_numbers = #tpu.dot_dimension_numbers<[1], [0], [0], [1], [0, 0, 1, 1], [], []>} : vector<2x3200xbf16>, vector<3200x1024xbf16>, vector<2x1024xf32> -> vector<2x1024xf32>
    %8 = arith.addf %3, %7 : vector<2x1024xf32>
    %c0_6 = arith.constant 0 : index
    %c0_7 = arith.constant 0 : index
    %9 = vector.load %arg7[%c0_6, %c0_7] : memref<2x1024xf32, #tpu.memory_space<vmem>>, vector<2x1024xf32>
    tpu.vector_store %arg7[%c0_6, %c0_7], %8 {strides = array<i32>} : memref<2x1024xf32, #tpu.memory_space<vmem>>, vector<2x1024xf32>,
    %c1_i32 = arith.constant 1 : i32
    %10 = arith.cmpi eq, %arg1, %c1_i32 : i32
    %11 = arith.extui %10 : i1 to i32
    %c0_i32_8 = arith.constant 0 : i32
    %12 = arith.cmpi ne, %11, %c0_i32_8 : i32
    scf.if %12 {
      %c0_9 = arith.constant 0 : index
      %c0_10 = arith.constant 0 : index
      %13 = vector.load %arg7[%c0_9, %c0_10] : memref<2x1024xf32, #tpu.memory_space<vmem>>, vector<2x1024xf32>
      %c0_11 = arith.constant 0 : index
      %c0_12 = arith.constant 0 : index
      %14 = vector.load %arg4[%c0_11, %c0_12] : memref<1x1024xf32, #tpu.memory_space<vmem>>, vector<1x1024xf32>
      %15 = vector.broadcast %14 : vector<1x1024xf32> to vector<2x1024xf32>
      %16 = arith.addf %13, %15 : vector<2x1024xf32>
      %cst_13 = arith.constant dense<0.000000e+00> : vector<1024xf32>
      %17 = vector.multi_reduction <add>, %16, %cst_13 [0] : vector<2x1024xf32> to vector<1024xf32>
      %18 = vector.shape_cast %17 : vector<1024xf32> to vector<1x1024xf32>
      %cst_14 = arith.constant 2.000000e+00 : f32
      %19 = vector.broadcast %cst_14 : f32 to vector<1x1024xf32>
      %20 = arith.divf %18, %19 : vector<1x1024xf32>
      %21 = vector.broadcast %20 : vector<1x1024xf32> to vector<2x1024xf32>
      %22 = arith.subf %16, %21 : vector<2x1024xf32>
      %23 = arith.mulf %22, %22 : vector<2x1024xf32>
      %cst_15 = arith.constant dense<0.000000e+00> : vector<1024xf32>
      %24 = vector.multi_reduction <add>, %23, %cst_15 [0] : vector<2x1024xf32> to vector<1024xf32>
      %25 = vector.shape_cast %24 : vector<1024xf32> to vector<1x1024xf32>
      %cst_16 = arith.constant 2.000000e+00 : f32
      %26 = vector.broadcast %cst_16 : f32 to vector<1x1024xf32>
      %27 = arith.divf %25, %26 : vector<1x1024xf32>
      %28 = vector.broadcast %20 : vector<1x1024xf32> to vector<2x1024xf32>
      %29 = arith.subf %16, %28 : vector<2x1024xf32>
      %cst_17 = arith.constant 9.99999974E-6 : f32
      %30 = vector.broadcast %cst_17 : f32 to vector<1x1024xf32>
      %31 = arith.addf %27, %30 : vector<1x1024xf32>
      %32 = math.rsqrt %31 : vector<1x1024xf32>
      %33 = vector.broadcast %32 : vector<1x1024xf32> to vector<2x1024xf32>
      %34 = arith.mulf %29, %33 : vector<2x1024xf32>
      %c0_18 = arith.constant 0 : index
      %c0_19 = arith.constant 0 : index
      %35 = vector.load %arg5[%c0_18, %c0_19] : memref<1x1024xf32, #tpu.memory_space<vmem>>, vector<1x1024xf32>
      %36 = vector.broadcast %35 : vector<1x1024xf32> to vector<2x1024xf32>
      %37 = arith.mulf %34, %36 : vector<2x1024xf32>
      %c0_20 = arith.constant 0 : index
      %c0_21 = arith.constant 0 : index
      %38 = vector.load %arg6[%c0_20, %c0_21] : memref<1x1024xf32, #tpu.memory_space<vmem>>, vector<1x1024xf32>
      %39 = vector.broadcast %38 : vector<1x1024xf32> to vector<2x1024xf32>
      %40 = arith.addf %37, %39 : vector<2x1024xf32>
      %cst_22 = arith.constant 0.000000e+00 : f32
      %41 = vector.broadcast %cst_22 : f32 to vector<2x1024xf32>
      %42 = arith.cmpf oge, %40, %41 : vector<2x1024xf32>
      %cst_23 = arith.constant 2.000000e-01 : f32
      %43 = vector.broadcast %cst_23 : f32 to vector<2x1024xf32>
      %44 = arith.mulf %43, %40 : vector<2x1024xf32>
      %45 = arith.select %42, %40, %44 : vector<2x1024xi1>, vector<2x1024xf32>
      %c0_24 = arith.constant 0 : index
      %c0_25 = arith.constant 0 : index
      %46 = vector.load %arg7[%c0_24, %c0_25] : memref<2x1024xf32, #tpu.memory_space<vmem>>, vector<2x1024xf32>
      tpu.vector_store %arg7[%c0_24, %c0_25], %45 {strides = array<i32>} : memref<2x1024xf32, #tpu.memory_space<vmem>>, vector<2x1024xf32>,
    } else {
    }
    return
  }
  func.func @transform_0(%arg0: i32, %arg1: i32) -> (i32, i32) {
    %c0_i32 = arith.constant 0 : i32
    %c0_i32_0 = arith.constant 0 : i32
    return %c0_i32, %arg1 : i32, i32
  }
  func.func @transform_1(%arg0: i32, %arg1: i32) -> (i32, i32) {
    %c0_i32 = arith.constant 0 : i32
    return %arg1, %arg0 : i32, i32
  }
  func.func @transform_2(%arg0: i32, %arg1: i32) -> (i32, i32) {
    %c0_i32 = arith.constant 0 : i32
    %c0_i32_0 = arith.constant 0 : i32
    return %c0_i32, %arg0 : i32, i32
  }
  func.func @transform_3(%arg0: i32, %arg1: i32) -> (i32, i32) {
    %c0_i32 = arith.constant 0 : i32
    %c0_i32_0 = arith.constant 0 : i32
    return %c0_i32, %arg0 : i32, i32
  }
  func.func @transform_4(%arg0: i32, %arg1: i32) -> (i32, i32) {
    %c0_i32 = arith.constant 0 : i32
    %c0_i32_0 = arith.constant 0 : i32
    return %c0_i32, %arg0 : i32, i32
  }
  func.func @transform_5(%arg0: i32, %arg1: i32) -> (i32, i32) {
    %c0_i32 = arith.constant 0 : i32
    %c0_i32_0 = arith.constant 0 : i32
    return %c0_i32, %arg0 : i32, i32
  }
}

</mosaic_0001>

<bundles_post_ra>
// kernel: fe_forward.3
= control target key start
LH: loop header
LB: loop body
LE: loop exit
PB: predicated region body
PF: predicated region fallthrough
CT: control target
= control target key end

     0   :  { %8 = vsyncpa [#allocation3], 0  ;;  %s1642_s0 = inlined_call_operand.vmem [shape: f32[392,16], index: 0, kind: input, shape index: {}]   ;;  %s1643_s1 = inlined_call_operand.hbm [shape: f32[16,64], index: 1, kind: input, shape index: {}]   ;;  %s1644_s2 = inlined_call_operand.hbm [shape: f32[1,64], index: 2, kind: input, shape index: {}]   ;;  %s1645_s3 = inlined_call_operand.vmem [shape: f32[392,64], index: 3, kind: output, shape index: {}]  }
   0x1   :  { %9 = vsyncpa [#allocation5], 0  ;;  %s1065_s12 = smov [#allocation2]  }
   0x2   :  { %s17_s13 = sshll.u32 %s1065_s12, 4  ;;  %s18_s13 = int_to_ptr.vmem [resolvable:$true] %s17_s13 }
   0x3   :  { %s1029_s14 = scalar_lea.vmem %s18_s13, 256  ;;  %p1034_p1 = scmp.lt.s32.totalorder %s18_s13, %s18_s13 }
   0x4   :  { %p1030_p0 = scmp.ne.s32.totalorder %s18_s13, %s1029_s14  ;;  %p1035_p2 = scmp.lt.s32.totalorder %s1029_s14, %s1029_s14 }
   0x6   :  { %p1036_p3 = por %p1035_p2, %p1034_p1 }
   0x8   :  { %p1037_p4 = pnand %p1036_p3, %p1030_p0 }
   0xa   :  { %1040 = shalt.err (!%p1037_p4)
}
   0xb   :  { %s1066_s15 = smov 128   ;;  %s1067_s16 = smov 8  }
   0xc   :  { %23 = dma.hbm_to_vmem [thread:$0]  %s1643_s1, 256, %s18_s13, [#allocation3], %s1066_s15, %s1066_s15, %s1067_s16  }
   0xd   :  { %s1068_s19 = smov [#allocation4]  }
   0xe   :  { %s30_s20 = sshll.u32 %s1068_s19, 4  ;;  %s31_s20 = int_to_ptr.vmem [resolvable:$true] %s30_s20 }
   0xf   :  { %s1049_s21 = scalar_lea.vmem %s31_s20, 16  ;;  %s1053_s22 = scalar_lea.vmem %s31_s20, 32 }
  0x10   :  { %p1050_p5 = scmp.ne.s32.totalorder %s31_s20, %s1049_s21  ;;  %p1054_p6 = scmp.lt.s32.totalorder %s31_s20, %s31_s20 }
  0x11   :  { %p1055_p7 = scmp.lt.s32.totalorder %s1053_s22, %s1049_s21 }
  0x13   :  { %p1056_p8 = por %p1055_p7, %p1054_p6 }
  0x15   :  { %p1057_p9 = pnand %p1056_p8, %p1050_p5 }
  0x17   :  { %1060 = shalt.err (!%p1057_p9)
}
  0x18   :  { %33 = dma.hbm_to_vmem [thread:$0]  %s1644_s2, 16, %s31_s20, [#allocation5]  }
  0x19   :  { %1061 = dma.done.wait [#allocation3], 256  }
  0x1a   :  { %1062 = vsyncadd [#allocation3], 4294967040 }
  0x1b   :  { %1063 = dma.done.wait [#allocation5], 16  }
  0x1c   :  { %1064 = vsyncadd [#allocation5], 4294967280  ;;  %v1069_v0 = vmov 0.0   ;;  %vm1070_vm0 = vmmov 0   ;;  %v90_v1 = vld [vmem:[#allocation2 + $0x8] sm:$0xff]  ;;  %v89_v2 = vld [vmem:[#allocation2] sm:$0xff] }
  0x1d   :  { %860 = vmatprep.subr.mxu0 %v1069_v0  ;;  %1011 = vmatprep.subr.mxu1 %v1069_v0  ;;  %v40_v3 = vld [vmem:[%s1642_s0] sm:$0xff]  ;;  %vm98_vm1 = vcmask 130048   ;;  %v65_v4 = vld [vmem:[%s1642_s0 + $0xc8] sm:$0xff]  ;;  %v66_v6 = vld [vmem:[%s1642_s0 + $0xd0] sm:$0xff]  ;;  %vm703_vm2 = vcmask 523264  }
  0x1e   :  { %864 = vmatprep.mubr.msk.f32.mxu0 %vm1070_vm0, %v1069_v0  ;;  %939 = vmatprep.mubr.msk.f32.mxu1 %vm1070_vm0, %v1069_v0  ;;  %v41_v5 = vld [vmem:[%s1642_s0 + $0x8] sm:$0xff]  ;;  %v42_v7 = vld [vmem:[%s1642_s0 + $0x10] sm:$0xff]  ;;  %v67_v8 = vld [vmem:[%s1642_s0 + $0xd8] sm:$0xff] }
  0x1f   :  { %861 = vmatpush3.msra.mxu0 %v90_v1  ;;  %1013 = vmatpush3.msra.mxu1 %v90_v1  ;;  %v43_v9 = vld [vmem:[%s1642_s0 + $0x18] sm:$0xff]  ;;  %v68_v10 = vld [vmem:[%s1642_s0 + $0xe0] sm:$0xff]  ;;  %v69_v12 = vld [vmem:[%s1642_s0 + $0xe8] sm:$0xff] }
  0x20   :  { %862 = vmatprep.subr.mxu0 %v1069_v0  ;;  %1012 = vmatprep.subr.mxu1 %v1069_v0  ;;  %v44_v11 = vld [vmem:[%s1642_s0 + $0x20] sm:$0xff]  ;;  %v45_v13 = vld [vmem:[%s1642_s0 + $0x28] sm:$0xff]  ;;  %v70_v14 = vld [vmem:[%s1642_s0 + $0xf0] sm:$0xff] }
  0x21   :  { %863 = vmatpush3.msra.mxu0 %v89_v2  ;;  %1014 = vmatpush3.msra.mxu1 %v89_v2  ;;  %v46_v15 = vld [vmem:[%s1642_s0 + $0x30] sm:$0xff]  ;;  %v71_v16 = vld [vmem:[%s1642_s0 + $0xf8] sm:$0xff]  ;;  %v72_v18 = vld [vmem:[%s1642_s0 + $0x100] sm:$0xff] }
  0x22   :  { %865 = vmatmul.mubr.msk.f32.vlgmr.msra.gmra.mxu0 %vm98_vm1, %v40_v3  ;;  %940 = vmatmul.mubr.msk.f32.vlgmr.msra.gmra.mxu1 %vm98_vm1, %v65_v4  ;;  %v47_v17 = vld [vmem:[%s1642_s0 + $0x38] sm:$0xff]  ;;  %v48_v19 = vld [vmem:[%s1642_s0 + $0x40] sm:$0xff]  ;;  %v73_v20 = vld [vmem:[%s1642_s0 + $0x108] sm:$0xff] }
  0x23   :  { %867 = vmatprep.mubr.msk.f32.mxu0 %vm1070_vm0, %v1069_v0  ;;  %942 = vmatprep.mubr.msk.f32.mxu1 %vm1070_vm0, %v1069_v0  ;;  %v49_v21 = vld [vmem:[%s1642_s0 + $0x48] sm:$0xff]  ;;  %v74_v22 = vld [vmem:[%s1642_s0 + $0x110] sm:$0xff]  ;;  %v75_v24 = vld [vmem:[%s1642_s0 + $0x118] sm:$0xff] }
  0x24   :  { %v50_v23 = vld [vmem:[%s1642_s0 + $0x50] sm:$0xff]  ;;  %v51_v25 = vld [vmem:[%s1642_s0 + $0x58] sm:$0xff]  ;;  %v76_v26 = vld [vmem:[%s1642_s0 + $0x120] sm:$0xff] }
  0x25   :  { %v52_v27 = vld [vmem:[%s1642_s0 + $0x60] sm:$0xff]  ;;  %v77_v28 = vld [vmem:[%s1642_s0 + $0x128] sm:$0xff]  ;;  %v78_v30 = vld [vmem:[%s1642_s0 + $0x130] sm:$0xff] }
  0x26   :  { %868 = vmatmul.mubr.msk.f32.gmra.mxu0 %vm98_vm1, %v41_v5  ;;  %943 = vmatmul.mubr.msk.f32.gmra.mxu1 %vm98_vm1, %v66_v6  ;;  %v53_v29 = vld [vmem:[%s1642_s0 + $0x68] sm:$0xff]  ;;  %v54_v31 = vld [vmem:[%s1642_s0 + $0x70] sm:$0xff]  ;;  %v79_v32 = vld [vmem:[%s1642_s0 + $0x138] sm:$0xff] }
  0x27   :  { %870 = vmatprep.mubr.msk.f32.mxu0 %vm1070_vm0, %v1069_v0  ;;  %945 = vmatprep.mubr.msk.f32.mxu1 %vm1070_vm0, %v1069_v0  ;;  %v55_v33 = vld [vmem:[%s1642_s0 + $0x78] sm:$0xff]  ;;  %v80_v34 = vld [vmem:[%s1642_s0 + $0x140] sm:$0xff]  ;;  %v81_v36 = vld [vmem:[%s1642_s0 + $0x148] sm:$0xff] }
  0x28   :  { %v56_v35 = vld [vmem:[%s1642_s0 + $0x80] sm:$0xff]  ;;  %v57_v37 = vld [vmem:[%s1642_s0 + $0x88] sm:$0xff]  ;;  %v82_v38 = vld [vmem:[%s1642_s0 + $0x150] sm:$0xff] }
  0x29   :  { %v58_v39 = vld [vmem:[%s1642_s0 + $0x90] sm:$0xff]  ;;  %v83_v40 = vld [vmem:[%s1642_s0 + $0x158] sm:$0xff]  ;;  %v84_v42 = vld [vmem:[%s1642_s0 + $0x160] sm:$0xff] }
  0x2a   :  { %871 = vmatmul.mubr.msk.f32.gmra.mxu0 %vm98_vm1, %v42_v7  ;;  %946 = vmatmul.mubr.msk.f32.gmra.mxu1 %vm98_vm1, %v67_v8  ;;  %v59_v41 = vld [vmem:[%s1642_s0 + $0x98] sm:$0xff]  ;;  %v60_v43 = vld [vmem:[%s1642_s0 + $0xa0] sm:$0xff]  ;;  %v85_v44 = vld [vmem:[%s1642_s0 + $0x168] sm:$0xff] }
  0x2b   :  { %873 = vmatprep.mubr.msk.f32.mxu0 %vm1070_vm0, %v1069_v0  ;;  %948 = vmatprep.mubr.msk.f32.mxu1 %vm1070_vm0, %v1069_v0  ;;  %v61_v45 = vld [vmem:[%s1642_s0 + $0xa8] sm:$0xff]  ;;  %v86_v46 = vld [vmem:[%s1642_s0 + $0x170] sm:$0xff]  ;;  %v87_v48 = vld [vmem:[%s1642_s0 + $0x178] sm:$0xff] }
  0x2c   :  { %v62_v47 = vld [vmem:[%s1642_s0 + $0xb0] sm:$0xff]  ;;  %v63_v49 = vld [vmem:[%s1642_s0 + $0xb8] sm:$0xff]  ;;  %v88_v50 = vld [vmem:[%s1642_s0 + $0x180] sm:$0xff] }
  0x2d   :  { %v64_v51 = vld [vmem:[%s1642_s0 + $0xc0] sm:$0xff]  ;;  %v1395_v52 = vld [vmem:[#allocation4] ss:$0 sm:$0xff] }
  0x2e   :  { %874 = vmatmul.mubr.msk.f32.gmra.mxu0 %vm98_vm1, %v43_v9  ;;  %949 = vmatmul.mubr.msk.f32.gmra.mxu1 %vm98_vm1, %v68_v10 }
  0x2f   :  { %876 = vmatprep.mubr.msk.f32.mxu0 %vm1070_vm0, %v1069_v0  ;;  %951 = vmatprep.mubr.msk.f32.mxu1 %vm1070_vm0, %v1069_v0 }
  0x32   :  { %877 = vmatmul.mubr.msk.f32.gmra.mxu0 %vm98_vm1, %v44_v11  ;;  %952 = vmatmul.mubr.msk.f32.gmra.mxu1 %vm98_vm1, %v69_v12 }
  0x33   :  { %879 = vmatprep.mubr.msk.f32.mxu0 %vm1070_vm0, %v1069_v0  ;;  %954 = vmatprep.mubr.msk.f32.mxu1 %vm1070_vm0, %v1069_v0 }
  0x36   :  { %880 = vmatmul.mubr.msk.f32.gmra.mxu0 %vm98_vm1, %v45_v13  ;;  %955 = vmatmul.mubr.msk.f32.gmra.mxu1 %vm98_vm1, %v70_v14 }
  0x37   :  { %882 = vmatprep.mubr.msk.f32.mxu0 %vm1070_vm0, %v1069_v0  ;;  %957 = vmatprep.mubr.msk.f32.mxu1 %vm1070_vm0, %v1069_v0 }
  0x3a   :  { %883 = vmatmul.mubr.msk.f32.gmra.mxu0 %vm98_vm1, %v46_v15  ;;  %958 = vmatmul.mubr.msk.f32.gmra.mxu1 %vm98_vm1, %v71_v16 }
  0x3b   :  { %885 = vmatprep.mubr.msk.f32.mxu0 %vm1070_vm0, %v1069_v0  ;;  %960 = vmatprep.mubr.msk.f32.mxu1 %vm1070_vm0, %v1069_v0 }
  0x3e   :  { %886 = vmatmul.mubr.msk.f32.gmra.mxu0 %vm98_vm1, %v47_v17  ;;  %961 = vmatmul.mubr.msk.f32.gmra.mxu1 %vm98_vm1, %v72_v18 }
  0x3f   :  { %888 = vmatprep.mubr.msk.f32.mxu0 %vm1070_vm0, %v1069_v0  ;;  %963 = vmatprep.mubr.msk.f32.mxu1 %vm1070_vm0, %v1069_v0 }
  0x42   :  { %889 = vmatmul.mubr.msk.f32.gmra.mxu0 %vm98_vm1, %v48_v19  ;;  %964 = vmatmul.mubr.msk.f32.gmra.mxu1 %vm98_vm1, %v73_v20 }
  0x43   :  { %891 = vmatprep.mubr.msk.f32.mxu0 %vm1070_vm0, %v1069_v0  ;;  %966 = vmatprep.mubr.msk.f32.mxu1 %vm1070_vm0, %v1069_v0 }
  0x46   :  { %892 = vmatmul.mubr.msk.f32.gmra.mxu0 %vm98_vm1, %v49_v21  ;;  %967 = vmatmul.mubr.msk.f32.gmra.mxu1 %vm98_vm1, %v74_v22 }
  0x47   :  { %894 = vmatprep.mubr.msk.f32.mxu0 %vm1070_vm0, %v1069_v0  ;;  %969 = vmatprep.mubr.msk.f32.mxu1 %vm1070_vm0, %v1069_v0 }
  0x4a   :  { %895 = vmatmul.mubr.msk.f32.gmra.mxu0 %vm98_vm1, %v50_v23  ;;  %970 = vmatmul.mubr.msk.f32.gmra.mxu1 %vm98_vm1, %v75_v24 }
  0x4b   :  { %897 = vmatprep.mubr.msk.f32.mxu0 %vm1070_vm0, %v1069_v0  ;;  %972 = vmatprep.mubr.msk.f32.mxu1 %vm1070_vm0, %v1069_v0 }
  0x4e   :  { %898 = vmatmul.mubr.msk.f32.gmra.mxu0 %vm98_vm1, %v51_v25  ;;  %973 = vmatmul.mubr.msk.f32.gmra.mxu1 %vm98_vm1, %v76_v26 }
  0x4f   :  { %900 = vmatprep.mubr.msk.f32.mxu0 %vm1070_vm0, %v1069_v0  ;;  %975 = vmatprep.mubr.msk.f32.mxu1 %vm1070_vm0, %v1069_v0 }
  0x52   :  { %901 = vmatmul.mubr.msk.f32.gmra.mxu0 %vm98_vm1, %v52_v27  ;;  %976 = vmatmul.mubr.msk.f32.gmra.mxu1 %vm98_vm1, %v77_v28 }
  0x53   :  { %903 = vmatprep.mubr.msk.f32.mxu0 %vm1070_vm0, %v1069_v0  ;;  %978 = vmatprep.mubr.msk.f32.mxu1 %vm1070_vm0, %v1069_v0 }
  0x56   :  { %904 = vmatmul.mubr.msk.f32.gmra.mxu0 %vm98_vm1, %v53_v29  ;;  %979 = vmatmul.mubr.msk.f32.gmra.mxu1 %vm98_vm1, %v78_v30 }
  0x57   :  { %906 = vmatprep.mubr.msk.f32.mxu0 %vm1070_vm0, %v1069_v0  ;;  %981 = vmatprep.mubr.msk.f32.mxu1 %vm1070_vm0, %v1069_v0 }
  0x5a   :  { %907 = vmatmul.mubr.msk.f32.gmra.mxu0 %vm98_vm1, %v54_v31  ;;  %982 = vmatmul.mubr.msk.f32.gmra.mxu1 %vm98_vm1, %v79_v32 }
  0x5b   :  { %909 = vmatprep.mubr.msk.f32.mxu0 %vm1070_vm0, %v1069_v0  ;;  %984 = vmatprep.mubr.msk.f32.mxu1 %vm1070_vm0, %v1069_v0 }
  0x5e   :  { %910 = vmatmul.mubr.msk.f32.gmra.mxu0 %vm98_vm1, %v55_v33  ;;  %985 = vmatmul.mubr.msk.f32.gmra.mxu1 %vm98_vm1, %v80_v34 }
  0x5f   :  { %912 = vmatprep.mubr.msk.f32.mxu0 %vm1070_vm0, %v1069_v0  ;;  %987 = vmatprep.mubr.msk.f32.mxu1 %vm1070_vm0, %v1069_v0 }
  0x62   :  { %913 = vmatmul.mubr.msk.f32.gmra.mxu0 %vm98_vm1, %v56_v35  ;;  %988 = vmatmul.mubr.msk.f32.gmra.mxu1 %vm98_vm1, %v81_v36 }
  0x63   :  { %915 = vmatprep.mubr.msk.f32.mxu0 %vm1070_vm0, %v1069_v0  ;;  %990 = vmatprep.mubr.msk.f32.mxu1 %vm1070_vm0, %v1069_v0 }
  0x66   :  { %916 = vmatmul.mubr.msk.f32.gmra.mxu0 %vm98_vm1, %v57_v37  ;;  %991 = vmatmul.mubr.msk.f32.gmra.mxu1 %vm98_vm1, %v82_v38 }
  0x67   :  { %918 = vmatprep.mubr.msk.f32.mxu0 %vm1070_vm0, %v1069_v0  ;;  %993 = vmatprep.mubr.msk.f32.mxu1 %vm1070_vm0, %v1069_v0 }
  0x6a   :  { %919 = vmatmul.mubr.msk.f32.gmra.mxu0 %vm98_vm1, %v58_v39  ;;  %994 = vmatmul.mubr.msk.f32.gmra.mxu1 %vm98_vm1, %v83_v40 }
  0x6b   :  { %921 = vmatprep.mubr.msk.f32.mxu0 %vm1070_vm0, %v1069_v0  ;;  %996 = vmatprep.mubr.msk.f32.mxu1 %vm1070_vm0, %v1069_v0 }
  0x6e   :  { %922 = vmatmul.mubr.msk.f32.gmra.mxu0 %vm98_vm1, %v59_v41  ;;  %997 = vmatmul.mubr.msk.f32.gmra.mxu1 %vm98_vm1, %v84_v42 }
  0x6f   :  { %924 = vmatprep.mubr.msk.f32.mxu0 %vm1070_vm0, %v1069_v0  ;;  %999 = vmatprep.mubr.msk.f32.mxu1 %vm1070_vm0, %v1069_v0 }
  0x72   :  { %925 = vmatmul.mubr.msk.f32.gmra.mxu0 %vm98_vm1, %v60_v43  ;;  %1000 = vmatmul.mubr.msk.f32.gmra.mxu1 %vm98_vm1, %v85_v44 }
  0x73   :  { %927 = vmatprep.mubr.msk.f32.mxu0 %vm1070_vm0, %v1069_v0  ;;  %1002 = vmatprep.mubr.msk.f32.mxu1 %vm1070_vm0, %v1069_v0 }
  0x76   :  { %928 = vmatmul.mubr.msk.f32.gmra.mxu0 %vm98_vm1, %v61_v45  ;;  %1003 = vmatmul.mubr.msk.f32.gmra.mxu1 %vm98_vm1, %v86_v46 }
  0x77   :  { %930 = vmatprep.mubr.msk.f32.mxu0 %vm1070_vm0, %v1069_v0  ;;  %1005 = vmatprep.mubr.msk.f32.mxu1 %vm1070_vm0, %v1069_v0 }
  0x7a   :  { %931 = vmatmul.mubr.msk.f32.gmra.mxu0 %vm98_vm1, %v62_v47  ;;  %1006 = vmatmul.mubr.msk.f32.gmra.mxu1 %vm98_vm1, %v87_v48 }
  0x7b   :  { %933 = vmatprep.mubr.msk.f32.mxu0 %vm1070_vm0, %v1069_v0  ;;  %1008 = vmatprep.mubr.msk.f32.mxu1 %vm1070_vm0, %v1069_v0 }
  0x7e   :  { %934 = vmatmul.mubr.msk.f32.gmra.mxu0 %vm98_vm1, %v63_v49  ;;  %1009 = vmatmul.mubr.msk.f32.gmra.mxu1 %vm98_vm1, %v88_v50 }
  0x7f   :  { %936 = vmatprep.mubr.msk.f32.mxu0 %vm1070_vm0, %v1069_v0 }
  0x82   :  { %937 = vmatmul.mubr.msk.f32.gmra.mxu0 %vm98_vm1, %v64_v51 }
  0xe2   :  { %v312_v53 = vpop.f32.mrf.mxu0  ;;  %v437_v54 = vpop.f32.mrf.mxu1 }
  0xe3   :  { %v313_v55 = vadd.f32 %v1395_v52, %v312_v53  ;;  %v438_v56 = vadd.f32 %v1395_v52, %v437_v54 }
  0xe4   :  { %v866_v57 = vpop.f32.mrf.mxu0  ;;  %v941_v58 = vpop.f32.mrf.mxu1 }
  0xe5   :  { %vm556_vm3 = vcmp.ge.f32.partialorder %v313_v55, 0.0  ;;  %v605_v59 = vmul.f32 0.2, %v313_v55  ;;  %vm581_vm4 = vcmp.ge.f32.partialorder %v438_v56, 0.0  ;;  %v630_v60 = vmul.f32 0.2, %v438_v56 }
  0xe6   :  { %v317_v61 = vpop.f32.mrf.mxu0  ;;  %v442_v62 = vpop.f32.mrf.mxu1 }
  0xe7   :  { %v654_v63 = vsel %vm556_vm3, %v313_v55, %v605_v59  ;;  %v679_v0 = vsel %vm581_vm4, %v438_v56, %v630_v60  ;;  %v318_v1 = vadd.f32 %v1395_v52, %v317_v61  ;;  %v443_v2 = vadd.f32 %v1395_v52, %v442_v62 }
  0xe8   :  { %704 = vst.msk [vmem:[%s1645_s3] sm:$0xff] %vm703_vm2, %v654_v63  ;;  %729 = vst.msk [vmem:[%s1645_s3 + $0xc8] sm:$0xff] %vm703_vm2, %v679_v0  ;;  %v869_v3 = vpop.f32.mrf.mxu0  ;;  %v944_v4 = vpop.f32.mrf.mxu1 }
  0xe9   :  { %vm557_vm5 = vcmp.ge.f32.partialorder %v318_v1, 0.0  ;;  %v606_v5 = vmul.f32 0.2, %v318_v1  ;;  %vm582_vm6 = vcmp.ge.f32.partialorder %v443_v2, 0.0  ;;  %v631_v6 = vmul.f32 0.2, %v443_v2 }
  0xea   :  { %v322_v7 = vpop.f32.mrf.mxu0  ;;  %v447_v8 = vpop.f32.mrf.mxu1 }
  0xeb   :  { %v655_v9 = vsel %vm557_vm5, %v318_v1, %v606_v5  ;;  %v680_v10 = vsel %vm582_vm6, %v443_v2, %v631_v6  ;;  %v323_v11 = vadd.f32 %v1395_v52, %v322_v7  ;;  %v448_v12 = vadd.f32 %v1395_v52, %v447_v8 }
  0xec   :  { %705 = vst.msk [vmem:[%s1645_s3 + $0x8] sm:$0xff] %vm703_vm2, %v655_v9  ;;  %730 = vst.msk [vmem:[%s1645_s3 + $0xd0] sm:$0xff] %vm703_vm2, %v680_v10  ;;  %v872_v13 = vpop.f32.mrf.mxu0  ;;  %v947_v14 = vpop.f32.mrf.mxu1 }
  0xed   :  { %vm558_vm7 = vcmp.ge.f32.partialorder %v323_v11, 0.0  ;;  %v607_v15 = vmul.f32 0.2, %v323_v11  ;;  %vm583_vm8 = vcmp.ge.f32.partialorder %v448_v12, 0.0  ;;  %v632_v16 = vmul.f32 0.2, %v448_v12 }
  0xee   :  { %v327_v17 = vpop.f32.mrf.mxu0  ;;  %v452_v18 = vpop.f32.mrf.mxu1 }
  0xef   :  { %v656_v19 = vsel %vm558_vm7, %v323_v11, %v607_v15  ;;  %v681_v20 = vsel %vm583_vm8, %v448_v12, %v632_v16  ;;  %v328_v21 = vadd.f32 %v1395_v52, %v327_v17  ;;  %v453_v22 = vadd.f32 %v1395_v52, %v452_v18 }
  0xf0   :  { %706 = vst.msk [vmem:[%s1645_s3 + $0x10] sm:$0xff] %vm703_vm2, %v656_v19  ;;  %731 = vst.msk [vmem:[%s1645_s3 + $0xd8] sm:$0xff] %vm703_vm2, %v681_v20  ;;  %v875_v23 = vpop.f32.mrf.mxu0  ;;  %v950_v24 = vpop.f32.mrf.mxu1 }
  0xf1   :  { %vm559_vm9 = vcmp.ge.f32.partialorder %v328_v21, 0.0  ;;  %v608_v25 = vmul.f32 0.2, %v328_v21  ;;  %vm584_vm10 = vcmp.ge.f32.partialorder %v453_v22, 0.0  ;;  %v633_v26 = vmul.f32 0.2, %v453_v22 }
  0xf2   :  { %v332_v27 = vpop.f32.mrf.mxu0  ;;  %v457_v28 = vpop.f32.mrf.mxu1 }
  0xf3   :  { %v657_v29 = vsel %vm559_vm9, %v328_v21, %v608_v25  ;;  %v682_v30 = vsel %vm584_vm10, %v453_v22, %v633_v26  ;;  %v333_v31 = vadd.f32 %v1395_v52, %v332_v27  ;;  %v458_v32 = vadd.f32 %v1395_v52, %v457_v28 }
  0xf4   :  { %707 = vst.msk [vmem:[%s1645_s3 + $0x18] sm:$0xff] %vm703_vm2, %v657_v29  ;;  %732 = vst.msk [vmem:[%s1645_s3 + $0xe0] sm:$0xff] %vm703_vm2, %v682_v30  ;;  %v878_v33 = vpop.f32.mrf.mxu0  ;;  %v953_v34 = vpop.f32.mrf.mxu1 }
  0xf5   :  { %vm560_vm11 = vcmp.ge.f32.partialorder %v333_v31, 0.0  ;;  %v609_v35 = vmul.f32 0.2, %v333_v31  ;;  %vm585_vm12 = vcmp.ge.f32.partialorder %v458_v32, 0.0  ;;  %v634_v36 = vmul.f32 0.2, %v458_v32 }
  0xf6   :  { %v337_v37 = vpop.f32.mrf.mxu0  ;;  %v462_v38 = vpop.f32.mrf.mxu1 }
  0xf7   :  { %v658_v39 = vsel %vm560_vm11, %v333_v31, %v609_v35  ;;  %v683_v40 = vsel %vm585_vm12, %v458_v32, %v634_v36  ;;  %v338_v41 = vadd.f32 %v1395_v52, %v337_v37  ;;  %v463_v42 = vadd.f32 %v1395_v52, %v462_v38 }
  0xf8   :  { %708 = vst.msk [vmem:[%s1645_s3 + $0x20] sm:$0xff] %vm703_vm2, %v658_v39  ;;  %733 = vst.msk [vmem:[%s1645_s3 + $0xe8] sm:$0xff] %vm703_vm2, %v683_v40  ;;  %v881_v43 = vpop.f32.mrf.mxu0  ;;  %v956_v44 = vpop.f32.mrf.mxu1 }
  0xf9   :  { %vm561_vm13 = vcmp.ge.f32.partialorder %v338_v41, 0.0  ;;  %v610_v45 = vmul.f32 0.2, %v338_v41  ;;  %vm586_vm14 = vcmp.ge.f32.partialorder %v463_v42, 0.0  ;;  %v635_v46 = vmul.f32 0.2, %v463_v42 }
  0xfa   :  { %v342_v47 = vpop.f32.mrf.mxu0  ;;  %v467_v48 = vpop.f32.mrf.mxu1 }
  0xfb   :  { %v659_v49 = vsel %vm561_vm13, %v338_v41, %v610_v45  ;;  %v684_v50 = vsel %vm586_vm14, %v463_v42, %v635_v46  ;;  %v343_v51 = vadd.f32 %v1395_v52, %v342_v47  ;;  %v468_v53 = vadd.f32 %v1395_v52, %v467_v48 }
  0xfc   :  { %709 = vst.msk [vmem:[%s1645_s3 + $0x28] sm:$0xff] %vm703_vm2, %v659_v49  ;;  %734 = vst.msk [vmem:[%s1645_s3 + $0xf0] sm:$0xff] %vm703_vm2, %v684_v50  ;;  %v884_v54 = vpop.f32.mrf.mxu0  ;;  %v959_v55 = vpop.f32.mrf.mxu1 }
  0xfd   :  { %vm562_vm15 = vcmp.ge.f32.partialorder %v343_v51, 0.0  ;;  %v611_v56 = vmul.f32 0.2, %v343_v51  ;;  %vm587_vm0 = vcmp.ge.f32.partialorder %v468_v53, 0.0  ;;  %v636_v57 = vmul.f32 0.2, %v468_v53 }
  0xfe   :  { %v347_v58 = vpop.f32.mrf.mxu0  ;;  %v472_v59 = vpop.f32.mrf.mxu1 }
  0xff   :  { %v660_v60 = vsel %vm562_vm15, %v343_v51, %v611_v56  ;;  %v685_v61 = vsel %vm587_vm0, %v468_v53, %v636_v57  ;;  %v348_v62 = vadd.f32 %v1395_v52, %v347_v58  ;;  %v473_v63 = vadd.f32 %v1395_v52, %v472_v59 }
 0x100   :  { %710 = vst.msk [vmem:[%s1645_s3 + $0x30] sm:$0xff] %vm703_vm2, %v660_v60  ;;  %735 = vst.msk [vmem:[%s1645_s3 + $0xf8] sm:$0xff] %vm703_vm2, %v685_v61  ;;  %v887_v0 = vpop.f32.mrf.mxu0  ;;  %v962_v1 = vpop.f32.mrf.mxu1 }
 0x101   :  { %vm563_vm1 = vcmp.ge.f32.partialorder %v348_v62, 0.0  ;;  %v612_v2 = vmul.f32 0.2, %v348_v62  ;;  %vm588_vm3 = vcmp.ge.f32.partialorder %v473_v63, 0.0  ;;  %v637_v3 = vmul.f32 0.2, %v473_v63 }
 0x102   :  { %v352_v4 = vpop.f32.mrf.mxu0  ;;  %v477_v5 = vpop.f32.mrf.mxu1 }
 0x103   :  { %v661_v6 = vsel %vm563_vm1, %v348_v62, %v612_v2  ;;  %v686_v7 = vsel %vm588_vm3, %v473_v63, %v637_v3  ;;  %v353_v8 = vadd.f32 %v1395_v52, %v352_v4  ;;  %v478_v9 = vadd.f32 %v1395_v52, %v477_v5 }
 0x104   :  { %711 = vst.msk [vmem:[%s1645_s3 + $0x38] sm:$0xff] %vm703_vm2, %v661_v6  ;;  %736 = vst.msk [vmem:[%s1645_s3 + $0x100] sm:$0xff] %vm703_vm2, %v686_v7  ;;  %v890_v10 = vpop.f32.mrf.mxu0  ;;  %v965_v11 = vpop.f32.mrf.mxu1 }
 0x105   :  { %vm564_vm4 = vcmp.ge.f32.partialorder %v353_v8, 0.0  ;;  %v613_v12 = vmul.f32 0.2, %v353_v8  ;;  %vm589_vm5 = vcmp.ge.f32.partialorder %v478_v9, 0.0  ;;  %v638_v13 = vmul.f32 0.2, %v478_v9 }
 0x106   :  { %v357_v14 = vpop.f32.mrf.mxu0  ;;  %v482_v15 = vpop.f32.mrf.mxu1 }
 0x107   :  { %v662_v16 = vsel %vm564_vm4, %v353_v8, %v613_v12  ;;  %v687_v17 = vsel %vm589_vm5, %v478_v9, %v638_v13  ;;  %v358_v18 = vadd.f32 %v1395_v52, %v357_v14  ;;  %v483_v19 = vadd.f32 %v1395_v52, %v482_v15 }
 0x108   :  { %712 = vst.msk [vmem:[%s1645_s3 + $0x40] sm:$0xff] %vm703_vm2, %v662_v16  ;;  %737 = vst.msk [vmem:[%s1645_s3 + $0x108] sm:$0xff] %vm703_vm2, %v687_v17  ;;  %v893_v20 = vpop.f32.mrf.mxu0  ;;  %v968_v21 = vpop.f32.mrf.mxu1 }
 0x109   :  { %vm565_vm6 = vcmp.ge.f32.partialorder %v358_v18, 0.0  ;;  %v614_v22 = vmul.f32 0.2, %v358_v18  ;;  %vm590_vm7 = vcmp.ge.f32.partialorder %v483_v19, 0.0  ;;  %v639_v23 = vmul.f32 0.2, %v483_v19 }
 0x10a   :  { %v362_v24 = vpop.f32.mrf.mxu0  ;;  %v487_v25 = vpop.f32.mrf.mxu1 }
 0x10b   :  { %v663_v26 = vsel %vm565_vm6, %v358_v18, %v614_v22  ;;  %v688_v27 = vsel %vm590_vm7, %v483_v19, %v639_v23  ;;  %v363_v28 = vadd.f32 %v1395_v52, %v362_v24  ;;  %v488_v29 = vadd.f32 %v1395_v52, %v487_v25 }
 0x10c   :  { %713 = vst.msk [vmem:[%s1645_s3 + $0x48] sm:$0xff] %vm703_vm2, %v663_v26  ;;  %738 = vst.msk [vmem:[%s1645_s3 + $0x110] sm:$0xff] %vm703_vm2, %v688_v27  ;;  %v896_v30 = vpop.f32.mrf.mxu0  ;;  %v971_v31 = vpop.f32.mrf.mxu1 }
 0x10d   :  { %vm566_vm8 = vcmp.ge.f32.partialorder %v363_v28, 0.0  ;;  %v615_v32 = vmul.f32 0.2, %v363_v28  ;;  %vm591_vm9 = vcmp.ge.f32.partialorder %v488_v29, 0.0  ;;  %v640_v33 = vmul.f32 0.2, %v488_v29 }
 0x10e   :  { %v367_v34 = vpop.f32.mrf.mxu0  ;;  %v492_v35 = vpop.f32.mrf.mxu1 }
 0x10f   :  { %v664_v36 = vsel %vm566_vm8, %v363_v28, %v615_v32  ;;  %v689_v37 = vsel %vm591_vm9, %v488_v29, %v640_v33  ;;  %v368_v38 = vadd.f32 %v1395_v52, %v367_v34  ;;  %v493_v39 = vadd.f32 %v1395_v52, %v492_v35 }
 0x110   :  { %714 = vst.msk [vmem:[%s1645_s3 + $0x50] sm:$0xff] %vm703_vm2, %v664_v36  ;;  %739 = vst.msk [vmem:[%s1645_s3 + $0x118] sm:$0xff] %vm703_vm2, %v689_v37  ;;  %v899_v40 = vpop.f32.mrf.mxu0  ;;  %v974_v41 = vpop.f32.mrf.mxu1 }
 0x111   :  { %vm567_vm10 = vcmp.ge.f32.partialorder %v368_v38, 0.0  ;;  %v616_v42 = vmul.f32 0.2, %v368_v38  ;;  %vm592_vm11 = vcmp.ge.f32.partialorder %v493_v39, 0.0  ;;  %v641_v43 = vmul.f32 0.2, %v493_v39 }
 0x112   :  { %v372_v44 = vpop.f32.mrf.mxu0  ;;  %v497_v45 = vpop.f32.mrf.mxu1 }
 0x113   :  { %v665_v46 = vsel %vm567_vm10, %v368_v38, %v616_v42  ;;  %v690_v47 = vsel %vm592_vm11, %v493_v39, %v641_v43  ;;  %v373_v48 = vadd.f32 %v1395_v52, %v372_v44  ;;  %v498_v49 = vadd.f32 %v1395_v52, %v497_v45 }
 0x114   :  { %715 = vst.msk [vmem:[%s1645_s3 + $0x58] sm:$0xff] %vm703_vm2, %v665_v46  ;;  %740 = vst.msk [vmem:[%s1645_s3 + $0x120] sm:$0xff] %vm703_vm2, %v690_v47  ;;  %v902_v50 = vpop.f32.mrf.mxu0  ;;  %v977_v51 = vpop.f32.mrf.mxu1 }
 0x115   :  { %vm568_vm12 = vcmp.ge.f32.partialorder %v373_v48, 0.0  ;;  %v617_v53 = vmul.f32 0.2, %v373_v48  ;;  %vm593_vm13 = vcmp.ge.f32.partialorder %v498_v49, 0.0  ;;  %v642_v54 = vmul.f32 0.2, %v498_v49 }
 0x116   :  { %v377_v55 = vpop.f32.mrf.mxu0  ;;  %v502_v56 = vpop.f32.mrf.mxu1 }
 0x117   :  { %v666_v57 = vsel %vm568_vm12, %v373_v48, %v617_v53  ;;  %v691_v58 = vsel %vm593_vm13, %v498_v49, %v642_v54  ;;  %v378_v59 = vadd.f32 %v1395_v52, %v377_v55  ;;  %v503_v60 = vadd.f32 %v1395_v52, %v502_v56 }
 0x118   :  { %716 = vst.msk [vmem:[%s1645_s3 + $0x60] sm:$0xff] %vm703_vm2, %v666_v57  ;;  %741 = vst.msk [vmem:[%s1645_s3 + $0x128] sm:$0xff] %vm703_vm2, %v691_v58  ;;  %v905_v61 = vpop.f32.mrf.mxu0  ;;  %v980_v62 = vpop.f32.mrf.mxu1 }
 0x119   :  { %vm569_vm14 = vcmp.ge.f32.partialorder %v378_v59, 0.0  ;;  %v618_v63 = vmul.f32 0.2, %v378_v59  ;;  %vm594_vm15 = vcmp.ge.f32.partialorder %v503_v60, 0.0  ;;  %v643_v0 = vmul.f32 0.2, %v503_v60 }
 0x11a   :  { %v382_v1 = vpop.f32.mrf.mxu0  ;;  %v507_v2 = vpop.f32.mrf.mxu1 }
 0x11b   :  { %v667_v3 = vsel %vm569_vm14, %v378_v59, %v618_v63  ;;  %v692_v4 = vsel %vm594_vm15, %v503_v60, %v643_v0  ;;  %v383_v5 = vadd.f32 %v1395_v52, %v382_v1  ;;  %v508_v6 = vadd.f32 %v1395_v52, %v507_v2 }
 0x11c   :  { %717 = vst.msk [vmem:[%s1645_s3 + $0x68] sm:$0xff] %vm703_vm2, %v667_v3  ;;  %742 = vst.msk [vmem:[%s1645_s3 + $0x130] sm:$0xff] %vm703_vm2, %v692_v4  ;;  %v908_v7 = vpop.f32.mrf.mxu0  ;;  %v983_v8 = vpop.f32.mrf.mxu1 }
 0x11d   :  { %vm570_vm0 = vcmp.ge.f32.partialorder %v383_v5, 0.0  ;;  %v619_v9 = vmul.f32 0.2, %v383_v5  ;;  %vm595_vm1 = vcmp.ge.f32.partialorder %v508_v6, 0.0  ;;  %v644_v10 = vmul.f32 0.2, %v508_v6 }
 0x11e   :  { %v387_v11 = vpop.f32.mrf.mxu0  ;;  %v512_v12 = vpop.f32.mrf.mxu1 }
 0x11f   :  { %v668_v13 = vsel %vm570_vm0, %v383_v5, %v619_v9  ;;  %v693_v14 = vsel %vm595_vm1, %v508_v6, %v644_v10  ;;  %v388_v15 = vadd.f32 %v1395_v52, %v387_v11  ;;  %v513_v16 = vadd.f32 %v1395_v52, %v512_v12 }
 0x120   :  { %718 = vst.msk [vmem:[%s1645_s3 + $0x70] sm:$0xff] %vm703_vm2, %v668_v13  ;;  %743 = vst.msk [vmem:[%s1645_s3 + $0x138] sm:$0xff] %vm703_vm2, %v693_v14  ;;  %v911_v17 = vpop.f32.mrf.mxu0  ;;  %v986_v18 = vpop.f32.mrf.mxu1 }
 0x121   :  { %vm571_vm3 = vcmp.ge.f32.partialorder %v388_v15, 0.0  ;;  %v620_v19 = vmul.f32 0.2, %v388_v15  ;;  %vm596_vm4 = vcmp.ge.f32.partialorder %v513_v16, 0.0  ;;  %v645_v20 = vmul.f32 0.2, %v513_v16 }
 0x122   :  { %v392_v21 = vpop.f32.mrf.mxu0  ;;  %v517_v22 = vpop.f32.mrf.mxu1 }
 0x123   :  { %v669_v23 = vsel %vm571_vm3, %v388_v15, %v620_v19  ;;  %v694_v24 = vsel %vm596_vm4, %v513_v16, %v645_v20  ;;  %v393_v25 = vadd.f32 %v1395_v52, %v392_v21  ;;  %v518_v26 = vadd.f32 %v1395_v52, %v517_v22 }
 0x124   :  { %719 = vst.msk [vmem:[%s1645_s3 + $0x78] sm:$0xff] %vm703_vm2, %v669_v23  ;;  %744 = vst.msk [vmem:[%s1645_s3 + $0x140] sm:$0xff] %vm703_vm2, %v694_v24  ;;  %v914_v27 = vpop.f32.mrf.mxu0  ;;  %v989_v28 = vpop.f32.mrf.mxu1 }
 0x125   :  { %vm572_vm5 = vcmp.ge.f32.partialorder %v393_v25, 0.0  ;;  %v621_v29 = vmul.f32 0.2, %v393_v25  ;;  %vm597_vm6 = vcmp.ge.f32.partialorder %v518_v26, 0.0  ;;  %v646_v30 = vmul.f32 0.2, %v518_v26 }
 0x126   :  { %v397_v31 = vpop.f32.mrf.mxu0  ;;  %v522_v32 = vpop.f32.mrf.mxu1 }
 0x127   :  { %v670_v33 = vsel %vm572_vm5, %v393_v25, %v621_v29  ;;  %v695_v34 = vsel %vm597_vm6, %v518_v26, %v646_v30  ;;  %v398_v35 = vadd.f32 %v1395_v52, %v397_v31  ;;  %v523_v36 = vadd.f32 %v1395_v52, %v522_v32 }
 0x128   :  { %720 = vst.msk [vmem:[%s1645_s3 + $0x80] sm:$0xff] %vm703_vm2, %v670_v33  ;;  %745 = vst.msk [vmem:[%s1645_s3 + $0x148] sm:$0xff] %vm703_vm2, %v695_v34  ;;  %v917_v37 = vpop.f32.mrf.mxu0  ;;  %v992_v38 = vpop.f32.mrf.mxu1 }
 0x129   :  { %vm573_vm7 = vcmp.ge.f32.partialorder %v398_v35, 0.0  ;;  %v622_v39 = vmul.f32 0.2, %v398_v35  ;;  %vm598_vm8 = vcmp.ge.f32.partialorder %v523_v36, 0.0  ;;  %v647_v40 = vmul.f32 0.2, %v523_v36 }
 0x12a   :  { %v402_v41 = vpop.f32.mrf.mxu0  ;;  %v527_v42 = vpop.f32.mrf.mxu1 }
 0x12b   :  { %v671_v43 = vsel %vm573_vm7, %v398_v35, %v622_v39  ;;  %v696_v44 = vsel %vm598_vm8, %v523_v36, %v647_v40  ;;  %v403_v45 = vadd.f32 %v1395_v52, %v402_v41  ;;  %v528_v46 = vadd.f32 %v1395_v52, %v527_v42 }
 0x12c   :  { %721 = vst.msk [vmem:[%s1645_s3 + $0x88] sm:$0xff] %vm703_vm2, %v671_v43  ;;  %746 = vst.msk [vmem:[%s1645_s3 + $0x150] sm:$0xff] %vm703_vm2, %v696_v44  ;;  %v920_v47 = vpop.f32.mrf.mxu0  ;;  %v995_v48 = vpop.f32.mrf.mxu1 }
 0x12d   :  { %vm574_vm9 = vcmp.ge.f32.partialorder %v403_v45, 0.0  ;;  %v623_v49 = vmul.f32 0.2, %v403_v45  ;;  %vm599_vm10 = vcmp.ge.f32.partialorder %v528_v46, 0.0  ;;  %v648_v50 = vmul.f32 0.2, %v528_v46 }
 0x12e   :  { %v407_v51 = vpop.f32.mrf.mxu0  ;;  %v532_v53 = vpop.f32.mrf.mxu1 }
 0x12f   :  { %v672_v54 = vsel %vm574_vm9, %v403_v45, %v623_v49  ;;  %v697_v55 = vsel %vm599_vm10, %v528_v46, %v648_v50  ;;  %v408_v56 = vadd.f32 %v1395_v52, %v407_v51  ;;  %v533_v57 = vadd.f32 %v1395_v52, %v532_v53 }
 0x130   :  { %722 = vst.msk [vmem:[%s1645_s3 + $0x90] sm:$0xff] %vm703_vm2, %v672_v54  ;;  %747 = vst.msk [vmem:[%s1645_s3 + $0x158] sm:$0xff] %vm703_vm2, %v697_v55  ;;  %v923_v58 = vpop.f32.mrf.mxu0  ;;  %v998_v59 = vpop.f32.mrf.mxu1 }
 0x131   :  { %vm575_vm11 = vcmp.ge.f32.partialorder %v408_v56, 0.0  ;;  %v624_v60 = vmul.f32 0.2, %v408_v56  ;;  %vm600_vm12 = vcmp.ge.f32.partialorder %v533_v57, 0.0  ;;  %v649_v61 = vmul.f32 0.2, %v533_v57 }
 0x132   :  { %v412_v62 = vpop.f32.mrf.mxu0  ;;  %v537_v63 = vpop.f32.mrf.mxu1 }
 0x133   :  { %v673_v0 = vsel %vm575_vm11, %v408_v56, %v624_v60  ;;  %v698_v1 = vsel %vm600_vm12, %v533_v57, %v649_v61  ;;  %v413_v2 = vadd.f32 %v1395_v52, %v412_v62  ;;  %v538_v3 = vadd.f32 %v1395_v52, %v537_v63 }
 0x134   :  { %723 = vst.msk [vmem:[%s1645_s3 + $0x98] sm:$0xff] %vm703_vm2, %v673_v0  ;;  %748 = vst.msk [vmem:[%s1645_s3 + $0x160] sm:$0xff] %vm703_vm2, %v698_v1  ;;  %v926_v4 = vpop.f32.mrf.mxu0  ;;  %v1001_v5 = vpop.f32.mrf.mxu1 }
 0x135   :  { %vm576_vm13 = vcmp.ge.f32.partialorder %v413_v2, 0.0  ;;  %v625_v6 = vmul.f32 0.2, %v413_v2  ;;  %vm601_vm14 = vcmp.ge.f32.partialorder %v538_v3, 0.0  ;;  %v650_v7 = vmul.f32 0.2, %v538_v3 }
 0x136   :  { %v417_v8 = vpop.f32.mrf.mxu0  ;;  %v542_v9 = vpop.f32.mrf.mxu1 }
 0x137   :  { %v674_v10 = vsel %vm576_vm13, %v413_v2, %v625_v6  ;;  %v699_v11 = vsel %vm601_vm14, %v538_v3, %v650_v7  ;;  %v418_v12 = vadd.f32 %v1395_v52, %v417_v8  ;;  %v543_v13 = vadd.f32 %v1395_v52, %v542_v9 }
 0x138   :  { %724 = vst.msk [vmem:[%s1645_s3 + $0xa0] sm:$0xff] %vm703_vm2, %v674_v10  ;;  %749 = vst.msk [vmem:[%s1645_s3 + $0x168] sm:$0xff] %vm703_vm2, %v699_v11  ;;  %v929_v14 = vpop.f32.mrf.mxu0  ;;  %v1004_v15 = vpop.f32.mrf.mxu1 }
 0x139   :  { %vm577_vm15 = vcmp.ge.f32.partialorder %v418_v12, 0.0  ;;  %v626_v16 = vmul.f32 0.2, %v418_v12  ;;  %vm602_vm0 = vcmp.ge.f32.partialorder %v543_v13, 0.0  ;;  %v651_v17 = vmul.f32 0.2, %v543_v13 }
 0x13a   :  { %v422_v18 = vpop.f32.mrf.mxu0  ;;  %v547_v19 = vpop.f32.mrf.mxu1 }
 0x13b   :  { %v675_v20 = vsel %vm577_vm15, %v418_v12, %v626_v16  ;;  %v700_v21 = vsel %vm602_vm0, %v543_v13, %v651_v17  ;;  %v423_v22 = vadd.f32 %v1395_v52, %v422_v18  ;;  %v548_v23 = vadd.f32 %v1395_v52, %v547_v19 }
 0x13c   :  { %725 = vst.msk [vmem:[%s1645_s3 + $0xa8] sm:$0xff] %vm703_vm2, %v675_v20  ;;  %750 = vst.msk [vmem:[%s1645_s3 + $0x170] sm:$0xff] %vm703_vm2, %v700_v21  ;;  %v932_v24 = vpop.f32.mrf.mxu0  ;;  %v1007_v25 = vpop.f32.mrf.mxu1 }
 0x13d   :  { %vm578_vm1 = vcmp.ge.f32.partialorder %v423_v22, 0.0  ;;  %v627_v26 = vmul.f32 0.2, %v423_v22  ;;  %vm603_vm3 = vcmp.ge.f32.partialorder %v548_v23, 0.0  ;;  %v652_v27 = vmul.f32 0.2, %v548_v23 }
 0x13e   :  { %v427_v28 = vpop.f32.mrf.mxu0  ;;  %v552_v29 = vpop.f32.mrf.mxu1 }
 0x13f   :  { %v676_v30 = vsel %vm578_vm1, %v423_v22, %v627_v26  ;;  %v701_v31 = vsel %vm603_vm3, %v548_v23, %v652_v27  ;;  %v428_v32 = vadd.f32 %v1395_v52, %v427_v28  ;;  %v553_v33 = vadd.f32 %v1395_v52, %v552_v29 }
 0x140   :  { %726 = vst.msk [vmem:[%s1645_s3 + $0xb0] sm:$0xff] %vm703_vm2, %v676_v30  ;;  %751 = vst.msk [vmem:[%s1645_s3 + $0x178] sm:$0xff] %vm703_vm2, %v701_v31  ;;  %v935_v34 = vpop.f32.mrf.mxu0  ;;  %v1010_v35 = vpop.f32.mrf.mxu1 }
 0x141   :  { %vm579_vm4 = vcmp.ge.f32.partialorder %v428_v32, 0.0  ;;  %v628_v36 = vmul.f32 0.2, %v428_v32  ;;  %vm604_vm5 = vcmp.ge.f32.partialorder %v553_v33, 0.0  ;;  %v653_v37 = vmul.f32 0.2, %v553_v33 }
 0x142   :  { %v432_v38 = vpop.f32.mrf.mxu0 }
 0x143   :  { %v677_v39 = vsel %vm579_vm4, %v428_v32, %v628_v36  ;;  %v702_v40 = vsel %vm604_vm5, %v553_v33, %v653_v37  ;;  %v433_v41 = vadd.f32 %v1395_v52, %v432_v38 }
 0x144   :  { %727 = vst.msk [vmem:[%s1645_s3 + $0xb8] sm:$0xff] %vm703_vm2, %v677_v39  ;;  %752 = vst.msk [vmem:[%s1645_s3 + $0x180] sm:$0xff] %vm703_vm2, %v702_v40  ;;  %v938_v42 = vpop.f32.mrf.mxu0 }
 0x145   :  { %vm580_vm6 = vcmp.ge.f32.partialorder %v433_v41, 0.0  ;;  %v629_v43 = vmul.f32 0.2, %v433_v41 }
 0x147   :  { %v678_v44 = vsel %vm580_vm6, %v433_v41, %v629_v43 }
 0x148   :  { %728 = vst.msk [vmem:[%s1645_s3 + $0xc0] sm:$0xff] %vm703_vm2, %v678_v44 }
 0x149   :  { %757 = vsyncpa [#allocation3], 1 }
 0x14a   :  { %758 = vsyncpa [#allocation5], 1 }

// kernel: fe_forward.4
= control target key start
LH: loop header
LB: loop body
LE: loop exit
PB: predicated region body
PF: predicated region fallthrough
CT: control target
= control target key end

     0   :  { %vm875_vm0 = vcmask 1041408   ;;  %s2230_s1 = inlined_call_operand.vmem [shape: f32[1024,128], index: 1, kind: input, shape index: {}]   ;;  %s2231_s0 = inlined_call_operand.vmem [shape: f32[98,1024], index: 0, kind: input, shape index: {}]   ;;  %s2232_s5 = inlined_call_operand.vmem [shape: f32[98,128], index: 5, kind: output, shape index: {}]   ;;  %s2233_s2 = inlined_call_operand.vmem [shape: f32[1,128], index: 2, kind: input, shape index: {}]   ;;  %s2234_s3 = inlined_call_operand.vmem [shape: f32[1,128], index: 3, kind: input, shape index: {}]   ;;  %s2235_s4 = inlined_call_operand.vmem [shape: f32[1,128], index: 4, kind: input, shape index: {}]  }
   0x1   :  { %v185_v0 = vld [vmem:[%s2230_s1 + $0xf8] sm:$0xff]  ;;  %v184_v4 = vld [vmem:[%s2230_s1 + $0xf0] sm:$0xff]  ;;  %v183_v8 = vld [vmem:[%s2230_s1 + $0xe8] sm:$0xff] }
   0x2   :  { %v217_v1 = vld [vmem:[%s2230_s1 + $0x1f8] sm:$0xff]  ;;  %1046 = vmatprep.subr.mxu0 %v185_v0  ;;  %v216_v5 = vld [vmem:[%s2230_s1 + $0x1f0] sm:$0xff]  ;;  %v215_v9 = vld [vmem:[%s2230_s1 + $0x1e8] sm:$0xff] }
   0x3   :  { %v169_v2 = vld [vmem:[%s2230_s1 + $0x78] sm:$0xff]  ;;  %1117 = vmatprep.subr.mxu1 %v217_v1  ;;  %v168_v6 = vld [vmem:[%s2230_s1 + $0x70] sm:$0xff]  ;;  %v167_v10 = vld [vmem:[%s2230_s1 + $0x68] sm:$0xff] }
   0x4   :  { %v201_v3 = vld [vmem:[%s2230_s1 + $0x178] sm:$0xff]  ;;  %1047 = vmatpush3.msra.mxu0 %v169_v2  ;;  %v200_v7 = vld [vmem:[%s2230_s1 + $0x170] sm:$0xff]  ;;  %v199_v11 = vld [vmem:[%s2230_s1 + $0x168] sm:$0xff] }
   0x5   :  { %1118 = vmatpush3.msra.mxu1 %v201_v3  ;;  %1048 = vmatprep.subr.mxu0 %v184_v4  ;;  %v182_v12 = vld [vmem:[%s2230_s1 + $0xe0] sm:$0xff]  ;;  %v181_v16 = vld [vmem:[%s2230_s1 + $0xd8] sm:$0xff]  ;;  %v180_v20 = vld [vmem:[%s2230_s1 + $0xd0] sm:$0xff] }
   0x6   :  { %1119 = vmatprep.subr.mxu1 %v216_v5  ;;  %1049 = vmatpush3.msra.mxu0 %v168_v6  ;;  %v214_v13 = vld [vmem:[%s2230_s1 + $0x1e0] sm:$0xff]  ;;  %v213_v17 = vld [vmem:[%s2230_s1 + $0x1d8] sm:$0xff]  ;;  %v212_v21 = vld [vmem:[%s2230_s1 + $0x1d0] sm:$0xff] }
   0x7   :  { %1120 = vmatpush3.msra.mxu1 %v200_v7  ;;  %1050 = vmatprep.subr.mxu0 %v183_v8  ;;  %v166_v14 = vld [vmem:[%s2230_s1 + $0x60] sm:$0xff]  ;;  %v165_v18 = vld [vmem:[%s2230_s1 + $0x58] sm:$0xff]  ;;  %v164_v22 = vld [vmem:[%s2230_s1 + $0x50] sm:$0xff] }
   0x8   :  { %1121 = vmatprep.subr.mxu1 %v215_v9  ;;  %v198_v15 = vld [vmem:[%s2230_s1 + $0x160] sm:$0xff]  ;;  %1051 = vmatpush3.msra.mxu0 %v167_v10  ;;  %v197_v19 = vld [vmem:[%s2230_s1 + $0x158] sm:$0xff]  ;;  %v196_v23 = vld [vmem:[%s2230_s1 + $0x150] sm:$0xff] }
   0x9   :  { %1122 = vmatpush3.msra.mxu1 %v199_v11  ;;  %1052 = vmatprep.subr.mxu0 %v182_v12  ;;  %v179_v24 = vld [vmem:[%s2230_s1 + $0xc8] sm:$0xff]  ;;  %v178_v28 = vld [vmem:[%s2230_s1 + $0xc0] sm:$0xff]  ;;  %v177_v32 = vld [vmem:[%s2230_s1 + $0xb8] sm:$0xff] }
   0xa   :  { %1123 = vmatprep.subr.mxu1 %v214_v13  ;;  %1053 = vmatpush3.msra.mxu0 %v166_v14  ;;  %v211_v25 = vld [vmem:[%s2230_s1 + $0x1c8] sm:$0xff]  ;;  %v210_v29 = vld [vmem:[%s2230_s1 + $0x1c0] sm:$0xff]  ;;  %v209_v33 = vld [vmem:[%s2230_s1 + $0x1b8] sm:$0xff] }
   0xb   :  { %1124 = vmatpush3.msra.mxu1 %v198_v15  ;;  %1054 = vmatprep.subr.mxu0 %v181_v16  ;;  %v163_v26 = vld [vmem:[%s2230_s1 + $0x48] sm:$0xff]  ;;  %v162_v30 = vld [vmem:[%s2230_s1 + $0x40] sm:$0xff]  ;;  %v161_v34 = vld [vmem:[%s2230_s1 + $0x38] sm:$0xff] }
   0xc   :  { %1125 = vmatprep.subr.mxu1 %v213_v17  ;;  %1055 = vmatpush3.msra.mxu0 %v165_v18  ;;  %v195_v27 = vld [vmem:[%s2230_s1 + $0x148] sm:$0xff]  ;;  %v194_v31 = vld [vmem:[%s2230_s1 + $0x140] sm:$0xff]  ;;  %v193_v35 = vld [vmem:[%s2230_s1 + $0x138] sm:$0xff] }
   0xd   :  { %1126 = vmatpush3.msra.mxu1 %v197_v19  ;;  %1056 = vmatprep.subr.mxu0 %v180_v20  ;;  %v176_v36 = vld [vmem:[%s2230_s1 + $0xb0] sm:$0xff]  ;;  %v175_v40 = vld [vmem:[%s2230_s1 + $0xa8] sm:$0xff]  ;;  %v174_v44 = vld [vmem:[%s2230_s1 + $0xa0] sm:$0xff] }
   0xe   :  { %1127 = vmatprep.subr.mxu1 %v212_v21  ;;  %1057 = vmatpush3.msra.mxu0 %v164_v22  ;;  %v208_v37 = vld [vmem:[%s2230_s1 + $0x1b0] sm:$0xff]  ;;  %v207_v41 = vld [vmem:[%s2230_s1 + $0x1a8] sm:$0xff]  ;;  %v206_v45 = vld [vmem:[%s2230_s1 + $0x1a0] sm:$0xff] }
   0xf   :  { %1128 = vmatpush3.msra.mxu1 %v196_v23  ;;  %1058 = vmatprep.subr.mxu0 %v179_v24  ;;  %v160_v38 = vld [vmem:[%s2230_s1 + $0x30] sm:$0xff]  ;;  %v159_v42 = vld [vmem:[%s2230_s1 + $0x28] sm:$0xff]  ;;  %v158_v46 = vld [vmem:[%s2230_s1 + $0x20] sm:$0xff] }
  0x10   :  { %1129 = vmatprep.subr.mxu1 %v211_v25  ;;  %1059 = vmatpush3.msra.mxu0 %v163_v26  ;;  %v192_v39 = vld [vmem:[%s2230_s1 + $0x130] sm:$0xff]  ;;  %v191_v43 = vld [vmem:[%s2230_s1 + $0x128] sm:$0xff]  ;;  %v190_v47 = vld [vmem:[%s2230_s1 + $0x120] sm:$0xff] }
  0x11   :  { %1130 = vmatpush3.msra.mxu1 %v195_v27  ;;  %1060 = vmatprep.subr.mxu0 %v178_v28  ;;  %v173_v48 = vld [vmem:[%s2230_s1 + $0x98] sm:$0xff]  ;;  %v172_v52 = vld [vmem:[%s2230_s1 + $0x90] sm:$0xff]  ;;  %v171_v56 = vld [vmem:[%s2230_s1 + $0x88] sm:$0xff] }
  0x12   :  { %1131 = vmatprep.subr.mxu1 %v210_v29  ;;  %1061 = vmatpush3.msra.mxu0 %v162_v30  ;;  %v205_v49 = vld [vmem:[%s2230_s1 + $0x198] sm:$0xff]  ;;  %v204_v53 = vld [vmem:[%s2230_s1 + $0x190] sm:$0xff]  ;;  %v203_v57 = vld [vmem:[%s2230_s1 + $0x188] sm:$0xff] }
  0x13   :  { %1132 = vmatpush3.msra.mxu1 %v194_v31  ;;  %1062 = vmatprep.subr.mxu0 %v177_v32  ;;  %v157_v50 = vld [vmem:[%s2230_s1 + $0x18] sm:$0xff]  ;;  %v156_v54 = vld [vmem:[%s2230_s1 + $0x10] sm:$0xff]  ;;  %v155_v58 = vld [vmem:[%s2230_s1 + $0x8] sm:$0xff] }
  0x14   :  { %1133 = vmatprep.subr.mxu1 %v209_v33  ;;  %1063 = vmatpush3.msra.mxu0 %v161_v34  ;;  %v189_v51 = vld [vmem:[%s2230_s1 + $0x118] sm:$0xff]  ;;  %v188_v55 = vld [vmem:[%s2230_s1 + $0x110] sm:$0xff]  ;;  %v187_v59 = vld [vmem:[%s2230_s1 + $0x108] sm:$0xff] }
  0x15   :  { %1134 = vmatpush3.msra.mxu1 %v193_v35  ;;  %1064 = vmatprep.subr.mxu0 %v176_v36  ;;  %v170_v60 = vld [vmem:[%s2230_s1 + $0x80] sm:$0xff]  ;;  %v51_v63 = vld [vmem:[%s2231_s0 + $0x8] sm:$0xff]  ;;  %v53_v1 = vld [vmem:[%s2231_s0 + $0x18] sm:$0xff] }
  0x16   :  { %1135 = vmatprep.subr.mxu1 %v208_v37  ;;  %1065 = vmatpush3.msra.mxu0 %v160_v38  ;;  %v202_v61 = vld [vmem:[%s2230_s1 + $0x180] sm:$0xff]  ;;  %v52_v3 = vld [vmem:[%s2231_s0 + $0x10] sm:$0xff]  ;;  %v249_v4 = vld [vmem:[%s2230_s1 + $0x2f8] sm:$0xff] }
  0x17   :  { %1136 = vmatpush3.msra.mxu1 %v192_v39  ;;  %1066 = vmatprep.subr.mxu0 %v175_v40  ;;  %v154_v62 = vld [vmem:[%s2230_s1] sm:$0xff]  ;;  %v281_v5 = vld [vmem:[%s2230_s1 + $0x3f8] sm:$0xff]  ;;  %v59_v7 = vld [vmem:[%s2231_s0 + $0x48] sm:$0xff] }
  0x18   :  { %1137 = vmatprep.subr.mxu1 %v207_v41  ;;  %1067 = vmatpush3.msra.mxu0 %v159_v42  ;;  %v186_v0 = vld [vmem:[%s2230_s1 + $0x100] sm:$0xff]  ;;  %v233_v6 = vld [vmem:[%s2230_s1 + $0x278] sm:$0xff]  ;;  %v60_v11 = vld [vmem:[%s2231_s0 + $0x50] sm:$0xff] }
  0x19   :  { %1138 = vmatpush3.msra.mxu1 %v191_v43  ;;  %1068 = vmatprep.subr.mxu0 %v174_v44  ;;  %v50_v2 = vld [vmem:[%s2231_s0] sm:$0xff]  ;;  %v61_v8 = vld [vmem:[%s2231_s0 + $0x58] sm:$0xff]  ;;  %v248_v12 = vld [vmem:[%s2230_s1 + $0x2f0] sm:$0xff] }
  0x1a   :  { %1139 = vmatprep.subr.mxu1 %v206_v45  ;;  %1069 = vmatpush3.msra.mxu0 %v158_v46  ;;  %v265_v9 = vld [vmem:[%s2230_s1 + $0x378] sm:$0xff]  ;;  %v58_v10 = vld [vmem:[%s2231_s0 + $0x40] sm:$0xff]  ;;  %v280_v13 = vld [vmem:[%s2230_s1 + $0x3f0] sm:$0xff] }
  0x1b   :  { %1140 = vmatpush3.msra.mxu1 %v190_v47  ;;  %1070 = vmatprep.subr.mxu0 %v173_v48  ;;  %v232_v14 = vld [vmem:[%s2230_s1 + $0x270] sm:$0xff]  ;;  %v67_v15 = vld [vmem:[%s2231_s0 + $0x88] sm:$0xff]  ;;  %v69_v16 = vld [vmem:[%s2231_s0 + $0x98] sm:$0xff] }
  0x1c   :  { %1141 = vmatprep.subr.mxu1 %v205_v49  ;;  %1071 = vmatpush3.msra.mxu0 %v157_v50  ;;  %v247_v17 = vld [vmem:[%s2230_s1 + $0x2e8] sm:$0xff]  ;;  %v264_v18 = vld [vmem:[%s2230_s1 + $0x370] sm:$0xff]  ;;  %v66_v19 = vld [vmem:[%s2231_s0 + $0x80] sm:$0xff] }
  0x1d   :  { %1142 = vmatpush3.msra.mxu1 %v189_v51  ;;  %1072 = vmatprep.subr.mxu0 %v172_v52  ;;  %v68_v20 = vld [vmem:[%s2231_s0 + $0x90] sm:$0xff]  ;;  %v231_v21 = vld [vmem:[%s2230_s1 + $0x268] sm:$0xff]  ;;  %v246_v23 = vld [vmem:[%s2230_s1 + $0x2e0] sm:$0xff] }
  0x1e   :  { %1143 = vmatprep.subr.mxu1 %v204_v53  ;;  %1073 = vmatpush3.msra.mxu0 %v156_v54  ;;  %v279_v22 = vld [vmem:[%s2230_s1 + $0x3e8] sm:$0xff]  ;;  %v77_v26 = vld [vmem:[%s2231_s0 + $0xd8] sm:$0xff]  ;;  %v230_v27 = vld [vmem:[%s2230_s1 + $0x260] sm:$0xff] }
  0x1f   :  { %1144 = vmatpush3.msra.mxu1 %v188_v55  ;;  %1074 = vmatprep.subr.mxu0 %v171_v56  ;;  %v263_v24 = vld [vmem:[%s2230_s1 + $0x368] sm:$0xff]  ;;  %v74_v28 = vld [vmem:[%s2231_s0 + $0xc0] sm:$0xff]  ;;  %v76_v29 = vld [vmem:[%s2231_s0 + $0xd0] sm:$0xff] }
  0x20   :  { %1145 = vmatprep.subr.mxu1 %v203_v57  ;;  %1075 = vmatpush3.msra.mxu0 %v155_v58  ;;  %v75_v25 = vld [vmem:[%s2231_s0 + $0xc8] sm:$0xff]  ;;  %v278_v30 = vld [vmem:[%s2230_s1 + $0x3e0] sm:$0xff]  ;;  %v245_v31 = vld [vmem:[%s2230_s1 + $0x2d8] sm:$0xff] }
  0x21   :  { %1146 = vmatpush3.msra.mxu1 %v187_v59  ;;  %1076 = vmatprep.subr.mxu0 %v170_v60  ;;  %v262_v32 = vld [vmem:[%s2230_s1 + $0x360] sm:$0xff]  ;;  %v229_v33 = vld [vmem:[%s2230_s1 + $0x258] sm:$0xff]  ;;  %v83_v34 = vld [vmem:[%s2231_s0 + $0x108] sm:$0xff] }
  0x22   :  { %1147 = vmatprep.subr.mxu1 %v202_v61  ;;  %1077 = vmatpush3.msra.mxu0 %v154_v62  ;;  %v85_v35 = vld [vmem:[%s2231_s0 + $0x118] sm:$0xff]  ;;  %v82_v37 = vld [vmem:[%s2231_s0 + $0x100] sm:$0xff]  ;;  %v84_v38 = vld [vmem:[%s2231_s0 + $0x110] sm:$0xff] }
  0x23   :  { %346 = vmatprep.mubr.f32.mxu0 %v51_v63  ;;  %1148 = vmatpush3.msra.mxu1 %v186_v0  ;;  %v277_v36 = vld [vmem:[%s2230_s1 + $0x3d8] sm:$0xff]  ;;  %v244_v39 = vld [vmem:[%s2230_s1 + $0x2d0] sm:$0xff]  ;;  %v91_v42 = vld [vmem:[%s2231_s0 + $0x148] sm:$0xff] }
  0x24   :  { %476 = vmatprep.mubr.f32.mxu1 %v53_v1  ;;  %347 = vmatmul.mubr.f32.vlgmr.msra.gmra.mxu0 %v50_v2  ;;  %v261_v40 = vld [vmem:[%s2230_s1 + $0x358] sm:$0xff]  ;;  %v228_v41 = vld [vmem:[%s2230_s1 + $0x250] sm:$0xff]  ;;  %v90_v45 = vld [vmem:[%s2231_s0 + $0x140] sm:$0xff] }
  0x25   :  { %477 = vmatmul.mubr.f32.vlgmr.msra.gmra.mxu1 %v52_v3  ;;  %1188 = vmatprep.subr.mxu0 %v249_v4  ;;  %v93_v43 = vld [vmem:[%s2231_s0 + $0x158] sm:$0xff]  ;;  %v276_v44 = vld [vmem:[%s2230_s1 + $0x3d0] sm:$0xff]  ;;  %v243_v47 = vld [vmem:[%s2230_s1 + $0x2c8] sm:$0xff] }
  0x26   :  { %1259 = vmatprep.subr.mxu1 %v281_v5  ;;  %1189 = vmatpush3.msra.mxu0 %v233_v6  ;;  %v92_v46 = vld [vmem:[%s2231_s0 + $0x150] sm:$0xff]  ;;  %v227_v49 = vld [vmem:[%s2230_s1 + $0x248] sm:$0xff]  ;;  %v101_v52 = vld [vmem:[%s2231_s0 + $0x198] sm:$0xff] }
  0x27   :  { %351 = vmatprep.mubr.f32.mxu0 %v59_v7  ;;  %481 = vmatprep.mubr.f32.mxu1 %v61_v8  ;;  %v260_v48 = vld [vmem:[%s2230_s1 + $0x350] sm:$0xff]  ;;  %v275_v50 = vld [vmem:[%s2230_s1 + $0x3c8] sm:$0xff]  ;;  %v242_v53 = vld [vmem:[%s2230_s1 + $0x2c0] sm:$0xff] }
  0x28   :  { %1260 = vmatpush3.msra.mxu1 %v265_v9  ;;  %352 = vmatmul.mubr.f32.gmra.mxu0 %v58_v10  ;;  %v99_v51 = vld [vmem:[%s2231_s0 + $0x188] sm:$0xff]  ;;  %v98_v55 = vld [vmem:[%s2231_s0 + $0x180] sm:$0xff]  ;;  %v100_v56 = vld [vmem:[%s2231_s0 + $0x190] sm:$0xff] }
  0x29   :  { %482 = vmatmul.mubr.f32.gmra.mxu1 %v60_v11  ;;  %1190 = vmatprep.subr.mxu0 %v248_v12  ;;  %v259_v54 = vld [vmem:[%s2230_s1 + $0x348] sm:$0xff]  ;;  %v226_v57 = vld [vmem:[%s2230_s1 + $0x240] sm:$0xff]  ;;  %v241_v59 = vld [vmem:[%s2230_s1 + $0x2b8] sm:$0xff] }
  0x2a   :  { %1261 = vmatprep.subr.mxu1 %v280_v13  ;;  %1191 = vmatpush3.msra.mxu0 %v232_v14  ;;  %v274_v58 = vld [vmem:[%s2230_s1 + $0x3c0] sm:$0xff]  ;;  %v107_v61 = vld [vmem:[%s2231_s0 + $0x1c8] sm:$0xff]  ;;  %v109_v62 = vld [vmem:[%s2231_s0 + $0x1d8] sm:$0xff] }
  0x2b   :  { %356 = vmatprep.mubr.f32.mxu0 %v67_v15  ;;  %486 = vmatprep.mubr.f32.mxu1 %v69_v16  ;;  %v258_v60 = vld [vmem:[%s2230_s1 + $0x340] sm:$0xff]  ;;  %v225_v63 = vld [vmem:[%s2230_s1 + $0x238] sm:$0xff]  ;;  %v108_v1 = vld [vmem:[%s2231_s0 + $0x1d0] sm:$0xff] }
  0x2c   :  { %1192 = vmatprep.subr.mxu0 %v247_v17  ;;  %1262 = vmatpush3.msra.mxu1 %v264_v18  ;;  %v106_v0 = vld [vmem:[%s2231_s0 + $0x1c0] sm:$0xff]  ;;  %v273_v2 = vld [vmem:[%s2230_s1 + $0x3b8] sm:$0xff]  ;;  %v240_v3 = vld [vmem:[%s2230_s1 + $0x2b0] sm:$0xff] }
  0x2d   :  { %357 = vmatmul.mubr.f32.gmra.mxu0 %v66_v19  ;;  %487 = vmatmul.mubr.f32.gmra.mxu1 %v68_v20  ;;  %v257_v4 = vld [vmem:[%s2230_s1 + $0x338] sm:$0xff]  ;;  %v115_v5 = vld [vmem:[%s2231_s0 + $0x208] sm:$0xff]  ;;  %v224_v7 = vld [vmem:[%s2230_s1 + $0x230] sm:$0xff] }
  0x2e   :  { %1193 = vmatpush3.msra.mxu0 %v231_v21  ;;  %1263 = vmatprep.subr.mxu1 %v279_v22  ;;  %v117_v6 = vld [vmem:[%s2231_s0 + $0x218] sm:$0xff]  ;;  %v114_v8 = vld [vmem:[%s2231_s0 + $0x200] sm:$0xff]  ;;  %v116_v9 = vld [vmem:[%s2231_s0 + $0x210] sm:$0xff] }
  0x2f   :  { %1194 = vmatprep.subr.mxu0 %v246_v23  ;;  %1264 = vmatpush3.msra.mxu1 %v263_v24  ;;  %v272_v10 = vld [vmem:[%s2230_s1 + $0x3b0] sm:$0xff]  ;;  %v239_v11 = vld [vmem:[%s2230_s1 + $0x2a8] sm:$0xff]  ;;  %v125_v15 = vld [vmem:[%s2231_s0 + $0x258] sm:$0xff] }
  0x30   :  { %361 = vmatprep.mubr.f32.mxu0 %v75_v25  ;;  %491 = vmatprep.mubr.f32.mxu1 %v77_v26  ;;  %v256_v12 = vld [vmem:[%s2230_s1 + $0x330] sm:$0xff]  ;;  %v223_v13 = vld [vmem:[%s2230_s1 + $0x228] sm:$0xff]  ;;  %v122_v17 = vld [vmem:[%s2231_s0 + $0x240] sm:$0xff] }
  0x31   :  { %1195 = vmatpush3.msra.mxu0 %v230_v27  ;;  %492 = vmatmul.mubr.f32.gmra.mxu1 %v76_v29  ;;  %v123_v14 = vld [vmem:[%s2231_s0 + $0x248] sm:$0xff]  ;;  %v124_v18 = vld [vmem:[%s2231_s0 + $0x250] sm:$0xff]  ;;  %v238_v19 = vld [vmem:[%s2230_s1 + $0x2a0] sm:$0xff] }
  0x32   :  { %362 = vmatmul.mubr.f32.gmra.mxu0 %v74_v28  ;;  %1265 = vmatprep.subr.mxu1 %v278_v30  ;;  %v271_v16 = vld [vmem:[%s2230_s1 + $0x3a8] sm:$0xff]  ;;  %v222_v21 = vld [vmem:[%s2230_s1 + $0x220] sm:$0xff]  ;;  %v133_v24 = vld [vmem:[%s2231_s0 + $0x298] sm:$0xff] }
  0x33   :  { %1196 = vmatprep.subr.mxu0 %v245_v31  ;;  %1266 = vmatpush3.msra.mxu1 %v262_v32  ;;  %v255_v20 = vld [vmem:[%s2230_s1 + $0x328] sm:$0xff]  ;;  %v270_v22 = vld [vmem:[%s2230_s1 + $0x3a0] sm:$0xff]  ;;  %v237_v25 = vld [vmem:[%s2230_s1 + $0x298] sm:$0xff] }
  0x34   :  { %1197 = vmatpush3.msra.mxu0 %v229_v33  ;;  %366 = vmatprep.mubr.f32.mxu0 %v83_v34  ;;  %v131_v23 = vld [vmem:[%s2231_s0 + $0x288] sm:$0xff]  ;;  %v254_v26 = vld [vmem:[%s2230_s1 + $0x320] sm:$0xff]  ;;  %v132_v28 = vld [vmem:[%s2231_s0 + $0x290] sm:$0xff] }
  0x35   :  { %496 = vmatprep.mubr.f32.mxu1 %v85_v35  ;;  %1267 = vmatprep.subr.mxu1 %v277_v36  ;;  %v130_v27 = vld [vmem:[%s2231_s0 + $0x280] sm:$0xff]  ;;  %v221_v29 = vld [vmem:[%s2230_s1 + $0x218] sm:$0xff]  ;;  %v139_v31 = vld [vmem:[%s2231_s0 + $0x2c8] sm:$0xff] }
  0x36   :  { %367 = vmatmul.mubr.f32.gmra.mxu0 %v82_v37  ;;  %497 = vmatmul.mubr.f32.gmra.mxu1 %v84_v38  ;;  %v269_v30 = vld [vmem:[%s2230_s1 + $0x398] sm:$0xff]  ;;  %v236_v34 = vld [vmem:[%s2230_s1 + $0x290] sm:$0xff]  ;;  %v138_v35 = vld [vmem:[%s2231_s0 + $0x2c0] sm:$0xff] }
  0x37   :  { %1198 = vmatprep.subr.mxu0 %v244_v39  ;;  %1268 = vmatpush3.msra.mxu1 %v261_v40  ;;  %v253_v32 = vld [vmem:[%s2230_s1 + $0x318] sm:$0xff]  ;;  %v140_v36 = vld [vmem:[%s2231_s0 + $0x2d0] sm:$0xff]  ;;  %v235_v39 = vld [vmem:[%s2230_s1 + $0x288] sm:$0xff] }
  0x38   :  { %1199 = vmatpush3.msra.mxu0 %v228_v41  ;;  %371 = vmatprep.mubr.f32.mxu0 %v91_v42  ;;  %v141_v33 = vld [vmem:[%s2231_s0 + $0x2d8] sm:$0xff]  ;;  %v220_v37 = vld [vmem:[%s2230_s1 + $0x210] sm:$0xff]  ;;  %v147_v41 = vld [vmem:[%s2231_s0 + $0x308] sm:$0x3] }
  0x39   :  { %501 = vmatprep.mubr.f32.mxu1 %v93_v43  ;;  %1269 = vmatprep.subr.mxu1 %v276_v44  ;;  %v268_v38 = vld [vmem:[%s2230_s1 + $0x390] sm:$0xff]  ;;  %v149_v42 = vld [vmem:[%s2231_s0 + $0x318] sm:$0x3]  ;;  %v219_v43 = vld [vmem:[%s2230_s1 + $0x208] sm:$0xff] }
  0x3a   :  { %372 = vmatmul.mubr.f32.gmra.mxu0 %v90_v45  ;;  %502 = vmatmul.mubr.f32.gmra.mxu1 %v92_v46  ;;  %v252_v40 = vld [vmem:[%s2230_s1 + $0x310] sm:$0xff]  ;;  %v146_v44 = vld [vmem:[%s2231_s0 + $0x300] sm:$0x3]  ;;  %v267_v46 = vld [vmem:[%s2230_s1 + $0x388] sm:$0xff] }
  0x3b   :  { %1200 = vmatprep.subr.mxu0 %v243_v47  ;;  %1270 = vmatpush3.msra.mxu1 %v260_v48  ;;  %v148_v45 = vld [vmem:[%s2231_s0 + $0x310] sm:$0x3]  ;;  %v234_v47 = vld [vmem:[%s2230_s1 + $0x280] sm:$0xff]  ;;  %v251_v48 = vld [vmem:[%s2230_s1 + $0x308] sm:$0xff] }
  0x3c   :  { %1201 = vmatpush3.msra.mxu0 %v227_v49  ;;  %1271 = vmatprep.subr.mxu1 %v275_v50  ;;  %v218_v49 = vld [vmem:[%s2230_s1 + $0x200] sm:$0xff]  ;;  %v55_v50 = vld [vmem:[%s2231_s0 + $0x28] sm:$0xff] }
  0x3d   :  { %376 = vmatprep.mubr.f32.mxu0 %v99_v51  ;;  %506 = vmatprep.mubr.f32.mxu1 %v101_v52  ;;  %v266_v51 = vld [vmem:[%s2230_s1 + $0x380] sm:$0xff] }
  0x3e   :  { %1202 = vmatprep.subr.mxu0 %v242_v53  ;;  %1272 = vmatpush3.msra.mxu1 %v259_v54  ;;  %v54_v52 = vld [vmem:[%s2231_s0 + $0x20] sm:$0xff]  ;;  %v57_v54 = vld [vmem:[%s2231_s0 + $0x38] sm:$0xff] }
  0x3f   :  { %377 = vmatmul.mubr.f32.gmra.mxu0 %v98_v55  ;;  %507 = vmatmul.mubr.f32.gmra.mxu1 %v100_v56  ;;  %v250_v53 = vld [vmem:[%s2230_s1 + $0x300] sm:$0xff]  ;;  %v63_v55 = vld [vmem:[%s2231_s0 + $0x68] sm:$0xff]  ;;  %v56_v56 = vld [vmem:[%s2231_s0 + $0x30] sm:$0xff] }
  0x40   :  { %1203 = vmatpush3.msra.mxu0 %v226_v57  ;;  %1273 = vmatprep.subr.mxu1 %v274_v58  ;;  %v65_v57 = vld [vmem:[%s2231_s0 + $0x78] sm:$0xff]  ;;  %v62_v58 = vld [vmem:[%s2231_s0 + $0x60] sm:$0xff] }
  0x41   :  { %1204 = vmatprep.subr.mxu0 %v241_v59  ;;  %1274 = vmatpush3.msra.mxu1 %v258_v60  ;;  %v71_v59 = vld [vmem:[%s2231_s0 + $0xa8] sm:$0xff]  ;;  %v64_v60 = vld [vmem:[%s2231_s0 + $0x70] sm:$0xff] }
  0x42   :  { %381 = vmatprep.mubr.f32.mxu0 %v107_v61  ;;  %511 = vmatprep.mubr.f32.mxu1 %v109_v62  ;;  %v73_v61 = vld [vmem:[%s2231_s0 + $0xb8] sm:$0xff]  ;;  %v70_v62 = vld [vmem:[%s2231_s0 + $0xa0] sm:$0xff] }
  0x43   :  { %1205 = vmatpush3.msra.mxu0 %v225_v63  ;;  %512 = vmatmul.mubr.f32.gmra.mxu1 %v108_v1  ;;  %v79_v63 = vld [vmem:[%s2231_s0 + $0xe8] sm:$0xff]  ;;  %v81_v1 = vld [vmem:[%s2231_s0 + $0xf8] sm:$0xff] }
  0x44   :  { %382 = vmatmul.mubr.f32.gmra.mxu0 %v106_v0  ;;  %1275 = vmatprep.subr.mxu1 %v273_v2  ;;  %v72_v0 = vld [vmem:[%s2231_s0 + $0xb0] sm:$0xff]  ;;  %v78_v2 = vld [vmem:[%s2231_s0 + $0xe0] sm:$0xff] }
  0x45   :  { %1206 = vmatprep.subr.mxu0 %v240_v3  ;;  %1276 = vmatpush3.msra.mxu1 %v257_v4  ;;  %v87_v3 = vld [vmem:[%s2231_s0 + $0x128] sm:$0xff]  ;;  %v80_v4 = vld [vmem:[%s2231_s0 + $0xf0] sm:$0xff] }
  0x46   :  { %386 = vmatprep.mubr.f32.mxu0 %v115_v5  ;;  %516 = vmatprep.mubr.f32.mxu1 %v117_v6  ;;  %v89_v5 = vld [vmem:[%s2231_s0 + $0x138] sm:$0xff]  ;;  %v86_v6 = vld [vmem:[%s2231_s0 + $0x120] sm:$0xff] }
  0x47   :  { %1207 = vmatpush3.msra.mxu0 %v224_v7  ;;  %517 = vmatmul.mubr.f32.gmra.mxu1 %v116_v9  ;;  %v95_v7 = vld [vmem:[%s2231_s0 + $0x168] sm:$0xff]  ;;  %v97_v9 = vld [vmem:[%s2231_s0 + $0x178] sm:$0xff] }
  0x48   :  { %387 = vmatmul.mubr.f32.gmra.mxu0 %v114_v8  ;;  %1277 = vmatprep.subr.mxu1 %v272_v10  ;;  %v88_v8 = vld [vmem:[%s2231_s0 + $0x130] sm:$0xff]  ;;  %v94_v10 = vld [vmem:[%s2231_s0 + $0x160] sm:$0xff] }
  0x49   :  { %1208 = vmatprep.subr.mxu0 %v239_v11  ;;  %1278 = vmatpush3.msra.mxu1 %v256_v12  ;;  %v103_v11 = vld [vmem:[%s2231_s0 + $0x1a8] sm:$0xff]  ;;  %v96_v12 = vld [vmem:[%s2231_s0 + $0x170] sm:$0xff] }
  0x4a   :  { %1209 = vmatpush3.msra.mxu0 %v223_v13  ;;  %391 = vmatprep.mubr.f32.mxu0 %v123_v14  ;;  %v105_v13 = vld [vmem:[%s2231_s0 + $0x1b8] sm:$0xff]  ;;  %v102_v14 = vld [vmem:[%s2231_s0 + $0x1a0] sm:$0xff] }
  0x4b   :  { %521 = vmatprep.mubr.f32.mxu1 %v125_v15  ;;  %1279 = vmatprep.subr.mxu1 %v271_v16  ;;  %v111_v15 = vld [vmem:[%s2231_s0 + $0x1e8] sm:$0xff]  ;;  %v104_v16 = vld [vmem:[%s2231_s0 + $0x1b0] sm:$0xff] }
  0x4c   :  { %392 = vmatmul.mubr.f32.gmra.mxu0 %v122_v17  ;;  %522 = vmatmul.mubr.f32.gmra.mxu1 %v124_v18  ;;  %v113_v17 = vld [vmem:[%s2231_s0 + $0x1f8] sm:$0xff]  ;;  %v110_v18 = vld [vmem:[%s2231_s0 + $0x1e0] sm:$0xff] }
  0x4d   :  { %1210 = vmatprep.subr.mxu0 %v238_v19  ;;  %1280 = vmatpush3.msra.mxu1 %v255_v20  ;;  %v119_v19 = vld [vmem:[%s2231_s0 + $0x228] sm:$0xff]  ;;  %v112_v20 = vld [vmem:[%s2231_s0 + $0x1f0] sm:$0xff] }
  0x4e   :  { %1211 = vmatpush3.msra.mxu0 %v222_v21  ;;  %1281 = vmatprep.subr.mxu1 %v270_v22  ;;  %v121_v21 = vld [vmem:[%s2231_s0 + $0x238] sm:$0xff]  ;;  %v118_v22 = vld [vmem:[%s2231_s0 + $0x220] sm:$0xff] }
  0x4f   :  { %396 = vmatprep.mubr.f32.mxu0 %v131_v23  ;;  %526 = vmatprep.mubr.f32.mxu1 %v133_v24  ;;  %v127_v23 = vld [vmem:[%s2231_s0 + $0x268] sm:$0xff]  ;;  %v120_v24 = vld [vmem:[%s2231_s0 + $0x230] sm:$0xff] }
  0x50   :  { %1212 = vmatprep.subr.mxu0 %v237_v25  ;;  %1282 = vmatpush3.msra.mxu1 %v254_v26  ;;  %v129_v25 = vld [vmem:[%s2231_s0 + $0x278] sm:$0xff]  ;;  %v126_v26 = vld [vmem:[%s2231_s0 + $0x260] sm:$0xff] }
  0x51   :  { %397 = vmatmul.mubr.f32.gmra.mxu0 %v130_v27  ;;  %527 = vmatmul.mubr.f32.gmra.mxu1 %v132_v28  ;;  %v135_v27 = vld [vmem:[%s2231_s0 + $0x2a8] sm:$0xff]  ;;  %v128_v28 = vld [vmem:[%s2231_s0 + $0x270] sm:$0xff] }
  0x52   :  { %1213 = vmatpush3.msra.mxu0 %v221_v29  ;;  %1283 = vmatprep.subr.mxu1 %v269_v30  ;;  %v137_v29 = vld [vmem:[%s2231_s0 + $0x2b8] sm:$0xff]  ;;  %v134_v30 = vld [vmem:[%s2231_s0 + $0x2a0] sm:$0xff] }
  0x53   :  { %401 = vmatprep.mubr.f32.mxu0 %v139_v31  ;;  %1284 = vmatpush3.msra.mxu1 %v253_v32  ;;  %v143_v31 = vld [vmem:[%s2231_s0 + $0x2e8] sm:$0xff]  ;;  %v136_v32 = vld [vmem:[%s2231_s0 + $0x2b0] sm:$0xff] }
  0x54   :  { %531 = vmatprep.mubr.f32.mxu1 %v141_v33  ;;  %1214 = vmatprep.subr.mxu0 %v236_v34  ;;  %v145_v33 = vld [vmem:[%s2231_s0 + $0x2f8] sm:$0xff]  ;;  %v142_v34 = vld [vmem:[%s2231_s0 + $0x2e0] sm:$0xff] }
  0x55   :  { %402 = vmatmul.mubr.f32.gmra.mxu0 %v138_v35  ;;  %532 = vmatmul.mubr.f32.gmra.mxu1 %v140_v36  ;;  %v151_v35 = vld [vmem:[%s2231_s0 + $0x328] sm:$0x3]  ;;  %v144_v36 = vld [vmem:[%s2231_s0 + $0x2f0] sm:$0xff] }
  0x56   :  { %1215 = vmatpush3.msra.mxu0 %v220_v37  ;;  %1285 = vmatprep.subr.mxu1 %v268_v38  ;;  %v153_v37 = vld [vmem:[%s2231_s0 + $0x338] sm:$0x3]  ;;  %v150_v38 = vld [vmem:[%s2231_s0 + $0x320] sm:$0x3] }
  0x57   :  { %1216 = vmatprep.subr.mxu0 %v235_v39  ;;  %1286 = vmatpush3.msra.mxu1 %v252_v40  ;;  %v152_v39 = vld [vmem:[%s2231_s0 + $0x330] sm:$0x3]  ;;  %v1333_v40 = vmov 0.0  }
  0x58   :  { %406 = vmatprep.mubr.f32.mxu0 %v147_v41  ;;  %536 = vmatprep.mubr.f32.mxu1 %v149_v42  ;;  %36 = vst [vmem:[%s2232_s5 + $0x60] sm:$0x3] %v1333_v40 }
  0x59   :  { %1217 = vmatpush3.msra.mxu0 %v219_v43  ;;  %537 = vmatmul.mubr.f32.gmra.mxu1 %v148_v45 }
  0x5a   :  { %407 = vmatmul.mubr.f32.gmra.mxu0 %v146_v44  ;;  %1287 = vmatprep.subr.mxu1 %v267_v46 }
  0x5b   :  { %1218 = vmatprep.subr.mxu0 %v234_v47  ;;  %1288 = vmatpush3.msra.mxu1 %v251_v48 }
  0x5c   :  { %1219 = vmatpush3.msra.mxu0 %v218_v49  ;;  %606 = vmatprep.mubr.f32.mxu0 %v55_v50 }
  0x5d   :  { %1289 = vmatprep.subr.mxu1 %v266_v51  ;;  %736 = vmatprep.mubr.f32.mxu1 %v57_v54 }
  0x5e   :  { %607 = vmatmul.mubr.f32.vlgmr.msra.gmra.mxu0 %v54_v52  ;;  %1290 = vmatpush3.msra.mxu1 %v250_v53 }
  0x5f   :  { %611 = vmatprep.mubr.f32.mxu0 %v63_v55  ;;  %737 = vmatmul.mubr.f32.vlgmr.msra.gmra.mxu1 %v56_v56 }
  0x60   :  { %741 = vmatprep.mubr.f32.mxu1 %v65_v57 }
  0x62   :  { %612 = vmatmul.mubr.f32.gmra.mxu0 %v62_v58 }
  0x63   :  { %616 = vmatprep.mubr.f32.mxu0 %v71_v59  ;;  %742 = vmatmul.mubr.f32.gmra.mxu1 %v64_v60 }
  0x64   :  { %746 = vmatprep.mubr.f32.mxu1 %v73_v61 }
  0x66   :  { %617 = vmatmul.mubr.f32.gmra.mxu0 %v70_v62 }
  0x67   :  { %621 = vmatprep.mubr.f32.mxu0 %v79_v63  ;;  %747 = vmatmul.mubr.f32.gmra.mxu1 %v72_v0 }
  0x68   :  { %751 = vmatprep.mubr.f32.mxu1 %v81_v1 }
  0x6a   :  { %622 = vmatmul.mubr.f32.gmra.mxu0 %v78_v2 }
  0x6b   :  { %626 = vmatprep.mubr.f32.mxu0 %v87_v3  ;;  %752 = vmatmul.mubr.f32.gmra.mxu1 %v80_v4 }
  0x6c   :  { %756 = vmatprep.mubr.f32.mxu1 %v89_v5 }
  0x6e   :  { %627 = vmatmul.mubr.f32.gmra.mxu0 %v86_v6 }
  0x6f   :  { %631 = vmatprep.mubr.f32.mxu0 %v95_v7  ;;  %757 = vmatmul.mubr.f32.gmra.mxu1 %v88_v8 }
  0x70   :  { %761 = vmatprep.mubr.f32.mxu1 %v97_v9 }
  0x72   :  { %632 = vmatmul.mubr.f32.gmra.mxu0 %v94_v10 }
  0x73   :  { %636 = vmatprep.mubr.f32.mxu0 %v103_v11  ;;  %762 = vmatmul.mubr.f32.gmra.mxu1 %v96_v12 }
  0x74   :  { %766 = vmatprep.mubr.f32.mxu1 %v105_v13 }
  0x76   :  { %637 = vmatmul.mubr.f32.gmra.mxu0 %v102_v14 }
  0x77   :  { %641 = vmatprep.mubr.f32.mxu0 %v111_v15  ;;  %767 = vmatmul.mubr.f32.gmra.mxu1 %v104_v16 }
  0x78   :  { %771 = vmatprep.mubr.f32.mxu1 %v113_v17 }
  0x7a   :  { %642 = vmatmul.mubr.f32.gmra.mxu0 %v110_v18 }
  0x7b   :  { %646 = vmatprep.mubr.f32.mxu0 %v119_v19  ;;  %772 = vmatmul.mubr.f32.gmra.mxu1 %v112_v20 }
  0x7c   :  { %776 = vmatprep.mubr.f32.mxu1 %v121_v21 }
  0x7e   :  { %647 = vmatmul.mubr.f32.gmra.mxu0 %v118_v22 }
  0x7f   :  { %651 = vmatprep.mubr.f32.mxu0 %v127_v23  ;;  %777 = vmatmul.mubr.f32.gmra.mxu1 %v120_v24 }
  0x80   :  { %781 = vmatprep.mubr.f32.mxu1 %v129_v25 }
  0x82   :  { %652 = vmatmul.mubr.f32.gmra.mxu0 %v126_v26 }
  0x83   :  { %656 = vmatprep.mubr.f32.mxu0 %v135_v27  ;;  %782 = vmatmul.mubr.f32.gmra.mxu1 %v128_v28 }
  0x84   :  { %786 = vmatprep.mubr.f32.mxu1 %v137_v29 }
  0x86   :  { %657 = vmatmul.mubr.f32.gmra.mxu0 %v134_v30 }
  0x87   :  { %661 = vmatprep.mubr.f32.mxu0 %v143_v31  ;;  %787 = vmatmul.mubr.f32.gmra.mxu1 %v136_v32 }
  0x88   :  { %791 = vmatprep.mubr.f32.mxu1 %v145_v33 }
  0x8a   :  { %662 = vmatmul.mubr.f32.gmra.mxu0 %v142_v34 }
  0x8b   :  { %666 = vmatprep.mubr.f32.mxu0 %v151_v35  ;;  %792 = vmatmul.mubr.f32.gmra.mxu1 %v144_v36 }
  0x8c   :  { %796 = vmatprep.mubr.f32.mxu1 %v153_v37 }
  0x8e   :  { %667 = vmatmul.mubr.f32.gmra.mxu0 %v150_v38 }
  0x8f   :  { %797 = vmatmul.mubr.f32.gmra.mxu1 %v152_v39 }
  0xe4   :  { %v1078_v41 = vpop.f32.mrf.mxu0 }
  0xe5   :  { %v1149_v42 = vpop.f32.mrf.mxu1 }
  0xe6   :  { %v1079_v43 = vpop.f32.mrf.mxu0 }
  0xe7   :  { %v1150_v44 = vpop.f32.mrf.mxu1  ;;  %v1080_v45 = vadd.f32 %v1079_v43, %v1078_v41 }
  0xe8   :  { %v1151_v46 = vadd.f32 %v1150_v44, %v1149_v42  ;;  %v1081_v47 = vpop.f32.mrf.mxu0 }
  0xe9   :  { %v1152_v48 = vpop.f32.mrf.mxu1 }
  0xea   :  { %v2063_v49 = vadd.f32 %v1151_v46, %v1080_v45  ;;  %v1082_v50 = vpop.f32.mrf.mxu0 }
  0xeb   :  { %v1153_v51 = vpop.f32.mrf.mxu1  ;;  %v1083_v52 = vadd.f32 %v1082_v50, %v1081_v47 }
  0xec   :  { %v1154_v53 = vadd.f32 %v1153_v51, %v1152_v48 }
  0xed   :  { %v1084_v54 = vpop.f32.mrf.mxu0  ;;  %v1155_v56 = vpop.f32.mrf.mxu1 }
  0xee   :  { %v2065_v55 = vadd.f32 %v1154_v53, %v1083_v52 }
  0xef   :  { %v1085_v57 = vpop.f32.mrf.mxu0  ;;  %v1156_v59 = vpop.f32.mrf.mxu1 }
  0xf0   :  { %v1086_v58 = vadd.f32 %v1085_v57, %v1084_v54  ;;  %v1157_v60 = vadd.f32 %v1156_v59, %v1155_v56 }
  0xf1   :  { %v1158_v62 = vpop.f32.mrf.mxu1 }
  0xf2   :  { %v1087_v61 = vpop.f32.mrf.mxu0  ;;  %v2067_v63 = vadd.f32 %v1157_v60, %v1086_v58 }
  0xf3   :  { %v1159_v1 = vpop.f32.mrf.mxu1 }
  0xf4   :  { %v1088_v0 = vpop.f32.mrf.mxu0  ;;  %v1160_v3 = vadd.f32 %v1159_v1, %v1158_v62 }
  0xf5   :  { %v1089_v2 = vadd.f32 %v1088_v0, %v1087_v61 }
  0xf6   :  { %v1090_v4 = vpop.f32.mrf.mxu0  ;;  %v1161_v6 = vpop.f32.mrf.mxu1 }
  0xf7   :  { %v2069_v5 = vadd.f32 %v1160_v3, %v1089_v2 }
  0xf8   :  { %v1091_v7 = vpop.f32.mrf.mxu0  ;;  %v1162_v9 = vpop.f32.mrf.mxu1 }
  0xf9   :  { %v1092_v8 = vadd.f32 %v1091_v7, %v1090_v4  ;;  %v1163_v10 = vadd.f32 %v1162_v9, %v1161_v6 }
  0xfa   :  { %v1093_v11 = vpop.f32.mrf.mxu0  ;;  %v1164_v12 = vpop.f32.mrf.mxu1 }
  0xfb   :  { %v2071_v13 = vadd.f32 %v1163_v10, %v1092_v8 }
  0xfc   :  { %v1094_v14 = vpop.f32.mrf.mxu0  ;;  %v1165_v16 = vpop.f32.mrf.mxu1 }
  0xfd   :  { %v1095_v15 = vadd.f32 %v1094_v14, %v1093_v11  ;;  %v1166_v17 = vadd.f32 %v1165_v16, %v1164_v12 }
  0xff   :  { %v1096_v18 = vpop.f32.mrf.mxu0  ;;  %v2073_v19 = vadd.f32 %v1166_v17, %v1095_v15  ;;  %v1167_v20 = vpop.f32.mrf.mxu1 }
 0x101   :  { %v1097_v21 = vpop.f32.mrf.mxu0  ;;  %v1168_v23 = vpop.f32.mrf.mxu1 }
 0x102   :  { %v1098_v22 = vadd.f32 %v1097_v21, %v1096_v18  ;;  %v1169_v24 = vadd.f32 %v1168_v23, %v1167_v20 }
 0x103   :  { %v1170_v26 = vpop.f32.mrf.mxu1 }
 0x104   :  { %v1099_v25 = vpop.f32.mrf.mxu0  ;;  %v2075_v27 = vadd.f32 %v1169_v24, %v1098_v22 }
 0x105   :  { %v1171_v29 = vpop.f32.mrf.mxu1 }
 0x106   :  { %v1100_v28 = vpop.f32.mrf.mxu0  ;;  %v1172_v31 = vadd.f32 %v1171_v29, %v1170_v26 }
 0x107   :  { %v1101_v30 = vadd.f32 %v1100_v28, %v1099_v25  ;;  %v1173_v33 = vpop.f32.mrf.mxu1  ;;  %v2100_v28 = vld [vmem:[%s2233_s2] ss:$0 sm:$0xff] }
 0x108   :  { %v1102_v32 = vpop.f32.mrf.mxu0 }
 0x109   :  { %v2077_v34 = vadd.f32 %v1172_v31, %v1101_v30  ;;  %v1174_v36 = vpop.f32.mrf.mxu1 }
 0x10a   :  { %v1103_v35 = vpop.f32.mrf.mxu0  ;;  %v1175_v38 = vadd.f32 %v1174_v36, %v1173_v33 }
 0x10b   :  { %v1104_v37 = vadd.f32 %v1103_v35, %v1102_v32 }
 0x10c   :  { %v1105_v39 = vpop.f32.mrf.mxu0  ;;  %v1176_v41 = vpop.f32.mrf.mxu1 }
 0x10d   :  { %v2079_v40 = vadd.f32 %v1175_v38, %v1104_v37 }
 0x10e   :  { %v1106_v42 = vpop.f32.mrf.mxu0  ;;  %v1177_v44 = vpop.f32.mrf.mxu1 }
 0x10f   :  { %v1107_v43 = vadd.f32 %v1106_v42, %v1105_v39  ;;  %v1178_v45 = vadd.f32 %v1177_v44, %v1176_v41 }
 0x111   :  { %v1108_v46 = vpop.f32.mrf.mxu0  ;;  %v2081_v47 = vadd.f32 %v1178_v45, %v1107_v43  ;;  %v1179_v48 = vpop.f32.mrf.mxu1 }
 0x113   :  { %v1109_v50 = vpop.f32.mrf.mxu0  ;;  %v1180_v52 = vpop.f32.mrf.mxu1 }
 0x114   :  { %v1110_v51 = vadd.f32 %v1109_v50, %v1108_v46  ;;  %v1181_v53 = vadd.f32 %v1180_v52, %v1179_v48 }
 0x115   :  { %v1111_v54 = vpop.f32.mrf.mxu0  ;;  %v1182_v56 = vpop.f32.mrf.mxu1 }
 0x116   :  { %v2083_v57 = vadd.f32 %v1181_v53, %v1110_v51 }
 0x117   :  { %v1112_v58 = vpop.f32.mrf.mxu0  ;;  %v1183_v60 = vpop.f32.mrf.mxu1 }
 0x118   :  { %v1113_v59 = vadd.f32 %v1112_v58, %v1111_v54  ;;  %v1184_v61 = vadd.f32 %v1183_v60, %v1182_v56 }
 0x119   :  { %v2087_v0 = vpop.f32.mrf.mxu1 }
 0x11a   :  { %v2085_v62 = vpop.f32.mrf.mxu0  ;;  %v2089_v1 = vadd.f32 %v1184_v61, %v1113_v59 }
 0x11b   :  { %v2093_v3 = vpop.f32.mrf.mxu1 }
 0x11c   :  { %v2091_v2 = vpop.f32.mrf.mxu0 }
 0x11e   :  { %v1220_v4 = vpop.f32.mrf.mxu0 }
 0x11f   :  { %v1291_v6 = vpop.f32.mrf.mxu1 }
 0x120   :  { %v1221_v7 = vpop.f32.mrf.mxu0 }
 0x121   :  { %v1222_v8 = vadd.f32 %v1221_v7, %v1220_v4  ;;  %v1292_v9 = vpop.f32.mrf.mxu1 }
 0x122   :  { %v1223_v10 = vpop.f32.mrf.mxu0  ;;  %v1293_v12 = vadd.f32 %v1292_v9, %v1291_v6 }
 0x123   :  { %v609_v11 = vadd.f32 %v1222_v8, %v2063_v49  ;;  %v1294_v14 = vpop.f32.mrf.mxu1 }
 0x124   :  { %v1224_v15 = vpop.f32.mrf.mxu0 }
 0x125   :  { %v739_v16 = vadd.f32 %v1293_v12, %v609_v11  ;;  %v1225_v17 = vadd.f32 %v1224_v15, %v1223_v10  ;;  %v1295_v18 = vpop.f32.mrf.mxu1 }
 0x126   :  { %v1226_v20 = vpop.f32.mrf.mxu0  ;;  %v1296_v22 = vadd.f32 %v1295_v18, %v1294_v14 }
 0x127   :  { %v614_v21 = vadd.f32 %v1225_v17, %v2065_v55  ;;  %v1297_v23 = vpop.f32.mrf.mxu1  ;;  %v2104_v35 = vadd.f32 %v2100_v28, %v739_v16 }
 0x128   :  { %v1227_v24 = vpop.f32.mrf.mxu0 }
 0x129   :  { %v744_v25 = vadd.f32 %v1296_v22, %v614_v21  ;;  %v1228_v26 = vadd.f32 %v1227_v24, %v1226_v20  ;;  %v1298_v49 = vpop.f32.mrf.mxu1 }
 0x12a   :  { %v1229_v29 = vpop.f32.mrf.mxu0  ;;  %v1299_v31 = vadd.f32 %v1298_v49, %v1297_v23 }
 0x12b   :  { %v619_v30 = vadd.f32 %v1228_v26, %v2067_v63  ;;  %v1300_v32 = vpop.f32.mrf.mxu1  ;;  %v2107_v55 = vadd.f32 %v2100_v28, %v744_v25 }
 0x12c   :  { %v1230_v33 = vpop.f32.mrf.mxu0 }
 0x12d   :  { %v749_v36 = vadd.f32 %v1299_v31, %v619_v30  ;;  %v1231_v37 = vadd.f32 %v1230_v33, %v1229_v29  ;;  %v1301_v38 = vpop.f32.mrf.mxu1  ;;  %v864_v41 = vadd.f32 %v2107_v55, %v2104_v35 }
 0x12e   :  { %v1232_v39 = vpop.f32.mrf.mxu0  ;;  %v1302_v43 = vadd.f32 %v1301_v38, %v1300_v32 }
 0x12f   :  { %v624_v42 = vadd.f32 %v1231_v37, %v2069_v5  ;;  %v1303_v63 = vpop.f32.mrf.mxu1  ;;  %v2113_v45 = vadd.f32 %v2100_v28, %v749_v36 }
 0x130   :  { %v1233_v44 = vpop.f32.mrf.mxu0 }
 0x131   :  { %v754_v46 = vadd.f32 %v1302_v43, %v624_v42  ;;  %v1234_v48 = vadd.f32 %v1233_v44, %v1232_v39  ;;  %v1304_v50 = vpop.f32.mrf.mxu1  ;;  %v865_v54 = vadd.f32 %v864_v41, %v2113_v45 }
 0x132   :  { %v1235_v51 = vpop.f32.mrf.mxu0  ;;  %v1305_v53 = vadd.f32 %v1304_v50, %v1303_v63 }
 0x133   :  { %v629_v52 = vadd.f32 %v1234_v48, %v2071_v13  ;;  %v1306_v56 = vpop.f32.mrf.mxu1  ;;  %v2118_v59 = vadd.f32 %v2100_v28, %v754_v46 }
 0x134   :  { %v1236_v58 = vpop.f32.mrf.mxu0 }
 0x135   :  { %v759_v5 = vadd.f32 %v1305_v53, %v629_v52  ;;  %v1237_v60 = vadd.f32 %v1236_v58, %v1235_v51  ;;  %v1307_v61 = vpop.f32.mrf.mxu1  ;;  %v866_v8 = vadd.f32 %v865_v54, %v2118_v59 }
 0x136   :  { %v1238_v4 = vpop.f32.mrf.mxu0  ;;  %v1308_v7 = vadd.f32 %v1307_v61, %v1306_v56 }
 0x137   :  { %v634_v6 = vadd.f32 %v1237_v60, %v2073_v19  ;;  %v1309_v9 = vpop.f32.mrf.mxu1  ;;  %v2123_v12 = vadd.f32 %v2100_v28, %v759_v5 }
 0x138   :  { %v1239_v10 = vpop.f32.mrf.mxu0 }
 0x139   :  { %v764_v13 = vadd.f32 %v1308_v7, %v634_v6  ;;  %v1240_v11 = vadd.f32 %v1239_v10, %v1238_v4  ;;  %v1310_v14 = vpop.f32.mrf.mxu1  ;;  %v867_v18 = vadd.f32 %v866_v8, %v2123_v12  ;;  %v1116_v7 = vadd.f32 %v2091_v2, %v2085_v62 }
 0x13a   :  { %v1241_v15 = vpop.f32.mrf.mxu0  ;;  %v1311_v17 = vadd.f32 %v1310_v14, %v1309_v9  ;;  %v1187_v9 = vadd.f32 %v2093_v3, %v2087_v0 }
 0x13b   :  { %v639_v16 = vadd.f32 %v1240_v11, %v2075_v27  ;;  %v1312_v20 = vpop.f32.mrf.mxu1  ;;  %v2128_v23 = vadd.f32 %v2100_v28, %v764_v13 }
 0x13c   :  { %v1242_v21 = vpop.f32.mrf.mxu0 }
 0x13d   :  { %v769_v19 = vadd.f32 %v1311_v17, %v639_v16  ;;  %v1243_v22 = vadd.f32 %v1242_v21, %v1241_v15  ;;  %v1313_v24 = vpop.f32.mrf.mxu1  ;;  %v868_v29 = vadd.f32 %v867_v18, %v2128_v23  ;;  %v539_v21 = vadd.f32 %v1187_v9, %v1116_v7 }
 0x13e   :  { %v1244_v25 = vpop.f32.mrf.mxu0  ;;  %v1314_v49 = vadd.f32 %v1313_v24, %v1312_v20 }
 0x13f   :  { %v644_v26 = vadd.f32 %v1243_v22, %v2077_v34  ;;  %v1315_v30 = vpop.f32.mrf.mxu1  ;;  %v2133_v33 = vadd.f32 %v2100_v28, %v769_v19 }
 0x140   :  { %v1245_v31 = vpop.f32.mrf.mxu0 }
 0x141   :  { %v774_v27 = vadd.f32 %v1314_v49, %v644_v26  ;;  %v1246_v32 = vadd.f32 %v1245_v31, %v1244_v25  ;;  %v1316_v36 = vpop.f32.mrf.mxu1  ;;  %v869_v41 = vadd.f32 %v868_v29, %v2133_v33  ;;  %v49_v25 = vld [vmem:[%s2232_s5 + $0x60] sm:$0x3] }
 0x142   :  { %v1247_v37 = vpop.f32.mrf.mxu0  ;;  %v1317_v39 = vadd.f32 %v1316_v36, %v1315_v30 }
 0x143   :  { %v649_v38 = vadd.f32 %v1246_v32, %v2079_v40  ;;  %v1318_v42 = vpop.f32.mrf.mxu1  ;;  %v2138_v44 = vadd.f32 %v2100_v28, %v774_v27 }
 0x144   :  { %v1248_v43 = vpop.f32.mrf.mxu0 }
 0x145   :  { %v779_v34 = vadd.f32 %v1317_v39, %v649_v38  ;;  %v1249_v63 = vadd.f32 %v1248_v43, %v1247_v37  ;;  %v1319_v46 = vpop.f32.mrf.mxu1  ;;  %v870_v52 = vadd.f32 %v869_v41, %v2138_v44 }
 0x146   :  { %v1250_v48 = vpop.f32.mrf.mxu0  ;;  %v1320_v51 = vadd.f32 %v1319_v46, %v1318_v42 }
 0x147   :  { %v654_v50 = vadd.f32 %v1249_v63, %v2081_v47  ;;  %v1321_v53 = vpop.f32.mrf.mxu1  ;;  %v859_v58 = vadd.f32 %v2100_v28, %v779_v34 }
 0x148   :  { %v1251_v54 = vpop.f32.mrf.mxu0 }
 0x149   :  { %v784_v40 = vadd.f32 %v1320_v51, %v654_v50  ;;  %v1252_v56 = vadd.f32 %v1251_v54, %v1250_v48  ;;  %v1322_v5 = vpop.f32.mrf.mxu1  ;;  %v871_v6 = vadd.f32 %v870_v52, %v859_v58 }
 0x14a   :  { %v1253_v60 = vpop.f32.mrf.mxu0  ;;  %v1323_v4 = vadd.f32 %v1322_v5, %v1321_v53 }
 0x14b   :  { %v659_v61 = vadd.f32 %v1252_v56, %v2083_v57  ;;  %v1324_v8 = vpop.f32.mrf.mxu1  ;;  %v860_v11 = vadd.f32 %v2100_v28, %v784_v40 }
 0x14c   :  { %v1254_v47 = vpop.f32.mrf.mxu0 }
 0x14d   :  { %v789_v10 = vadd.f32 %v1323_v4, %v659_v61  ;;  %v1255_v13 = vadd.f32 %v1254_v47, %v1253_v60  ;;  %v1325_v14 = vpop.f32.mrf.mxu1  ;;  %v872_v57 = vadd.f32 %v871_v6, %v860_v11 }
 0x14e   :  { %v1256_v15 = vpop.f32.mrf.mxu0  ;;  %v1326_v17 = vadd.f32 %v1325_v14, %v1324_v8 }
 0x14f   :  { %v664_v16 = vadd.f32 %v1255_v13, %v2089_v1  ;;  %v1327_v18 = vpop.f32.mrf.mxu1  ;;  %v861_v2 = vadd.f32 %v2100_v28, %v789_v10 }
 0x150   :  { %v1257_v20 = vpop.f32.mrf.mxu0 }
 0x151   :  { %v794_v19 = vadd.f32 %v1326_v17, %v664_v16  ;;  %v1258_v62 = vadd.f32 %v1257_v20, %v1256_v15  ;;  %v1328_v22 = vpop.f32.mrf.mxu1  ;;  %v873_v3 = vadd.f32 %v872_v57, %v861_v2 }
 0x152   :  { %v1329_v0 = vadd.f32 %v1328_v22, %v1327_v18 }
 0x153   :  { %v669_v24 = vadd.f32 %v1258_v62, %v539_v21  ;;  %v862_v1 = vadd.f32 %v2100_v28, %v794_v19 }
 0x155   :  { %v799_v26 = vadd.f32 %v1329_v0, %v669_v24  ;;  %v874_v29 = vadd.f32 %v873_v3, %v862_v1 }
 0x157   :  { %v814_v49 = vadd.f32 %v799_v26, %v49_v25 }
 0x159   :  { %827 = vst [vmem:[%s2232_s5 + $0x60] sm:$0x3] %v814_v49 }
 0x160   :  { %v843_v30 = vld [vmem:[%s2232_s5 + $0x60] sm:$0x3] }
 0x161   :  { %v863_v31 = vadd.f32 %v2100_v28, %v843_v30 }
 0x163   :  { %v876_v27 = vsel %vm875_vm0, %v863_v31, 0.0 }
 0x164   :  { %v877_v32 = vadd.f32 %v876_v27, %v874_v29  ;;  %v1044_v29 = vld [vmem:[%s2234_s3] ss:$0 sm:$0xff] }
 0x166   :  { %v878_v36 = vrot.slane %v877_v32, 4 }
 0x168   :  { %v879_v37 = vadd.f32 %v878_v36, %v877_v32 }
 0x16a   :  { %v880_v38 = vrot.slane %v879_v37, 2 }
 0x16c   :  { %v881_v39 = vadd.f32 %v880_v38, %v879_v37 }
 0x16e   :  { %v882_v41 = vrot.slane %v881_v39, 1 }
 0x170   :  { %v883_v42 = vadd.f32 %v882_v41, %v881_v39 }
 0x172   :  { %v885_v43 = vmul.f32 0.010204081, %v883_v42 }
 0x174   :  { %v886_v34 = vsub.f32 %v2104_v35, %v885_v43  ;;  %v887_v63 = vsub.f32 %v2107_v55, %v885_v43  ;;  %v888_v46 = vsub.f32 %v2113_v45, %v885_v43  ;;  %v889_v48 = vsub.f32 %v2118_v59, %v885_v43 }
 0x175   :  { %v890_v28 = vsub.f32 %v2123_v12, %v885_v43  ;;  %v891_v50 = vsub.f32 %v2128_v23, %v885_v43  ;;  %v892_v51 = vsub.f32 %v2133_v33, %v885_v43  ;;  %v893_v52 = vsub.f32 %v2138_v44, %v885_v43 }
 0x176   :  { %v894_v53 = vsub.f32 %v859_v58, %v885_v43  ;;  %v895_v54 = vsub.f32 %v860_v11, %v885_v43  ;;  %v896_v40 = vsub.f32 %v861_v2, %v885_v43  ;;  %v897_v56 = vsub.f32 %v862_v1, %v885_v43 }
 0x177   :  { %v899_v5 = vmul.f32 %v886_v34, %v886_v34  ;;  %v900_v35 = vmul.f32 %v887_v63, %v887_v63  ;;  %v901_v60 = vmul.f32 %v888_v46, %v888_v46  ;;  %v902_v61 = vmul.f32 %v889_v48, %v889_v48 }
 0x178   :  { %v903_v4 = vmul.f32 %v890_v28, %v890_v28  ;;  %v904_v6 = vmul.f32 %v891_v50, %v891_v50  ;;  %v905_v7 = vmul.f32 %v892_v51, %v892_v51  ;;  %v906_v8 = vmul.f32 %v893_v52, %v893_v52 }
 0x179   :  { %v912_v55 = vadd.f32 %v900_v35, %v899_v5  ;;  %v907_v47 = vmul.f32 %v894_v53, %v894_v53  ;;  %v898_v58 = vsub.f32 %v863_v31, %v885_v43  ;;  %v908_v9 = vmul.f32 %v895_v54, %v895_v54 }
 0x17a   :  { %v909_v13 = vmul.f32 %v896_v40, %v896_v40  ;;  %v910_v15 = vmul.f32 %v897_v56, %v897_v56 }
 0x17b   :  { %v913_v45 = vadd.f32 %v912_v55, %v901_v60  ;;  %v911_v14 = vmul.f32 %v898_v58, %v898_v58 }
 0x17d   :  { %v914_v59 = vadd.f32 %v913_v45, %v902_v61  ;;  %v923_v57 = vsel %vm875_vm0, %v911_v14, 0.0 }
 0x17f   :  { %v915_v12 = vadd.f32 %v914_v59, %v903_v4 }
 0x181   :  { %v916_v23 = vadd.f32 %v915_v12, %v904_v6 }
 0x183   :  { %v917_v33 = vadd.f32 %v916_v23, %v905_v7 }
 0x185   :  { %v918_v44 = vadd.f32 %v917_v33, %v906_v8 }
 0x187   :  { %v919_v10 = vadd.f32 %v918_v44, %v907_v47 }
 0x189   :  { %v920_v11 = vadd.f32 %v919_v10, %v908_v9 }
 0x18b   :  { %v921_v16 = vadd.f32 %v920_v11, %v909_v13 }
 0x18d   :  { %v922_v17 = vadd.f32 %v921_v16, %v910_v15 }
 0x18f   :  { %v924_v18 = vadd.f32 %v923_v57, %v922_v17 }
 0x191   :  { %v925_v20 = vrot.slane %v924_v18, 4 }
 0x193   :  { %v926_v21 = vadd.f32 %v925_v20, %v924_v18 }
 0x195   :  { %v927_v19 = vrot.slane %v926_v21, 2 }
 0x197   :  { %v928_v62 = vadd.f32 %v927_v19, %v926_v21 }
 0x199   :  { %v929_v2 = vrot.slane %v928_v62, 1 }
 0x19b   :  { %v930_v22 = vadd.f32 %v929_v2, %v928_v62 }
 0x19d   :  { %v931_v24 = vmul.f32 0.010204081, %v930_v22 }
 0x19f   :  { %v932_v0 = vadd.f32 1e-05, %v931_v24 }
 0x1a1   :  { %1331 = vrsqrt.f32 %v932_v0 }
 0x1ae   :  { %v1332_v3 = vpop.eup %1331 }
 0x1af   :  { %v934_v25 = vmul.f32 %v1332_v3, %v886_v34  ;;  %v935_v26 = vmul.f32 %v1332_v3, %v887_v63  ;;  %v936_v1 = vmul.f32 %v1332_v3, %v888_v46  ;;  %v937_v49 = vmul.f32 %v1332_v3, %v889_v48  ;;  %v1045_v34 = vld [vmem:[%s2235_s4] ss:$0 sm:$0xff] }
 0x1b0   :  { %v938_v30 = vmul.f32 %v1332_v3, %v890_v28  ;;  %v939_v31 = vmul.f32 %v1332_v3, %v891_v50  ;;  %v940_v27 = vmul.f32 %v1332_v3, %v892_v51  ;;  %v941_v32 = vmul.f32 %v1332_v3, %v893_v52 }
 0x1b1   :  { %v942_v36 = vmul.f32 %v1332_v3, %v894_v53  ;;  %v943_v37 = vmul.f32 %v1332_v3, %v895_v54  ;;  %v944_v38 = vmul.f32 %v1332_v3, %v896_v40  ;;  %v945_v39 = vmul.f32 %v1332_v3, %v897_v56 }
 0x1b2   :  { %v946_v41 = vmul.f32 %v1332_v3, %v898_v58  ;;  %v954_v42 = vmul.f32 %v1044_v29, %v934_v25  ;;  %v955_v43 = vmul.f32 %v1044_v29, %v935_v26  ;;  %v956_v5 = vmul.f32 %v1044_v29, %v936_v1 }
 0x1b3   :  { %v957_v63 = vmul.f32 %v1044_v29, %v937_v49  ;;  %v958_v46 = vmul.f32 %v1044_v29, %v938_v30  ;;  %v959_v48 = vmul.f32 %v1044_v29, %v939_v31  ;;  %v960_v35 = vmul.f32 %v1044_v29, %v940_v27 }
 0x1b4   :  { %v961_v28 = vmul.f32 %v1044_v29, %v941_v32  ;;  %v962_v50 = vmul.f32 %v1044_v29, %v942_v36  ;;  %v963_v51 = vmul.f32 %v1044_v29, %v943_v37  ;;  %v964_v52 = vmul.f32 %v1044_v29, %v944_v38 }
 0x1b5   :  { %v965_v53 = vmul.f32 %v1044_v29, %v945_v39  ;;  %v966_v54 = vmul.f32 %v1044_v29, %v946_v41  ;;  %v974_v40 = vadd.f32 %v1045_v34, %v954_v42  ;;  %v975_v56 = vadd.f32 %v1045_v34, %v955_v43 }
 0x1b6   :  { %v976_v60 = vadd.f32 %v1045_v34, %v956_v5  ;;  %v977_v55 = vadd.f32 %v1045_v34, %v957_v63  ;;  %v978_v61 = vadd.f32 %v1045_v34, %v958_v46  ;;  %v979_v45 = vadd.f32 %v1045_v34, %v959_v48 }
 0x1b7   :  { %v980_v4 = vadd.f32 %v1045_v34, %v960_v35  ;;  %v981_v59 = vadd.f32 %v1045_v34, %v961_v28  ;;  %v982_v6 = vadd.f32 %v1045_v34, %v962_v50  ;;  %v983_v12 = vadd.f32 %v1045_v34, %v963_v51 }
 0x1b8   :  { %v984_v7 = vadd.f32 %v1045_v34, %v964_v52  ;;  %v985_v23 = vadd.f32 %v1045_v34, %v965_v53  ;;  %v986_v8 = vadd.f32 %v1045_v34, %v966_v54  ;;  %vm987_vm1 = vcmp.ge.f32.partialorder %v974_v40, 0.0 }
 0x1b9   :  { %vm988_vm2 = vcmp.ge.f32.partialorder %v975_v56, 0.0  ;;  %vm989_vm3 = vcmp.ge.f32.partialorder %v976_v60, 0.0  ;;  %vm990_vm4 = vcmp.ge.f32.partialorder %v977_v55, 0.0  ;;  %vm991_vm5 = vcmp.ge.f32.partialorder %v978_v61, 0.0 }
 0x1ba   :  { %vm992_vm6 = vcmp.ge.f32.partialorder %v979_v45, 0.0  ;;  %vm993_vm7 = vcmp.ge.f32.partialorder %v980_v4, 0.0  ;;  %vm994_vm8 = vcmp.ge.f32.partialorder %v981_v59, 0.0  ;;  %vm995_vm9 = vcmp.ge.f32.partialorder %v982_v6, 0.0 }
 0x1bb   :  { %vm996_vm10 = vcmp.ge.f32.partialorder %v983_v12, 0.0  ;;  %vm997_vm11 = vcmp.ge.f32.partialorder %v984_v7, 0.0  ;;  %vm998_vm12 = vcmp.ge.f32.partialorder %v985_v23, 0.0  ;;  %vm999_vm13 = vcmp.ge.f32.partialorder %v986_v8, 0.0 }
 0x1bc   :  { %v1000_v33 = vmul.f32 0.2, %v974_v40  ;;  %v1001_v47 = vmul.f32 0.2, %v975_v56  ;;  %v1002_v44 = vmul.f32 0.2, %v976_v60 }
 0x1bd   :  { %v1003_v58 = vmul.f32 0.2, %v977_v55  ;;  %v1004_v9 = vmul.f32 0.2, %v978_v61  ;;  %v1005_v10 = vmul.f32 0.2, %v979_v45 }
 0x1be   :  { %v1006_v13 = vmul.f32 0.2, %v980_v4  ;;  %v1007_v11 = vmul.f32 0.2, %v981_v59  ;;  %v1008_v14 = vmul.f32 0.2, %v982_v6  ;;  %v1013_v15 = vsel %vm987_vm1, %v974_v40, %v1000_v33 }
 0x1bf   :  { %v1009_v16 = vmul.f32 0.2, %v983_v12  ;;  %v1010_v17 = vmul.f32 0.2, %v984_v7  ;;  %v1011_v57 = vmul.f32 0.2, %v985_v23  ;;  %v1014_v18 = vsel %vm988_vm2, %v975_v56, %v1001_v47  ;;  %1026 = vst [vmem:[%s2232_s5] sm:$0xff] %v1013_v15 }
 0x1c0   :  { %v1012_v20 = vmul.f32 0.2, %v986_v8  ;;  %v1015_v21 = vsel %vm989_vm3, %v976_v60, %v1002_v44  ;;  %v1016_v19 = vsel %vm990_vm4, %v977_v55, %v1003_v58  ;;  %v1017_v62 = vsel %vm991_vm5, %v978_v61, %v1004_v9  ;;  %1027 = vst [vmem:[%s2232_s5 + $0x8] sm:$0xff] %v1014_v18 }
 0x1c1   :  { %v1018_v2 = vsel %vm992_vm6, %v979_v45, %v1005_v10  ;;  %v1019_v22 = vsel %vm993_vm7, %v980_v4, %v1006_v13  ;;  %v1020_v24 = vsel %vm994_vm8, %v981_v59, %v1007_v11  ;;  %v1021_v0 = vsel %vm995_vm9, %v982_v6, %v1008_v14  ;;  %1028 = vst [vmem:[%s2232_s5 + $0x10] sm:$0xff] %v1015_v21 }
 0x1c2   :  { %1029 = vst [vmem:[%s2232_s5 + $0x18] sm:$0xff] %v1016_v19  ;;  %1030 = vst [vmem:[%s2232_s5 + $0x20] sm:$0xff] %v1017_v62  ;;  %v1022_v3 = vsel %vm996_vm10, %v983_v12, %v1009_v16  ;;  %v1023_v25 = vsel %vm997_vm11, %v984_v7, %v1010_v17  ;;  %v1024_v26 = vsel %vm998_vm12, %v985_v23, %v1011_v57 }
 0x1c3   :  { %v1025_v1 = vsel %vm999_vm13, %v986_v8, %v1012_v20  ;;  %1031 = vst [vmem:[%s2232_s5 + $0x28] sm:$0xff] %v1018_v2  ;;  %1032 = vst [vmem:[%s2232_s5 + $0x30] sm:$0xff] %v1019_v22 }
 0x1c4   :  { %1033 = vst [vmem:[%s2232_s5 + $0x38] sm:$0xff] %v1020_v24  ;;  %1034 = vst [vmem:[%s2232_s5 + $0x40] sm:$0xff] %v1021_v0 }
 0x1c5   :  { %1035 = vst [vmem:[%s2232_s5 + $0x48] sm:$0xff] %v1022_v3  ;;  %1036 = vst [vmem:[%s2232_s5 + $0x50] sm:$0xff] %v1023_v25 }
 0x1c6   :  { %1037 = vst [vmem:[%s2232_s5 + $0x58] sm:$0xff] %v1024_v26  ;;  %1038 = vst [vmem:[%s2232_s5 + $0x60] sm:$0x3] %v1025_v1 }

// kernel: fe_forward.5
= control target key start
LH: loop header
LB: loop body
LE: loop exit
PB: predicated region body
PF: predicated region fallthrough
CT: control target
= control target key end

     0   :  { %10 = vsyncpa [#allocation3], 0  ;;  %s14723_s18 = smov 0   ;;  %s14725_s19 = smov 0   ;;  %s16990_s0 = inlined_call_operand.vmem [shape: f32[2,6400], index: 0, kind: input, shape index: {}]   ;;  %s16991_s1 = inlined_call_operand.vmem [shape: bf16[6400,1024], index: 1, kind: input, shape index: {}]   ;;  %s16992_s2 = inlined_call_operand.vmem [shape: f32[1,1024], index: 2, kind: input, shape index: {}]   ;;  %s16993_s3 = inlined_call_operand.vmem [shape: f32[1,1024], index: 3, kind: input, shape index: {}]   ;;  %s16994_s4 = inlined_call_operand.vmem [shape: f32[1,1024], index: 4, kind: input, shape index: {}]   ;;  %s16995_s5 = inlined_call_operand.hbm [shape: f32[2,1024], index: 5, kind: output, shape index: {}]  }
   0x1   :  { %s14727_s20 = smov 0  }
   0x2 LB: > { %s12963_s21 = sadd.s32 4294967295, %s14687_s20   ;;  %s25_s22 = sadd.s32 1, %s14683_s19  ;;  %s14687_s20 = sphi %s14727_s20, %s16_s20   ;;  %s14683_s19 = sphi %s14725_s19, %s16998_s19   ;;  %s14679_s18 = sphi %s14723_s18, %s16997_s18  }
   0x3   : > { %p26_p0 = scmp.ge.s32.totalorder %s25_s22, 2  ;;  %p12969_p1 = scmp.ge.s32.totalorder %s14687_s20, 1 }
   0x4   : > { %p250_p2 = scmp.lt.s32.totalorder %s14687_s20, 3 }
   0x5   : > { %s17000_s22 = smov (%p26_p0, %s25_s22), 0 }
   0x6   : > { %p251_p3 = pnand %p12969_p1, %p250_p2 }
   0x7   : > { %s295_s23 = smul.u32 (!%p251_p3), 25, %s14679_s18  ;;  %p12973_p6 = scmp.ne.s32.totalorder (!%p251_p3), %s14679_s18, 0 }
   0x8   : > { %254 = sbr.rel (%p251_p3) target bundleno = 1955 (0x7a3), region = 40 }
   0x9   : > { %s301_s24 = smul.u32 (!%p251_p3), 400, %s14679_s18  ;;  %p296_p4 = scmp.lt.s32.totalorder (!%p251_p3), %s295_s23, 49 }
   0xb   : > { %p303_p5 = scmp.lt.s32.totalorder (!%p251_p3), %s301_s24, 799 }
   0xd   : > { %s17002_s23 = smov (!%p296_p4, %s295_s23), 49  ;;  %s17004_s24 = smov (!%p303_p5, %s301_s24), 799 }
   0xe   : > { %s12970_s25 = sshll.u32 %s17002_s23, 1  ;;  %s14580_s29 = sshll.u32 %s17004_s24, 5 }
   0xf   : > { %s14749_s28 = scalar_lea.vmem %s16990_s0, %s12970_s25  ;;  %s14754_s7 = scalar_lea.vmem %s16991_s1, %s14580_s29 }
  0x10   : > { %333 = sbr.rel (%p12973_p6) target bundleno = 23 (0x17), region = 44 }
  0x15   : > { %v14689_v0 = vmov 0.0  }
  0x16   : > { %334 = vst [vmem:[#allocation2] sm:$0xff] %v14689_v0  ;;  %335 = vst [vmem:[#allocation2 + $0x8] sm:$0xff] %v14689_v0 }
  0x17 PF: > { %v567_v1 = vld [vmem:[%s14754_s7 + $0x1c0] sm:$0xff]  ;;  %v14690_v33 = vmov 1983009808   ;;  %v356_v35 = vlaneseq  ;;  %p14575_p7 = scmp.ne.s32.totalorder %s14679_s18, 1 }
  0x18   : > { %v571_v2 = vld [vmem:[%s14754_s7 + $0x1e0] sm:$0xff]  ;;  %v354_v34 = vunpack.c.l.s4 %v14690_v33 }
  0x19   : > { %v695_v3 = vld [vmem:[%s14754_s7 + $0x5c0] sm:$0xff]  ;;  %v13032_v4 = vcombine.high %v567_v1, %v571_v2  ;;  %v13031_v6 = vcombine.low %v567_v1, %v571_v2  ;;  %v14779_v45 = vshrl.u32 %v356_v35, 7 }
  0x1a   : > { %v699_v5 = vld [vmem:[%s14754_s7 + $0x5e0] sm:$0xff]  ;;  %v355_v44 = vunpack.c.0.s8 %v354_v34 }
  0x1b   : > { %v559_v7 = vld [vmem:[%s14754_s7 + $0x180] sm:$0xff]  ;;  %v13160_v9 = vcombine.high %v695_v3, %v699_v5  ;;  %v13159_v10 = vcombine.low %v695_v3, %v699_v5  ;;  %10111 = vmatprep.subr.bf16.mxu0 %v13032_v4 }
  0x1c   : > { %v563_v8 = vld [vmem:[%s14754_s7 + $0x1a0] sm:$0xff]  ;;  %10112 = vmatpush1.bf16.msra.mxu0 %v13031_v6  ;;  %v14786_v54 = vsub.s32 %v355_v44, %v14779_v45 }
  0x1d   : > { %v13024_v11 = vcombine.high %v559_v7, %v563_v8  ;;  %v687_v12 = vld [vmem:[%s14754_s7 + $0x580] sm:$0xff]  ;;  %10152 = vmatprep.subr.bf16.mxu1 %v13160_v9  ;;  %v13023_v19 = vcombine.low %v559_v7, %v563_v8 }
  0x1e   : > { %v691_v13 = vld [vmem:[%s14754_s7 + $0x5a0] sm:$0xff]  ;;  %10153 = vmatpush1.bf16.msra.mxu1 %v13159_v10 }
  0x1f   : > { %v551_v14 = vld [vmem:[%s14754_s7 + $0x140] sm:$0xff]  ;;  %v13152_v15 = vcombine.high %v687_v12, %v691_v13  ;;  %10113 = vmatprep.subr.bf16.mxu0 %v13024_v11  ;;  %v13151_v20 = vcombine.low %v687_v12, %v691_v13 }
  0x20   : > { %v555_v16 = vld [vmem:[%s14754_s7 + $0x160] sm:$0xff]  ;;  %10114 = vmatpush1.bf16.msra.mxu0 %v13023_v19 }
  0x21   : > { %v679_v17 = vld [vmem:[%s14754_s7 + $0x540] sm:$0xff]  ;;  %v13016_v21 = vcombine.high %v551_v14, %v555_v16  ;;  %10154 = vmatprep.subr.bf16.mxu1 %v13152_v15  ;;  %v13015_v27 = vcombine.low %v551_v14, %v555_v16 }
  0x22   : > { %v683_v18 = vld [vmem:[%s14754_s7 + $0x560] sm:$0xff]  ;;  %10155 = vmatpush1.bf16.msra.mxu1 %v13151_v20 }
  0x23   : > { %v13144_v22 = vcombine.high %v679_v17, %v683_v18  ;;  %v543_v23 = vld [vmem:[%s14754_s7 + $0x100] sm:$0xff]  ;;  %10115 = vmatprep.subr.bf16.mxu0 %v13016_v21  ;;  %v13143_v28 = vcombine.low %v679_v17, %v683_v18 }
  0x24   : > { %v547_v24 = vld [vmem:[%s14754_s7 + $0x120] sm:$0xff]  ;;  %10116 = vmatpush1.bf16.msra.mxu0 %v13015_v27 }
  0x25   : > { %v671_v25 = vld [vmem:[%s14754_s7 + $0x500] sm:$0xff]  ;;  %v13008_v29 = vcombine.high %v543_v23, %v547_v24  ;;  %10156 = vmatprep.subr.bf16.mxu1 %v13144_v22  ;;  %v13007_v38 = vcombine.low %v543_v23, %v547_v24 }
  0x26   : > { %v675_v26 = vld [vmem:[%s14754_s7 + $0x520] sm:$0xff]  ;;  %10157 = vmatpush1.bf16.msra.mxu1 %v13143_v28 }
  0x27   : > { %v13136_v30 = vcombine.high %v671_v25, %v675_v26  ;;  %v535_v31 = vld [vmem:[%s14754_s7 + $0xc0] sm:$0xff]  ;;  %10117 = vmatprep.subr.bf16.mxu0 %v13008_v29  ;;  %v13135_v39 = vcombine.low %v671_v25, %v675_v26 }
  0x28   : > { %v539_v32 = vld [vmem:[%s14754_s7 + $0xe0] sm:$0xff]  ;;  %10118 = vmatpush1.bf16.msra.mxu0 %v13007_v38 }
  0x29   : > { %v663_v36 = vld [vmem:[%s14754_s7 + $0x4c0] sm:$0xff]  ;;  %v13000_v40 = vcombine.high %v535_v31, %v539_v32  ;;  %10158 = vmatprep.subr.bf16.mxu1 %v13136_v30  ;;  %v12999_v48 = vcombine.low %v535_v31, %v539_v32 }
  0x2a   : > { %v667_v37 = vld [vmem:[%s14754_s7 + $0x4e0] sm:$0xff]  ;;  %10159 = vmatpush1.bf16.msra.mxu1 %v13135_v39 }
  0x2b   : > { %v13128_v41 = vcombine.high %v663_v36, %v667_v37  ;;  %v527_v42 = vld [vmem:[%s14754_s7 + $0x80] sm:$0xff]  ;;  %10119 = vmatprep.subr.bf16.mxu0 %v13000_v40  ;;  %v13127_v49 = vcombine.low %v663_v36, %v667_v37 }
  0x2c   : > { %v531_v43 = vld [vmem:[%s14754_s7 + $0xa0] sm:$0xff]  ;;  %10120 = vmatpush1.bf16.msra.mxu0 %v12999_v48 }
  0x2d   : > { %v655_v46 = vld [vmem:[%s14754_s7 + $0x480] sm:$0xff]  ;;  %v12992_v50 = vcombine.high %v527_v42, %v531_v43  ;;  %10160 = vmatprep.subr.bf16.mxu1 %v13128_v41  ;;  %v12991_v57 = vcombine.low %v527_v42, %v531_v43 }
  0x2e   : > { %v659_v47 = vld [vmem:[%s14754_s7 + $0x4a0] sm:$0xff]  ;;  %10161 = vmatpush1.bf16.msra.mxu1 %v13127_v49 }
  0x2f   : > { %v13120_v51 = vcombine.high %v655_v46, %v659_v47  ;;  %v519_v52 = vld [vmem:[%s14754_s7 + $0x40] sm:$0xff]  ;;  %10121 = vmatprep.subr.bf16.mxu0 %v12992_v50  ;;  %v13119_v58 = vcombine.low %v655_v46, %v659_v47 }
  0x30   : > { %v523_v53 = vld [vmem:[%s14754_s7 + $0x60] sm:$0xff]  ;;  %10122 = vmatpush1.bf16.msra.mxu0 %v12991_v57 }
  0x31   : > { %v647_v55 = vld [vmem:[%s14754_s7 + $0x440] sm:$0xff]  ;;  %v12984_v59 = vcombine.high %v519_v52, %v523_v53  ;;  %10162 = vmatprep.subr.bf16.mxu1 %v13120_v51  ;;  %v12983_v4 = vcombine.low %v519_v52, %v523_v53 }
  0x32   : > { %v651_v56 = vld [vmem:[%s14754_s7 + $0x460] sm:$0xff]  ;;  %10163 = vmatpush1.bf16.msra.mxu1 %v13119_v58 }
  0x33   : > { %v338_v60 = vld [vmem:[%s14749_s28] sm:$0xff]  ;;  %v13112_v61 = vcombine.high %v647_v55, %v651_v56  ;;  %10123 = vmatprep.subr.bf16.mxu0 %v12984_v59  ;;  %v13111_v7 = vcombine.low %v647_v55, %v651_v56 }
  0x34   : > { %v511_v62 = vld [vmem:[%s14754_s7] sm:$0xff]  ;;  %v14794_v0 = vrot.slane %v338_v60, %v14786_v54  ;;  %v352_v1 = vcombine.high %v338_v60, %v338_v60  ;;  %10124 = vmatpush1.bf16.msra.mxu0 %v12983_v4 }
  0x35   : > { %v515_v63 = vld [vmem:[%s14754_s7 + $0x20] sm:$0xff]  ;;  %10164 = vmatprep.subr.bf16.mxu1 %v13112_v61 }
  0x36   : > { %v639_v2 = vld [vmem:[%s14754_s7 + $0x400] sm:$0xff]  ;;  %v367_v5 = vcombine.high %v14794_v0, %v14794_v0  ;;  %v14801_v6 = vrot.slane %v352_v1, %v14786_v54  ;;  %v12976_v8 = vcombine.high %v511_v62, %v515_v63  ;;  %v12975_v16 = vcombine.low %v511_v62, %v515_v63  ;;  %10165 = vmatpush1.bf16.msra.mxu1 %v13111_v7 }
  0x37   : > { %v643_v3 = vld [vmem:[%s14754_s7 + $0x420] sm:$0xff] }
  0x38   : > { %v13104_v9 = vcombine.high %v639_v2, %v643_v3  ;;  %v631_v10 = vld [vmem:[%s14754_s7 + $0x3c0] sm:$0xff]  ;;  %v14805_v12 = vpack.c.bf16 %v367_v5, %v367_v5  ;;  %v368_v13 = vcombine.high %v14801_v6, %v14801_v6  ;;  %10125 = vmatprep.subr.bf16.mxu0 %v12976_v8  ;;  %v13103_v18 = vcombine.low %v639_v2, %v643_v3  ;;  %v339_v5 = vld [vmem:[%s14749_s28 + $0x8] sm:$0xff] }
  0x39   : > { %v635_v11 = vld [vmem:[%s14754_s7 + $0x3e0] sm:$0xff]  ;;  %10126 = vmatpush1.bf16.msra.mxu0 %v12975_v16 }
  0x3a   : > { %v759_v14 = vld [vmem:[%s14754_s7 + $0x7c0] sm:$0xff]  ;;  %10143 = vmatprep.mubr.bf16.mxu0 %v14805_v12  ;;  %v14812_v17 = vpack.c.bf16 %v368_v13, %v368_v13  ;;  %v13096_v19 = vcombine.high %v631_v10, %v635_v11  ;;  %10166 = vmatprep.subr.bf16.mxu1 %v13104_v9  ;;  %v13095_v25 = vcombine.low %v631_v10, %v635_v11 }
  0x3b   : > { %v763_v15 = vld [vmem:[%s14754_s7 + $0x7e0] sm:$0xff]  ;;  %10167 = vmatpush1.bf16.msra.mxu1 %v13103_v18 }
  0x3c   : > { %v13224_v20 = vcombine.high %v759_v14, %v763_v15  ;;  %v623_v21 = vld [vmem:[%s14754_s7 + $0x380] sm:$0xff]  ;;  %10184 = vmatprep.mubr.bf16.mxu1 %v14812_v17  ;;  %10127 = vmatprep.subr.bf16.mxu0 %v13096_v19  ;;  %v13223_v26 = vcombine.low %v759_v14, %v763_v15  ;;  %v369_v15 = vcombine.high %v339_v5, %v339_v5 }
  0x3d   : > { %v627_v22 = vld [vmem:[%s14754_s7 + $0x3a0] sm:$0xff]  ;;  %10128 = vmatpush2.bf16.msra.mxu0 %v13095_v25 }
  0x3e   : > { %v751_v23 = vld [vmem:[%s14754_s7 + $0x780] sm:$0xff]  ;;  %v13088_v27 = vcombine.high %v623_v21, %v627_v22  ;;  %10168 = vmatprep.subr.bf16.mxu1 %v13224_v20  ;;  %v13087_v33 = vcombine.low %v623_v21, %v627_v22 }
  0x3f   : > { %v755_v24 = vld [vmem:[%s14754_s7 + $0x7a0] sm:$0xff]  ;;  %10169 = vmatpush2.bf16.msra.mxu1 %v13223_v26  ;;  %v14852_v26 = vrot.slane %v369_v15, %v14786_v54 }
  0x40   : > { %v13216_v28 = vcombine.high %v751_v23, %v755_v24  ;;  %v615_v29 = vld [vmem:[%s14754_s7 + $0x340] sm:$0xff]  ;;  %10129 = vmatprep.subr.bf16.mxu0 %v13088_v27  ;;  %v13215_v34 = vcombine.low %v751_v23, %v755_v24  ;;  %v14847_v23 = vrot.slane %v339_v5, %v14786_v54 }
  0x41   : > { %v619_v30 = vld [vmem:[%s14754_s7 + $0x360] sm:$0xff]  ;;  %10130 = vmatpush2.bf16.msra.mxu0 %v13087_v33 }
  0x42   : > { %v743_v31 = vld [vmem:[%s14754_s7 + $0x740] sm:$0xff]  ;;  %v13080_v35 = vcombine.high %v615_v29, %v619_v30  ;;  %10170 = vmatprep.subr.bf16.mxu1 %v13216_v28  ;;  %v13079_v41 = vcombine.low %v615_v29, %v619_v30  ;;  %v384_v33 = vcombine.high %v14847_v23, %v14847_v23 }
  0x43   : > { %v747_v32 = vld [vmem:[%s14754_s7 + $0x760] sm:$0xff]  ;;  %10171 = vmatpush2.bf16.msra.mxu1 %v13215_v34  ;;  %v14860_v34 = vpack.c.bf16 %v14794_v0, %v14794_v0 }
  0x44   : > { %v13208_v36 = vcombine.high %v743_v31, %v747_v32  ;;  %v607_v37 = vld [vmem:[%s14754_s7 + $0x300] sm:$0xff]  ;;  %10131 = vmatprep.subr.bf16.mxu0 %v13080_v35  ;;  %v13207_v42 = vcombine.low %v743_v31, %v747_v32 }
  0x45   : > { %v611_v38 = vld [vmem:[%s14754_s7 + $0x320] sm:$0xff]  ;;  %10132 = vmatpush2.bf16.msra.mxu0 %v13079_v41 }
  0x46   : > { %v735_v39 = vld [vmem:[%s14754_s7 + $0x700] sm:$0xff]  ;;  %v13072_v43 = vcombine.high %v607_v37, %v611_v38  ;;  %10172 = vmatprep.subr.bf16.mxu1 %v13208_v36  ;;  %v13071_v50 = vcombine.low %v607_v37, %v611_v38  ;;  %v385_v37 = vcombine.high %v14852_v26, %v14852_v26  ;;  %v14868_v38 = vpack.c.bf16 %v14801_v6, %v14801_v6 }
  0x47   : > { %v739_v40 = vld [vmem:[%s14754_s7 + $0x720] sm:$0xff]  ;;  %10173 = vmatpush2.bf16.msra.mxu1 %v13207_v42 }
  0x48   : > { %v13200_v44 = vcombine.high %v735_v39, %v739_v40  ;;  %v599_v46 = vld [vmem:[%s14754_s7 + $0x2c0] sm:$0xff]  ;;  %10133 = vmatprep.subr.bf16.mxu0 %v13072_v43  ;;  %v13199_v51 = vcombine.low %v735_v39, %v739_v40 }
  0x49   : > { %v603_v47 = vld [vmem:[%s14754_s7 + $0x2e0] sm:$0xff]  ;;  %10134 = vmatpush2.bf16.msra.mxu0 %v13071_v50 }
  0x4a   : > { %v727_v48 = vld [vmem:[%s14754_s7 + $0x6c0] sm:$0xff]  ;;  %v13064_v52 = vcombine.high %v599_v46, %v603_v47  ;;  %10174 = vmatprep.subr.bf16.mxu1 %v13200_v44  ;;  %v13063_v59 = vcombine.low %v599_v46, %v603_v47  ;;  %v14872_v44 = vpack.c.bf16 %v384_v33, %v384_v33  ;;  %v14877_v47 = vpack.c.bf16 %v385_v37, %v385_v37 }
  0x4b   : > { %v731_v49 = vld [vmem:[%s14754_s7 + $0x6e0] sm:$0xff]  ;;  %10175 = vmatpush2.bf16.msra.mxu1 %v13199_v51 }
  0x4c   : > { %v13192_v53 = vcombine.high %v727_v48, %v731_v49  ;;  %v591_v55 = vld [vmem:[%s14754_s7 + $0x280] sm:$0xff]  ;;  %10135 = vmatprep.subr.bf16.mxu0 %v13064_v52  ;;  %v13191_v60 = vcombine.low %v727_v48, %v731_v49 }
  0x4d   : > { %v595_v56 = vld [vmem:[%s14754_s7 + $0x2a0] sm:$0xff]  ;;  %10136 = vmatpush2.bf16.msra.mxu0 %v13063_v59 }
  0x4e   : > { %v719_v57 = vld [vmem:[%s14754_s7 + $0x680] sm:$0xff]  ;;  %v13056_v61 = vcombine.high %v591_v55, %v595_v56  ;;  %10176 = vmatprep.subr.bf16.mxu1 %v13192_v53  ;;  %v13055_v4 = vcombine.low %v591_v55, %v595_v56 }
  0x4f   : > { %v723_v58 = vld [vmem:[%s14754_s7 + $0x6a0] sm:$0xff]  ;;  %10177 = vmatpush2.bf16.msra.mxu1 %v13191_v60 }
  0x50   : > { %v13184_v62 = vcombine.high %v719_v57, %v723_v58  ;;  %v583_v63 = vld [vmem:[%s14754_s7 + $0x240] sm:$0xff]  ;;  %10137 = vmatprep.subr.bf16.mxu0 %v13056_v61  ;;  %v13183_v7 = vcombine.low %v719_v57, %v723_v58 }
  0x51   : > { %v587_v1 = vld [vmem:[%s14754_s7 + $0x260] sm:$0xff]  ;;  %10138 = vmatpush2.bf16.msra.mxu0 %v13055_v4 }
  0x52   : > { %v711_v2 = vld [vmem:[%s14754_s7 + $0x640] sm:$0xff]  ;;  %v13048_v8 = vcombine.high %v583_v63, %v587_v1  ;;  %10178 = vmatprep.subr.bf16.mxu1 %v13184_v62  ;;  %v13047_v16 = vcombine.low %v583_v63, %v587_v1 }
  0x53   : > { %v715_v3 = vld [vmem:[%s14754_s7 + $0x660] sm:$0xff]  ;;  %10179 = vmatpush2.bf16.msra.mxu1 %v13183_v7 }
  0x54   : > { %v13176_v9 = vcombine.high %v711_v2, %v715_v3  ;;  %v575_v10 = vld [vmem:[%s14754_s7 + $0x200] sm:$0xff]  ;;  %10139 = vmatprep.subr.bf16.mxu0 %v13048_v8  ;;  %v13175_v18 = vcombine.low %v711_v2, %v715_v3 }
  0x55   : > { %v579_v11 = vld [vmem:[%s14754_s7 + $0x220] sm:$0xff]  ;;  %10140 = vmatpush2.bf16.msra.mxu0 %v13047_v16 }
  0x56   : > { %v703_v13 = vld [vmem:[%s14754_s7 + $0x600] sm:$0xff]  ;;  %v13040_v19 = vcombine.high %v575_v10, %v579_v11  ;;  %10180 = vmatprep.subr.bf16.mxu1 %v13176_v9  ;;  %v13039_v27 = vcombine.low %v575_v10, %v579_v11 }
  0x57   : > { %v707_v14 = vld [vmem:[%s14754_s7 + $0x620] sm:$0xff]  ;;  %10181 = vmatpush2.bf16.msra.mxu1 %v13175_v18 }
  0x58   : > { %v13168_v20 = vcombine.high %v703_v13, %v707_v14  ;;  %v823_v21 = vld [vmem:[%s14754_s7 + $0x9c0] sm:$0xff]  ;;  %10141 = vmatprep.subr.bf16.mxu0 %v13040_v19  ;;  %v13167_v28 = vcombine.low %v703_v13, %v707_v14 }
  0x59   : > { %v827_v22 = vld [vmem:[%s14754_s7 + $0x9e0] sm:$0xff]  ;;  %10142 = vmatpush2.bf16.msra.mxu0 %v13039_v27 }
  0x5a   : > { %v951_v24 = vld [vmem:[%s14754_s7 + $0xdc0] sm:$0xff]  ;;  %v13288_v29 = vcombine.high %v823_v21, %v827_v22  ;;  %10182 = vmatprep.subr.bf16.mxu1 %v13168_v20  ;;  %v13287_v39 = vcombine.low %v823_v21, %v827_v22 }
  0x5b   : > { %v955_v25 = vld [vmem:[%s14754_s7 + $0xde0] sm:$0xff]  ;;  %10183 = vmatpush2.bf16.msra.mxu1 %v13167_v28 }
  0x5c   : > { %v13416_v30 = vcombine.high %v951_v24, %v955_v25  ;;  %v815_v31 = vld [vmem:[%s14754_s7 + $0x980] sm:$0xff]  ;;  %10193 = vmatprep.subr.bf16.mxu0 %v13288_v29  ;;  %v13415_v40 = vcombine.low %v951_v24, %v955_v25  ;;  %10144 = vmatmul.mubr.bf16.vlgmr.msra.gmra.mxu0 %v14860_v34 }
  0x5d   : > { %v819_v32 = vld [vmem:[%s14754_s7 + $0x9a0] sm:$0xff]  ;;  %10194 = vmatpush1.bf16.msra.mxu0 %v13287_v39  ;;  %10225 = vmatprep.mubr.bf16.mxu0 %v14872_v44 }
  0x5e   : > { %v943_v35 = vld [vmem:[%s14754_s7 + $0xd80] sm:$0xff]  ;;  %v13280_v41 = vcombine.high %v815_v31, %v819_v32  ;;  %10234 = vmatprep.subr.bf16.mxu1 %v13416_v30  ;;  %10185 = vmatmul.mubr.bf16.vlgmr.msra.gmra.mxu1 %v14868_v38  ;;  %v13279_v48 = vcombine.low %v815_v31, %v819_v32 }
  0x5f   : > { %v947_v36 = vld [vmem:[%s14754_s7 + $0xda0] sm:$0xff]  ;;  %10235 = vmatpush1.bf16.msra.mxu1 %v13415_v40  ;;  %10266 = vmatprep.mubr.bf16.mxu1 %v14877_v47 }
  0x60   : > { %v13408_v0 = vcombine.high %v943_v35, %v947_v36  ;;  %v807_v42 = vld [vmem:[%s14754_s7 + $0x940] sm:$0xff]  ;;  %10195 = vmatprep.subr.bf16.mxu0 %v13280_v41  ;;  %v13407_v49 = vcombine.low %v943_v35, %v947_v36 }
  0x61   : > { %v811_v43 = vld [vmem:[%s14754_s7 + $0x960] sm:$0xff]  ;;  %10196 = vmatpush1.bf16.msra.mxu0 %v13279_v48 }
  0x62   : > { %v935_v46 = vld [vmem:[%s14754_s7 + $0xd40] sm:$0xff]  ;;  %v13272_v50 = vcombine.high %v807_v42, %v811_v43  ;;  %10236 = vmatprep.subr.bf16.mxu1 %v13408_v0  ;;  %v13271_v57 = vcombine.low %v807_v42, %v811_v43 }
  0x63   : > { %v939_v6 = vld [vmem:[%s14754_s7 + $0xd60] sm:$0xff]  ;;  %10237 = vmatpush1.bf16.msra.mxu1 %v13407_v49 }
  0x64   : > { %v13400_v51 = vcombine.high %v935_v46, %v939_v6  ;;  %v799_v52 = vld [vmem:[%s14754_s7 + $0x900] sm:$0xff]  ;;  %10197 = vmatprep.subr.bf16.mxu0 %v13272_v50  ;;  %v13399_v58 = vcombine.low %v935_v46, %v939_v6 }
  0x65   : > { %v803_v53 = vld [vmem:[%s14754_s7 + $0x920] sm:$0xff]  ;;  %10198 = vmatpush1.bf16.msra.mxu0 %v13271_v57 }
  0x66   : > { %v927_v55 = vld [vmem:[%s14754_s7 + $0xd00] sm:$0xff]  ;;  %v13264_v59 = vcombine.high %v799_v52, %v803_v53  ;;  %10238 = vmatprep.subr.bf16.mxu1 %v13400_v51  ;;  %v13263_v2 = vcombine.low %v799_v52, %v803_v53 }
  0x67   : > { %v931_v56 = vld [vmem:[%s14754_s7 + $0xd20] sm:$0xff]  ;;  %10239 = vmatpush1.bf16.msra.mxu1 %v13399_v58 }
  0x68   : > { %v13392_v60 = vcombine.high %v927_v55, %v931_v56  ;;  %v791_v61 = vld [vmem:[%s14754_s7 + $0x8c0] sm:$0xff]  ;;  %10199 = vmatprep.subr.bf16.mxu0 %v13264_v59  ;;  %v13391_v3 = vcombine.low %v927_v55, %v931_v56 }
  0x69   : > { %v795_v62 = vld [vmem:[%s14754_s7 + $0x8e0] sm:$0xff]  ;;  %10200 = vmatpush1.bf16.msra.mxu0 %v13263_v2 }
  0x6a   : > { %v919_v63 = vld [vmem:[%s14754_s7 + $0xcc0] sm:$0xff]  ;;  %v13256_v4 = vcombine.high %v791_v61, %v795_v62  ;;  %10240 = vmatprep.subr.bf16.mxu1 %v13392_v60  ;;  %v13255_v11 = vcombine.low %v791_v61, %v795_v62 }
  0x6b   : > { %v923_v1 = vld [vmem:[%s14754_s7 + $0xce0] sm:$0xff]  ;;  %10241 = vmatpush1.bf16.msra.mxu1 %v13391_v3 }
  0x6c   : > { %v13384_v5 = vcombine.high %v919_v63, %v923_v1  ;;  %v783_v7 = vld [vmem:[%s14754_s7 + $0x880] sm:$0xff]  ;;  %10201 = vmatprep.subr.bf16.mxu0 %v13256_v4  ;;  %v13383_v13 = vcombine.low %v919_v63, %v923_v1 }
  0x6d   : > { %v787_v8 = vld [vmem:[%s14754_s7 + $0x8a0] sm:$0xff]  ;;  %10202 = vmatpush1.bf16.msra.mxu0 %v13255_v11 }
  0x6e   : > { %v911_v9 = vld [vmem:[%s14754_s7 + $0xc80] sm:$0xff]  ;;  %v13248_v14 = vcombine.high %v783_v7, %v787_v8  ;;  %10242 = vmatprep.subr.bf16.mxu1 %v13384_v5  ;;  %v13247_v21 = vcombine.low %v783_v7, %v787_v8 }
  0x6f   : > { %v915_v10 = vld [vmem:[%s14754_s7 + $0xca0] sm:$0xff]  ;;  %10243 = vmatpush1.bf16.msra.mxu1 %v13383_v13 }
  0x70   : > { %v13376_v15 = vcombine.high %v911_v9, %v915_v10  ;;  %v775_v16 = vld [vmem:[%s14754_s7 + $0x840] sm:$0xff]  ;;  %10203 = vmatprep.subr.bf16.mxu0 %v13248_v14  ;;  %v13375_v22 = vcombine.low %v911_v9, %v915_v10 }
  0x71   : > { %v779_v18 = vld [vmem:[%s14754_s7 + $0x860] sm:$0xff]  ;;  %10204 = vmatpush1.bf16.msra.mxu0 %v13247_v21 }
  0x72   : > { %v903_v19 = vld [vmem:[%s14754_s7 + $0xc40] sm:$0xff]  ;;  %v13240_v24 = vcombine.high %v775_v16, %v779_v18  ;;  %10244 = vmatprep.subr.bf16.mxu1 %v13376_v15  ;;  %v13239_v31 = vcombine.low %v775_v16, %v779_v18 }
  0x73   : > { %v907_v20 = vld [vmem:[%s14754_s7 + $0xc60] sm:$0xff]  ;;  %10245 = vmatpush1.bf16.msra.mxu1 %v13375_v22 }
  0x74   : > { %v13368_v25 = vcombine.high %v903_v19, %v907_v20  ;;  %v767_v27 = vld [vmem:[%s14754_s7 + $0x800] sm:$0xff]  ;;  %10205 = vmatprep.subr.bf16.mxu0 %v13240_v24  ;;  %v13367_v32 = vcombine.low %v903_v19, %v907_v20 }
  0x75   : > { %v771_v28 = vld [vmem:[%s14754_s7 + $0x820] sm:$0xff]  ;;  %10206 = vmatpush1.bf16.msra.mxu0 %v13239_v31 }
  0x76   : > { %v895_v29 = vld [vmem:[%s14754_s7 + $0xc00] sm:$0xff]  ;;  %v13232_v33 = vcombine.high %v767_v27, %v771_v28  ;;  %10246 = vmatprep.subr.bf16.mxu1 %v13368_v25  ;;  %v13231_v41 = vcombine.low %v767_v27, %v771_v28 }
  0x77   : > { %v899_v30 = vld [vmem:[%s14754_s7 + $0xc20] sm:$0xff]  ;;  %10247 = vmatpush1.bf16.msra.mxu1 %v13367_v32 }
  0x78   : > { %v13360_v35 = vcombine.high %v895_v29, %v899_v30  ;;  %v887_v36 = vld [vmem:[%s14754_s7 + $0xbc0] sm:$0xff]  ;;  %10207 = vmatprep.subr.bf16.mxu0 %v13232_v33  ;;  %v13359_v0 = vcombine.low %v895_v29, %v899_v30 }
  0x79   : > { %v891_v37 = vld [vmem:[%s14754_s7 + $0xbe0] sm:$0xff]  ;;  %10208 = vmatpush1.bf16.msra.mxu0 %v13231_v41 }
  0x7a   : > { %v1015_v39 = vld [vmem:[%s14754_s7 + $0xfc0] sm:$0xff]  ;;  %v13352_v42 = vcombine.high %v887_v36, %v891_v37  ;;  %10248 = vmatprep.subr.bf16.mxu1 %v13360_v35  ;;  %v13351_v50 = vcombine.low %v887_v36, %v891_v37  ;;  %v340_v35 = vld [vmem:[%s14749_s28 + $0x10] sm:$0xff] }
  0x7b   : > { %v1019_v40 = vld [vmem:[%s14754_s7 + $0xfe0] sm:$0xff]  ;;  %10249 = vmatpush1.bf16.msra.mxu1 %v13359_v0 }
  0x7c   : > { %v13480_v43 = vcombine.high %v1015_v39, %v1019_v40  ;;  %v879_v46 = vld [vmem:[%s14754_s7 + $0xb80] sm:$0xff]  ;;  %10209 = vmatprep.subr.bf16.mxu0 %v13352_v42  ;;  %v13479_v51 = vcombine.low %v1015_v39, %v1019_v40 }
  0x7d   : > { %v883_v6 = vld [vmem:[%s14754_s7 + $0xba0] sm:$0xff]  ;;  %10210 = vmatpush2.bf16.msra.mxu0 %v13351_v50 }
  0x7e   : > { %v1007_v48 = vld [vmem:[%s14754_s7 + $0xf80] sm:$0xff]  ;;  %v13344_v52 = vcombine.high %v879_v46, %v883_v6  ;;  %10250 = vmatprep.subr.bf16.mxu1 %v13480_v43  ;;  %v13343_v59 = vcombine.low %v879_v46, %v883_v6  ;;  %v386_v43 = vcombine.high %v340_v35, %v340_v35 }
  0x7f   : > { %v1011_v49 = vld [vmem:[%s14754_s7 + $0xfa0] sm:$0xff]  ;;  %10251 = vmatpush2.bf16.msra.mxu1 %v13479_v51 }
  0x80   : > { %v13472_v53 = vcombine.high %v1007_v48, %v1011_v49  ;;  %v871_v55 = vld [vmem:[%s14754_s7 + $0xb40] sm:$0xff]  ;;  %10211 = vmatprep.subr.bf16.mxu0 %v13344_v52  ;;  %v13471_v60 = vcombine.low %v1007_v48, %v1011_v49  ;;  %v14938_v52 = vrot.slane %v340_v35, %v14786_v54 }
  0x81   : > { %v875_v56 = vld [vmem:[%s14754_s7 + $0xb60] sm:$0xff]  ;;  %10212 = vmatpush2.bf16.msra.mxu0 %v13343_v59 }
  0x82   : > { %v999_v57 = vld [vmem:[%s14754_s7 + $0xf40] sm:$0xff]  ;;  %v13336_v61 = vcombine.high %v871_v55, %v875_v56  ;;  %10252 = vmatprep.subr.bf16.mxu1 %v13472_v53  ;;  %v13335_v4 = vcombine.low %v871_v55, %v875_v56  ;;  %v14943_v56 = vrot.slane %v386_v43, %v14786_v54 }
  0x83   : > { %v1003_v58 = vld [vmem:[%s14754_s7 + $0xf60] sm:$0xff]  ;;  %10253 = vmatpush2.bf16.msra.mxu1 %v13471_v60 }
  0x84   : > { %v13464_v62 = vcombine.high %v999_v57, %v1003_v58  ;;  %v863_v63 = vld [vmem:[%s14754_s7 + $0xb00] sm:$0xff]  ;;  %10213 = vmatprep.subr.bf16.mxu0 %v13336_v61  ;;  %v13463_v5 = vcombine.low %v999_v57, %v1003_v58 }
  0x85   : > { %v867_v1 = vld [vmem:[%s14754_s7 + $0xb20] sm:$0xff]  ;;  %10214 = vmatpush2.bf16.msra.mxu0 %v13335_v4  ;;  %v402_v4 = vcombine.high %v14943_v56, %v14943_v56 }
  0x86   : > { %v991_v2 = vld [vmem:[%s14754_s7 + $0xf00] sm:$0xff]  ;;  %v13328_v7 = vcombine.high %v863_v63, %v867_v1  ;;  %10254 = vmatprep.subr.bf16.mxu1 %v13464_v62  ;;  %v13327_v14 = vcombine.low %v863_v63, %v867_v1  ;;  %v401_v63 = vcombine.high %v14938_v52, %v14938_v52  ;;  %v14951_v1 = vpack.c.bf16 %v14847_v23, %v14847_v23 }
  0x87   : > { %v995_v3 = vld [vmem:[%s14754_s7 + $0xf20] sm:$0xff]  ;;  %10255 = vmatpush2.bf16.msra.mxu1 %v13463_v5  ;;  %v14959_v5 = vpack.c.bf16 %v14852_v26, %v14852_v26 }
  0x88   : > { %v13456_v8 = vcombine.high %v991_v2, %v995_v3  ;;  %v855_v9 = vld [vmem:[%s14754_s7 + $0xac0] sm:$0xff]  ;;  %10215 = vmatprep.subr.bf16.mxu0 %v13328_v7  ;;  %v13455_v15 = vcombine.low %v991_v2, %v995_v3 }
  0x89   : > { %v859_v10 = vld [vmem:[%s14754_s7 + $0xae0] sm:$0xff]  ;;  %10216 = vmatpush2.bf16.msra.mxu0 %v13327_v14 }
  0x8a   : > { %v983_v11 = vld [vmem:[%s14754_s7 + $0xec0] sm:$0xff]  ;;  %v13320_v16 = vcombine.high %v855_v9, %v859_v10  ;;  %10256 = vmatprep.subr.bf16.mxu1 %v13456_v8  ;;  %v13319_v24 = vcombine.low %v855_v9, %v859_v10 }
  0x8b   : > { %v987_v13 = vld [vmem:[%s14754_s7 + $0xee0] sm:$0xff]  ;;  %10257 = vmatpush2.bf16.msra.mxu1 %v13455_v15  ;;  %v14968_v15 = vpack.c.bf16 %v402_v4, %v402_v4 }
  0x8c   : > { %v13448_v18 = vcombine.high %v983_v11, %v987_v13  ;;  %v847_v19 = vld [vmem:[%s14754_s7 + $0xa80] sm:$0xff]  ;;  %10217 = vmatprep.subr.bf16.mxu0 %v13320_v16  ;;  %v13447_v25 = vcombine.low %v983_v11, %v987_v13  ;;  %v14963_v13 = vpack.c.bf16 %v401_v63, %v401_v63 }
  0x8d   : > { %v851_v20 = vld [vmem:[%s14754_s7 + $0xaa0] sm:$0xff]  ;;  %10218 = vmatpush2.bf16.msra.mxu0 %v13319_v24 }
  0x8e   : > { %v975_v21 = vld [vmem:[%s14754_s7 + $0xe80] sm:$0xff]  ;;  %v13312_v27 = vcombine.high %v847_v19, %v851_v20  ;;  %10258 = vmatprep.subr.bf16.mxu1 %v13448_v18  ;;  %v13311_v33 = vcombine.low %v847_v19, %v851_v20 }
  0x8f   : > { %v979_v22 = vld [vmem:[%s14754_s7 + $0xea0] sm:$0xff]  ;;  %10259 = vmatpush2.bf16.msra.mxu1 %v13447_v25 }
  0x90   : > { %v13440_v28 = vcombine.high %v975_v21, %v979_v22  ;;  %v839_v29 = vld [vmem:[%s14754_s7 + $0xa40] sm:$0xff]  ;;  %10219 = vmatprep.subr.bf16.mxu0 %v13312_v27  ;;  %v13439_v36 = vcombine.low %v975_v21, %v979_v22 }
  0x91   : > { %v843_v30 = vld [vmem:[%s14754_s7 + $0xa60] sm:$0xff]  ;;  %10220 = vmatpush2.bf16.msra.mxu0 %v13311_v33 }
  0x92   : > { %v967_v31 = vld [vmem:[%s14754_s7 + $0xe40] sm:$0xff]  ;;  %v13304_v37 = vcombine.high %v839_v29, %v843_v30  ;;  %10260 = vmatprep.subr.bf16.mxu1 %v13440_v28  ;;  %v13303_v46 = vcombine.low %v839_v29, %v843_v30 }
  0x93   : > { %v971_v32 = vld [vmem:[%s14754_s7 + $0xe60] sm:$0xff]  ;;  %10261 = vmatpush2.bf16.msra.mxu1 %v13439_v36 }
  0x94   : > { %v13432_v39 = vcombine.high %v967_v31, %v971_v32  ;;  %v831_v40 = vld [vmem:[%s14754_s7 + $0xa00] sm:$0xff]  ;;  %10221 = vmatprep.subr.bf16.mxu0 %v13304_v37  ;;  %v13431_v6 = vcombine.low %v967_v31, %v971_v32 }
  0x95   : > { %v835_v41 = vld [vmem:[%s14754_s7 + $0xa20] sm:$0xff]  ;;  %10222 = vmatpush2.bf16.msra.mxu0 %v13303_v46 }
  0x96   : > { %v959_v0 = vld [vmem:[%s14754_s7 + $0xe00] sm:$0xff]  ;;  %v13296_v48 = vcombine.high %v831_v40, %v835_v41  ;;  %10262 = vmatprep.subr.bf16.mxu1 %v13432_v39  ;;  %v13295_v57 = vcombine.low %v831_v40, %v835_v41 }
  0x97   : > { %v963_v42 = vld [vmem:[%s14754_s7 + $0xe20] sm:$0xff]  ;;  %10263 = vmatpush2.bf16.msra.mxu1 %v13431_v6 }
  0x98   : > { %v13424_v49 = vcombine.high %v959_v0, %v963_v42  ;;  %v1079_v50 = vld [vmem:[%s14754_s7 + $0x11c0] sm:$0xff]  ;;  %10223 = vmatprep.subr.bf16.mxu0 %v13296_v48  ;;  %v13423_v58 = vcombine.low %v959_v0, %v963_v42 }
  0x99   : > { %v1083_v51 = vld [vmem:[%s14754_s7 + $0x11e0] sm:$0xff]  ;;  %10224 = vmatpush2.bf16.msra.mxu0 %v13295_v57 }
  0x9a   : > { %v1207_v53 = vld [vmem:[%s14754_s7 + $0x15c0] sm:$0xff]  ;;  %v13544_v59 = vcombine.high %v1079_v50, %v1083_v51  ;;  %10264 = vmatprep.subr.bf16.mxu1 %v13424_v49  ;;  %v13543_v7 = vcombine.low %v1079_v50, %v1083_v51 }
  0x9b   : > { %v1211_v55 = vld [vmem:[%s14754_s7 + $0x15e0] sm:$0xff]  ;;  %10265 = vmatpush2.bf16.msra.mxu1 %v13423_v58 }
  0x9c   : > { %v13672_v60 = vcombine.high %v1207_v53, %v1211_v55  ;;  %v1071_v61 = vld [vmem:[%s14754_s7 + $0x1180] sm:$0xff]  ;;  %10275 = vmatprep.subr.bf16.mxu0 %v13544_v59  ;;  %v13671_v8 = vcombine.low %v1207_v53, %v1211_v55  ;;  %10226 = vmatmul.mubr.bf16.vlgmr.msra.gmra.mxu0 %v14951_v1 }
  0x9d   : > { %v1075_v62 = vld [vmem:[%s14754_s7 + $0x11a0] sm:$0xff]  ;;  %10276 = vmatpush1.bf16.msra.mxu0 %v13543_v7  ;;  %10307 = vmatprep.mubr.bf16.mxu0 %v14963_v13 }
  0x9e   : > { %v1199_v2 = vld [vmem:[%s14754_s7 + $0x1580] sm:$0xff]  ;;  %v13536_v9 = vcombine.high %v1071_v61, %v1075_v62  ;;  %10316 = vmatprep.subr.bf16.mxu1 %v13672_v60  ;;  %10267 = vmatmul.mubr.bf16.vlgmr.msra.gmra.mxu1 %v14959_v5  ;;  %v13535_v16 = vcombine.low %v1071_v61, %v1075_v62 }
  0x9f   : > { %v1203_v3 = vld [vmem:[%s14754_s7 + $0x15a0] sm:$0xff]  ;;  %10317 = vmatpush1.bf16.msra.mxu1 %v13671_v8  ;;  %10348 = vmatprep.mubr.bf16.mxu1 %v14968_v15 }
  0xa0   : > { %v13664_v23 = vcombine.high %v1199_v2, %v1203_v3  ;;  %v1063_v10 = vld [vmem:[%s14754_s7 + $0x1140] sm:$0xff]  ;;  %10277 = vmatprep.subr.bf16.mxu0 %v13536_v9  ;;  %v13663_v18 = vcombine.low %v1199_v2, %v1203_v3 }
  0xa1   : > { %v1067_v11 = vld [vmem:[%s14754_s7 + $0x1160] sm:$0xff]  ;;  %10278 = vmatpush1.bf16.msra.mxu0 %v13535_v16 }
  0xa2   : > { %v1191_v14 = vld [vmem:[%s14754_s7 + $0x1540] sm:$0xff]  ;;  %v13528_v19 = vcombine.high %v1063_v10, %v1067_v11  ;;  %10318 = vmatprep.subr.bf16.mxu1 %v13664_v23  ;;  %v13527_v27 = vcombine.low %v1063_v10, %v1067_v11 }
  0xa3   : > { %v1195_v26 = vld [vmem:[%s14754_s7 + $0x1560] sm:$0xff]  ;;  %10319 = vmatpush1.bf16.msra.mxu1 %v13663_v18 }
  0xa4   : > { %v13656_v20 = vcombine.high %v1191_v14, %v1195_v26  ;;  %v1055_v21 = vld [vmem:[%s14754_s7 + $0x1100] sm:$0xff]  ;;  %10279 = vmatprep.subr.bf16.mxu0 %v13528_v19  ;;  %v13655_v28 = vcombine.low %v1191_v14, %v1195_v26 }
  0xa5   : > { %v1059_v22 = vld [vmem:[%s14754_s7 + $0x1120] sm:$0xff]  ;;  %10280 = vmatpush1.bf16.msra.mxu0 %v13527_v27 }
  0xa6   : > { %v1183_v24 = vld [vmem:[%s14754_s7 + $0x1500] sm:$0xff]  ;;  %v13520_v29 = vcombine.high %v1055_v21, %v1059_v22  ;;  %10320 = vmatprep.subr.bf16.mxu1 %v13656_v20  ;;  %v13519_v36 = vcombine.low %v1055_v21, %v1059_v22 }
  0xa7   : > { %v1187_v25 = vld [vmem:[%s14754_s7 + $0x1520] sm:$0xff]  ;;  %10321 = vmatpush1.bf16.msra.mxu1 %v13655_v28 }
  0xa8   : > { %v13648_v30 = vcombine.high %v1183_v24, %v1187_v25  ;;  %v1047_v31 = vld [vmem:[%s14754_s7 + $0x10c0] sm:$0xff]  ;;  %10281 = vmatprep.subr.bf16.mxu0 %v13520_v29  ;;  %v13647_v37 = vcombine.low %v1183_v24, %v1187_v25 }
  0xa9   : > { %v1051_v32 = vld [vmem:[%s14754_s7 + $0x10e0] sm:$0xff]  ;;  %10282 = vmatpush1.bf16.msra.mxu0 %v13519_v36 }
  0xaa   : > { %v1175_v33 = vld [vmem:[%s14754_s7 + $0x14c0] sm:$0xff]  ;;  %v13512_v39 = vcombine.high %v1047_v31, %v1051_v32  ;;  %10322 = vmatprep.subr.bf16.mxu1 %v13648_v30  ;;  %v13511_v46 = vcombine.low %v1047_v31, %v1051_v32 }
  0xab   : > { %v1179_v35 = vld [vmem:[%s14754_s7 + $0x14e0] sm:$0xff]  ;;  %10323 = vmatpush1.bf16.msra.mxu1 %v13647_v37 }
  0xac   : > { %v13640_v40 = vcombine.high %v1175_v33, %v1179_v35  ;;  %v1039_v41 = vld [vmem:[%s14754_s7 + $0x1080] sm:$0xff]  ;;  %10283 = vmatprep.subr.bf16.mxu0 %v13512_v39  ;;  %v13639_v6 = vcombine.low %v1175_v33, %v1179_v35 }
  0xad   : > { %v1043_v0 = vld [vmem:[%s14754_s7 + $0x10a0] sm:$0xff]  ;;  %10284 = vmatpush1.bf16.msra.mxu0 %v13511_v46 }
  0xae   : > { %v1167_v42 = vld [vmem:[%s14754_s7 + $0x1480] sm:$0xff]  ;;  %v13504_v48 = vcombine.high %v1039_v41, %v1043_v0  ;;  %10324 = vmatprep.subr.bf16.mxu1 %v13640_v40  ;;  %v13503_v57 = vcombine.low %v1039_v41, %v1043_v0 }
  0xaf   : > { %v1171_v43 = vld [vmem:[%s14754_s7 + $0x14a0] sm:$0xff]  ;;  %10325 = vmatpush1.bf16.msra.mxu1 %v13639_v6 }
  0xb0   : > { %v13632_v49 = vcombine.high %v1167_v42, %v1171_v43  ;;  %v1031_v50 = vld [vmem:[%s14754_s7 + $0x1040] sm:$0xff]  ;;  %10285 = vmatprep.subr.bf16.mxu0 %v13504_v48  ;;  %v13631_v58 = vcombine.low %v1167_v42, %v1171_v43 }
  0xb1   : > { %v1035_v51 = vld [vmem:[%s14754_s7 + $0x1060] sm:$0xff]  ;;  %10286 = vmatpush1.bf16.msra.mxu0 %v13503_v57 }
  0xb2   : > { %v1159_v53 = vld [vmem:[%s14754_s7 + $0x1440] sm:$0xff]  ;;  %v13496_v59 = vcombine.high %v1031_v50, %v1035_v51  ;;  %10326 = vmatprep.subr.bf16.mxu1 %v13632_v49  ;;  %v13495_v3 = vcombine.low %v1031_v50, %v1035_v51 }
  0xb3   : > { %v1163_v55 = vld [vmem:[%s14754_s7 + $0x1460] sm:$0xff]  ;;  %10327 = vmatpush1.bf16.msra.mxu1 %v13631_v58 }
  0xb4   : > { %v13624_v60 = vcombine.high %v1159_v53, %v1163_v55  ;;  %v1023_v61 = vld [vmem:[%s14754_s7 + $0x1000] sm:$0xff]  ;;  %10287 = vmatprep.subr.bf16.mxu0 %v13496_v59  ;;  %v13623_v4 = vcombine.low %v1159_v53, %v1163_v55 }
  0xb5   : > { %v1027_v62 = vld [vmem:[%s14754_s7 + $0x1020] sm:$0xff]  ;;  %10288 = vmatpush1.bf16.msra.mxu0 %v13495_v3 }
  0xb6   : > { %v1151_v63 = vld [vmem:[%s14754_s7 + $0x1400] sm:$0xff]  ;;  %v13488_v7 = vcombine.high %v1023_v61, %v1027_v62  ;;  %10328 = vmatprep.subr.bf16.mxu1 %v13624_v60  ;;  %v13487_v14 = vcombine.low %v1023_v61, %v1027_v62 }
  0xb7   : > { %v1155_v2 = vld [vmem:[%s14754_s7 + $0x1420] sm:$0xff]  ;;  %10329 = vmatpush1.bf16.msra.mxu1 %v13623_v4 }
  0xb8   : > { %v13616_v8 = vcombine.high %v1151_v63, %v1155_v2  ;;  %v1143_v9 = vld [vmem:[%s14754_s7 + $0x13c0] sm:$0xff]  ;;  %10289 = vmatprep.subr.bf16.mxu0 %v13488_v7  ;;  %v13615_v26 = vcombine.low %v1151_v63, %v1155_v2 }
  0xb9   : > { %v1147_v23 = vld [vmem:[%s14754_s7 + $0x13e0] sm:$0xff]  ;;  %10290 = vmatpush1.bf16.msra.mxu0 %v13487_v14 }
  0xba   : > { %v1271_v10 = vld [vmem:[%s14754_s7 + $0x17c0] sm:$0xff]  ;;  %v13608_v16 = vcombine.high %v1143_v9, %v1147_v23  ;;  %10330 = vmatprep.subr.bf16.mxu1 %v13616_v8  ;;  %v13607_v24 = vcombine.low %v1143_v9, %v1147_v23 }
  0xbb   : > { %v1275_v11 = vld [vmem:[%s14754_s7 + $0x17e0] sm:$0xff]  ;;  %10331 = vmatpush1.bf16.msra.mxu1 %v13615_v26 }
  0xbc   : > { %v13736_v18 = vcombine.high %v1271_v10, %v1275_v11  ;;  %v1135_v19 = vld [vmem:[%s14754_s7 + $0x1380] sm:$0xff]  ;;  %10291 = vmatprep.subr.bf16.mxu0 %v13608_v16  ;;  %v13735_v25 = vcombine.low %v1271_v10, %v1275_v11  ;;  %v341_v11 = vld [vmem:[%s14749_s28 + $0x18] sm:$0xff] }
  0xbd   : > { %v1139_v20 = vld [vmem:[%s14754_s7 + $0x13a0] sm:$0xff]  ;;  %10292 = vmatpush2.bf16.msra.mxu0 %v13607_v24 }
  0xbe   : > { %v1263_v21 = vld [vmem:[%s14754_s7 + $0x1780] sm:$0xff]  ;;  %v13600_v27 = vcombine.high %v1135_v19, %v1139_v20  ;;  %10332 = vmatprep.subr.bf16.mxu1 %v13736_v18  ;;  %v13599_v33 = vcombine.low %v1135_v19, %v1139_v20 }
  0xbf   : > { %v1267_v22 = vld [vmem:[%s14754_s7 + $0x17a0] sm:$0xff]  ;;  %10333 = vmatpush2.bf16.msra.mxu1 %v13735_v25 }
  0xc0   : > { %v13728_v28 = vcombine.high %v1263_v21, %v1267_v22  ;;  %v1127_v29 = vld [vmem:[%s14754_s7 + $0x1340] sm:$0xff]  ;;  %10293 = vmatprep.subr.bf16.mxu0 %v13600_v27  ;;  %v13727_v35 = vcombine.low %v1263_v21, %v1267_v22  ;;  %v403_v22 = vcombine.high %v341_v11, %v341_v11 }
  0xc1   : > { %v1131_v30 = vld [vmem:[%s14754_s7 + $0x1360] sm:$0xff]  ;;  %10294 = vmatpush2.bf16.msra.mxu0 %v13599_v33 }
  0xc2   : > { %v1255_v31 = vld [vmem:[%s14754_s7 + $0x1740] sm:$0xff]  ;;  %v13592_v36 = vcombine.high %v1127_v29, %v1131_v30  ;;  %10334 = vmatprep.subr.bf16.mxu1 %v13728_v28  ;;  %v13591_v42 = vcombine.low %v1127_v29, %v1131_v30 }
  0xc3   : > { %v1259_v32 = vld [vmem:[%s14754_s7 + $0x1760] sm:$0xff]  ;;  %10335 = vmatpush2.bf16.msra.mxu1 %v13727_v35  ;;  %v15034_v35 = vrot.slane %v403_v22, %v14786_v54 }
  0xc4   : > { %v13720_v37 = vcombine.high %v1255_v31, %v1259_v32  ;;  %v1119_v39 = vld [vmem:[%s14754_s7 + $0x1300] sm:$0xff]  ;;  %10295 = vmatprep.subr.bf16.mxu0 %v13592_v36  ;;  %v13719_v43 = vcombine.low %v1255_v31, %v1259_v32  ;;  %v15029_v31 = vrot.slane %v341_v11, %v14786_v54 }
  0xc5   : > { %v1123_v40 = vld [vmem:[%s14754_s7 + $0x1320] sm:$0xff]  ;;  %10296 = vmatpush2.bf16.msra.mxu0 %v13591_v42 }
  0xc6   : > { %v1247_v41 = vld [vmem:[%s14754_s7 + $0x1700] sm:$0xff]  ;;  %v13584_v46 = vcombine.high %v1119_v39, %v1123_v40  ;;  %10336 = vmatprep.subr.bf16.mxu1 %v13720_v37  ;;  %v13583_v53 = vcombine.low %v1119_v39, %v1123_v40  ;;  %v418_v42 = vcombine.high %v15029_v31, %v15029_v31 }
  0xc7   : > { %v1251_v0 = vld [vmem:[%s14754_s7 + $0x1720] sm:$0xff]  ;;  %10337 = vmatpush2.bf16.msra.mxu1 %v13719_v43  ;;  %v15042_v43 = vpack.c.bf16 %v14938_v52, %v14938_v52 }
  0xc8   : > { %v13712_v6 = vcombine.high %v1247_v41, %v1251_v0  ;;  %v1111_v48 = vld [vmem:[%s14754_s7 + $0x12c0] sm:$0xff]  ;;  %10297 = vmatprep.subr.bf16.mxu0 %v13584_v46  ;;  %v13711_v55 = vcombine.low %v1247_v41, %v1251_v0 }
  0xc9   : > { %v1115_v49 = vld [vmem:[%s14754_s7 + $0x12e0] sm:$0xff]  ;;  %10298 = vmatpush2.bf16.msra.mxu0 %v13583_v53 }
  0xca   : > { %v1239_v50 = vld [vmem:[%s14754_s7 + $0x16c0] sm:$0xff]  ;;  %v13576_v57 = vcombine.high %v1111_v48, %v1115_v49  ;;  %10338 = vmatprep.subr.bf16.mxu1 %v13712_v6  ;;  %v13575_v63 = vcombine.low %v1111_v48, %v1115_v49  ;;  %v419_v48 = vcombine.high %v15034_v35, %v15034_v35  ;;  %v15050_v49 = vpack.c.bf16 %v14943_v56, %v14943_v56 }
  0xcb   : > { %v1243_v51 = vld [vmem:[%s14754_s7 + $0x16e0] sm:$0xff]  ;;  %10339 = vmatpush2.bf16.msra.mxu1 %v13711_v55 }
  0xcc   : > { %v13704_v58 = vcombine.high %v1239_v50, %v1243_v51  ;;  %v1103_v59 = vld [vmem:[%s14754_s7 + $0x1280] sm:$0xff]  ;;  %10299 = vmatprep.subr.bf16.mxu0 %v13576_v57  ;;  %v13703_v2 = vcombine.low %v1239_v50, %v1243_v51 }
  0xcd   : > { %v1107_v60 = vld [vmem:[%s14754_s7 + $0x12a0] sm:$0xff]  ;;  %10300 = vmatpush2.bf16.msra.mxu0 %v13575_v63 }
  0xce   : > { %v1231_v61 = vld [vmem:[%s14754_s7 + $0x1680] sm:$0xff]  ;;  %v13568_v3 = vcombine.high %v1103_v59, %v1107_v60  ;;  %10340 = vmatprep.subr.bf16.mxu1 %v13704_v58  ;;  %v13567_v10 = vcombine.low %v1103_v59, %v1107_v60  ;;  %v15054_v58 = vpack.c.bf16 %v418_v42, %v418_v42  ;;  %v15059_v60 = vpack.c.bf16 %v419_v48, %v419_v48 }
  0xcf   : > { %v1235_v62 = vld [vmem:[%s14754_s7 + $0x16a0] sm:$0xff]  ;;  %10341 = vmatpush2.bf16.msra.mxu1 %v13703_v2 }
  0xd0   : > { %v13696_v4 = vcombine.high %v1231_v61, %v1235_v62  ;;  %v1095_v7 = vld [vmem:[%s14754_s7 + $0x1240] sm:$0xff]  ;;  %10301 = vmatprep.subr.bf16.mxu0 %v13568_v3  ;;  %v13695_v14 = vcombine.low %v1231_v61, %v1235_v62 }
  0xd1   : > { %v1099_v8 = vld [vmem:[%s14754_s7 + $0x1260] sm:$0xff]  ;;  %10302 = vmatpush2.bf16.msra.mxu0 %v13567_v10 }
  0xd2   : > { %v1223_v9 = vld [vmem:[%s14754_s7 + $0x1640] sm:$0xff]  ;;  %v13560_v26 = vcombine.high %v1095_v7, %v1099_v8  ;;  %10342 = vmatprep.subr.bf16.mxu1 %v13696_v4  ;;  %v13559_v24 = vcombine.low %v1095_v7, %v1099_v8 }
  0xd3   : > { %v1227_v23 = vld [vmem:[%s14754_s7 + $0x1660] sm:$0xff]  ;;  %10343 = vmatpush2.bf16.msra.mxu1 %v13695_v14 }
  0xd4   : > { %v13688_v16 = vcombine.high %v1223_v9, %v1227_v23  ;;  %v1087_v18 = vld [vmem:[%s14754_s7 + $0x1200] sm:$0xff]  ;;  %10303 = vmatprep.subr.bf16.mxu0 %v13560_v26  ;;  %v13687_v25 = vcombine.low %v1223_v9, %v1227_v23 }
  0xd5   : > { %v1091_v19 = vld [vmem:[%s14754_s7 + $0x1220] sm:$0xff]  ;;  %10304 = vmatpush2.bf16.msra.mxu0 %v13559_v24 }
  0xd6   : > { %v1215_v20 = vld [vmem:[%s14754_s7 + $0x1600] sm:$0xff]  ;;  %v13552_v27 = vcombine.high %v1087_v18, %v1091_v19  ;;  %10344 = vmatprep.subr.bf16.mxu1 %v13688_v16  ;;  %v13551_v36 = vcombine.low %v1087_v18, %v1091_v19 }
  0xd7   : > { %v1219_v21 = vld [vmem:[%s14754_s7 + $0x1620] sm:$0xff]  ;;  %10345 = vmatpush2.bf16.msra.mxu1 %v13687_v25 }
  0xd8   : > { %v13680_v28 = vcombine.high %v1215_v20, %v1219_v21  ;;  %v1335_v29 = vld [vmem:[%s14754_s7 + $0x19c0] sm:$0xff]  ;;  %10305 = vmatprep.subr.bf16.mxu0 %v13552_v27  ;;  %v13679_v37 = vcombine.low %v1215_v20, %v1219_v21 }
  0xd9   : > { %v1339_v30 = vld [vmem:[%s14754_s7 + $0x19e0] sm:$0xff]  ;;  %10306 = vmatpush2.bf16.msra.mxu0 %v13551_v36 }
  0xda   : > { %v1463_v32 = vld [vmem:[%s14754_s7 + $0x1dc0] sm:$0xff]  ;;  %v13800_v39 = vcombine.high %v1335_v29, %v1339_v30  ;;  %10346 = vmatprep.subr.bf16.mxu1 %v13680_v28  ;;  %v13799_v50 = vcombine.low %v1335_v29, %v1339_v30 }
  0xdb   : > { %v1467_v33 = vld [vmem:[%s14754_s7 + $0x1de0] sm:$0xff]  ;;  %10347 = vmatpush2.bf16.msra.mxu1 %v13679_v37 }
  0xdc   : > { %v13928_v40 = vcombine.high %v1463_v32, %v1467_v33  ;;  %v1327_v41 = vld [vmem:[%s14754_s7 + $0x1980] sm:$0xff]  ;;  %10357 = vmatprep.subr.bf16.mxu0 %v13800_v39  ;;  %v13927_v51 = vcombine.low %v1463_v32, %v1467_v33  ;;  %10308 = vmatmul.mubr.bf16.vlgmr.msra.gmra.mxu0 %v15042_v43 }
  0xdd   : > { %v1331_v0 = vld [vmem:[%s14754_s7 + $0x19a0] sm:$0xff]  ;;  %10358 = vmatpush1.bf16.msra.mxu0 %v13799_v50  ;;  %10389 = vmatprep.mubr.bf16.mxu0 %v15054_v58 }
  0xde   : > { %v1455_v46 = vld [vmem:[%s14754_s7 + $0x1d80] sm:$0xff]  ;;  %v13792_v53 = vcombine.high %v1327_v41, %v1331_v0  ;;  %10398 = vmatprep.subr.bf16.mxu1 %v13928_v40  ;;  %10349 = vmatmul.mubr.bf16.vlgmr.msra.gmra.mxu1 %v15050_v49  ;;  %v13791_v61 = vcombine.low %v1327_v41, %v1331_v0 }
  0xdf   : > { %v1459_v6 = vld [vmem:[%s14754_s7 + $0x1da0] sm:$0xff]  ;;  %10399 = vmatpush1.bf16.msra.mxu1 %v13927_v51  ;;  %10430 = vmatprep.mubr.bf16.mxu1 %v15059_v60 }
  0xe0   : > { %v13920_v52 = vcombine.high %v1455_v46, %v1459_v6  ;;  %v1319_v55 = vld [vmem:[%s14754_s7 + $0x1940] sm:$0xff]  ;;  %10359 = vmatprep.subr.bf16.mxu0 %v13792_v53  ;;  %v13919_v62 = vcombine.low %v1455_v46, %v1459_v6 }
  0xe1   : > { %v1323_v57 = vld [vmem:[%s14754_s7 + $0x1960] sm:$0xff]  ;;  %10360 = vmatpush1.bf16.msra.mxu0 %v13791_v61 }
  0xe2   : > { %v1447_v59 = vld [vmem:[%s14754_s7 + $0x1d40] sm:$0xff]  ;;  %v13784_v63 = vcombine.high %v1319_v55, %v1323_v57  ;;  %10400 = vmatprep.subr.bf16.mxu1 %v13920_v52  ;;  %v13783_v9 = vcombine.low %v1319_v55, %v1323_v57 }
  0xe3   : > { %v1451_v56 = vld [vmem:[%s14754_s7 + $0x1d60] sm:$0xff]  ;;  %10401 = vmatpush1.bf16.msra.mxu1 %v13919_v62 }
  0xe4   : > { %v13912_v2 = vcombine.high %v1447_v59, %v1451_v56  ;;  %v1311_v3 = vld [vmem:[%s14754_s7 + $0x1900] sm:$0xff]  ;;  %10361 = vmatprep.subr.bf16.mxu0 %v13784_v63  ;;  %v13911_v23 = vcombine.low %v1447_v59, %v1451_v56 }
  0xe5   : > { %v1315_v4 = vld [vmem:[%s14754_s7 + $0x1920] sm:$0xff]  ;;  %10362 = vmatpush1.bf16.msra.mxu0 %v13783_v9 }
  0xe6   : > { %v1439_v7 = vld [vmem:[%s14754_s7 + $0x1d00] sm:$0xff]  ;;  %v13776_v10 = vcombine.high %v1311_v3, %v1315_v4  ;;  %10402 = vmatprep.subr.bf16.mxu1 %v13912_v2  ;;  %v13775_v19 = vcombine.low %v1311_v3, %v1315_v4 }
  0xe7   : > { %v1443_v8 = vld [vmem:[%s14754_s7 + $0x1d20] sm:$0xff]  ;;  %10403 = vmatpush1.bf16.msra.mxu1 %v13911_v23 }
  0xe8   : > { %v13904_v11 = vcombine.high %v1439_v7, %v1443_v8  ;;  %v1303_v14 = vld [vmem:[%s14754_s7 + $0x18c0] sm:$0xff]  ;;  %10363 = vmatprep.subr.bf16.mxu0 %v13776_v10  ;;  %v13903_v20 = vcombine.low %v1439_v7, %v1443_v8 }
  0xe9   : > { %v1307_v26 = vld [vmem:[%s14754_s7 + $0x18e0] sm:$0xff]  ;;  %10364 = vmatpush1.bf16.msra.mxu0 %v13775_v19 }
  0xea   : > { %v1431_v16 = vld [vmem:[%s14754_s7 + $0x1cc0] sm:$0xff]  ;;  %v13768_v21 = vcombine.high %v1303_v14, %v1307_v26  ;;  %10404 = vmatprep.subr.bf16.mxu1 %v13904_v11  ;;  %v13767_v29 = vcombine.low %v1303_v14, %v1307_v26 }
  0xeb   : > { %v1435_v18 = vld [vmem:[%s14754_s7 + $0x1ce0] sm:$0xff]  ;;  %10405 = vmatpush1.bf16.msra.mxu1 %v13903_v20 }
  0xec   : > { %v13896_v22 = vcombine.high %v1431_v16, %v1435_v18  ;;  %v1295_v24 = vld [vmem:[%s14754_s7 + $0x1880] sm:$0xff]  ;;  %10365 = vmatprep.subr.bf16.mxu0 %v13768_v21  ;;  %v13895_v30 = vcombine.low %v1431_v16, %v1435_v18 }
  0xed   : > { %v1299_v25 = vld [vmem:[%s14754_s7 + $0x18a0] sm:$0xff]  ;;  %10366 = vmatpush1.bf16.msra.mxu0 %v13767_v29 }
  0xee   : > { %v1423_v27 = vld [vmem:[%s14754_s7 + $0x1c80] sm:$0xff]  ;;  %v13760_v32 = vcombine.high %v1295_v24, %v1299_v25  ;;  %10406 = vmatprep.subr.bf16.mxu1 %v13896_v22  ;;  %v13759_v41 = vcombine.low %v1295_v24, %v1299_v25 }
  0xef   : > { %v1427_v28 = vld [vmem:[%s14754_s7 + $0x1ca0] sm:$0xff]  ;;  %10407 = vmatpush1.bf16.msra.mxu1 %v13895_v30 }
  0xf0   : > { %v13888_v33 = vcombine.high %v1423_v27, %v1427_v28  ;;  %v1287_v36 = vld [vmem:[%s14754_s7 + $0x1840] sm:$0xff]  ;;  %10367 = vmatprep.subr.bf16.mxu0 %v13760_v32  ;;  %v13887_v0 = vcombine.low %v1423_v27, %v1427_v28 }
  0xf1   : > { %v1291_v37 = vld [vmem:[%s14754_s7 + $0x1860] sm:$0xff]  ;;  %10368 = vmatpush1.bf16.msra.mxu0 %v13759_v41 }
  0xf2   : > { %v1415_v39 = vld [vmem:[%s14754_s7 + $0x1c40] sm:$0xff]  ;;  %v13752_v42 = vcombine.high %v1287_v36, %v1291_v37  ;;  %10408 = vmatprep.subr.bf16.mxu1 %v13888_v33  ;;  %v13751_v53 = vcombine.low %v1287_v36, %v1291_v37 }
  0xf3   : > { %v1419_v40 = vld [vmem:[%s14754_s7 + $0x1c60] sm:$0xff]  ;;  %10409 = vmatpush1.bf16.msra.mxu1 %v13887_v0 }
  0xf4   : > { %v13880_v46 = vcombine.high %v1415_v39, %v1419_v40  ;;  %v1279_v6 = vld [vmem:[%s14754_s7 + $0x1800] sm:$0xff]  ;;  %10369 = vmatprep.subr.bf16.mxu0 %v13752_v42  ;;  %v13879_v52 = vcombine.low %v1415_v39, %v1419_v40 }
  0xf5   : > { %v1283_v48 = vld [vmem:[%s14754_s7 + $0x1820] sm:$0xff]  ;;  %10370 = vmatpush1.bf16.msra.mxu0 %v13751_v53 }
  0xf6   : > { %v1407_v50 = vld [vmem:[%s14754_s7 + $0x1c00] sm:$0xff]  ;;  %v13744_v55 = vcombine.high %v1279_v6, %v1283_v48  ;;  %10410 = vmatprep.subr.bf16.mxu1 %v13880_v46  ;;  %v13743_v63 = vcombine.low %v1279_v6, %v1283_v48 }
  0xf7   : > { %v1411_v51 = vld [vmem:[%s14754_s7 + $0x1c20] sm:$0xff]  ;;  %10411 = vmatpush1.bf16.msra.mxu1 %v13879_v52 }
  0xf8   : > { %v13872_v57 = vcombine.high %v1407_v50, %v1411_v51  ;;  %v1399_v59 = vld [vmem:[%s14754_s7 + $0x1bc0] sm:$0xff]  ;;  %10371 = vmatprep.subr.bf16.mxu0 %v13744_v55  ;;  %v13871_v2 = vcombine.low %v1407_v50, %v1411_v51 }
  0xf9   : > { %v1403_v56 = vld [vmem:[%s14754_s7 + $0x1be0] sm:$0xff]  ;;  %10372 = vmatpush1.bf16.msra.mxu0 %v13743_v63 }
  0xfa   : > { %v1527_v61 = vld [vmem:[%s14754_s7 + $0x1fc0] sm:$0xff]  ;;  %v13864_v3 = vcombine.high %v1399_v59, %v1403_v56  ;;  %10412 = vmatprep.subr.bf16.mxu1 %v13872_v57  ;;  %v13863_v10 = vcombine.low %v1399_v59, %v1403_v56 }
  0xfb   : > { %v1531_v62 = vld [vmem:[%s14754_s7 + $0x1fe0] sm:$0xff]  ;;  %10413 = vmatpush1.bf16.msra.mxu1 %v13871_v2 }
  0xfc   : > { %v13992_v4 = vcombine.high %v1527_v61, %v1531_v62  ;;  %v1391_v7 = vld [vmem:[%s14754_s7 + $0x1b80] sm:$0xff]  ;;  %10373 = vmatprep.subr.bf16.mxu0 %v13864_v3  ;;  %v13991_v11 = vcombine.low %v1527_v61, %v1531_v62 }
  0xfd   : > { %v1395_v8 = vld [vmem:[%s14754_s7 + $0x1ba0] sm:$0xff]  ;;  %10374 = vmatpush2.bf16.msra.mxu0 %v13863_v10 }
  0xfe   : > { %v1519_v9 = vld [vmem:[%s14754_s7 + $0x1f80] sm:$0xff]  ;;  %v13856_v14 = vcombine.high %v1391_v7, %v1395_v8  ;;  %10414 = vmatprep.subr.bf16.mxu1 %v13992_v4  ;;  %v13855_v21 = vcombine.low %v1391_v7, %v1395_v8 }
  0xff   : > { %v1523_v23 = vld [vmem:[%s14754_s7 + $0x1fa0] sm:$0xff]  ;;  %10415 = vmatpush2.bf16.msra.mxu1 %v13991_v11 }
 0x100   : > { %v13984_v26 = vcombine.high %v1519_v9, %v1523_v23  ;;  %v1383_v16 = vld [vmem:[%s14754_s7 + $0x1b40] sm:$0xff]  ;;  %10375 = vmatprep.subr.bf16.mxu0 %v13856_v14  ;;  %v13983_v22 = vcombine.low %v1519_v9, %v1523_v23 }
 0x101   : > { %v1387_v18 = vld [vmem:[%s14754_s7 + $0x1b60] sm:$0xff]  ;;  %10376 = vmatpush2.bf16.msra.mxu0 %v13855_v21 }
 0x102   : > { %v1511_v19 = vld [vmem:[%s14754_s7 + $0x1f40] sm:$0xff]  ;;  %v13848_v24 = vcombine.high %v1383_v16, %v1387_v18  ;;  %10416 = vmatprep.subr.bf16.mxu1 %v13984_v26  ;;  %v13847_v32 = vcombine.low %v1383_v16, %v1387_v18 }
 0x103   : > { %v1515_v20 = vld [vmem:[%s14754_s7 + $0x1f60] sm:$0xff]  ;;  %10417 = vmatpush2.bf16.msra.mxu1 %v13983_v22 }
 0x104   : > { %v13976_v25 = vcombine.high %v1511_v19, %v1515_v20  ;;  %v1375_v27 = vld [vmem:[%s14754_s7 + $0x1b00] sm:$0xff]  ;;  %10377 = vmatprep.subr.bf16.mxu0 %v13848_v24  ;;  %v13975_v33 = vcombine.low %v1511_v19, %v1515_v20 }
 0x105   : > { %v1379_v28 = vld [vmem:[%s14754_s7 + $0x1b20] sm:$0xff]  ;;  %10378 = vmatpush2.bf16.msra.mxu0 %v13847_v32 }
 0x106   : > { %v1503_v29 = vld [vmem:[%s14754_s7 + $0x1f00] sm:$0xff]  ;;  %v13840_v36 = vcombine.high %v1375_v27, %v1379_v28  ;;  %10418 = vmatprep.subr.bf16.mxu1 %v13976_v25  ;;  %v13839_v42 = vcombine.low %v1375_v27, %v1379_v28 }
 0x107   : > { %v1507_v30 = vld [vmem:[%s14754_s7 + $0x1f20] sm:$0xff]  ;;  %10419 = vmatpush2.bf16.msra.mxu1 %v13975_v33 }
 0x108   : > { %v13968_v37 = vcombine.high %v1503_v29, %v1507_v30  ;;  %v1367_v39 = vld [vmem:[%s14754_s7 + $0x1ac0] sm:$0xff]  ;;  %10379 = vmatprep.subr.bf16.mxu0 %v13840_v36  ;;  %v13967_v46 = vcombine.low %v1503_v29, %v1507_v30 }
 0x109   : > { %v1371_v40 = vld [vmem:[%s14754_s7 + $0x1ae0] sm:$0xff]  ;;  %10380 = vmatpush2.bf16.msra.mxu0 %v13839_v42 }
 0x10a   : > { %v1495_v41 = vld [vmem:[%s14754_s7 + $0x1ec0] sm:$0xff]  ;;  %v13832_v6 = vcombine.high %v1367_v39, %v1371_v40  ;;  %10420 = vmatprep.subr.bf16.mxu1 %v13968_v37  ;;  %v13831_v55 = vcombine.low %v1367_v39, %v1371_v40  ;;  %v15133_v40 = vpack.c.bf16 %v15029_v31, %v15029_v31 }
 0x10b   : > { %v1499_v0 = vld [vmem:[%s14754_s7 + $0x1ee0] sm:$0xff]  ;;  %10421 = vmatpush2.bf16.msra.mxu1 %v13967_v46  ;;  %v15141_v46 = vpack.c.bf16 %v15034_v35, %v15034_v35 }
 0x10c   : > { %v13960_v48 = vcombine.high %v1495_v41, %v1499_v0  ;;  %v1359_v50 = vld [vmem:[%s14754_s7 + $0x1a80] sm:$0xff]  ;;  %10381 = vmatprep.subr.bf16.mxu0 %v13832_v6  ;;  %v13959_v57 = vcombine.low %v1495_v41, %v1499_v0 }
 0x10d   : > { %v1363_v51 = vld [vmem:[%s14754_s7 + $0x1aa0] sm:$0xff]  ;;  %10382 = vmatpush2.bf16.msra.mxu0 %v13831_v55 }
 0x10e   : > { %v1487_v53 = vld [vmem:[%s14754_s7 + $0x1e80] sm:$0xff]  ;;  %v13824_v59 = vcombine.high %v1359_v50, %v1363_v51  ;;  %10422 = vmatprep.subr.bf16.mxu1 %v13960_v48  ;;  %v13823_v3 = vcombine.low %v1359_v50, %v1363_v51 }
 0x10f   : > { %v1491_v52 = vld [vmem:[%s14754_s7 + $0x1ea0] sm:$0xff]  ;;  %10423 = vmatpush2.bf16.msra.mxu1 %v13959_v57 }
 0x110   : > { %v13952_v56 = vcombine.high %v1487_v53, %v1491_v52  ;;  %v1351_v61 = vld [vmem:[%s14754_s7 + $0x1a40] sm:$0xff]  ;;  %10383 = vmatprep.subr.bf16.mxu0 %v13824_v59  ;;  %v13951_v7 = vcombine.low %v1487_v53, %v1491_v52 }
 0x111   : > { %v1355_v62 = vld [vmem:[%s14754_s7 + $0x1a60] sm:$0xff]  ;;  %10384 = vmatpush2.bf16.msra.mxu0 %v13823_v3 }
 0x112   : > { %v1479_v63 = vld [vmem:[%s14754_s7 + $0x1e40] sm:$0xff]  ;;  %v13816_v8 = vcombine.high %v1351_v61, %v1355_v62  ;;  %10424 = vmatprep.subr.bf16.mxu1 %v13952_v56  ;;  %v13815_v16 = vcombine.low %v1351_v61, %v1355_v62 }
 0x113   : > { %v1483_v2 = vld [vmem:[%s14754_s7 + $0x1e60] sm:$0xff]  ;;  %10425 = vmatpush2.bf16.msra.mxu1 %v13951_v7 }
 0x114   : > { %v342_v4 = vld [vmem:[%s14749_s28 + $0x20] sm:$0xff]  ;;  %v13944_v9 = vcombine.high %v1479_v63, %v1483_v2  ;;  %10385 = vmatprep.subr.bf16.mxu0 %v13816_v8  ;;  %v13943_v18 = vcombine.low %v1479_v63, %v1483_v2 }
 0x115   : > { %v1343_v23 = vld [vmem:[%s14754_s7 + $0x1a00] sm:$0xff]  ;;  %v420_v26 = vcombine.high %v342_v4, %v342_v4  ;;  %v15120_v24 = vrot.slane %v342_v4, %v14786_v54  ;;  %10386 = vmatpush2.bf16.msra.mxu0 %v13815_v16 }
 0x116   : > { %v1347_v10 = vld [vmem:[%s14754_s7 + $0x1a20] sm:$0xff]  ;;  %10426 = vmatprep.subr.bf16.mxu1 %v13944_v9 }
 0x117   : > { %v1471_v11 = vld [vmem:[%s14754_s7 + $0x1e00] sm:$0xff]  ;;  %v13808_v19 = vcombine.high %v1343_v23, %v1347_v10  ;;  %v15125_v28 = vrot.slane %v420_v26, %v14786_v54  ;;  %v13807_v29 = vcombine.low %v1343_v23, %v1347_v10  ;;  %10427 = vmatpush2.bf16.msra.mxu1 %v13943_v18  ;;  %v435_v39 = vcombine.high %v15120_v24, %v15120_v24 }
 0x118   : > { %v1475_v14 = vld [vmem:[%s14754_s7 + $0x1e20] sm:$0xff] }
 0x119   : > { %v13936_v20 = vcombine.high %v1471_v11, %v1475_v14  ;;  %v1591_v21 = vld [vmem:[%s14754_s7 + $0x21c0] sm:$0xff]  ;;  %10387 = vmatprep.subr.bf16.mxu0 %v13808_v19  ;;  %v13935_v30 = vcombine.low %v1471_v11, %v1475_v14  ;;  %v436_v42 = vcombine.high %v15125_v28, %v15125_v28  ;;  %v15145_v52 = vpack.c.bf16 %v435_v39, %v435_v39 }
 0x11a   : > { %v1595_v22 = vld [vmem:[%s14754_s7 + $0x21e0] sm:$0xff]  ;;  %10388 = vmatpush2.bf16.msra.mxu0 %v13807_v29 }
 0x11b   : > { %v1719_v25 = vld [vmem:[%s14754_s7 + $0x25c0] sm:$0xff]  ;;  %v14056_v32 = vcombine.high %v1591_v21, %v1595_v22  ;;  %10428 = vmatprep.subr.bf16.mxu1 %v13936_v20  ;;  %v14055_v6 = vcombine.low %v1591_v21, %v1595_v22  ;;  %v15150_v35 = vpack.c.bf16 %v436_v42, %v436_v42 }
 0x11c   : > { %v1723_v27 = vld [vmem:[%s14754_s7 + $0x25e0] sm:$0xff]  ;;  %10429 = vmatpush2.bf16.msra.mxu1 %v13935_v30  ;;  %v10145_v55 = vpop.f32.mrf.mxu0 }
 0x11d   : > { %v14184_v33 = vcombine.high %v1719_v25, %v1723_v27  ;;  %v1583_v36 = vld [vmem:[%s14754_s7 + $0x2180] sm:$0xff]  ;;  %10439 = vmatprep.subr.bf16.mxu0 %v14056_v32  ;;  %v14183_v48 = vcombine.low %v1719_v25, %v1723_v27  ;;  %10390 = vmatmul.mubr.bf16.vlgmr.msra.gmra.mxu0 %v15133_v40 }
 0x11e   : > { %v1587_v37 = vld [vmem:[%s14754_s7 + $0x21a0] sm:$0xff]  ;;  %v10186_v56 = vpop.f32.mrf.mxu1  ;;  %10440 = vmatpush1.bf16.msra.mxu0 %v14055_v6  ;;  %v10147_v63 = vpop.f32.mrf.mxu0  ;;  %10471 = vmatprep.mubr.bf16.mxu0 %v15145_v52 }
 0x11f   : > { %v1711_v41 = vld [vmem:[%s14754_s7 + $0x2580] sm:$0xff]  ;;  %v14048_v50 = vcombine.high %v1583_v36, %v1587_v37  ;;  %10480 = vmatprep.subr.bf16.mxu1 %v14184_v33  ;;  %10431 = vmatmul.mubr.bf16.vlgmr.msra.gmra.mxu1 %v15141_v46  ;;  %v14047_v61 = vcombine.low %v1583_v36, %v1587_v37  ;;  %v15153_v62 = vadd.f32 %v10186_v56, %v10145_v55 }
 0x120   : > { %v1715_v0 = vld [vmem:[%s14754_s7 + $0x25a0] sm:$0xff]  ;;  %10481 = vmatpush1.bf16.msra.mxu1 %v14183_v48  ;;  %v10188_v4 = vpop.f32.mrf.mxu1  ;;  %v10149_v10 = vpop.f32.mrf.mxu0  ;;  %10512 = vmatprep.mubr.bf16.mxu1 %v15150_v35 }
 0x121   : > { %v14176_v31 = vcombine.high %v1711_v41, %v1715_v0  ;;  %v1575_v51 = vld [vmem:[%s14754_s7 + $0x2140] sm:$0xff]  ;;  %10441 = vmatprep.subr.bf16.mxu0 %v14048_v50  ;;  %v14175_v2 = vcombine.low %v1711_v41, %v1715_v0  ;;  %v15158_v23 = vadd.f32 %v10188_v4, %v10147_v63 }
 0x122   : > { %v1579_v53 = vld [vmem:[%s14754_s7 + $0x2160] sm:$0xff]  ;;  %v10190_v26 = vpop.f32.mrf.mxu1  ;;  %10442 = vmatpush1.bf16.msra.mxu0 %v14047_v61  ;;  %v10150_v18 = vpop.f32.mrf.mxu0 }
 0x123   : > { %v1703_v57 = vld [vmem:[%s14754_s7 + $0x2540] sm:$0xff]  ;;  %v14040_v3 = vcombine.high %v1575_v51, %v1579_v53  ;;  %10482 = vmatprep.subr.bf16.mxu1 %v14176_v31  ;;  %v14039_v16 = vcombine.low %v1575_v51, %v1579_v53 }
 0x124   : > { %v1707_v59 = vld [vmem:[%s14754_s7 + $0x2560] sm:$0xff]  ;;  %10483 = vmatpush1.bf16.msra.mxu1 %v14175_v2  ;;  %v10191_v21 = vpop.f32.mrf.mxu1 }
 0x125   : > { %v14168_v7 = vcombine.high %v1703_v57, %v1707_v59  ;;  %v1567_v8 = vld [vmem:[%s14754_s7 + $0x2100] sm:$0xff]  ;;  %10443 = vmatprep.subr.bf16.mxu0 %v14040_v3  ;;  %v14167_v19 = vcombine.low %v1703_v57, %v1707_v59 }
 0x126   : > { %v1571_v9 = vld [vmem:[%s14754_s7 + $0x2120] sm:$0xff]  ;;  %10444 = vmatpush1.bf16.msra.mxu0 %v14039_v16 }
 0x127   : > { %v1695_v11 = vld [vmem:[%s14754_s7 + $0x2500] sm:$0xff]  ;;  %v14032_v20 = vcombine.high %v1567_v8, %v1571_v9  ;;  %10484 = vmatprep.subr.bf16.mxu1 %v14168_v7  ;;  %v14031_v32 = vcombine.low %v1567_v8, %v1571_v9 }
 0x128   : > { %v1699_v14 = vld [vmem:[%s14754_s7 + $0x2520] sm:$0xff]  ;;  %10485 = vmatpush1.bf16.msra.mxu1 %v14167_v19 }
 0x129   : > { %v14160_v22 = vcombine.high %v1695_v11, %v1699_v14  ;;  %v1559_v25 = vld [vmem:[%s14754_s7 + $0x20c0] sm:$0xff]  ;;  %10445 = vmatprep.subr.bf16.mxu0 %v14032_v20  ;;  %v14159_v33 = vcombine.low %v1695_v11, %v1699_v14 }
 0x12a   : > { %v1563_v27 = vld [vmem:[%s14754_s7 + $0x20e0] sm:$0xff]  ;;  %10446 = vmatpush1.bf16.msra.mxu0 %v14031_v32 }
 0x12b   : > { %v1687_v29 = vld [vmem:[%s14754_s7 + $0x24c0] sm:$0xff]  ;;  %v14024_v36 = vcombine.high %v1559_v25, %v1563_v27  ;;  %10486 = vmatprep.subr.bf16.mxu1 %v14160_v22  ;;  %v14023_v6 = vcombine.low %v1559_v25, %v1563_v27 }
 0x12c   : > { %v1691_v30 = vld [vmem:[%s14754_s7 + $0x24e0] sm:$0xff]  ;;  %10487 = vmatpush1.bf16.msra.mxu1 %v14159_v33 }
 0x12d   : > { %v14152_v37 = vcombine.high %v1687_v29, %v1691_v30  ;;  %v1551_v39 = vld [vmem:[%s14754_s7 + $0x2080] sm:$0xff]  ;;  %10447 = vmatprep.subr.bf16.mxu0 %v14024_v36  ;;  %v14151_v48 = vcombine.low %v1687_v29, %v1691_v30 }
 0x12e   : > { %v1555_v41 = vld [vmem:[%s14754_s7 + $0x20a0] sm:$0xff]  ;;  %10448 = vmatpush1.bf16.msra.mxu0 %v14023_v6 }
 0x12f   : > { %v1679_v0 = vld [vmem:[%s14754_s7 + $0x2480] sm:$0xff]  ;;  %v14016_v50 = vcombine.high %v1551_v39, %v1555_v41  ;;  %10488 = vmatprep.subr.bf16.mxu1 %v14152_v37  ;;  %v14015_v59 = vcombine.low %v1551_v39, %v1555_v41 }
 0x130   : > { %v1683_v42 = vld [vmem:[%s14754_s7 + $0x24a0] sm:$0xff]  ;;  %10489 = vmatpush1.bf16.msra.mxu1 %v14151_v48 }
 0x131   : > { %v14144_v31 = vcombine.high %v1679_v0, %v1683_v42  ;;  %v1543_v51 = vld [vmem:[%s14754_s7 + $0x2040] sm:$0xff]  ;;  %10449 = vmatprep.subr.bf16.mxu0 %v14016_v50  ;;  %v14143_v56 = vcombine.low %v1679_v0, %v1683_v42 }
 0x132   : > { %v1547_v53 = vld [vmem:[%s14754_s7 + $0x2060] sm:$0xff]  ;;  %10450 = vmatpush1.bf16.msra.mxu0 %v14015_v59 }
 0x133   : > { %v1671_v55 = vld [vmem:[%s14754_s7 + $0x2440] sm:$0xff]  ;;  %v14008_v61 = vcombine.high %v1543_v51, %v1547_v53  ;;  %10490 = vmatprep.subr.bf16.mxu1 %v14144_v31  ;;  %v14007_v8 = vcombine.low %v1543_v51, %v1547_v53 }
 0x134   : > { %v1675_v57 = vld [vmem:[%s14754_s7 + $0x2460] sm:$0xff]  ;;  %10491 = vmatpush1.bf16.msra.mxu1 %v14143_v56 }
 0x135   : > { %v14136_v63 = vcombine.high %v1671_v55, %v1675_v57  ;;  %v1535_v2 = vld [vmem:[%s14754_s7 + $0x2000] sm:$0xff]  ;;  %10451 = vmatprep.subr.bf16.mxu0 %v14008_v61  ;;  %v14135_v9 = vcombine.low %v1671_v55, %v1675_v57 }
 0x136   : > { %v1539_v3 = vld [vmem:[%s14754_s7 + $0x2020] sm:$0xff]  ;;  %10452 = vmatpush1.bf16.msra.mxu0 %v14007_v8 }
 0x137   : > { %v1663_v4 = vld [vmem:[%s14754_s7 + $0x2400] sm:$0xff]  ;;  %v14000_v10 = vcombine.high %v1535_v2, %v1539_v3  ;;  %10492 = vmatprep.subr.bf16.mxu1 %v14136_v63  ;;  %v13999_v19 = vcombine.low %v1535_v2, %v1539_v3 }
 0x138   : > { %v1667_v7 = vld [vmem:[%s14754_s7 + $0x2420] sm:$0xff]  ;;  %10493 = vmatpush1.bf16.msra.mxu1 %v14135_v9 }
 0x139   : > { %v14128_v11 = vcombine.high %v1663_v4, %v1667_v7  ;;  %v1655_v14 = vld [vmem:[%s14754_s7 + $0x23c0] sm:$0xff]  ;;  %10453 = vmatprep.subr.bf16.mxu0 %v14000_v10  ;;  %v14127_v20 = vcombine.low %v1663_v4, %v1667_v7 }
 0x13a   : > { %v1659_v26 = vld [vmem:[%s14754_s7 + $0x23e0] sm:$0xff]  ;;  %10454 = vmatpush1.bf16.msra.mxu0 %v13999_v19 }
 0x13b   : > { %v1783_v16 = vld [vmem:[%s14754_s7 + $0x27c0] sm:$0xff]  ;;  %v14120_v21 = vcombine.high %v1655_v14, %v1659_v26  ;;  %10494 = vmatprep.subr.bf16.mxu1 %v14128_v11  ;;  %v14119_v32 = vcombine.low %v1655_v14, %v1659_v26 }
 0x13c   : > { %v1787_v18 = vld [vmem:[%s14754_s7 + $0x27e0] sm:$0xff]  ;;  %10495 = vmatpush1.bf16.msra.mxu1 %v14127_v20 }
 0x13d   : > { %v14248_v22 = vcombine.high %v1783_v16, %v1787_v18  ;;  %v1647_v25 = vld [vmem:[%s14754_s7 + $0x2380] sm:$0xff]  ;;  %10455 = vmatprep.subr.bf16.mxu0 %v14120_v21  ;;  %v14247_v33 = vcombine.low %v1783_v16, %v1787_v18 }
 0x13e   : > { %v1651_v27 = vld [vmem:[%s14754_s7 + $0x23a0] sm:$0xff]  ;;  %10456 = vmatpush2.bf16.msra.mxu0 %v14119_v32 }
 0x13f   : > { %v1775_v29 = vld [vmem:[%s14754_s7 + $0x2780] sm:$0xff]  ;;  %v14112_v36 = vcombine.high %v1647_v25, %v1651_v27  ;;  %10496 = vmatprep.subr.bf16.mxu1 %v14248_v22  ;;  %v14111_v6 = vcombine.low %v1647_v25, %v1651_v27 }
 0x140   : > { %v1779_v30 = vld [vmem:[%s14754_s7 + $0x27a0] sm:$0xff]  ;;  %10497 = vmatpush2.bf16.msra.mxu1 %v14247_v33  ;;  %v343_v33 = vld [vmem:[%s14749_s28 + $0x28] sm:$0xff] }
 0x141   : > { %v14240_v37 = vcombine.high %v1775_v29, %v1779_v30  ;;  %v1639_v39 = vld [vmem:[%s14754_s7 + $0x2340] sm:$0xff]  ;;  %10457 = vmatprep.subr.bf16.mxu0 %v14112_v36  ;;  %v14239_v48 = vcombine.low %v1775_v29, %v1779_v30 }
 0x142   : > { %v1643_v41 = vld [vmem:[%s14754_s7 + $0x2360] sm:$0xff]  ;;  %10458 = vmatpush2.bf16.msra.mxu0 %v14111_v6 }
 0x143   : > { %v1767_v0 = vld [vmem:[%s14754_s7 + $0x2740] sm:$0xff]  ;;  %v14104_v50 = vcombine.high %v1639_v39, %v1643_v41  ;;  %10498 = vmatprep.subr.bf16.mxu1 %v14240_v37  ;;  %v14103_v59 = vcombine.low %v1639_v39, %v1643_v41 }
 0x144   : > { %v1771_v42 = vld [vmem:[%s14754_s7 + $0x2760] sm:$0xff]  ;;  %10499 = vmatpush2.bf16.msra.mxu1 %v14239_v48  ;;  %v437_v48 = vcombine.high %v343_v33, %v343_v33 }
 0x145   : > { %v14232_v31 = vcombine.high %v1767_v0, %v1771_v42  ;;  %v1631_v51 = vld [vmem:[%s14754_s7 + $0x2300] sm:$0xff]  ;;  %10459 = vmatprep.subr.bf16.mxu0 %v14104_v50  ;;  %v14231_v56 = vcombine.low %v1767_v0, %v1771_v42 }
 0x146   : > { %v1635_v53 = vld [vmem:[%s14754_s7 + $0x2320] sm:$0xff]  ;;  %10460 = vmatpush2.bf16.msra.mxu0 %v14103_v59  ;;  %v15215_v59 = vrot.slane %v343_v33, %v14786_v54 }
 0x147   : > { %v1759_v55 = vld [vmem:[%s14754_s7 + $0x2700] sm:$0xff]  ;;  %v14096_v61 = vcombine.high %v1631_v51, %v1635_v53  ;;  %10500 = vmatprep.subr.bf16.mxu1 %v14232_v31  ;;  %v14095_v8 = vcombine.low %v1631_v51, %v1635_v53 }
 0x148   : > { %v1763_v57 = vld [vmem:[%s14754_s7 + $0x2720] sm:$0xff]  ;;  %10501 = vmatpush2.bf16.msra.mxu1 %v14231_v56 }
 0x149   : > { %v14224_v63 = vcombine.high %v1759_v55, %v1763_v57  ;;  %v1623_v2 = vld [vmem:[%s14754_s7 + $0x22c0] sm:$0xff]  ;;  %10461 = vmatprep.subr.bf16.mxu0 %v14096_v61  ;;  %v14223_v9 = vcombine.low %v1759_v55, %v1763_v57 }
 0x14a   : > { %v1627_v3 = vld [vmem:[%s14754_s7 + $0x22e0] sm:$0xff]  ;;  %10462 = vmatpush2.bf16.msra.mxu0 %v14095_v8 }
 0x14b   : > { %v1751_v4 = vld [vmem:[%s14754_s7 + $0x26c0] sm:$0xff]  ;;  %v14088_v10 = vcombine.high %v1623_v2, %v1627_v3  ;;  %10502 = vmatprep.subr.bf16.mxu1 %v14224_v63  ;;  %v14087_v19 = vcombine.low %v1623_v2, %v1627_v3  ;;  %v15220_v63 = vrot.slane %v437_v48, %v14786_v54 }
 0x14c   : > { %v1755_v7 = vld [vmem:[%s14754_s7 + $0x26e0] sm:$0xff]  ;;  %10503 = vmatpush2.bf16.msra.mxu1 %v14223_v9 }
 0x14d   : > { %v14216_v11 = vcombine.high %v1751_v4, %v1755_v7  ;;  %v1615_v14 = vld [vmem:[%s14754_s7 + $0x2280] sm:$0xff]  ;;  %10463 = vmatprep.subr.bf16.mxu0 %v14088_v10  ;;  %v14215_v20 = vcombine.low %v1751_v4, %v1755_v7  ;;  %v452_v10 = vcombine.high %v15215_v59, %v15215_v59 }
 0x14e   : > { %v1619_v26 = vld [vmem:[%s14754_s7 + $0x22a0] sm:$0xff]  ;;  %10464 = vmatpush2.bf16.msra.mxu0 %v14087_v19 }
 0x14f   : > { %v1743_v16 = vld [vmem:[%s14754_s7 + $0x2680] sm:$0xff]  ;;  %v14080_v21 = vcombine.high %v1615_v14, %v1619_v26  ;;  %10504 = vmatprep.subr.bf16.mxu1 %v14216_v11  ;;  %v14079_v32 = vcombine.low %v1615_v14, %v1619_v26  ;;  %v15228_v11 = vpack.c.bf16 %v15120_v24, %v15120_v24 }
 0x150   : > { %v1747_v18 = vld [vmem:[%s14754_s7 + $0x26a0] sm:$0xff]  ;;  %10505 = vmatpush2.bf16.msra.mxu1 %v14215_v20 }
 0x151   : > { %v14208_v22 = vcombine.high %v1743_v16, %v1747_v18  ;;  %v1607_v25 = vld [vmem:[%s14754_s7 + $0x2240] sm:$0xff]  ;;  %10465 = vmatprep.subr.bf16.mxu0 %v14080_v21  ;;  %v14207_v36 = vcombine.low %v1743_v16, %v1747_v18  ;;  %v453_v16 = vcombine.high %v15220_v63, %v15220_v63  ;;  %v15236_v18 = vpack.c.bf16 %v15125_v28, %v15125_v28 }
 0x152   : > { %v1611_v27 = vld [vmem:[%s14754_s7 + $0x2260] sm:$0xff]  ;;  %10466 = vmatpush2.bf16.msra.mxu0 %v14079_v32 }
 0x153   : > { %v1735_v29 = vld [vmem:[%s14754_s7 + $0x2640] sm:$0xff]  ;;  %v14072_v37 = vcombine.high %v1607_v25, %v1611_v27  ;;  %10506 = vmatprep.subr.bf16.mxu1 %v14208_v22  ;;  %v14071_v50 = vcombine.low %v1607_v25, %v1611_v27  ;;  %v15240_v27 = vpack.c.bf16 %v452_v10, %v452_v10  ;;  %v15245_v33 = vpack.c.bf16 %v453_v16, %v453_v16 }
 0x154   : > { %v1739_v30 = vld [vmem:[%s14754_s7 + $0x2660] sm:$0xff]  ;;  %10507 = vmatpush2.bf16.msra.mxu1 %v14207_v36 }
 0x155   : > { %v14200_v39 = vcombine.high %v1735_v29, %v1739_v30  ;;  %v1599_v41 = vld [vmem:[%s14754_s7 + $0x2200] sm:$0xff]  ;;  %10467 = vmatprep.subr.bf16.mxu0 %v14072_v37  ;;  %v14199_v31 = vcombine.low %v1735_v29, %v1739_v30 }
 0x156   : > { %v1603_v0 = vld [vmem:[%s14754_s7 + $0x2220] sm:$0xff]  ;;  %10468 = vmatpush2.bf16.msra.mxu0 %v14071_v50 }
 0x157   : > { %v1727_v42 = vld [vmem:[%s14754_s7 + $0x2600] sm:$0xff]  ;;  %v14064_v51 = vcombine.high %v1599_v41, %v1603_v0  ;;  %10508 = vmatprep.subr.bf16.mxu1 %v14200_v39  ;;  %v14063_v2 = vcombine.low %v1599_v41, %v1603_v0 }
 0x158   : > { %v1731_v6 = vld [vmem:[%s14754_s7 + $0x2620] sm:$0xff]  ;;  %10509 = vmatpush2.bf16.msra.mxu1 %v14199_v31 }
 0x159   : > { %v14192_v53 = vcombine.high %v1727_v42, %v1731_v6  ;;  %v1847_v55 = vld [vmem:[%s14754_s7 + $0x29c0] sm:$0xff]  ;;  %10469 = vmatprep.subr.bf16.mxu0 %v14064_v51  ;;  %v14191_v3 = vcombine.low %v1727_v42, %v1731_v6 }
 0x15a   : > { %v1851_v57 = vld [vmem:[%s14754_s7 + $0x29e0] sm:$0xff]  ;;  %10470 = vmatpush2.bf16.msra.mxu0 %v14063_v2 }
 0x15b   : > { %v1975_v56 = vld [vmem:[%s14754_s7 + $0x2dc0] sm:$0xff]  ;;  %v14312_v4 = vcombine.high %v1847_v55, %v1851_v57  ;;  %10510 = vmatprep.subr.bf16.mxu1 %v14192_v53  ;;  %v14311_v19 = vcombine.low %v1847_v55, %v1851_v57 }
 0x15c   : > { %v1979_v61 = vld [vmem:[%s14754_s7 + $0x2de0] sm:$0xff]  ;;  %10511 = vmatpush2.bf16.msra.mxu1 %v14191_v3  ;;  %v10227_v29 = vpop.f32.mrf.mxu0 }
 0x15d   : > { %v14440_v7 = vcombine.high %v1975_v56, %v1979_v61  ;;  %v1839_v8 = vld [vmem:[%s14754_s7 + $0x2980] sm:$0xff]  ;;  %10521 = vmatprep.subr.bf16.mxu0 %v14312_v4  ;;  %v14439_v20 = vcombine.low %v1975_v56, %v1979_v61  ;;  %10472 = vmatmul.mubr.bf16.vlgmr.msra.gmra.mxu0 %v15228_v11  ;;  %v10228_v28 = vadd.f32 %v10227_v29, %v15153_v62 }
 0x15e   : > { %v1843_v9 = vld [vmem:[%s14754_s7 + $0x29a0] sm:$0xff]  ;;  %v10268_v36 = vpop.f32.mrf.mxu1  ;;  %10522 = vmatpush1.bf16.msra.mxu0 %v14311_v19  ;;  %v10229_v39 = vpop.f32.mrf.mxu0  ;;  %10553 = vmatprep.mubr.bf16.mxu0 %v15240_v27 }
 0x15f   : > { %v1967_v14 = vld [vmem:[%s14754_s7 + $0x2d80] sm:$0xff]  ;;  %v14304_v21 = vcombine.high %v1839_v8, %v1843_v9  ;;  %10562 = vmatprep.subr.bf16.mxu1 %v14440_v7  ;;  %10513 = vmatmul.mubr.bf16.vlgmr.msra.gmra.mxu1 %v15236_v18  ;;  %v14303_v37 = vcombine.low %v1839_v8, %v1843_v9  ;;  %v15249_v42 = vadd.f32 %v10268_v36, %v10228_v28 }
 0x160   : > { %v1971_v26 = vld [vmem:[%s14754_s7 + $0x2da0] sm:$0xff]  ;;  %10563 = vmatpush1.bf16.msra.mxu1 %v14439_v20  ;;  %v10230_v6 = vadd.f32 %v10229_v39, %v15158_v23  ;;  %v10270_v48 = vpop.f32.mrf.mxu1  ;;  %v10231_v51 = vpop.f32.mrf.mxu0  ;;  %10594 = vmatprep.mubr.bf16.mxu1 %v15245_v33 }
 0x161   : > { %v14432_v24 = vcombine.high %v1967_v14, %v1971_v26  ;;  %v1831_v22 = vld [vmem:[%s14754_s7 + $0x2940] sm:$0xff]  ;;  %10523 = vmatprep.subr.bf16.mxu0 %v14304_v21  ;;  %v14431_v41 = vcombine.low %v1967_v14, %v1971_v26 }
 0x162   : > { %v1835_v25 = vld [vmem:[%s14754_s7 + $0x2960] sm:$0xff]  ;;  %v15258_v57 = vadd.f32 %v10270_v48, %v10230_v6  ;;  %v10272_v56 = vpop.f32.mrf.mxu1  ;;  %10524 = vmatpush1.bf16.msra.mxu0 %v14303_v37  ;;  %v10232_v61 = vpop.f32.mrf.mxu0 }
 0x163   : > { %v1959_v30 = vld [vmem:[%s14754_s7 + $0x2d40] sm:$0xff]  ;;  %v14296_v0 = vcombine.high %v1831_v22, %v1835_v25  ;;  %10564 = vmatprep.subr.bf16.mxu1 %v14432_v24  ;;  %v14295_v23 = vcombine.low %v1831_v22, %v1835_v25 }
 0x164   : > { %v1963_v32 = vld [vmem:[%s14754_s7 + $0x2d60] sm:$0xff]  ;;  %10565 = vmatpush1.bf16.msra.mxu1 %v14431_v41  ;;  %v10273_v4 = vpop.f32.mrf.mxu1 }
 0x165   : > { %v14424_v62 = vcombine.high %v1959_v30, %v1963_v32  ;;  %v1823_v50 = vld [vmem:[%s14754_s7 + $0x2900] sm:$0xff]  ;;  %10525 = vmatprep.subr.bf16.mxu0 %v14296_v0  ;;  %v14423_v2 = vcombine.low %v1959_v30, %v1963_v32 }
 0x166   : > { %v1827_v31 = vld [vmem:[%s14754_s7 + $0x2920] sm:$0xff]  ;;  %10526 = vmatpush1.bf16.msra.mxu0 %v14295_v23 }
 0x167   : > { %v1951_v53 = vld [vmem:[%s14754_s7 + $0x2d00] sm:$0xff]  ;;  %v14288_v3 = vcombine.high %v1823_v50, %v1827_v31  ;;  %10566 = vmatprep.subr.bf16.mxu1 %v14424_v62  ;;  %v14287_v26 = vcombine.low %v1823_v50, %v1827_v31 }
 0x168   : > { %v1955_v55 = vld [vmem:[%s14754_s7 + $0x2d20] sm:$0xff]  ;;  %10567 = vmatpush1.bf16.msra.mxu1 %v14423_v2 }
 0x169   : > { %v14416_v7 = vcombine.high %v1951_v53, %v1955_v55  ;;  %v1815_v8 = vld [vmem:[%s14754_s7 + $0x28c0] sm:$0xff]  ;;  %10527 = vmatprep.subr.bf16.mxu0 %v14288_v3  ;;  %v14415_v16 = vcombine.low %v1951_v53, %v1955_v55 }
 0x16a   : > { %v1819_v9 = vld [vmem:[%s14754_s7 + $0x28e0] sm:$0xff]  ;;  %10528 = vmatpush1.bf16.msra.mxu0 %v14287_v26 }
 0x16b   : > { %v1943_v10 = vld [vmem:[%s14754_s7 + $0x2cc0] sm:$0xff]  ;;  %v14280_v19 = vcombine.high %v1815_v8, %v1819_v9  ;;  %10568 = vmatprep.subr.bf16.mxu1 %v14416_v7  ;;  %v14279_v29 = vcombine.low %v1815_v8, %v1819_v9 }
 0x16c   : > { %v1947_v14 = vld [vmem:[%s14754_s7 + $0x2ce0] sm:$0xff]  ;;  %10569 = vmatpush1.bf16.msra.mxu1 %v14415_v16 }
 0x16d   : > { %v14408_v20 = vcombine.high %v1943_v10, %v1947_v14  ;;  %v1807_v21 = vld [vmem:[%s14754_s7 + $0x2880] sm:$0xff]  ;;  %10529 = vmatprep.subr.bf16.mxu0 %v14280_v19  ;;  %v14407_v30 = vcombine.low %v1943_v10, %v1947_v14 }
 0x16e   : > { %v1811_v24 = vld [vmem:[%s14754_s7 + $0x28a0] sm:$0xff]  ;;  %10530 = vmatpush1.bf16.msra.mxu0 %v14279_v29 }
 0x16f   : > { %v1935_v22 = vld [vmem:[%s14754_s7 + $0x2c80] sm:$0xff]  ;;  %v14272_v32 = vcombine.high %v1807_v21, %v1811_v24  ;;  %10570 = vmatprep.subr.bf16.mxu1 %v14408_v20  ;;  %v14271_v0 = vcombine.low %v1807_v21, %v1811_v24 }
 0x170   : > { %v1939_v25 = vld [vmem:[%s14754_s7 + $0x2ca0] sm:$0xff]  ;;  %10571 = vmatpush1.bf16.msra.mxu1 %v14407_v30 }
 0x171   : > { %v14400_v28 = vcombine.high %v1935_v22, %v1939_v25  ;;  %v1799_v36 = vld [vmem:[%s14754_s7 + $0x2840] sm:$0xff]  ;;  %10531 = vmatprep.subr.bf16.mxu0 %v14272_v32  ;;  %v14399_v6 = vcombine.low %v1935_v22, %v1939_v25 }
 0x172   : > { %v1803_v37 = vld [vmem:[%s14754_s7 + $0x2860] sm:$0xff]  ;;  %10532 = vmatpush1.bf16.msra.mxu0 %v14271_v0 }
 0x173   : > { %v1927_v39 = vld [vmem:[%s14754_s7 + $0x2c40] sm:$0xff]  ;;  %v14264_v48 = vcombine.high %v1799_v36, %v1803_v37  ;;  %10572 = vmatprep.subr.bf16.mxu1 %v14400_v28  ;;  %v14263_v55 = vcombine.low %v1799_v36, %v1803_v37 }
 0x174   : > { %v1931_v41 = vld [vmem:[%s14754_s7 + $0x2c60] sm:$0xff]  ;;  %10573 = vmatpush1.bf16.msra.mxu1 %v14399_v6 }
 0x175   : > { %v14392_v62 = vcombine.high %v1927_v39, %v1931_v41  ;;  %v1791_v50 = vld [vmem:[%s14754_s7 + $0x2800] sm:$0xff]  ;;  %10533 = vmatprep.subr.bf16.mxu0 %v14264_v48  ;;  %v14391_v56 = vcombine.low %v1927_v39, %v1931_v41 }
 0x176   : > { %v1795_v31 = vld [vmem:[%s14754_s7 + $0x2820] sm:$0xff]  ;;  %10534 = vmatpush1.bf16.msra.mxu0 %v14263_v55 }
 0x177   : > { %v1919_v51 = vld [vmem:[%s14754_s7 + $0x2c00] sm:$0xff]  ;;  %v14256_v23 = vcombine.high %v1791_v50, %v1795_v31  ;;  %10574 = vmatprep.subr.bf16.mxu1 %v14392_v62  ;;  %v14255_v8 = vcombine.low %v1791_v50, %v1795_v31 }
 0x178   : > { %v1923_v53 = vld [vmem:[%s14754_s7 + $0x2c20] sm:$0xff]  ;;  %10575 = vmatpush1.bf16.msra.mxu1 %v14391_v56 }
 0x179   : > { %v14384_v61 = vcombine.high %v1919_v51, %v1923_v53  ;;  %v1911_v2 = vld [vmem:[%s14754_s7 + $0x2bc0] sm:$0xff]  ;;  %10535 = vmatprep.subr.bf16.mxu0 %v14256_v23  ;;  %v14383_v9 = vcombine.low %v1919_v51, %v1923_v53 }
 0x17a   : > { %v1915_v3 = vld [vmem:[%s14754_s7 + $0x2be0] sm:$0xff]  ;;  %10536 = vmatpush1.bf16.msra.mxu0 %v14255_v8 }
 0x17b   : > { %v2039_v4 = vld [vmem:[%s14754_s7 + $0x2fc0] sm:$0xff]  ;;  %v14376_v10 = vcombine.high %v1911_v2, %v1915_v3  ;;  %10576 = vmatprep.subr.bf16.mxu1 %v14384_v61  ;;  %v14375_v21 = vcombine.low %v1911_v2, %v1915_v3 }
 0x17c   : > { %v2043_v7 = vld [vmem:[%s14754_s7 + $0x2fe0] sm:$0xff]  ;;  %10577 = vmatpush1.bf16.msra.mxu1 %v14383_v9 }
 0x17d   : > { %v14504_v14 = vcombine.high %v2039_v4, %v2043_v7  ;;  %v1903_v26 = vld [vmem:[%s14754_s7 + $0x2b80] sm:$0xff]  ;;  %10537 = vmatprep.subr.bf16.mxu0 %v14376_v10  ;;  %v14503_v24 = vcombine.low %v2039_v4, %v2043_v7 }
 0x17e   : > { %v1907_v16 = vld [vmem:[%s14754_s7 + $0x2ba0] sm:$0xff]  ;;  %10538 = vmatpush2.bf16.msra.mxu0 %v14375_v21 }
 0x17f   : > { %v2031_v19 = vld [vmem:[%s14754_s7 + $0x2f80] sm:$0xff]  ;;  %v14368_v22 = vcombine.high %v1903_v26, %v1907_v16  ;;  %10578 = vmatprep.subr.bf16.mxu1 %v14504_v14  ;;  %v14367_v36 = vcombine.low %v1903_v26, %v1907_v16 }
 0x180   : > { %v2035_v20 = vld [vmem:[%s14754_s7 + $0x2fa0] sm:$0xff]  ;;  %10579 = vmatpush2.bf16.msra.mxu1 %v14503_v24 }
 0x181   : > { %v14496_v25 = vcombine.high %v2031_v19, %v2035_v20  ;;  %v1895_v29 = vld [vmem:[%s14754_s7 + $0x2b40] sm:$0xff]  ;;  %10539 = vmatprep.subr.bf16.mxu0 %v14368_v22  ;;  %v14495_v37 = vcombine.low %v2031_v19, %v2035_v20 }
 0x182   : > { %v1899_v30 = vld [vmem:[%s14754_s7 + $0x2b60] sm:$0xff]  ;;  %10540 = vmatpush2.bf16.msra.mxu0 %v14367_v36 }
 0x183   : > { %v2023_v32 = vld [vmem:[%s14754_s7 + $0x2f40] sm:$0xff]  ;;  %v14360_v39 = vcombine.high %v1895_v29, %v1899_v30  ;;  %10580 = vmatprep.subr.bf16.mxu1 %v14496_v25  ;;  %v14359_v50 = vcombine.low %v1895_v29, %v1899_v30 }
 0x184   : > { %v2027_v28 = vld [vmem:[%s14754_s7 + $0x2f60] sm:$0xff]  ;;  %10581 = vmatpush2.bf16.msra.mxu1 %v14495_v37 }
 0x185   : > { %v14488_v41 = vcombine.high %v2023_v32, %v2027_v28  ;;  %v1887_v0 = vld [vmem:[%s14754_s7 + $0x2b00] sm:$0xff]  ;;  %10541 = vmatprep.subr.bf16.mxu0 %v14360_v39  ;;  %v14487_v31 = vcombine.low %v2023_v32, %v2027_v28 }
 0x186   : > { %v1891_v6 = vld [vmem:[%s14754_s7 + $0x2b20] sm:$0xff]  ;;  %10542 = vmatpush2.bf16.msra.mxu0 %v14359_v50 }
 0x187   : > { %v2015_v48 = vld [vmem:[%s14754_s7 + $0x2f00] sm:$0xff]  ;;  %v14352_v51 = vcombine.high %v1887_v0, %v1891_v6  ;;  %10582 = vmatprep.subr.bf16.mxu1 %v14488_v41  ;;  %v14351_v2 = vcombine.low %v1887_v0, %v1891_v6 }
 0x188   : > { %v2019_v62 = vld [vmem:[%s14754_s7 + $0x2f20] sm:$0xff]  ;;  %10583 = vmatpush2.bf16.msra.mxu1 %v14487_v31 }
 0x189   : > { %v14480_v53 = vcombine.high %v2015_v48, %v2019_v62  ;;  %v1879_v55 = vld [vmem:[%s14754_s7 + $0x2ac0] sm:$0xff]  ;;  %10543 = vmatprep.subr.bf16.mxu0 %v14352_v51  ;;  %v14479_v3 = vcombine.low %v2015_v48, %v2019_v62  ;;  %v568_v51 = vld [vmem:[%s14754_s7 + $0x1c8] sm:$0xff] }
 0x18a   : > { %v1883_v56 = vld [vmem:[%s14754_s7 + $0x2ae0] sm:$0xff]  ;;  %10544 = vmatpush2.bf16.msra.mxu0 %v14351_v2 }
 0x18b   : > { %v2007_v23 = vld [vmem:[%s14754_s7 + $0x2ec0] sm:$0xff]  ;;  %v14344_v4 = vcombine.high %v1879_v55, %v1883_v56  ;;  %10584 = vmatprep.subr.bf16.mxu1 %v14480_v53  ;;  %v14343_v26 = vcombine.low %v1879_v55, %v1883_v56  ;;  %v572_v53 = vld [vmem:[%s14754_s7 + $0x1e8] sm:$0xff] }
 0x18c   : > { %v2011_v61 = vld [vmem:[%s14754_s7 + $0x2ee0] sm:$0xff]  ;;  %10585 = vmatpush2.bf16.msra.mxu1 %v14479_v3 }
 0x18d   : > { %v14472_v7 = vcombine.high %v2007_v23, %v2011_v61  ;;  %v1871_v8 = vld [vmem:[%s14754_s7 + $0x2a80] sm:$0xff]  ;;  %10545 = vmatprep.subr.bf16.mxu0 %v14344_v4  ;;  %v14471_v16 = vcombine.low %v2007_v23, %v2011_v61  ;;  %v13034_v61 = vcombine.high %v568_v51, %v572_v53  ;;  %v15316_v4 = vpack.c.bf16 %v15215_v59, %v15215_v59 }
 0x18e   : > { %v1875_v9 = vld [vmem:[%s14754_s7 + $0x2aa0] sm:$0xff]  ;;  %10546 = vmatpush2.bf16.msra.mxu0 %v14343_v26 }
 0x18f   : > { %v1999_v10 = vld [vmem:[%s14754_s7 + $0x2e80] sm:$0xff]  ;;  %v14336_v19 = vcombine.high %v1871_v8, %v1875_v9  ;;  %10586 = vmatprep.subr.bf16.mxu1 %v14472_v7  ;;  %v14335_v29 = vcombine.low %v1871_v8, %v1875_v9  ;;  %v560_v7 = vld [vmem:[%s14754_s7 + $0x188] sm:$0xff]  ;;  %v15322_v9 = vpack.c.bf16 %v15220_v63, %v15220_v63 }
 0x190   : > { %v2003_v14 = vld [vmem:[%s14754_s7 + $0x2ea0] sm:$0xff]  ;;  %10587 = vmatpush2.bf16.msra.mxu1 %v14471_v16  ;;  %v564_v8 = vld [vmem:[%s14754_s7 + $0x1a8] sm:$0xff] }
 0x191   : > { %v14464_v20 = vcombine.high %v1999_v10, %v2003_v14  ;;  %v1863_v21 = vld [vmem:[%s14754_s7 + $0x2a40] sm:$0xff]  ;;  %10547 = vmatprep.subr.bf16.mxu0 %v14336_v19  ;;  %v14463_v30 = vcombine.low %v1999_v10, %v2003_v14  ;;  %v13033_v14 = vcombine.low %v568_v51, %v572_v53  ;;  %v13026_v16 = vcombine.high %v560_v7, %v564_v8 }
 0x192   : > { %v1867_v24 = vld [vmem:[%s14754_s7 + $0x2a60] sm:$0xff]  ;;  %10548 = vmatpush2.bf16.msra.mxu0 %v14335_v29 }
 0x193   : > { %v1991_v22 = vld [vmem:[%s14754_s7 + $0x2e40] sm:$0xff]  ;;  %v14328_v32 = vcombine.high %v1863_v21, %v1867_v24  ;;  %10588 = vmatprep.subr.bf16.mxu1 %v14464_v20  ;;  %v14327_v0 = vcombine.low %v1863_v21, %v1867_v24  ;;  %v552_v21 = vld [vmem:[%s14754_s7 + $0x148] sm:$0xff] }
 0x194   : > { %v1995_v25 = vld [vmem:[%s14754_s7 + $0x2e60] sm:$0xff]  ;;  %10589 = vmatpush2.bf16.msra.mxu1 %v14463_v30  ;;  %v556_v24 = vld [vmem:[%s14754_s7 + $0x168] sm:$0xff]  ;;  %v13025_v30 = vcombine.low %v560_v7, %v564_v8 }
 0x195   : > { %v14456_v28 = vcombine.high %v1991_v22, %v1995_v25  ;;  %v1855_v36 = vld [vmem:[%s14754_s7 + $0x2a00] sm:$0xff]  ;;  %10549 = vmatprep.subr.bf16.mxu0 %v14328_v32  ;;  %v14455_v6 = vcombine.low %v1991_v22, %v1995_v25  ;;  %v13017_v53 = vcombine.low %v552_v21, %v556_v24  ;;  %v540_v7 = vld [vmem:[%s14754_s7 + $0xe8] sm:$0xff] }
 0x196   : > { %v1859_v37 = vld [vmem:[%s14754_s7 + $0x2a20] sm:$0xff]  ;;  %10550 = vmatpush2.bf16.msra.mxu0 %v14327_v0  ;;  %v14691_v0 = vmov 0  }
 0x197   : > { %v1983_v39 = vld [vmem:[%s14754_s7 + $0x2e00] sm:$0xff]  ;;  %v14320_v48 = vcombine.high %v1855_v36, %v1859_v37  ;;  %10590 = vmatprep.subr.bf16.mxu1 %v14456_v28  ;;  %v14319_v55 = vcombine.low %v1855_v36, %v1859_v37 }
 0x198   : > { %v1987_v41 = vld [vmem:[%s14754_s7 + $0x2e20] sm:$0xff]  ;;  %10591 = vmatpush2.bf16.msra.mxu1 %v14455_v6 }
 0x199   : > { %v14448_v62 = vcombine.high %v1983_v39, %v1987_v41  ;;  %v2103_v50 = vld [vmem:[%s14754_s7 + $0x31c0] sm:$0xff]  ;;  %10551 = vmatprep.subr.bf16.mxu0 %v14320_v48  ;;  %v14447_v56 = vcombine.low %v1983_v39, %v1987_v41  ;;  %v544_v48 = vld [vmem:[%s14754_s7 + $0x108] sm:$0xff] }
 0x19a   : > { %v2107_v31 = vld [vmem:[%s14754_s7 + $0x31e0] sm:$0xff]  ;;  %10552 = vmatpush2.bf16.msra.mxu0 %v14319_v55 }
 0x19b   : > { %v14568_v23 = vcombine.high %v2103_v50, %v2107_v31  ;;  %10592 = vmatprep.subr.bf16.mxu1 %v14448_v62  ;;  %v2095_v2 = vld [vmem:[%s14754_s7 + $0x3180] sm:$0xff]  ;;  %v14567_v10 = vcombine.low %v2103_v50, %v2107_v31  ;;  %v548_v62 = vld [vmem:[%s14754_s7 + $0x128] sm:$0xff] }
 0x19c   : > { %v2099_v3 = vld [vmem:[%s14754_s7 + $0x31a0] sm:$0xff]  ;;  %10593 = vmatpush2.bf16.msra.mxu1 %v14447_v56  ;;  %v10309_v59 = vpop.f32.mrf.mxu0 }
 0x19d   : > { %10603 = vmatprep.subr.bf16.mxu0 %v14568_v23  ;;  %v14560_v26 = vcombine.high %v2095_v2, %v2099_v3  ;;  %10644 = vmatprep.subr.bf16.mxu1 %v13034_v61  ;;  %v2087_v19 = vld [vmem:[%s14754_s7 + $0x3140] sm:$0xff]  ;;  %v10310_v22 = vadd.f32 %v10309_v59, %v15249_v42  ;;  %v14559_v25 = vcombine.low %v2095_v2, %v2099_v3  ;;  %v536_v3 = vld [vmem:[%s14754_s7 + $0xc8] sm:$0xff] }
 0x19e   : > { %v2091_v20 = vld [vmem:[%s14754_s7 + $0x3160] sm:$0xff]  ;;  %10554 = vmatmul.mubr.bf16.vlgmr.msra.gmra.mxu0 %v15316_v4  ;;  %v10350_v63 = vpop.f32.mrf.mxu1  ;;  %v10311_v29 = vpop.f32.mrf.mxu0  ;;  %v13018_v42 = vcombine.high %v552_v21, %v556_v24  ;;  %v13010_v23 = vcombine.high %v544_v48, %v548_v62  ;;  %v532_v59 = vld [vmem:[%s14754_s7 + $0xa8] sm:$0xff]  ;;  %v13001_v24 = vcombine.low %v536_v3, %v540_v7 }
 0x19f   : > { %10595 = vmatmul.mubr.bf16.vlgmr.msra.gmra.mxu1 %v15322_v9  ;;  %10604 = vmatpush1.bf16.msra.mxu0 %v14567_v10  ;;  %v14552_v32 = vcombine.high %v2087_v19, %v2091_v20  ;;  %v15331_v28 = vadd.f32 %v10350_v63, %v10310_v22  ;;  %v10312_v36 = vadd.f32 %v10311_v29, %v15258_v57  ;;  %v2079_v39 = vld [vmem:[%s14754_s7 + $0x3100] sm:$0xff] }
 0x1a0   : > { %10645 = vmatpush1.bf16.msra.mxu1 %v13033_v14  ;;  %10605 = vmatprep.subr.bf16.mxu0 %v14560_v26  ;;  %v10352_v37 = vpop.f32.mrf.mxu1  ;;  %v2083_v41 = vld [vmem:[%s14754_s7 + $0x3120] sm:$0xff]  ;;  %v10313_v6 = vpop.f32.mrf.mxu0  ;;  %v14551_v31 = vcombine.low %v2087_v19, %v2091_v20  ;;  %v13009_v10 = vcombine.low %v544_v48, %v548_v62  ;;  %v13002_v26 = vcombine.high %v536_v3, %v540_v7  ;;  %v528_v20 = vld [vmem:[%s14754_s7 + $0x88] sm:$0xff]  ;;  %v12974_v3 = vld.sshfl [vmem:[%s14749_s28 + $0x30] sm:$0x3 pattern:$0x76325410] }
 0x1a1   : > { %10646 = vmatprep.subr.bf16.mxu1 %v13026_v16  ;;  %10635 = vmatprep.mubr.bf16.mxu0 %v14691_v0  ;;  %v15340_v50 = vadd.f32 %v10352_v37, %v10312_v36  ;;  %v14544_v55 = vcombine.high %v2079_v39, %v2083_v41  ;;  %v2071_v61 = vld [vmem:[%s14754_s7 + $0x30c0] sm:$0xff]  ;;  %v14543_v8 = vcombine.low %v2079_v39, %v2083_v41  ;;  %v512_v48 = vld [vmem:[%s14754_s7 + $0x8] sm:$0xff] }
 0x1a2   : > { %10676 = vmatprep.mubr.bf16.mxu1 %v14805_v12  ;;  %v10354_v57 = vpop.f32.mrf.mxu1  ;;  %v10314_v51 = vpop.f32.mrf.mxu0  ;;  %v2075_v2 = vld [vmem:[%s14754_s7 + $0x30e0] sm:$0xff]  ;;  %v12994_v63 = vcombine.high %v528_v20, %v532_v59  ;;  %v12993_v37 = vcombine.low %v528_v20, %v532_v59  ;;  %v516_v62 = vld [vmem:[%s14754_s7 + $0x28] sm:$0xff] }
 0x1a3   : > { %10606 = vmatpush1.bf16.msra.mxu0 %v14559_v25  ;;  %v14536_v14 = vcombine.high %v2071_v61, %v2075_v2  ;;  %v2063_v16 = vld [vmem:[%s14754_s7 + $0x3080] sm:$0xff]  ;;  %v14535_v21 = vcombine.low %v2071_v61, %v2075_v2  ;;  %v636_v61 = vld [vmem:[%s14754_s7 + $0x3e8] sm:$0xff]  ;;  %v12977_v7 = vcombine.low %v512_v48, %v516_v62 }
 0x1a4   : > { %10647 = vmatpush1.bf16.msra.mxu1 %v13025_v30  ;;  %10607 = vmatprep.subr.bf16.mxu0 %v14552_v32  ;;  %v10355_v56 = vpop.f32.mrf.mxu1  ;;  %v2067_v19 = vld [vmem:[%s14754_s7 + $0x30a0] sm:$0xff]  ;;  %v520_v30 = vld [vmem:[%s14754_s7 + $0x48] sm:$0xff] }
 0x1a5   : > { %10648 = vmatprep.subr.bf16.mxu1 %v13018_v42  ;;  %v14528_v22 = vcombine.high %v2063_v16, %v2067_v19  ;;  %v2055_v25 = vld [vmem:[%s14754_s7 + $0x3040] sm:$0xff]  ;;  %v524_v32 = vld [vmem:[%s14754_s7 + $0x68] sm:$0xff]  ;;  %v14527_v36 = vcombine.low %v2063_v16, %v2067_v19  ;;  %v15365_v16 = vpack.c.bf16 %v12974_v3, %v12974_v3 }
 0x1a6   : > { %v2059_v29 = vld [vmem:[%s14754_s7 + $0x3060] sm:$0xff]  ;;  %v12986_v39 = vcombine.high %v520_v30, %v524_v32  ;;  %v700_v56 = vld [vmem:[%s14754_s7 + $0x5e8] sm:$0xff] }
 0x1a7   : > { %10608 = vmatpush1.bf16.msra.mxu0 %v14551_v31  ;;  %v14520_v42 = vcombine.high %v2055_v25, %v2059_v29  ;;  %v2047_v41 = vld [vmem:[%s14754_s7 + $0x3000] sm:$0xff]  ;;  %v14519_v57 = vcombine.low %v2055_v25, %v2059_v29  ;;  %v12985_v31 = vcombine.low %v520_v30, %v524_v32  ;;  %v624_v19 = vld [vmem:[%s14754_s7 + $0x388] sm:$0xff] }
 0x1a8   : > { %10649 = vmatpush1.bf16.msra.mxu1 %v13017_v53  ;;  %10609 = vmatprep.subr.bf16.mxu0 %v14544_v55  ;;  %v2051_v6 = vld [vmem:[%s14754_s7 + $0x3020] sm:$0xff]  ;;  %v12978_v53 = vcombine.high %v512_v48, %v516_v62  ;;  %v696_v55 = vld [vmem:[%s14754_s7 + $0x5c8] sm:$0xff] }
 0x1a9   : > { %10650 = vmatprep.subr.bf16.mxu1 %v13010_v23  ;;  %v14512_v51 = vcombine.high %v2047_v41, %v2051_v6  ;;  %v632_v23 = vld [vmem:[%s14754_s7 + $0x3c8] sm:$0xff]  ;;  %v14511_v2 = vcombine.low %v2047_v41, %v2051_v6  ;;  %v13161_v59 = vcombine.low %v696_v55, %v700_v56 }
 0x1aa   : > { %v628_v20 = vld [vmem:[%s14754_s7 + $0x3a8] sm:$0xff] }
 0x1ab   : > { %10610 = vmatpush1.bf16.msra.mxu0 %v14543_v8  ;;  %v13162_v8 = vcombine.high %v696_v55, %v700_v56  ;;  %v684_v25 = vld [vmem:[%s14754_s7 + $0x568] sm:$0xff] }
 0x1ac   : > { %10651 = vmatpush1.bf16.msra.mxu1 %v13009_v10  ;;  %10611 = vmatprep.subr.bf16.mxu0 %v14536_v14  ;;  %v13098_v10 = vcombine.high %v632_v23, %v636_v61  ;;  %v688_v14 = vld [vmem:[%s14754_s7 + $0x588] sm:$0xff] }
 0x1ad   : > { %10652 = vmatprep.subr.bf16.mxu1 %v13002_v26  ;;  %v692_v26 = vld [vmem:[%s14754_s7 + $0x5a8] sm:$0xff] }
 0x1ae   : > { %v616_v29 = vld [vmem:[%s14754_s7 + $0x348] sm:$0xff]  ;;  %v13153_v32 = vcombine.low %v688_v14, %v692_v26 }
 0x1af   : > { %10612 = vmatpush1.bf16.msra.mxu0 %v14535_v21  ;;  %v13097_v21 = vcombine.low %v632_v23, %v636_v61  ;;  %v620_v30 = vld [vmem:[%s14754_s7 + $0x368] sm:$0xff] }
 0x1b0   : > { %10653 = vmatpush1.bf16.msra.mxu1 %v13001_v24  ;;  %10613 = vmatprep.subr.bf16.mxu0 %v14528_v22  ;;  %v13154_v24 = vcombine.high %v688_v14, %v692_v26  ;;  %v13090_v22 = vcombine.high %v624_v19, %v628_v20  ;;  %v676_v41 = vld [vmem:[%s14754_s7 + $0x528] sm:$0xff] }
 0x1b1   : > { %10654 = vmatprep.subr.bf16.mxu1 %v12994_v63  ;;  %v680_v63 = vld [vmem:[%s14754_s7 + $0x548] sm:$0xff] }
 0x1b2   : > { %v608_v6 = vld [vmem:[%s14754_s7 + $0x308] sm:$0xff]  ;;  %v13145_v62 = vcombine.low %v680_v63, %v684_v25 }
 0x1b3   : > { %10614 = vmatpush1.bf16.msra.mxu0 %v14527_v36  ;;  %v13089_v36 = vcombine.low %v624_v19, %v628_v20  ;;  %v612_v48 = vld [vmem:[%s14754_s7 + $0x328] sm:$0xff] }
 0x1b4   : > { %10655 = vmatpush1.bf16.msra.mxu1 %v12993_v37  ;;  %10615 = vmatprep.subr.bf16.mxu0 %v14520_v42  ;;  %v13146_v37 = vcombine.high %v680_v63, %v684_v25  ;;  %v13082_v42 = vcombine.high %v616_v29, %v620_v30  ;;  %v668_v55 = vld [vmem:[%s14754_s7 + $0x4e8] sm:$0xff] }
 0x1b5   : > { %10656 = vmatprep.subr.bf16.mxu1 %v12986_v39  ;;  %v672_v39 = vld [vmem:[%s14754_s7 + $0x508] sm:$0xff] }
 0x1b6   : > { %v600_v56 = vld [vmem:[%s14754_s7 + $0x2c8] sm:$0xff]  ;;  %v13137_v61 = vcombine.low %v672_v39, %v676_v41 }
 0x1b7   : > { %10616 = vmatpush1.bf16.msra.mxu0 %v14519_v57  ;;  %v13081_v57 = vcombine.low %v616_v29, %v620_v30  ;;  %v604_v23 = vld [vmem:[%s14754_s7 + $0x2e8] sm:$0xff] }
 0x1b8   : > { %10657 = vmatpush1.bf16.msra.mxu1 %v12985_v31  ;;  %10617 = vmatprep.subr.bf16.mxu0 %v14512_v51  ;;  %v13138_v31 = vcombine.high %v672_v39, %v676_v41  ;;  %v13074_v51 = vcombine.high %v608_v6, %v612_v48  ;;  %v592_v14 = vld [vmem:[%s14754_s7 + $0x288] sm:$0xff]  ;;  %v13065_v20 = vcombine.low %v600_v56, %v604_v23 }
 0x1b9   : > { %10658 = vmatprep.subr.bf16.mxu1 %v12978_v53  ;;  %v664_v53 = vld [vmem:[%s14754_s7 + $0x4c8] sm:$0xff] }
 0x1ba   : > { %v13130_v3 = vcombine.high %v664_v53, %v668_v55  ;;  %v596_v26 = vld [vmem:[%s14754_s7 + $0x2a8] sm:$0xff]  ;;  %v13129_v19 = vcombine.low %v664_v53, %v668_v55 }
 0x1bb   : > { %10618 = vmatpush1.bf16.msra.mxu0 %v14511_v2  ;;  %v13073_v2 = vcombine.low %v608_v6, %v612_v48  ;;  %v584_v63 = vld [vmem:[%s14754_s7 + $0x248] sm:$0xff]  ;;  %v13057_v30 = vcombine.low %v592_v14, %v596_v26 }
 0x1bc   : > { %10659 = vmatpush1.bf16.msra.mxu1 %v12977_v7  ;;  %10685 = vmatprep.subr.bf16.mxu0 %v13162_v8  ;;  %v13066_v7 = vcombine.high %v600_v56, %v604_v23  ;;  %v656_v8 = vld [vmem:[%s14754_s7 + $0x488] sm:$0xff] }
 0x1bd   : > { %10660 = vmatprep.subr.bf16.mxu1 %v13098_v10  ;;  %v660_v10 = vld [vmem:[%s14754_s7 + $0x4a8] sm:$0xff] }
 0x1be   : > { %10636 = vmatmul.mubr.bf16.vlgmr.msra.gmra.mxu0 %v15365_v16  ;;  %v588_v25 = vld [vmem:[%s14754_s7 + $0x268] sm:$0xff]  ;;  %v13121_v29 = vcombine.low %v656_v8, %v660_v10 }
 0x1bf   : > { %10686 = vmatpush1.bf16.msra.mxu0 %v13161_v59  ;;  %10717 = vmatprep.mubr.bf16.mxu0 %v14812_v17  ;;  %v13122_v59 = vcombine.high %v656_v8, %v660_v10  ;;  %v576_v39 = vld [vmem:[%s14754_s7 + $0x208] sm:$0xff]  ;;  %v13049_v48 = vcombine.low %v584_v63, %v588_v25 }
 0x1c0   : > { %10661 = vmatpush2.bf16.msra.mxu1 %v13097_v21  ;;  %10687 = vmatprep.subr.bf16.mxu0 %v13154_v24  ;;  %v13058_v21 = vcombine.high %v592_v14, %v596_v26  ;;  %v648_v24 = vld [vmem:[%s14754_s7 + $0x448] sm:$0xff] }
 0x1c1   : > { %10662 = vmatprep.subr.bf16.mxu1 %v13090_v22  ;;  %v652_v22 = vld [vmem:[%s14754_s7 + $0x468] sm:$0xff] }
 0x1c2   : > { %v580_v41 = vld [vmem:[%s14754_s7 + $0x228] sm:$0xff]  ;;  %v13113_v6 = vcombine.low %v648_v24, %v652_v22 }
 0x1c3   : > { %10688 = vmatpush1.bf16.msra.mxu0 %v13153_v32  ;;  %v13114_v32 = vcombine.high %v648_v24, %v652_v22  ;;  %v824_v53 = vld [vmem:[%s14754_s7 + $0x9c8] sm:$0xff]  ;;  %v13041_v23 = vcombine.low %v576_v39, %v580_v41 }
 0x1c4   : > { %10663 = vmatpush2.bf16.msra.mxu1 %v13089_v36  ;;  %10689 = vmatprep.subr.bf16.mxu0 %v13146_v37  ;;  %v13050_v36 = vcombine.high %v584_v63, %v588_v25  ;;  %v640_v37 = vld [vmem:[%s14754_s7 + $0x408] sm:$0xff] }
 0x1c5   : > { %10664 = vmatprep.subr.bf16.mxu1 %v13082_v42  ;;  %v644_v42 = vld [vmem:[%s14754_s7 + $0x428] sm:$0xff] }
 0x1c6   : > { %v828_v55 = vld [vmem:[%s14754_s7 + $0x9e8] sm:$0xff]  ;;  %v13105_v56 = vcombine.low %v640_v37, %v644_v42 }
 0x1c7   : > { %10690 = vmatpush1.bf16.msra.mxu0 %v13145_v62  ;;  %v13106_v62 = vcombine.high %v640_v37, %v644_v42  ;;  %v816_v8 = vld [vmem:[%s14754_s7 + $0x988] sm:$0xff]  ;;  %v13289_v26 = vcombine.low %v824_v53, %v828_v55 }
 0x1c8   : > { %10665 = vmatpush2.bf16.msra.mxu1 %v13081_v57  ;;  %10691 = vmatprep.subr.bf16.mxu0 %v13138_v31  ;;  %v13042_v57 = vcombine.high %v576_v39, %v580_v41  ;;  %v760_v31 = vld [vmem:[%s14754_s7 + $0x7c8] sm:$0xff] }
 0x1c9   : > { %10666 = vmatprep.subr.bf16.mxu1 %v13074_v51  ;;  %v764_v51 = vld [vmem:[%s14754_s7 + $0x7e8] sm:$0xff] }
 0x1ca   : > { %v820_v10 = vld [vmem:[%s14754_s7 + $0x9a8] sm:$0xff]  ;;  %v13225_v14 = vcombine.low %v760_v31, %v764_v51 }
 0x1cb   : > { %10692 = vmatpush1.bf16.msra.mxu0 %v13137_v61  ;;  %v13226_v61 = vcombine.high %v760_v31, %v764_v51  ;;  %v808_v22 = vld [vmem:[%s14754_s7 + $0x948] sm:$0xff] }
 0x1cc   : > { %10667 = vmatpush2.bf16.msra.mxu1 %v13073_v2  ;;  %10693 = vmatprep.subr.bf16.mxu0 %v13130_v3  ;;  %v13290_v2 = vcombine.high %v824_v53, %v828_v55  ;;  %v752_v3 = vld [vmem:[%s14754_s7 + $0x788] sm:$0xff] }
 0x1cd   : > { %10668 = vmatprep.subr.bf16.mxu1 %v13066_v7  ;;  %v756_v7 = vld [vmem:[%s14754_s7 + $0x7a8] sm:$0xff] }
 0x1ce   : > { %v812_v63 = vld [vmem:[%s14754_s7 + $0x968] sm:$0xff] }
 0x1cf   : > { %10694 = vmatpush1.bf16.msra.mxu0 %v13129_v19  ;;  %v13218_v19 = vcombine.high %v752_v3, %v756_v7  ;;  %v804_v31 = vld [vmem:[%s14754_s7 + $0x928] sm:$0xff] }
 0x1d0   : > { %10669 = vmatpush2.bf16.msra.mxu1 %v13065_v20  ;;  %10695 = vmatprep.subr.bf16.mxu0 %v13122_v59  ;;  %v13282_v20 = vcombine.high %v816_v8, %v820_v10  ;;  %v744_v59 = vld [vmem:[%s14754_s7 + $0x748] sm:$0xff] }
 0x1d1   : > { %10670 = vmatprep.subr.bf16.mxu1 %v13058_v21  ;;  %v748_v21 = vld [vmem:[%s14754_s7 + $0x768] sm:$0xff] }
 0x1d2   : > { %v13210_v37 = vcombine.high %v744_v59, %v748_v21  ;;  %v13209_v55 = vcombine.low %v744_v59, %v748_v21  ;;  %v720_v59 = vld [vmem:[%s14754_s7 + $0x688] sm:$0xff] }
 0x1d3   : > { %10696 = vmatpush1.bf16.msra.mxu0 %v13121_v29  ;;  %v724_v21 = vld [vmem:[%s14754_s7 + $0x6a8] sm:$0xff] }
 0x1d4   : > { %10671 = vmatpush2.bf16.msra.mxu1 %v13057_v30  ;;  %10697 = vmatprep.subr.bf16.mxu0 %v13114_v32  ;;  %v13217_v30 = vcombine.low %v752_v3, %v756_v7  ;;  %v728_v3 = vld [vmem:[%s14754_s7 + $0x6c8] sm:$0xff] }
 0x1d5   : > { %10672 = vmatprep.subr.bf16.mxu1 %v13050_v36  ;;  %v13281_v36 = vcombine.low %v816_v8, %v820_v10  ;;  %v732_v7 = vld [vmem:[%s14754_s7 + $0x6e8] sm:$0xff] }
 0x1d6   : > { %v792_v8 = vld [vmem:[%s14754_s7 + $0x8c8] sm:$0xff] }
 0x1d7   : > { %10698 = vmatpush1.bf16.msra.mxu0 %v13113_v6  ;;  %v736_v6 = vld [vmem:[%s14754_s7 + $0x708] sm:$0xff] }
 0x1d8   : > { %10673 = vmatpush2.bf16.msra.mxu1 %v13049_v48  ;;  %10699 = vmatprep.subr.bf16.mxu0 %v13106_v62  ;;  %v740_v48 = vld [vmem:[%s14754_s7 + $0x728] sm:$0xff] }
 0x1d9   : > { %10674 = vmatprep.subr.bf16.mxu1 %v13042_v57  ;;  %v800_v57 = vld [vmem:[%s14754_s7 + $0x908] sm:$0xff] }
 0x1da   : > { %v796_v10 = vld [vmem:[%s14754_s7 + $0x8e8] sm:$0xff] }
 0x1db   : > { %10700 = vmatpush1.bf16.msra.mxu0 %v13105_v56  ;;  %v13273_v56 = vcombine.low %v808_v22, %v812_v63 }
 0x1dc   : > { %10675 = vmatpush2.bf16.msra.mxu1 %v13041_v23  ;;  %10701 = vmatprep.subr.bf16.mxu0 %v13226_v61  ;;  %v13202_v23 = vcombine.high %v736_v6, %v740_v48 }
 0x1dd   : > { %10726 = vmatprep.subr.bf16.mxu1 %v13290_v2  ;;  %v10391_v24 = vpop.f32.mrf.mxu0  ;;  %v13266_v2 = vcombine.high %v800_v57, %v804_v31 }
 0x1de   : > { %v10392_v25 = vadd.f32 %v10391_v24, %v15331_v28  ;;  %v13274_v28 = vcombine.high %v808_v22, %v812_v63  ;;  %v784_v24 = vld [vmem:[%s14754_s7 + $0x888] sm:$0xff]  ;;  %v13193_v63 = vcombine.low %v728_v3, %v732_v7 }
 0x1df   : > { %v10432_v29 = vpop.f32.mrf.mxu1  ;;  %10677 = vmatmul.mubr.bf16.vlgmr.msra.gmra.mxu1 %v14860_v34  ;;  %10702 = vmatpush2.bf16.msra.mxu0 %v13225_v14  ;;  %v10393_v32 = vpop.f32.mrf.mxu0  ;;  %v13201_v14 = vcombine.low %v736_v6, %v740_v48  ;;  %v788_v22 = vld [vmem:[%s14754_s7 + $0x8a8] sm:$0xff] }
 0x1e0   : > { %10727 = vmatpush1.bf16.msra.mxu1 %v13289_v26  ;;  %10703 = vmatprep.subr.bf16.mxu0 %v13218_v19  ;;  %v15409_v42 = vadd.f32 %v10432_v29, %v10392_v25  ;;  %v10394_v39 = vadd.f32 %v10393_v32, %v15340_v50  ;;  %v13265_v26 = vcombine.low %v800_v57, %v804_v31  ;;  %v712_v32 = vld [vmem:[%s14754_s7 + $0x648] sm:$0xff] }
 0x1e1   : > { %v10434_v41 = vpop.f32.mrf.mxu1  ;;  %10728 = vmatprep.subr.bf16.mxu1 %v13282_v20  ;;  %10758 = vmatprep.mubr.bf16.mxu1 %v14872_v44  ;;  %v10395_v62 = vpop.f32.mrf.mxu0  ;;  %v13194_v19 = vcombine.high %v728_v3, %v732_v7  ;;  %v13258_v20 = vcombine.high %v792_v8, %v796_v10  ;;  %v13257_v25 = vcombine.low %v792_v8, %v796_v10  ;;  %v708_v57 = vld [vmem:[%s14754_s7 + $0x628] sm:$0xff] }
 0x1e2   : > { %v15417_v51 = vadd.f32 %v10434_v41, %v10394_v39  ;;  %v13186_v29 = vcombine.high %v720_v59, %v724_v21  ;;  %v780_v39 = vld [vmem:[%s14754_s7 + $0x868] sm:$0xff]  ;;  %v13185_v41 = vcombine.low %v720_v59, %v724_v21 }
 0x1e3   : > { %v10436_v53 = vpop.f32.mrf.mxu1  ;;  %10704 = vmatpush2.bf16.msra.mxu0 %v13217_v30  ;;  %v10396_v50 = vpop.f32.mrf.mxu0  ;;  %v13250_v30 = vcombine.high %v784_v24, %v788_v22  ;;  %v704_v62 = vld [vmem:[%s14754_s7 + $0x608] sm:$0xff] }
 0x1e4   : > { %10729 = vmatpush1.bf16.msra.mxu1 %v13281_v36  ;;  %10705 = vmatprep.subr.bf16.mxu0 %v13210_v37  ;;  %v716_v36 = vld [vmem:[%s14754_s7 + $0x668] sm:$0xff]  ;;  %v13169_v8 = vcombine.low %v704_v62, %v708_v57 }
 0x1e5   : > { %v10437_v61 = vpop.f32.mrf.mxu1  ;;  %10730 = vmatprep.subr.bf16.mxu1 %v13274_v28  ;;  %v776_v37 = vld [vmem:[%s14754_s7 + $0x848] sm:$0xff]  ;;  %v13249_v28 = vcombine.low %v784_v24, %v788_v22  ;;  %v13178_v6 = vcombine.high %v712_v32, %v716_v36 }
 0x1e6   : > { %v13242_v48 = vcombine.high %v776_v37, %v780_v39  ;;  %v768_v31 = vld [vmem:[%s14754_s7 + $0x808] sm:$0xff]  ;;  %v13241_v50 = vcombine.low %v776_v37, %v780_v39 }
 0x1e7   : > { %10706 = vmatpush2.bf16.msra.mxu0 %v13209_v55  ;;  %v772_v53 = vld [vmem:[%s14754_s7 + $0x828] sm:$0xff]  ;;  %v13177_v55 = vcombine.low %v712_v32, %v716_v36 }
 0x1e8   : > { %10731 = vmatpush1.bf16.msra.mxu1 %v13273_v56  ;;  %10707 = vmatprep.subr.bf16.mxu0 %v13202_v23  ;;  %v13170_v56 = vcombine.high %v704_v62, %v708_v57  ;;  %v13234_v23 = vcombine.high %v768_v31, %v772_v53  ;;  %v952_v61 = vld [vmem:[%s14754_s7 + $0xdc8] sm:$0xff]  ;;  %v13233_v10 = vcombine.low %v768_v31, %v772_v53 }
 0x1e9   : > { %10732 = vmatprep.subr.bf16.mxu1 %v13266_v2  ;;  %v956_v2 = vld [vmem:[%s14754_s7 + $0xde8] sm:$0xff] }
 0x1ea   : > { %v888_v3 = vld [vmem:[%s14754_s7 + $0xbc8] sm:$0xff]  ;;  %v13417_v24 = vcombine.low %v952_v61, %v956_v2 }
 0x1eb   : > { %10708 = vmatpush2.bf16.msra.mxu0 %v13201_v14  ;;  %v892_v7 = vld [vmem:[%s14754_s7 + $0xbe8] sm:$0xff]  ;;  %v13418_v14 = vcombine.high %v952_v61, %v956_v2 }
 0x1ec   : > { %10733 = vmatpush1.bf16.msra.mxu1 %v13265_v26  ;;  %10709 = vmatprep.subr.bf16.mxu0 %v13194_v19  ;;  %v13354_v26 = vcombine.high %v888_v3, %v892_v7  ;;  %v944_v19 = vld [vmem:[%s14754_s7 + $0xd88] sm:$0xff]  ;;  %v13353_v22 = vcombine.low %v888_v3, %v892_v7 }
 0x1ed   : > { %10734 = vmatprep.subr.bf16.mxu1 %v13258_v20  ;;  %v948_v20 = vld [vmem:[%s14754_s7 + $0xda8] sm:$0xff] }
 0x1ee   : > { %v880_v59 = vld [vmem:[%s14754_s7 + $0xb88] sm:$0xff]  ;;  %v13409_v37 = vcombine.low %v944_v19, %v948_v20 }
 0x1ef   : > { %10710 = vmatpush2.bf16.msra.mxu0 %v13193_v63  ;;  %v884_v21 = vld [vmem:[%s14754_s7 + $0xba8] sm:$0xff]  ;;  %v13410_v63 = vcombine.high %v944_v19, %v948_v20 }
 0x1f0   : > { %10735 = vmatpush1.bf16.msra.mxu1 %v13257_v25  ;;  %10711 = vmatprep.subr.bf16.mxu0 %v13186_v29  ;;  %v13346_v25 = vcombine.high %v880_v59, %v884_v21  ;;  %v936_v29 = vld [vmem:[%s14754_s7 + $0xd48] sm:$0xff]  ;;  %v13345_v39 = vcombine.low %v880_v59, %v884_v21 }
 0x1f1   : > { %10736 = vmatprep.subr.bf16.mxu1 %v13250_v30  ;;  %v940_v30 = vld [vmem:[%s14754_s7 + $0xd68] sm:$0xff] }
 0x1f2   : > { %v872_v32 = vld [vmem:[%s14754_s7 + $0xb48] sm:$0xff]  ;;  %v13401_v31 = vcombine.low %v936_v29, %v940_v30 }
 0x1f3   : > { %10712 = vmatpush2.bf16.msra.mxu0 %v13185_v41  ;;  %v876_v36 = vld [vmem:[%s14754_s7 + $0xb68] sm:$0xff]  ;;  %v13402_v41 = vcombine.high %v936_v29, %v940_v30 }
 0x1f4   : > { %10737 = vmatpush1.bf16.msra.mxu1 %v13249_v28  ;;  %10713 = vmatprep.subr.bf16.mxu0 %v13178_v6  ;;  %v13338_v28 = vcombine.high %v872_v32, %v876_v36  ;;  %v928_v6 = vld [vmem:[%s14754_s7 + $0xd08] sm:$0xff]  ;;  %v13337_v53 = vcombine.low %v872_v32, %v876_v36 }
 0x1f5   : > { %10738 = vmatprep.subr.bf16.mxu1 %v13242_v48  ;;  %v932_v48 = vld [vmem:[%s14754_s7 + $0xd28] sm:$0xff] }
 0x1f6   : > { %v864_v62 = vld [vmem:[%s14754_s7 + $0xb08] sm:$0xff]  ;;  %v13393_v3 = vcombine.low %v928_v6, %v932_v48 }
 0x1f7   : > { %10714 = vmatpush2.bf16.msra.mxu0 %v13177_v55  ;;  %v868_v57 = vld [vmem:[%s14754_s7 + $0xb28] sm:$0xff]  ;;  %v13394_v55 = vcombine.high %v928_v6, %v932_v48 }
 0x1f8   : > { %10739 = vmatpush1.bf16.msra.mxu1 %v13241_v50  ;;  %10715 = vmatprep.subr.bf16.mxu0 %v13170_v56  ;;  %v13330_v50 = vcombine.high %v864_v62, %v868_v57  ;;  %v920_v56 = vld [vmem:[%s14754_s7 + $0xcc8] sm:$0xff]  ;;  %v13329_v7 = vcombine.low %v864_v62, %v868_v57 }
 0x1f9   : > { %10740 = vmatprep.subr.bf16.mxu1 %v13234_v23  ;;  %v924_v23 = vld [vmem:[%s14754_s7 + $0xce8] sm:$0xff] }
 0x1fa   : > { %v856_v61 = vld [vmem:[%s14754_s7 + $0xac8] sm:$0xff]  ;;  %v13385_v59 = vcombine.low %v920_v56, %v924_v23 }
 0x1fb   : > { %10716 = vmatpush2.bf16.msra.mxu0 %v13169_v8  ;;  %v860_v2 = vld [vmem:[%s14754_s7 + $0xae8] sm:$0xff]  ;;  %v13386_v8 = vcombine.high %v920_v56, %v924_v23 }
 0x1fc   : > { %10741 = vmatpush1.bf16.msra.mxu1 %v13233_v10  ;;  %10767 = vmatprep.subr.bf16.mxu0 %v13418_v14  ;;  %v13322_v10 = vcombine.high %v856_v61, %v860_v2  ;;  %v912_v14 = vld [vmem:[%s14754_s7 + $0xc88] sm:$0xff]  ;;  %v13321_v21 = vcombine.low %v856_v61, %v860_v2 }
 0x1fd   : > { %10742 = vmatprep.subr.bf16.mxu1 %v13354_v26  ;;  %v916_v26 = vld [vmem:[%s14754_s7 + $0xca8] sm:$0xff] }
 0x1fe   : > { %10718 = vmatmul.mubr.bf16.vlgmr.msra.gmra.mxu0 %v14868_v38  ;;  %v848_v19 = vld [vmem:[%s14754_s7 + $0xa88] sm:$0xff]  ;;  %v13377_v32 = vcombine.low %v912_v14, %v916_v26 }
 0x1ff   : > { %10768 = vmatpush1.bf16.msra.mxu0 %v13417_v24  ;;  %10799 = vmatprep.mubr.bf16.mxu0 %v14877_v47  ;;  %v852_v20 = vld [vmem:[%s14754_s7 + $0xaa8] sm:$0xff]  ;;  %v13378_v24 = vcombine.high %v912_v14, %v916_v26 }
 0x200   : > { %10743 = vmatpush2.bf16.msra.mxu1 %v13353_v22  ;;  %10769 = vmatprep.subr.bf16.mxu0 %v13410_v63  ;;  %v13314_v22 = vcombine.high %v848_v19, %v852_v20  ;;  %v904_v63 = vld [vmem:[%s14754_s7 + $0xc48] sm:$0xff]  ;;  %v13313_v36 = vcombine.low %v848_v19, %v852_v20 }
 0x201   : > { %10744 = vmatprep.subr.bf16.mxu1 %v13346_v25  ;;  %v908_v25 = vld [vmem:[%s14754_s7 + $0xc68] sm:$0xff] }
 0x202   : > { %v840_v29 = vld [vmem:[%s14754_s7 + $0xa48] sm:$0xff]  ;;  %v13369_v62 = vcombine.low %v904_v63, %v908_v25 }
 0x203   : > { %10770 = vmatpush1.bf16.msra.mxu0 %v13409_v37  ;;  %v844_v30 = vld [vmem:[%s14754_s7 + $0xa68] sm:$0xff]  ;;  %v13370_v37 = vcombine.high %v904_v63, %v908_v25 }
 0x204   : > { %10745 = vmatpush2.bf16.msra.mxu1 %v13345_v39  ;;  %10771 = vmatprep.subr.bf16.mxu0 %v13402_v41  ;;  %v13306_v39 = vcombine.high %v840_v29, %v844_v30  ;;  %v896_v41 = vld [vmem:[%s14754_s7 + $0xc08] sm:$0xff]  ;;  %v13305_v57 = vcombine.low %v840_v29, %v844_v30 }
 0x205   : > { %10746 = vmatprep.subr.bf16.mxu1 %v13338_v28  ;;  %v900_v28 = vld [vmem:[%s14754_s7 + $0xc28] sm:$0xff] }
 0x206   : > { %v832_v6 = vld [vmem:[%s14754_s7 + $0xa08] sm:$0xff]  ;;  %v13361_v61 = vcombine.low %v896_v41, %v900_v28 }
 0x207   : > { %10772 = vmatpush1.bf16.msra.mxu0 %v13401_v31  ;;  %v836_v48 = vld [vmem:[%s14754_s7 + $0xa28] sm:$0xff]  ;;  %v13362_v31 = vcombine.high %v896_v41, %v900_v28 }
 0x208   : > { %10747 = vmatpush2.bf16.msra.mxu1 %v13337_v53  ;;  %10773 = vmatprep.subr.bf16.mxu0 %v13394_v55  ;;  %v13298_v53 = vcombine.high %v832_v6, %v836_v48  ;;  %v1016_v55 = vld [vmem:[%s14754_s7 + $0xfc8] sm:$0xff]  ;;  %v13297_v2 = vcombine.low %v832_v6, %v836_v48 }
 0x209   : > { %10748 = vmatprep.subr.bf16.mxu1 %v13330_v50  ;;  %v1020_v50 = vld [vmem:[%s14754_s7 + $0xfe8] sm:$0xff] }
 0x20a   : > { %v1080_v56 = vld [vmem:[%s14754_s7 + $0x11c8] sm:$0xff]  ;;  %v13481_v19 = vcombine.low %v1016_v55, %v1020_v50 }
 0x20b   : > { %10774 = vmatpush1.bf16.msra.mxu0 %v13393_v3  ;;  %v1084_v23 = vld [vmem:[%s14754_s7 + $0x11e8] sm:$0xff]  ;;  %v13482_v3 = vcombine.high %v1016_v55, %v1020_v50 }
 0x20c   : > { %10749 = vmatpush2.bf16.msra.mxu1 %v13329_v7  ;;  %10775 = vmatprep.subr.bf16.mxu0 %v13386_v8  ;;  %v13546_v7 = vcombine.high %v1080_v56, %v1084_v23  ;;  %v1008_v8 = vld [vmem:[%s14754_s7 + $0xf88] sm:$0xff]  ;;  %v13545_v20 = vcombine.low %v1080_v56, %v1084_v23 }
 0x20d   : > { %10750 = vmatprep.subr.bf16.mxu1 %v13322_v10  ;;  %v1012_v10 = vld [vmem:[%s14754_s7 + $0xfa8] sm:$0xff] }
 0x20e   : > { %v1072_v14 = vld [vmem:[%s14754_s7 + $0x1188] sm:$0xff] }
 0x20f   : > { %10776 = vmatpush1.bf16.msra.mxu0 %v13385_v59  ;;  %v1076_v26 = vld [vmem:[%s14754_s7 + $0x11a8] sm:$0xff]  ;;  %v13474_v59 = vcombine.high %v1008_v8, %v1012_v10 }
 0x210   : > { %10751 = vmatpush2.bf16.msra.mxu1 %v13321_v21  ;;  %10777 = vmatprep.subr.bf16.mxu0 %v13378_v24  ;;  %v13538_v21 = vcombine.high %v1072_v14, %v1076_v26  ;;  %v1000_v24 = vld [vmem:[%s14754_s7 + $0xf48] sm:$0xff] }
 0x211   : > { %10752 = vmatprep.subr.bf16.mxu1 %v13314_v22  ;;  %v1004_v22 = vld [vmem:[%s14754_s7 + $0xf68] sm:$0xff] }
 0x212   : > { %v1064_v25 = vld [vmem:[%s14754_s7 + $0x1148] sm:$0xff]  ;;  %v13466_v41 = vcombine.high %v1000_v24, %v1004_v22  ;;  %v13465_v23 = vcombine.low %v1000_v24, %v1004_v22 }
 0x213   : > { %10778 = vmatpush1.bf16.msra.mxu0 %v13377_v32  ;;  %v1068_v29 = vld [vmem:[%s14754_s7 + $0x1168] sm:$0xff] }
 0x214   : > { %10753 = vmatpush2.bf16.msra.mxu1 %v13313_v36  ;;  %10779 = vmatprep.subr.bf16.mxu0 %v13370_v37  ;;  %v13473_v36 = vcombine.low %v1008_v8, %v1012_v10  ;;  %v1060_v55 = vld [vmem:[%s14754_s7 + $0x1128] sm:$0xff] }
 0x215   : > { %10754 = vmatprep.subr.bf16.mxu1 %v13306_v39  ;;  %v13537_v39 = vcombine.low %v1072_v14, %v1076_v26  ;;  %v984_v8 = vld [vmem:[%s14754_s7 + $0xec8] sm:$0xff] }
 0x216   : > { %v988_v10 = vld [vmem:[%s14754_s7 + $0xee8] sm:$0xff] }
 0x217   : > { %10780 = vmatpush1.bf16.msra.mxu0 %v13369_v62  ;;  %v992_v62 = vld [vmem:[%s14754_s7 + $0xf08] sm:$0xff] }
 0x218   : > { %10755 = vmatpush2.bf16.msra.mxu1 %v13305_v57  ;;  %10781 = vmatprep.subr.bf16.mxu0 %v13362_v31  ;;  %v996_v57 = vld [vmem:[%s14754_s7 + $0xf28] sm:$0xff] }
 0x219   : > { %10756 = vmatprep.subr.bf16.mxu1 %v13298_v53  ;;  %v1056_v53 = vld [vmem:[%s14754_s7 + $0x1108] sm:$0xff] }
 0x21a   : > { %v1048_v14 = vld [vmem:[%s14754_s7 + $0x10c8] sm:$0xff] }
 0x21b   : > { %10782 = vmatpush1.bf16.msra.mxu0 %v13361_v61  ;;  %v13529_v61 = vcombine.low %v1064_v25, %v1068_v29  ;;  %v1052_v26 = vld [vmem:[%s14754_s7 + $0x10e8] sm:$0xff] }
 0x21c   : > { %10757 = vmatpush2.bf16.msra.mxu1 %v13297_v2  ;;  %10783 = vmatprep.subr.bf16.mxu0 %v13482_v3  ;;  %v13458_v2 = vcombine.high %v992_v62, %v996_v57  ;;  %v976_v24 = vld [vmem:[%s14754_s7 + $0xe88] sm:$0xff] }
 0x21d   : > { %10808 = vmatprep.subr.bf16.mxu1 %v13546_v7  ;;  %v10473_v63 = vpop.f32.mrf.mxu0  ;;  %v13522_v7 = vcombine.high %v1056_v53, %v1060_v55  ;;  %v980_v22 = vld [vmem:[%s14754_s7 + $0xea8] sm:$0xff] }
 0x21e   : > { %v10474_v30 = vadd.f32 %v10473_v63, %v15409_v42  ;;  %v13530_v42 = vcombine.high %v1064_v25, %v1068_v29  ;;  %v1040_v63 = vld [vmem:[%s14754_s7 + $0x1088] sm:$0xff]  ;;  %v13449_v29 = vcombine.low %v984_v8, %v988_v10 }
 0x21f   : > { %v10514_v32 = vpop.f32.mrf.mxu1  ;;  %10759 = vmatmul.mubr.bf16.vlgmr.msra.gmra.mxu1 %v14951_v1  ;;  %10784 = vmatpush2.bf16.msra.mxu0 %v13481_v19  ;;  %v10475_v37 = vpop.f32.mrf.mxu0  ;;  %v13457_v19 = vcombine.low %v992_v62, %v996_v57  ;;  %v1044_v25 = vld [vmem:[%s14754_s7 + $0x10a8] sm:$0xff] }
 0x220   : > { %10809 = vmatpush1.bf16.msra.mxu1 %v13545_v20  ;;  %10785 = vmatprep.subr.bf16.mxu0 %v13474_v59  ;;  %v15483_v28 = vadd.f32 %v10514_v32, %v10474_v30  ;;  %v10476_v6 = vadd.f32 %v10475_v37, %v15417_v51  ;;  %v13521_v20 = vcombine.low %v1056_v53, %v1060_v55  ;;  %v968_v37 = vld [vmem:[%s14754_s7 + $0xe48] sm:$0xff] }
 0x221   : > { %v10516_v48 = vpop.f32.mrf.mxu1  ;;  %10810 = vmatprep.subr.bf16.mxu1 %v13538_v21  ;;  %10840 = vmatprep.mubr.bf16.mxu1 %v14963_v13  ;;  %v10477_v31 = vpop.f32.mrf.mxu0  ;;  %v13450_v59 = vcombine.high %v984_v8, %v988_v10  ;;  %v13514_v21 = vcombine.high %v1048_v14, %v1052_v26  ;;  %v13513_v30 = vcombine.low %v1048_v14, %v1052_v26  ;;  %v964_v53 = vld [vmem:[%s14754_s7 + $0xe28] sm:$0xff] }
 0x222   : > { %v15491_v50 = vadd.f32 %v10516_v48, %v10476_v6  ;;  %v13442_v32 = vcombine.high %v976_v24, %v980_v22  ;;  %v1036_v6 = vld [vmem:[%s14754_s7 + $0x1068] sm:$0xff]  ;;  %v13441_v48 = vcombine.low %v976_v24, %v980_v22 }
 0x223   : > { %v10518_v56 = vpop.f32.mrf.mxu1  ;;  %10786 = vmatpush2.bf16.msra.mxu0 %v13473_v36  ;;  %v10478_v51 = vpop.f32.mrf.mxu0  ;;  %v13506_v36 = vcombine.high %v1040_v63, %v1044_v25  ;;  %v960_v31 = vld [vmem:[%s14754_s7 + $0xe08] sm:$0xff] }
 0x224   : > { %10811 = vmatpush1.bf16.msra.mxu1 %v13537_v39  ;;  %10787 = vmatprep.subr.bf16.mxu0 %v13466_v41  ;;  %v972_v39 = vld [vmem:[%s14754_s7 + $0xe68] sm:$0xff]  ;;  %v13425_v14 = vcombine.low %v960_v31, %v964_v53 }
 0x225   : > { %v10519_v3 = vpop.f32.mrf.mxu1  ;;  %10812 = vmatprep.subr.bf16.mxu1 %v13530_v42  ;;  %v1032_v41 = vld [vmem:[%s14754_s7 + $0x1048] sm:$0xff]  ;;  %v13505_v42 = vcombine.low %v1040_v63, %v1044_v25  ;;  %v13434_v62 = vcombine.high %v968_v37, %v972_v39 }
 0x226   : > { %v13498_v57 = vcombine.high %v1032_v41, %v1036_v6  ;;  %v1024_v55 = vld [vmem:[%s14754_s7 + $0x1008] sm:$0xff]  ;;  %v13497_v51 = vcombine.low %v1032_v41, %v1036_v6 }
 0x227   : > { %10788 = vmatpush2.bf16.msra.mxu0 %v13465_v23  ;;  %v1028_v56 = vld [vmem:[%s14754_s7 + $0x1028] sm:$0xff]  ;;  %v13433_v23 = vcombine.low %v968_v37, %v972_v39 }
 0x228   : > { %10813 = vmatpush1.bf16.msra.mxu1 %v13529_v61  ;;  %10789 = vmatprep.subr.bf16.mxu0 %v13458_v2  ;;  %v13426_v61 = vcombine.high %v960_v31, %v964_v53  ;;  %v13490_v2 = vcombine.high %v1024_v55, %v1028_v56  ;;  %v1208_v3 = vld [vmem:[%s14754_s7 + $0x15c8] sm:$0xff]  ;;  %v13489_v26 = vcombine.low %v1024_v55, %v1028_v56 }
 0x229   : > { %10814 = vmatprep.subr.bf16.mxu1 %v13522_v7  ;;  %v1212_v7 = vld [vmem:[%s14754_s7 + $0x15e8] sm:$0xff] }
 0x22a   : > { %v1144_v8 = vld [vmem:[%s14754_s7 + $0x13c8] sm:$0xff]  ;;  %v13673_v63 = vcombine.low %v1208_v3, %v1212_v7 }
 0x22b   : > { %10790 = vmatpush2.bf16.msra.mxu0 %v13457_v19  ;;  %v1148_v10 = vld [vmem:[%s14754_s7 + $0x13e8] sm:$0xff]  ;;  %v13674_v19 = vcombine.high %v1208_v3, %v1212_v7 }
 0x22c   : > { %10815 = vmatpush1.bf16.msra.mxu1 %v13521_v20  ;;  %10791 = vmatprep.subr.bf16.mxu0 %v13450_v59  ;;  %v13610_v20 = vcombine.high %v1144_v8, %v1148_v10  ;;  %v1200_v59 = vld [vmem:[%s14754_s7 + $0x1588] sm:$0xff]  ;;  %v13609_v25 = vcombine.low %v1144_v8, %v1148_v10 }
 0x22d   : > { %10816 = vmatprep.subr.bf16.mxu1 %v13514_v21  ;;  %v1204_v21 = vld [vmem:[%s14754_s7 + $0x15a8] sm:$0xff] }
 0x22e   : > { %v1136_v24 = vld [vmem:[%s14754_s7 + $0x1388] sm:$0xff]  ;;  %v13665_v41 = vcombine.low %v1200_v59, %v1204_v21 }
 0x22f   : > { %10792 = vmatpush2.bf16.msra.mxu0 %v13449_v29  ;;  %v1140_v22 = vld [vmem:[%s14754_s7 + $0x13a8] sm:$0xff]  ;;  %v13666_v29 = vcombine.high %v1200_v59, %v1204_v21 }
 0x230   : > { %10817 = vmatpush1.bf16.msra.mxu1 %v13513_v30  ;;  %10793 = vmatprep.subr.bf16.mxu0 %v13442_v32  ;;  %v13602_v30 = vcombine.high %v1136_v24, %v1140_v22  ;;  %v1192_v32 = vld [vmem:[%s14754_s7 + $0x1548] sm:$0xff]  ;;  %v13601_v6 = vcombine.low %v1136_v24, %v1140_v22 }
 0x231   : > { %10818 = vmatprep.subr.bf16.mxu1 %v13506_v36  ;;  %v1196_v36 = vld [vmem:[%s14754_s7 + $0x1568] sm:$0xff] }
 0x232   : > { %v1128_v37 = vld [vmem:[%s14754_s7 + $0x1348] sm:$0xff]  ;;  %v13657_v55 = vcombine.low %v1192_v32, %v1196_v36 }
 0x233   : > { %10794 = vmatpush2.bf16.msra.mxu0 %v13441_v48  ;;  %v1132_v39 = vld [vmem:[%s14754_s7 + $0x1368] sm:$0xff]  ;;  %v13658_v48 = vcombine.high %v1192_v32, %v1196_v36 }
 0x234   : > { %10819 = vmatpush1.bf16.msra.mxu1 %v13505_v42  ;;  %10795 = vmatprep.subr.bf16.mxu0 %v13434_v62  ;;  %v13594_v42 = vcombine.high %v1128_v37, %v1132_v39  ;;  %v1184_v62 = vld [vmem:[%s14754_s7 + $0x1508] sm:$0xff]  ;;  %v13593_v56 = vcombine.low %v1128_v37, %v1132_v39 }
 0x235   : > { %10820 = vmatprep.subr.bf16.mxu1 %v13498_v57  ;;  %v1188_v57 = vld [vmem:[%s14754_s7 + $0x1528] sm:$0xff] }
 0x236   : > { %v1120_v31 = vld [vmem:[%s14754_s7 + $0x1308] sm:$0xff]  ;;  %v13649_v8 = vcombine.low %v1184_v62, %v1188_v57 }
 0x237   : > { %10796 = vmatpush2.bf16.msra.mxu0 %v13433_v23  ;;  %v1124_v53 = vld [vmem:[%s14754_s7 + $0x1328] sm:$0xff]  ;;  %v13650_v23 = vcombine.high %v1184_v62, %v1188_v57 }
 0x238   : > { %10821 = vmatpush1.bf16.msra.mxu1 %v13497_v51  ;;  %10797 = vmatprep.subr.bf16.mxu0 %v13426_v61  ;;  %v13586_v51 = vcombine.high %v1120_v31, %v1124_v53  ;;  %v1176_v61 = vld [vmem:[%s14754_s7 + $0x14c8] sm:$0xff]  ;;  %v13585_v10 = vcombine.low %v1120_v31, %v1124_v53 }
 0x239   : > { %10822 = vmatprep.subr.bf16.mxu1 %v13490_v2  ;;  %v1180_v2 = vld [vmem:[%s14754_s7 + $0x14e8] sm:$0xff] }
 0x23a   : > { %v1112_v3 = vld [vmem:[%s14754_s7 + $0x12c8] sm:$0xff]  ;;  %v13641_v24 = vcombine.low %v1176_v61, %v1180_v2 }
 0x23b   : > { %10798 = vmatpush2.bf16.msra.mxu0 %v13425_v14  ;;  %v1116_v7 = vld [vmem:[%s14754_s7 + $0x12e8] sm:$0xff]  ;;  %v13642_v14 = vcombine.high %v1176_v61, %v1180_v2 }
 0x23c   : > { %10823 = vmatpush1.bf16.msra.mxu1 %v13489_v26  ;;  %10849 = vmatprep.subr.bf16.mxu0 %v13674_v19  ;;  %v13578_v26 = vcombine.high %v1112_v3, %v1116_v7  ;;  %v1168_v19 = vld [vmem:[%s14754_s7 + $0x1488] sm:$0xff]  ;;  %v13577_v22 = vcombine.low %v1112_v3, %v1116_v7 }
 0x23d   : > { %10824 = vmatprep.subr.bf16.mxu1 %v13610_v20  ;;  %v1172_v20 = vld [vmem:[%s14754_s7 + $0x14a8] sm:$0xff] }
 0x23e   : > { %10800 = vmatmul.mubr.bf16.vlgmr.msra.gmra.mxu0 %v14959_v5  ;;  %v1104_v59 = vld [vmem:[%s14754_s7 + $0x1288] sm:$0xff]  ;;  %v13633_v37 = vcombine.low %v1168_v19, %v1172_v20 }
 0x23f   : > { %10850 = vmatpush1.bf16.msra.mxu0 %v13673_v63  ;;  %10881 = vmatprep.mubr.bf16.mxu0 %v14968_v15  ;;  %v1108_v21 = vld [vmem:[%s14754_s7 + $0x12a8] sm:$0xff]  ;;  %v13634_v63 = vcombine.high %v1168_v19, %v1172_v20 }
 0x240   : > { %10825 = vmatpush2.bf16.msra.mxu1 %v13609_v25  ;;  %10851 = vmatprep.subr.bf16.mxu0 %v13666_v29  ;;  %v13570_v25 = vcombine.high %v1104_v59, %v1108_v21  ;;  %v1160_v29 = vld [vmem:[%s14754_s7 + $0x1448] sm:$0xff]  ;;  %v13569_v39 = vcombine.low %v1104_v59, %v1108_v21 }
 0x241   : > { %10826 = vmatprep.subr.bf16.mxu1 %v13602_v30  ;;  %v1164_v30 = vld [vmem:[%s14754_s7 + $0x1468] sm:$0xff] }
 0x242   : > { %v1096_v32 = vld [vmem:[%s14754_s7 + $0x1248] sm:$0xff]  ;;  %v13625_v31 = vcombine.low %v1160_v29, %v1164_v30 }
 0x243   : > { %10852 = vmatpush1.bf16.msra.mxu0 %v13665_v41  ;;  %v1100_v36 = vld [vmem:[%s14754_s7 + $0x1268] sm:$0xff]  ;;  %v13626_v41 = vcombine.high %v1160_v29, %v1164_v30 }
 0x244   : > { %10827 = vmatpush2.bf16.msra.mxu1 %v13601_v6  ;;  %10853 = vmatprep.subr.bf16.mxu0 %v13658_v48  ;;  %v13562_v6 = vcombine.high %v1096_v32, %v1100_v36  ;;  %v1152_v48 = vld [vmem:[%s14754_s7 + $0x1408] sm:$0xff]  ;;  %v13561_v53 = vcombine.low %v1096_v32, %v1100_v36 }
 0x245   : > { %10828 = vmatprep.subr.bf16.mxu1 %v13594_v42  ;;  %v1156_v42 = vld [vmem:[%s14754_s7 + $0x1428] sm:$0xff] }
 0x246   : > { %v1088_v62 = vld [vmem:[%s14754_s7 + $0x1208] sm:$0xff]  ;;  %v13617_v3 = vcombine.low %v1152_v48, %v1156_v42 }
 0x247   : > { %10854 = vmatpush1.bf16.msra.mxu0 %v13657_v55  ;;  %v1092_v57 = vld [vmem:[%s14754_s7 + $0x1228] sm:$0xff]  ;;  %v13618_v55 = vcombine.high %v1152_v48, %v1156_v42 }
 0x248   : > { %10829 = vmatpush2.bf16.msra.mxu1 %v13593_v56  ;;  %10855 = vmatprep.subr.bf16.mxu0 %v13650_v23  ;;  %v13554_v56 = vcombine.high %v1088_v62, %v1092_v57  ;;  %v1272_v23 = vld [vmem:[%s14754_s7 + $0x17c8] sm:$0xff]  ;;  %v13553_v7 = vcombine.low %v1088_v62, %v1092_v57 }
 0x249   : > { %10830 = vmatprep.subr.bf16.mxu1 %v13586_v51  ;;  %v1276_v51 = vld [vmem:[%s14754_s7 + $0x17e8] sm:$0xff] }
 0x24a   : > { %v1336_v61 = vld [vmem:[%s14754_s7 + $0x19c8] sm:$0xff]  ;;  %v13737_v59 = vcombine.low %v1272_v23, %v1276_v51 }
 0x24b   : > { %10856 = vmatpush1.bf16.msra.mxu0 %v13649_v8  ;;  %v1340_v2 = vld [vmem:[%s14754_s7 + $0x19e8] sm:$0xff]  ;;  %v13738_v8 = vcombine.high %v1272_v23, %v1276_v51 }
 0x24c   : > { %10831 = vmatpush2.bf16.msra.mxu1 %v13585_v10  ;;  %10857 = vmatprep.subr.bf16.mxu0 %v13642_v14  ;;  %v13802_v10 = vcombine.high %v1336_v61, %v1340_v2  ;;  %v1264_v14 = vld [vmem:[%s14754_s7 + $0x1788] sm:$0xff]  ;;  %v13801_v21 = vcombine.low %v1336_v61, %v1340_v2 }
 0x24d   : > { %10832 = vmatprep.subr.bf16.mxu1 %v13578_v26  ;;  %v1268_v26 = vld [vmem:[%s14754_s7 + $0x17a8] sm:$0xff] }
 0x24e   : > { %v1328_v19 = vld [vmem:[%s14754_s7 + $0x1988] sm:$0xff] }
 0x24f   : > { %10858 = vmatpush1.bf16.msra.mxu0 %v13641_v24  ;;  %v1332_v20 = vld [vmem:[%s14754_s7 + $0x19a8] sm:$0xff]  ;;  %v13730_v24 = vcombine.high %v1264_v14, %v1268_v26 }
 0x250   : > { %10833 = vmatpush2.bf16.msra.mxu1 %v13577_v22  ;;  %10859 = vmatprep.subr.bf16.mxu0 %v13634_v63  ;;  %v13794_v22 = vcombine.high %v1328_v19, %v1332_v20  ;;  %v1256_v63 = vld [vmem:[%s14754_s7 + $0x1748] sm:$0xff] }
 0x251   : > { %10834 = vmatprep.subr.bf16.mxu1 %v13570_v25  ;;  %v1260_v25 = vld [vmem:[%s14754_s7 + $0x1768] sm:$0xff] }
 0x252   : > { %v1320_v30 = vld [vmem:[%s14754_s7 + $0x1948] sm:$0xff]  ;;  %v13722_v48 = vcombine.high %v1256_v63, %v1260_v25  ;;  %v13721_v2 = vcombine.low %v1256_v63, %v1260_v25 }
 0x253   : > { %10860 = vmatpush1.bf16.msra.mxu0 %v13633_v37  ;;  %v1324_v32 = vld [vmem:[%s14754_s7 + $0x1968] sm:$0xff] }
 0x254   : > { %10835 = vmatpush2.bf16.msra.mxu1 %v13569_v39  ;;  %10861 = vmatprep.subr.bf16.mxu0 %v13626_v41  ;;  %v13729_v39 = vcombine.low %v1264_v14, %v1268_v26  ;;  %v1316_v23 = vld [vmem:[%s14754_s7 + $0x1928] sm:$0xff] }
 0x255   : > { %10836 = vmatprep.subr.bf16.mxu1 %v13562_v6  ;;  %v13793_v6 = vcombine.low %v1328_v19, %v1332_v20  ;;  %v1240_v14 = vld [vmem:[%s14754_s7 + $0x16c8] sm:$0xff] }
 0x256   : > { %v1244_v26 = vld [vmem:[%s14754_s7 + $0x16e8] sm:$0xff] }
 0x257   : > { %10862 = vmatpush1.bf16.msra.mxu0 %v13625_v31  ;;  %v1248_v31 = vld [vmem:[%s14754_s7 + $0x1708] sm:$0xff] }
 0x258   : > { %10837 = vmatpush2.bf16.msra.mxu1 %v13561_v53  ;;  %10863 = vmatprep.subr.bf16.mxu0 %v13618_v55  ;;  %v1252_v53 = vld [vmem:[%s14754_s7 + $0x1728] sm:$0xff] }
 0x259   : > { %10838 = vmatprep.subr.bf16.mxu1 %v13554_v56  ;;  %v1312_v56 = vld [vmem:[%s14754_s7 + $0x1908] sm:$0xff] }
 0x25a   : > { %v1304_v19 = vld [vmem:[%s14754_s7 + $0x18c8] sm:$0xff] }
 0x25b   : > { %10864 = vmatpush1.bf16.msra.mxu0 %v13617_v3  ;;  %v13785_v3 = vcombine.low %v1320_v30, %v1324_v32  ;;  %v1308_v20 = vld [vmem:[%s14754_s7 + $0x18e8] sm:$0xff] }
 0x25c   : > { %10839 = vmatpush2.bf16.msra.mxu1 %v13553_v7  ;;  %10865 = vmatprep.subr.bf16.mxu0 %v13738_v8  ;;  %v13714_v7 = vcombine.high %v1248_v31, %v1252_v53  ;;  %v1232_v63 = vld [vmem:[%s14754_s7 + $0x1688] sm:$0xff] }
 0x25d   : > { %10890 = vmatprep.subr.bf16.mxu1 %v13802_v10  ;;  %v13778_v10 = vcombine.high %v1312_v56, %v1316_v23  ;;  %v1236_v25 = vld [vmem:[%s14754_s7 + $0x16a8] sm:$0xff] }
 0x25e   : > { %v10555_v29 = vpop.f32.mrf.mxu0 }
 0x25f   : > { %v10556_v36 = vadd.f32 %v10555_v29, %v15483_v28  ;;  %v10596_v37 = vpop.f32.mrf.mxu1  ;;  %10841 = vmatmul.mubr.bf16.vlgmr.msra.gmra.mxu1 %v15042_v43  ;;  %10866 = vmatpush2.bf16.msra.mxu0 %v13737_v59  ;;  %v13786_v28 = vcombine.high %v1320_v30, %v1324_v32  ;;  %v13713_v59 = vcombine.low %v1248_v31, %v1252_v53  ;;  %v1296_v29 = vld [vmem:[%s14754_s7 + $0x1888] sm:$0xff] }
 0x260   : > { %10891 = vmatpush1.bf16.msra.mxu1 %v13801_v21  ;;  %v10557_v41 = vpop.f32.mrf.mxu0  ;;  %10867 = vmatprep.subr.bf16.mxu0 %v13730_v24  ;;  %v13777_v21 = vcombine.low %v1312_v56, %v1316_v23  ;;  %v13706_v24 = vcombine.high %v1240_v14, %v1244_v26  ;;  %v1300_v30 = vld [vmem:[%s14754_s7 + $0x18a8] sm:$0xff]  ;;  %v13705_v32 = vcombine.low %v1240_v14, %v1244_v26 }
 0x261   : > { %v15557_v42 = vadd.f32 %v10596_v37, %v10556_v36  ;;  %v10558_v62 = vadd.f32 %v10557_v41, %v15491_v50  ;;  %v10598_v57 = vpop.f32.mrf.mxu1  ;;  %10892 = vmatprep.subr.bf16.mxu1 %v13794_v22  ;;  %10922 = vmatprep.mubr.bf16.mxu1 %v15054_v58  ;;  %v13770_v22 = vcombine.high %v1304_v19, %v1308_v20  ;;  %v1224_v41 = vld [vmem:[%s14754_s7 + $0x1648] sm:$0xff] }
 0x262   : > { %v10559_v55 = vpop.f32.mrf.mxu0  ;;  %v13769_v36 = vcombine.low %v1304_v19, %v1308_v20  ;;  %v13698_v37 = vcombine.high %v1232_v63, %v1236_v25  ;;  %v1220_v56 = vld [vmem:[%s14754_s7 + $0x1628] sm:$0xff] }
 0x263   : > { %v15565_v51 = vadd.f32 %v10598_v57, %v10558_v62  ;;  %v10600_v61 = vpop.f32.mrf.mxu1  ;;  %10868 = vmatpush2.bf16.msra.mxu0 %v13729_v39  ;;  %v13762_v39 = vcombine.high %v1296_v29, %v1300_v30  ;;  %v1292_v62 = vld [vmem:[%s14754_s7 + $0x1868] sm:$0xff]  ;;  %v13697_v57 = vcombine.low %v1232_v63, %v1236_v25 }
 0x264   : > { %10893 = vmatpush1.bf16.msra.mxu1 %v13793_v6  ;;  %v10560_v50 = vpop.f32.mrf.mxu0  ;;  %10869 = vmatprep.subr.bf16.mxu0 %v13722_v48  ;;  %v1228_v6 = vld [vmem:[%s14754_s7 + $0x1668] sm:$0xff] }
 0x265   : > { %v10601_v8 = vpop.f32.mrf.mxu1  ;;  %10894 = vmatprep.subr.bf16.mxu1 %v13786_v28  ;;  %v1288_v48 = vld [vmem:[%s14754_s7 + $0x1848] sm:$0xff]  ;;  %v13761_v28 = vcombine.low %v1296_v29, %v1300_v30  ;;  %v13690_v31 = vcombine.high %v1224_v41, %v1228_v6 }
 0x266   : > { %v13754_v53 = vcombine.high %v1288_v48, %v1292_v62  ;;  %v1216_v55 = vld [vmem:[%s14754_s7 + $0x1608] sm:$0xff]  ;;  %v13753_v50 = vcombine.low %v1288_v48, %v1292_v62 }
 0x267   : > { %10870 = vmatpush2.bf16.msra.mxu0 %v13721_v2  ;;  %v1280_v23 = vld [vmem:[%s14754_s7 + $0x1808] sm:$0xff]  ;;  %v13689_v2 = vcombine.low %v1224_v41, %v1228_v6  ;;  %v13681_v19 = vcombine.low %v1216_v55, %v1220_v56 }
 0x268   : > { %10895 = vmatpush1.bf16.msra.mxu1 %v13785_v3  ;;  %10871 = vmatprep.subr.bf16.mxu0 %v13714_v7  ;;  %v1284_v61 = vld [vmem:[%s14754_s7 + $0x1828] sm:$0xff]  ;;  %v13682_v3 = vcombine.high %v1216_v55, %v1220_v56 }
 0x269   : > { %10896 = vmatprep.subr.bf16.mxu1 %v13778_v10  ;;  %v13746_v7 = vcombine.high %v1280_v23, %v1284_v61  ;;  %v1464_v8 = vld [vmem:[%s14754_s7 + $0x1dc8] sm:$0xff]  ;;  %v13745_v20 = vcombine.low %v1280_v23, %v1284_v61 }
 0x26a   : > { %v1468_v10 = vld [vmem:[%s14754_s7 + $0x1de8] sm:$0xff] }
 0x26b   : > { %10872 = vmatpush2.bf16.msra.mxu0 %v13713_v59  ;;  %v1400_v14 = vld [vmem:[%s14754_s7 + $0x1bc8] sm:$0xff]  ;;  %v13930_v59 = vcombine.high %v1464_v8, %v1468_v10  ;;  %v13929_v29 = vcombine.low %v1464_v8, %v1468_v10 }
 0x26c   : > { %10897 = vmatpush1.bf16.msra.mxu1 %v13777_v21  ;;  %10873 = vmatprep.subr.bf16.mxu0 %v13706_v24  ;;  %v1404_v26 = vld [vmem:[%s14754_s7 + $0x1be8] sm:$0xff] }
 0x26d   : > { %10898 = vmatprep.subr.bf16.mxu1 %v13770_v22  ;;  %v13866_v21 = vcombine.high %v1400_v14, %v1404_v26  ;;  %v1456_v24 = vld [vmem:[%s14754_s7 + $0x1d88] sm:$0xff]  ;;  %v13865_v30 = vcombine.low %v1400_v14, %v1404_v26 }
 0x26e   : > { %v1460_v22 = vld [vmem:[%s14754_s7 + $0x1da8] sm:$0xff] }
 0x26f   : > { %10874 = vmatpush2.bf16.msra.mxu0 %v13705_v32  ;;  %v1392_v63 = vld [vmem:[%s14754_s7 + $0x1b88] sm:$0xff]  ;;  %v13922_v32 = vcombine.high %v1456_v24, %v1460_v22 }
 0x270   : > { %10899 = vmatpush1.bf16.msra.mxu1 %v13769_v36  ;;  %10875 = vmatprep.subr.bf16.mxu0 %v13698_v37  ;;  %v1396_v25 = vld [vmem:[%s14754_s7 + $0x1ba8] sm:$0xff] }
 0x271   : > { %10900 = vmatprep.subr.bf16.mxu1 %v13762_v39  ;;  %v13858_v36 = vcombine.high %v1392_v63, %v1396_v25  ;;  %v1448_v37 = vld [vmem:[%s14754_s7 + $0x1d48] sm:$0xff] }
 0x272   : > { %v1452_v39 = vld [vmem:[%s14754_s7 + $0x1d68] sm:$0xff] }
 0x273   : > { %10876 = vmatpush2.bf16.msra.mxu0 %v13697_v57  ;;  %v1384_v6 = vld [vmem:[%s14754_s7 + $0x1b48] sm:$0xff]  ;;  %v13921_v57 = vcombine.low %v1456_v24, %v1460_v22 }
 0x274   : > { %10901 = vmatpush1.bf16.msra.mxu1 %v13761_v28  ;;  %10877 = vmatprep.subr.bf16.mxu0 %v13690_v31  ;;  %v1388_v48 = vld [vmem:[%s14754_s7 + $0x1b68] sm:$0xff]  ;;  %v13857_v31 = vcombine.low %v1392_v63, %v1396_v25 }
 0x275   : > { %10902 = vmatprep.subr.bf16.mxu1 %v13754_v53  ;;  %v13914_v53 = vcombine.high %v1448_v37, %v1452_v39  ;;  %v13850_v56 = vcombine.high %v1384_v6, %v1388_v48  ;;  %v1440_v23 = vld [vmem:[%s14754_s7 + $0x1d08] sm:$0xff] }
 0x276   : > { %v1432_v26 = vld [vmem:[%s14754_s7 + $0x1cc8] sm:$0xff] }
 0x277   : > { %10878 = vmatpush2.bf16.msra.mxu0 %v13689_v2  ;;  %v1376_v2 = vld [vmem:[%s14754_s7 + $0x1b08] sm:$0xff] }
 0x278   : > { %10903 = vmatpush1.bf16.msra.mxu1 %v13753_v50  ;;  %10879 = vmatprep.subr.bf16.mxu0 %v13682_v3  ;;  %v1380_v50 = vld [vmem:[%s14754_s7 + $0x1b28] sm:$0xff] }
 0x279   : > { %10904 = vmatprep.subr.bf16.mxu1 %v13746_v7  ;;  %v13913_v7 = vcombine.low %v1448_v37, %v1452_v39  ;;  %v13842_v14 = vcombine.high %v1376_v2, %v1380_v50  ;;  %v13841_v24 = vcombine.low %v1376_v2, %v1380_v50  ;;  %v1424_v25 = vld [vmem:[%s14754_s7 + $0x1c88] sm:$0xff] }
 0x27a   : > { %v1344_v2 = vld [vmem:[%s14754_s7 + $0x1a08] sm:$0xff] }
 0x27b   : > { %10880 = vmatpush2.bf16.msra.mxu0 %v13681_v19  ;;  %v1436_v19 = vld [vmem:[%s14754_s7 + $0x1ce8] sm:$0xff] }
 0x27c   : > { %10905 = vmatpush1.bf16.msra.mxu1 %v13745_v20  ;;  %10931 = vmatprep.subr.bf16.mxu0 %v13930_v59  ;;  %v1368_v20 = vld [vmem:[%s14754_s7 + $0x1ac8] sm:$0xff]  ;;  %v13898_v22 = vcombine.high %v1432_v26, %v1436_v19 }
 0x27d   : > { %10906 = vmatprep.subr.bf16.mxu1 %v13866_v21  ;;  %v1372_v59 = vld [vmem:[%s14754_s7 + $0x1ae8] sm:$0xff] }
 0x27e   : > { %v10637_v41 = vpop.f32.mrf.mxu0  ;;  %10882 = vmatmul.mubr.bf16.vlgmr.msra.gmra.mxu0 %v15050_v49  ;;  %v13834_v63 = vcombine.high %v1368_v20, %v1372_v59  ;;  %v13833_v37 = vcombine.low %v1368_v20, %v1372_v59  ;;  %v1348_v50 = vld [vmem:[%s14754_s7 + $0x1a28] sm:$0xff] }
 0x27f   : > { %v15597_v62 = vadd.f32 %v10637_v41, %v15557_v42  ;;  %10932 = vmatpush1.bf16.msra.mxu0 %v13929_v29  ;;  %10963 = vmatprep.mubr.bf16.mxu0 %v15059_v60  ;;  %v1444_v42 = vld [vmem:[%s14754_s7 + $0x1d28] sm:$0xff] }
 0x280   : > { %10907 = vmatpush2.bf16.msra.mxu1 %v13865_v30  ;;  %v10639_v28 = vpop.f32.mrf.mxu0  ;;  %10933 = vmatprep.subr.bf16.mxu0 %v13922_v32  ;;  %v13906_v10 = vcombine.high %v1440_v23, %v1444_v42  ;;  %v13905_v21 = vcombine.low %v1440_v23, %v1444_v42  ;;  %v1428_v29 = vld [vmem:[%s14754_s7 + $0x1ca8] sm:$0xff] }
 0x281   : > { %v15601_v55 = vadd.f32 %v10639_v28, %v15565_v51  ;;  %10908 = vmatprep.subr.bf16.mxu1 %v13858_v36  ;;  %v13849_v51 = vcombine.low %v1384_v6, %v1388_v48  ;;  %v1360_v30 = vld [vmem:[%s14754_s7 + $0x1a88] sm:$0xff]  ;;  %v13897_v36 = vcombine.low %v1432_v26, %v1436_v19  ;;  %v13890_v39 = vcombine.high %v1424_v25, %v1428_v29 }
 0x282   : > { %v10641_v61 = vpop.f32.mrf.mxu0  ;;  %v1364_v32 = vld [vmem:[%s14754_s7 + $0x1aa8] sm:$0xff] }
 0x283   : > { %v12251_v3 = vcombine.low %v15597_v62, %v15601_v55  ;;  %10934 = vmatpush1.bf16.msra.mxu0 %v13921_v57  ;;  %v13826_v41 = vcombine.high %v1360_v30, %v1364_v32  ;;  %v1416_v6 = vld [vmem:[%s14754_s7 + $0x1c48] sm:$0xff]  ;;  %v1425_v62 = vld [vmem:[%s14754_s7 + $0x1c90] sm:$0xff] }
 0x284   : > { %10909 = vmatpush2.bf16.msra.mxu1 %v13857_v31  ;;  %v10642_v8 = vpop.f32.mrf.mxu0  ;;  %10935 = vmatprep.subr.bf16.mxu0 %v13914_v53  ;;  %v1420_v48 = vld [vmem:[%s14754_s7 + $0x1c68] sm:$0xff]  ;;  %v13889_v31 = vcombine.low %v1424_v25, %v1428_v29  ;;  %v13825_v53 = vcombine.low %v1360_v30, %v1364_v32  ;;  %v1429_v55 = vld [vmem:[%s14754_s7 + $0x1cb0] sm:$0xff] }
 0x285   : > { %10910 = vmatprep.subr.bf16.mxu1 %v13850_v56  ;;  %v1352_v57 = vld [vmem:[%s14754_s7 + $0x1a48] sm:$0xff]  ;;  %v13882_v56 = vcombine.high %v1416_v6, %v1420_v48 }
 0x286   : > { %v1356_v28 = vld [vmem:[%s14754_s7 + $0x1a68] sm:$0xff] }
 0x287   : > { %10936 = vmatpush1.bf16.msra.mxu0 %v13913_v7  ;;  %v13818_v23 = vcombine.high %v1352_v57, %v1356_v28  ;;  %v1408_v42 = vld [vmem:[%s14754_s7 + $0x1c08] sm:$0xff]  ;;  %v13881_v7 = vcombine.low %v1416_v6, %v1420_v48  ;;  %v13817_v8 = vcombine.low %v1352_v57, %v1356_v28 }
 0x288   : > { %10911 = vmatpush2.bf16.msra.mxu1 %v13849_v51  ;;  %10937 = vmatprep.subr.bf16.mxu0 %v13906_v10  ;;  %v1412_v61 = vld [vmem:[%s14754_s7 + $0x1c28] sm:$0xff]  ;;  %v13810_v10 = vcombine.high %v1344_v2, %v1348_v50 }
 0x289   : > { %10912 = vmatprep.subr.bf16.mxu1 %v13842_v14  ;;  %v13874_v51 = vcombine.high %v1408_v42, %v1412_v61  ;;  %v1528_v14 = vld [vmem:[%s14754_s7 + $0x1fc8] sm:$0xff]  ;;  %v13873_v59 = vcombine.low %v1408_v42, %v1412_v61 }
 0x28a   : > { %v1532_v26 = vld [vmem:[%s14754_s7 + $0x1fe8] sm:$0xff] }
 0x28b   : > { %10938 = vmatpush1.bf16.msra.mxu0 %v13905_v21  ;;  %v1592_v19 = vld [vmem:[%s14754_s7 + $0x21c8] sm:$0xff]  ;;  %v13809_v21 = vcombine.low %v1344_v2, %v1348_v50  ;;  %v13993_v32 = vcombine.low %v1528_v14, %v1532_v26 }
 0x28c   : > { %10913 = vmatpush2.bf16.msra.mxu1 %v13841_v24  ;;  %10939 = vmatprep.subr.bf16.mxu0 %v13898_v22  ;;  %v1596_v20 = vld [vmem:[%s14754_s7 + $0x21e8] sm:$0xff]  ;;  %v13994_v24 = vcombine.high %v1528_v14, %v1532_v26 }
 0x28d   : > { %10914 = vmatprep.subr.bf16.mxu1 %v13834_v63  ;;  %v14058_v22 = vcombine.high %v1592_v19, %v1596_v20  ;;  %v1520_v63 = vld [vmem:[%s14754_s7 + $0x1f88] sm:$0xff] }
 0x28e   : > { %v1524_v25 = vld [vmem:[%s14754_s7 + $0x1fa8] sm:$0xff] }
 0x28f   : > { %10940 = vmatpush1.bf16.msra.mxu0 %v13897_v36  ;;  %v1584_v29 = vld [vmem:[%s14754_s7 + $0x2188] sm:$0xff]  ;;  %v14057_v36 = vcombine.low %v1592_v19, %v1596_v20 }
 0x290   : > { %10915 = vmatpush2.bf16.msra.mxu1 %v13833_v37  ;;  %10941 = vmatprep.subr.bf16.mxu0 %v13890_v39  ;;  %v1588_v30 = vld [vmem:[%s14754_s7 + $0x21a8] sm:$0xff]  ;;  %v13986_v37 = vcombine.high %v1520_v63, %v1524_v25 }
 0x291   : > { %10916 = vmatprep.subr.bf16.mxu1 %v13826_v41  ;;  %v14050_v39 = vcombine.high %v1584_v29, %v1588_v30  ;;  %v1512_v41 = vld [vmem:[%s14754_s7 + $0x1f48] sm:$0xff] }
 0x292   : > { %v1516_v6 = vld [vmem:[%s14754_s7 + $0x1f68] sm:$0xff] }
 0x293   : > { %10942 = vmatpush1.bf16.msra.mxu0 %v13889_v31  ;;  %v1576_v48 = vld [vmem:[%s14754_s7 + $0x2148] sm:$0xff]  ;;  %v13985_v31 = vcombine.low %v1520_v63, %v1524_v25 }
 0x294   : > { %10917 = vmatpush2.bf16.msra.mxu1 %v13825_v53  ;;  %10943 = vmatprep.subr.bf16.mxu0 %v13882_v56  ;;  %v1580_v57 = vld [vmem:[%s14754_s7 + $0x2168] sm:$0xff]  ;;  %v14049_v53 = vcombine.low %v1584_v29, %v1588_v30  ;;  %v13978_v56 = vcombine.high %v1512_v41, %v1516_v6 }
 0x295   : > { %10918 = vmatprep.subr.bf16.mxu1 %v13818_v23  ;;  %v14042_v42 = vcombine.high %v1576_v48, %v1580_v57  ;;  %v1504_v61 = vld [vmem:[%s14754_s7 + $0x1f08] sm:$0xff] }
 0x296   : > { %v1508_v2 = vld [vmem:[%s14754_s7 + $0x1f28] sm:$0xff] }
 0x297   : > { %10944 = vmatpush1.bf16.msra.mxu0 %v13881_v7  ;;  %v1568_v50 = vld [vmem:[%s14754_s7 + $0x2108] sm:$0xff]  ;;  %v13970_v14 = vcombine.high %v1504_v61, %v1508_v2 }
 0x298   : > { %10919 = vmatpush2.bf16.msra.mxu1 %v13817_v8  ;;  %10945 = vmatprep.subr.bf16.mxu0 %v13874_v51  ;;  %v1572_v7 = vld [vmem:[%s14754_s7 + $0x2128] sm:$0xff]  ;;  %v13977_v51 = vcombine.low %v1512_v41, %v1516_v6 }
 0x299   : > { %10920 = vmatprep.subr.bf16.mxu1 %v13810_v10  ;;  %v14041_v10 = vcombine.low %v1576_v48, %v1580_v57  ;;  %v14034_v19 = vcombine.high %v1568_v50, %v1572_v7  ;;  %v1496_v20 = vld [vmem:[%s14754_s7 + $0x1ec8] sm:$0xff]  ;;  %v14033_v63 = vcombine.low %v1568_v50, %v1572_v7 }
 0x29a   : > { %v1488_v30 = vld [vmem:[%s14754_s7 + $0x1e88] sm:$0xff] }
 0x29b   : > { %10946 = vmatpush1.bf16.msra.mxu0 %v13873_v59  ;;  %v1500_v59 = vld [vmem:[%s14754_s7 + $0x1ee8] sm:$0xff] }
 0x29c   : > { %10921 = vmatpush2.bf16.msra.mxu1 %v13809_v21  ;;  %10947 = vmatprep.subr.bf16.mxu0 %v13994_v24  ;;  %v1560_v21 = vld [vmem:[%s14754_s7 + $0x20c8] sm:$0xff]  ;;  %v13962_v25 = vcombine.high %v1496_v20, %v1500_v59 }
 0x29d   : > { %10972 = vmatprep.subr.bf16.mxu1 %v14058_v22  ;;  %v1564_v24 = vld [vmem:[%s14754_s7 + $0x20e8] sm:$0xff]  ;;  %v13969_v22 = vcombine.low %v1504_v61, %v1508_v2 }
 0x29e   : > { %v14026_v29 = vcombine.high %v1560_v21, %v1564_v24  ;;  %v14025_v41 = vcombine.low %v1560_v21, %v1564_v24  ;;  %v1480_v57 = vld [vmem:[%s14754_s7 + $0x1e48] sm:$0xff] }
 0x29f   : > { %v15637_v28 = vpop.f32.mrf.mxu1  ;;  %10923 = vmatmul.mubr.bf16.vlgmr.msra.gmra.mxu1 %v15133_v40  ;;  %10948 = vmatpush2.bf16.msra.mxu0 %v13993_v32  ;;  %v1492_v32 = vld [vmem:[%s14754_s7 + $0x1ea8] sm:$0xff] }
 0x2a0   : > { %10973 = vmatpush1.bf16.msra.mxu1 %v14057_v36  ;;  %10949 = vmatprep.subr.bf16.mxu0 %v13986_v37  ;;  %v1552_v36 = vld [vmem:[%s14754_s7 + $0x2088] sm:$0xff]  ;;  %v13954_v6 = vcombine.high %v1488_v30, %v1492_v32 }
 0x2a1   : > { %v15640_v23 = vpop.f32.mrf.mxu1  ;;  %10974 = vmatprep.subr.bf16.mxu1 %v14050_v39  ;;  %11004 = vmatprep.mubr.bf16.mxu1 %v15145_v52  ;;  %v1556_v37 = vld [vmem:[%s14754_s7 + $0x20a8] sm:$0xff]  ;;  %v13961_v39 = vcombine.low %v1496_v20, %v1500_v59 }
 0x2a2   : > { %v14018_v48 = vcombine.high %v1552_v36, %v1556_v37  ;;  %v14017_v61 = vcombine.low %v1552_v36, %v1556_v37  ;;  %v1472_v7 = vld [vmem:[%s14754_s7 + $0x1e08] sm:$0xff] }
 0x2a3   : > { %v10682_v8 = vpop.f32.mrf.mxu1  ;;  %10950 = vmatpush2.bf16.msra.mxu0 %v13985_v31  ;;  %v1484_v31 = vld [vmem:[%s14754_s7 + $0x1e68] sm:$0xff] }
 0x2a4   : > { %10975 = vmatpush1.bf16.msra.mxu1 %v14049_v53  ;;  %10951 = vmatprep.subr.bf16.mxu0 %v13978_v56  ;;  %v1544_v53 = vld [vmem:[%s14754_s7 + $0x2048] sm:$0xff]  ;;  %v13946_v2 = vcombine.high %v1480_v57, %v1484_v31 }
 0x2a5   : > { %v10683_v26 = vpop.f32.mrf.mxu1  ;;  %10976 = vmatprep.subr.bf16.mxu1 %v14042_v42  ;;  %v1548_v56 = vld [vmem:[%s14754_s7 + $0x2068] sm:$0xff]  ;;  %v13953_v42 = vcombine.low %v1488_v30, %v1492_v32 }
 0x2a6   : > { %v14010_v50 = vcombine.high %v1544_v53, %v1548_v56  ;;  %v1476_v8 = vld [vmem:[%s14754_s7 + $0x1e28] sm:$0xff]  ;;  %v14009_v26 = vcombine.low %v1544_v53, %v1548_v56 }
 0x2a7   : > { %10952 = vmatpush2.bf16.msra.mxu0 %v13977_v51  ;;  %v1536_v51 = vld [vmem:[%s14754_s7 + $0x2008] sm:$0xff] }
 0x2a8   : > { %10977 = vmatpush1.bf16.msra.mxu1 %v14041_v10  ;;  %10953 = vmatprep.subr.bf16.mxu0 %v13970_v14  ;;  %v1540_v10 = vld [vmem:[%s14754_s7 + $0x2028] sm:$0xff]  ;;  %v13945_v14 = vcombine.low %v1480_v57, %v1484_v31 }
 0x2a9   : > { %10978 = vmatprep.subr.bf16.mxu1 %v14034_v19  ;;  %v13938_v19 = vcombine.high %v1472_v7, %v1476_v8  ;;  %v14002_v20 = vcombine.high %v1536_v51, %v1540_v10  ;;  %v1720_v59 = vld [vmem:[%s14754_s7 + $0x25c8] sm:$0xff] }
 0x2aa   : > { %v1724_v21 = vld [vmem:[%s14754_s7 + $0x25e8] sm:$0xff] }
 0x2ab   : > { %10954 = vmatpush2.bf16.msra.mxu0 %v13969_v22  ;;  %v1656_v24 = vld [vmem:[%s14754_s7 + $0x23c8] sm:$0xff] }
 0x2ac   : > { %10979 = vmatpush1.bf16.msra.mxu1 %v14033_v63  ;;  %10955 = vmatprep.subr.bf16.mxu0 %v13962_v25  ;;  %v1660_v22 = vld [vmem:[%s14754_s7 + $0x23e8] sm:$0xff]  ;;  %v13937_v63 = vcombine.low %v1472_v7, %v1476_v8  ;;  %v14001_v25 = vcombine.low %v1536_v51, %v1540_v10 }
 0x2ad   : > { %10980 = vmatprep.subr.bf16.mxu1 %v14026_v29  ;;  %v14186_v29 = vcombine.high %v1720_v59, %v1724_v21  ;;  %v14122_v30 = vcombine.high %v1656_v24, %v1660_v22  ;;  %v1712_v32 = vld [vmem:[%s14754_s7 + $0x2588] sm:$0xff] }
 0x2ae   : > { %v1716_v36 = vld [vmem:[%s14754_s7 + $0x25a8] sm:$0xff] }
 0x2af   : > { %10956 = vmatpush2.bf16.msra.mxu0 %v13961_v39  ;;  %v1648_v37 = vld [vmem:[%s14754_s7 + $0x2388] sm:$0xff] }
 0x2b0   : > { %10981 = vmatpush1.bf16.msra.mxu1 %v14025_v41  ;;  %10957 = vmatprep.subr.bf16.mxu0 %v13954_v6  ;;  %v1652_v39 = vld [vmem:[%s14754_s7 + $0x23a8] sm:$0xff]  ;;  %v14185_v41 = vcombine.low %v1720_v59, %v1724_v21  ;;  %v14121_v6 = vcombine.low %v1656_v24, %v1660_v22 }
 0x2b1   : > { %10982 = vmatprep.subr.bf16.mxu1 %v14018_v48  ;;  %v14178_v48 = vcombine.high %v1712_v32, %v1716_v36  ;;  %v14114_v57 = vcombine.high %v1648_v37, %v1652_v39  ;;  %v1704_v31 = vld [vmem:[%s14754_s7 + $0x2548] sm:$0xff]  ;;  %v14113_v8 = vcombine.low %v1648_v37, %v1652_v39 }
 0x2b2   : > { %v1708_v53 = vld [vmem:[%s14754_s7 + $0x2568] sm:$0xff] }
 0x2b3   : > { %10958 = vmatpush2.bf16.msra.mxu0 %v13953_v42  ;;  %v1640_v42 = vld [vmem:[%s14754_s7 + $0x2348] sm:$0xff]  ;;  %v14170_v51 = vcombine.high %v1704_v31, %v1708_v53  ;;  %v14169_v21 = vcombine.low %v1704_v31, %v1708_v53 }
 0x2b4   : > { %10983 = vmatpush1.bf16.msra.mxu1 %v14017_v61  ;;  %10959 = vmatprep.subr.bf16.mxu0 %v13946_v2  ;;  %v1644_v61 = vld [vmem:[%s14754_s7 + $0x2368] sm:$0xff] }
 0x2b5   : > { %10984 = vmatprep.subr.bf16.mxu1 %v14010_v50  ;;  %v14177_v50 = vcombine.low %v1712_v32, %v1716_v36  ;;  %v1636_v59 = vld [vmem:[%s14754_s7 + $0x2328] sm:$0xff]  ;;  %v14105_v22 = vcombine.low %v1640_v42, %v1644_v61 }
 0x2b6   : > { %v1628_v32 = vld [vmem:[%s14754_s7 + $0x22e8] sm:$0xff] }
 0x2b7   : > { %10960 = vmatpush2.bf16.msra.mxu0 %v13945_v14  ;;  %v14106_v14 = vcombine.high %v1640_v42, %v1644_v61  ;;  %v1620_v31 = vld [vmem:[%s14754_s7 + $0x22a8] sm:$0xff] }
 0x2b8   : > { %10985 = vmatpush1.bf16.msra.mxu1 %v14009_v26  ;;  %10961 = vmatprep.subr.bf16.mxu0 %v13938_v19  ;;  %v1696_v26 = vld [vmem:[%s14754_s7 + $0x2508] sm:$0xff] }
 0x2b9   : > { %10986 = vmatprep.subr.bf16.mxu1 %v14002_v20  ;;  %v1632_v20 = vld [vmem:[%s14754_s7 + $0x2308] sm:$0xff] }
 0x2ba   : > { %v14097_v37 = vcombine.low %v1632_v20, %v1636_v59 }
 0x2bb   : > { %10962 = vmatpush2.bf16.msra.mxu0 %v13937_v63  ;;  %v14098_v63 = vcombine.high %v1632_v20, %v1636_v59  ;;  %v1664_v20 = vld [vmem:[%s14754_s7 + $0x2408] sm:$0xff] }
 0x2bc   : > { %10987 = vmatpush1.bf16.msra.mxu1 %v14001_v25  ;;  %11013 = vmatprep.subr.bf16.mxu0 %v14186_v29  ;;  %v1688_v25 = vld [vmem:[%s14754_s7 + $0x24c8] sm:$0xff] }
 0x2bd   : > { %10988 = vmatprep.subr.bf16.mxu1 %v14122_v30  ;;  %v1692_v29 = vld [vmem:[%s14754_s7 + $0x24e8] sm:$0xff] }
 0x2be   : > { %v10719_v56 = vpop.f32.mrf.mxu0  ;;  %10964 = vmatmul.mubr.bf16.vlgmr.msra.gmra.mxu0 %v15141_v46  ;;  %v1624_v30 = vld [vmem:[%s14754_s7 + $0x22c8] sm:$0xff]  ;;  %v14154_v39 = vcombine.high %v1688_v25, %v1692_v29  ;;  %v14153_v53 = vcombine.low %v1688_v25, %v1692_v29 }
 0x2bf   : > { %v15677_v2 = vadd.f32 %v10719_v56, %v15637_v28  ;;  %11014 = vmatpush1.bf16.msra.mxu0 %v14185_v41  ;;  %11045 = vmatprep.mubr.bf16.mxu0 %v15150_v35  ;;  %v1700_v28 = vld [vmem:[%s14754_s7 + $0x2528] sm:$0xff]  ;;  %v14090_v41 = vcombine.high %v1624_v30, %v1628_v32  ;;  %v14089_v56 = vcombine.low %v1624_v30, %v1628_v32 }
 0x2c0   : > { %10989 = vmatpush2.bf16.msra.mxu1 %v14121_v6  ;;  %v10721_v7 = vpop.f32.mrf.mxu0  ;;  %11015 = vmatprep.subr.bf16.mxu0 %v14178_v48  ;;  %v14161_v36 = vcombine.low %v1696_v26, %v1700_v28  ;;  %v1680_v6 = vld [vmem:[%s14754_s7 + $0x2488] sm:$0xff] }
 0x2c1   : > { %v15681_v10 = vadd.f32 %v10721_v7, %v15640_v23  ;;  %10990 = vmatprep.subr.bf16.mxu1 %v14114_v57  ;;  %v14162_v23 = vcombine.high %v1696_v26, %v1700_v28  ;;  %v1684_v48 = vld [vmem:[%s14754_s7 + $0x24a8] sm:$0xff] }
 0x2c2   : > { %v10723_v19 = vpop.f32.mrf.mxu0  ;;  %v1616_v57 = vld [vmem:[%s14754_s7 + $0x2288] sm:$0xff]  ;;  %v14146_v42 = vcombine.high %v1680_v6, %v1684_v48 }
 0x2c3   : > { %11016 = vmatpush1.bf16.msra.mxu0 %v14177_v50  ;;  %v14082_v61 = vcombine.high %v1616_v57, %v1620_v31  ;;  %v1672_v50 = vld [vmem:[%s14754_s7 + $0x2448] sm:$0xff]  ;;  %v14081_v26 = vcombine.low %v1616_v57, %v1620_v31 }
 0x2c4   : > { %10991 = vmatpush2.bf16.msra.mxu1 %v14113_v8  ;;  %v10724_v24 = vpop.f32.mrf.mxu0  ;;  %11017 = vmatprep.subr.bf16.mxu0 %v14170_v51  ;;  %v1676_v7 = vld [vmem:[%s14754_s7 + $0x2468] sm:$0xff] }
 0x2c5   : > { %10992 = vmatprep.subr.bf16.mxu1 %v14106_v14  ;;  %v1608_v8 = vld [vmem:[%s14754_s7 + $0x2248] sm:$0xff]  ;;  %v14145_v14 = vcombine.low %v1680_v6, %v1684_v48  ;;  %v14138_v28 = vcombine.high %v1672_v50, %v1676_v7 }
 0x2c6   : > { %v1612_v51 = vld [vmem:[%s14754_s7 + $0x2268] sm:$0xff] }
 0x2c7   : > { %11018 = vmatpush1.bf16.msra.mxu0 %v14169_v21  ;;  %v14074_v19 = vcombine.high %v1608_v8, %v1612_v51  ;;  %v1668_v59 = vld [vmem:[%s14754_s7 + $0x2428] sm:$0xff] }
 0x2c8   : > { %10993 = vmatpush2.bf16.msra.mxu1 %v14105_v22  ;;  %11019 = vmatprep.subr.bf16.mxu0 %v14162_v23  ;;  %v1600_v21 = vld [vmem:[%s14754_s7 + $0x2208] sm:$0xff]  ;;  %v14137_v22 = vcombine.low %v1672_v50, %v1676_v7  ;;  %v14073_v23 = vcombine.low %v1608_v8, %v1612_v51 }
 0x2c9   : > { %10994 = vmatprep.subr.bf16.mxu1 %v14098_v63  ;;  %v1604_v24 = vld [vmem:[%s14754_s7 + $0x2228] sm:$0xff]  ;;  %v14130_v63 = vcombine.high %v1664_v20, %v1668_v59 }
 0x2ca   : > { %v14066_v25 = vcombine.high %v1600_v21, %v1604_v24  ;;  %v1784_v29 = vld [vmem:[%s14754_s7 + $0x27c8] sm:$0xff] }
 0x2cb   : > { %11020 = vmatpush1.bf16.msra.mxu0 %v14161_v36  ;;  %v1788_v30 = vld [vmem:[%s14754_s7 + $0x27e8] sm:$0xff] }
 0x2cc   : > { %10995 = vmatpush2.bf16.msra.mxu1 %v14097_v37  ;;  %11021 = vmatprep.subr.bf16.mxu0 %v14154_v39  ;;  %v1848_v32 = vld [vmem:[%s14754_s7 + $0x29c8] sm:$0xff]  ;;  %v14129_v37 = vcombine.low %v1664_v20, %v1668_v59  ;;  %v14065_v39 = vcombine.low %v1600_v21, %v1604_v24 }
 0x2cd   : > { %10996 = vmatprep.subr.bf16.mxu1 %v14090_v41  ;;  %v1852_v36 = vld [vmem:[%s14754_s7 + $0x29e8] sm:$0xff]  ;;  %v14250_v41 = vcombine.high %v1784_v29, %v1788_v30 }
 0x2ce   : > { %v14314_v6 = vcombine.high %v1848_v32, %v1852_v36  ;;  %v1776_v48 = vld [vmem:[%s14754_s7 + $0x2788] sm:$0xff] }
 0x2cf   : > { %11022 = vmatpush1.bf16.msra.mxu0 %v14153_v53  ;;  %v1780_v57 = vld [vmem:[%s14754_s7 + $0x27a8] sm:$0xff] }
 0x2d0   : > { %10997 = vmatpush2.bf16.msra.mxu1 %v14089_v56  ;;  %11023 = vmatprep.subr.bf16.mxu0 %v14146_v42  ;;  %v1840_v31 = vld [vmem:[%s14754_s7 + $0x2988] sm:$0xff]  ;;  %v14249_v56 = vcombine.low %v1784_v29, %v1788_v30  ;;  %v14313_v42 = vcombine.low %v1848_v32, %v1852_v36 }
 0x2d1   : > { %10998 = vmatprep.subr.bf16.mxu1 %v14082_v61  ;;  %v1844_v53 = vld [vmem:[%s14754_s7 + $0x29a8] sm:$0xff]  ;;  %v14242_v61 = vcombine.high %v1776_v48, %v1780_v57 }
 0x2d2   : > { %v14306_v50 = vcombine.high %v1840_v31, %v1844_v53  ;;  %v1768_v7 = vld [vmem:[%s14754_s7 + $0x2748] sm:$0xff]  ;;  %v14305_v20 = vcombine.low %v1840_v31, %v1844_v53 }
 0x2d3   : > { %11024 = vmatpush1.bf16.msra.mxu0 %v14145_v14  ;;  %v1772_v8 = vld [vmem:[%s14754_s7 + $0x2768] sm:$0xff] }
 0x2d4   : > { %10999 = vmatpush2.bf16.msra.mxu1 %v14081_v26  ;;  %11025 = vmatprep.subr.bf16.mxu0 %v14138_v28  ;;  %v1832_v51 = vld [vmem:[%s14754_s7 + $0x2948] sm:$0xff]  ;;  %v14241_v28 = vcombine.low %v1776_v48, %v1780_v57  ;;  %v14234_v59 = vcombine.high %v1768_v7, %v1772_v8  ;;  %v14233_v30 = vcombine.low %v1768_v7, %v1772_v8 }
 0x2d5   : > { %11000 = vmatprep.subr.bf16.mxu1 %v14074_v19  ;;  %v1836_v14 = vld [vmem:[%s14754_s7 + $0x2968] sm:$0xff] }
 0x2d6   : > { %v14298_v24 = vcombine.high %v1832_v51, %v1836_v14  ;;  %v14297_v32 = vcombine.low %v1832_v51, %v1836_v14  ;;  %v1820_v48 = vld [vmem:[%s14754_s7 + $0x28e8] sm:$0xff] }
 0x2d7   : > { %11026 = vmatpush1.bf16.msra.mxu0 %v14137_v22  ;;  %v1760_v22 = vld [vmem:[%s14754_s7 + $0x2708] sm:$0xff] }
 0x2d8   : > { %11001 = vmatpush2.bf16.msra.mxu1 %v14073_v23  ;;  %11027 = vmatprep.subr.bf16.mxu0 %v14130_v63  ;;  %v1764_v23 = vld [vmem:[%s14754_s7 + $0x2728] sm:$0xff] }
 0x2d9   : > { %11002 = vmatprep.subr.bf16.mxu1 %v14066_v25  ;;  %v1828_v25 = vld [vmem:[%s14754_s7 + $0x2928] sm:$0xff]  ;;  %v14226_v36 = vcombine.high %v1760_v22, %v1764_v23  ;;  %v14225_v57 = vcombine.low %v1760_v22, %v1764_v23 }
 0x2da   : > { %v1812_v7 = vld [vmem:[%s14754_s7 + $0x28a8] sm:$0xff] }
 0x2db   : > { %11028 = vmatpush1.bf16.msra.mxu0 %v14129_v37 }
 0x2dc   : > { %11003 = vmatpush2.bf16.msra.mxu1 %v14065_v39  ;;  %11029 = vmatprep.subr.bf16.mxu0 %v14250_v41  ;;  %v1752_v41 = vld [vmem:[%s14754_s7 + $0x26c8] sm:$0xff] }
 0x2dd   : > { %11054 = vmatprep.subr.bf16.mxu1 %v14314_v6  ;;  %v1816_v6 = vld [vmem:[%s14754_s7 + $0x28c8] sm:$0xff] }
 0x2de   : > { %v14281_v51 = vcombine.low %v1816_v6, %v1820_v48 }
 0x2df   : > { %v10760_v26 = vpop.f32.mrf.mxu1  ;;  %11005 = vmatmul.mubr.bf16.vlgmr.msra.gmra.mxu1 %v15228_v11  ;;  %11030 = vmatpush2.bf16.msra.mxu0 %v14249_v56  ;;  %v14282_v56 = vcombine.high %v1816_v6, %v1820_v48  ;;  %v1980_v6 = vld [vmem:[%s14754_s7 + $0x2de8] sm:$0xff] }
 0x2e0   : > { %v15717_v19 = vadd.f32 %v10760_v26, %v15677_v2  ;;  %11055 = vmatpush1.bf16.msra.mxu1 %v14313_v42  ;;  %11031 = vmatprep.subr.bf16.mxu0 %v14242_v61  ;;  %v1824_v2 = vld [vmem:[%s14754_s7 + $0x2908] sm:$0xff] }
 0x2e1   : > { %v10762_v21 = vpop.f32.mrf.mxu1  ;;  %11056 = vmatprep.subr.bf16.mxu1 %v14306_v50  ;;  %11086 = vmatprep.mubr.bf16.mxu1 %v15240_v27  ;;  %v14290_v39 = vcombine.high %v1824_v2, %v1828_v25  ;;  %v14289_v31 = vcombine.low %v1824_v2, %v1828_v25  ;;  %v1744_v42 = vld [vmem:[%s14754_s7 + $0x2688] sm:$0xff] }
 0x2e2   : > { %v15723_v63 = vadd.f32 %v10762_v21, %v15681_v10  ;;  %v1756_v10 = vld [vmem:[%s14754_s7 + $0x26e8] sm:$0xff] }
 0x2e3   : > { %v10764_v29 = vpop.f32.mrf.mxu1  ;;  %11032 = vmatpush2.bf16.msra.mxu0 %v14241_v28  ;;  %v14218_v53 = vcombine.high %v1752_v41, %v1756_v10  ;;  %v1748_v61 = vld [vmem:[%s14754_s7 + $0x26a8] sm:$0xff]  ;;  %v14217_v8 = vcombine.low %v1752_v41, %v1756_v10 }
 0x2e4   : > { %11057 = vmatpush1.bf16.msra.mxu1 %v14305_v20  ;;  %11033 = vmatprep.subr.bf16.mxu0 %v14234_v59  ;;  %v1808_v50 = vld [vmem:[%s14754_s7 + $0x2888] sm:$0xff]  ;;  %v14210_v14 = vcombine.high %v1744_v42, %v1748_v61 }
 0x2e5   : > { %v10765_v37 = vpop.f32.mrf.mxu1  ;;  %11058 = vmatprep.subr.bf16.mxu1 %v14298_v24  ;;  %v14274_v26 = vcombine.high %v1808_v50, %v1812_v7  ;;  %v1736_v28 = vld [vmem:[%s14754_s7 + $0x2648] sm:$0xff]  ;;  %v14209_v24 = vcombine.low %v1744_v42, %v1748_v61  ;;  %v14273_v22 = vcombine.low %v1808_v50, %v1812_v7 }
 0x2e6   : > { %v1740_v20 = vld [vmem:[%s14754_s7 + $0x2668] sm:$0xff] }
 0x2e7   : > { %11034 = vmatpush2.bf16.msra.mxu0 %v14233_v30  ;;  %v1800_v59 = vld [vmem:[%s14754_s7 + $0x2848] sm:$0xff]  ;;  %v14202_v23 = vcombine.high %v1736_v28, %v1740_v20 }
 0x2e8   : > { %11059 = vmatpush1.bf16.msra.mxu1 %v14297_v32  ;;  %11035 = vmatprep.subr.bf16.mxu0 %v14226_v36  ;;  %v1804_v21 = vld [vmem:[%s14754_s7 + $0x2868] sm:$0xff]  ;;  %v14201_v36 = vcombine.low %v1736_v28, %v1740_v20 }
 0x2e9   : > { %11060 = vmatprep.subr.bf16.mxu1 %v14290_v39  ;;  %v14266_v2 = vcombine.high %v1800_v59, %v1804_v21  ;;  %v1728_v25 = vld [vmem:[%s14754_s7 + $0x2608] sm:$0xff]  ;;  %v14265_v37 = vcombine.low %v1800_v59, %v1804_v21 }
 0x2ea   : > { %v1732_v29 = vld [vmem:[%s14754_s7 + $0x2628] sm:$0xff] }
 0x2eb   : > { %11036 = vmatpush2.bf16.msra.mxu0 %v14225_v57  ;;  %v1792_v30 = vld [vmem:[%s14754_s7 + $0x2808] sm:$0xff]  ;;  %v14194_v39 = vcombine.high %v1728_v25, %v1732_v29 }
 0x2ec   : > { %11061 = vmatpush1.bf16.msra.mxu1 %v14289_v31  ;;  %11037 = vmatprep.subr.bf16.mxu0 %v14218_v53  ;;  %v1796_v32 = vld [vmem:[%s14754_s7 + $0x2828] sm:$0xff]  ;;  %v14193_v31 = vcombine.low %v1728_v25, %v1732_v29 }
 0x2ed   : > { %11062 = vmatprep.subr.bf16.mxu1 %v14282_v56  ;;  %v14258_v41 = vcombine.high %v1792_v30, %v1796_v32  ;;  %v1976_v10 = vld [vmem:[%s14754_s7 + $0x2dc8] sm:$0xff]  ;;  %v14257_v53 = vcombine.low %v1792_v30, %v1796_v32 }
 0x2ee   : > { %v1912_v48 = vld [vmem:[%s14754_s7 + $0x2bc8] sm:$0xff]  ;;  %v14442_v56 = vcombine.high %v1976_v10, %v1980_v6 }
 0x2ef   : > { %11038 = vmatpush2.bf16.msra.mxu0 %v14217_v8  ;;  %v1916_v57 = vld [vmem:[%s14754_s7 + $0x2be8] sm:$0xff] }
 0x2f0   : > { %11063 = vmatpush1.bf16.msra.mxu1 %v14281_v51  ;;  %11039 = vmatprep.subr.bf16.mxu0 %v14210_v14  ;;  %v14378_v42 = vcombine.high %v1912_v48, %v1916_v57  ;;  %v1968_v61 = vld [vmem:[%s14754_s7 + $0x2d88] sm:$0xff]  ;;  %v14441_v51 = vcombine.low %v1976_v10, %v1980_v6  ;;  %v14377_v14 = vcombine.low %v1912_v48, %v1916_v57 }
 0x2f1   : > { %11064 = vmatprep.subr.bf16.mxu1 %v14274_v26  ;;  %v1972_v50 = vld [vmem:[%s14754_s7 + $0x2da8] sm:$0xff] }
 0x2f2   : > { %v1904_v7 = vld [vmem:[%s14754_s7 + $0x2b88] sm:$0xff]  ;;  %v14434_v26 = vcombine.high %v1968_v61, %v1972_v50 }
 0x2f3   : > { %11040 = vmatpush2.bf16.msra.mxu0 %v14209_v24  ;;  %v1908_v8 = vld [vmem:[%s14754_s7 + $0x2ba8] sm:$0xff] }
 0x2f4   : > { %11065 = vmatpush1.bf16.msra.mxu1 %v14273_v22  ;;  %11041 = vmatprep.subr.bf16.mxu0 %v14202_v23  ;;  %v14370_v28 = vcombine.high %v1904_v7, %v1908_v8  ;;  %v1960_v20 = vld [vmem:[%s14754_s7 + $0x2d48] sm:$0xff]  ;;  %v14369_v29 = vcombine.low %v1904_v7, %v1908_v8 }
 0x2f5   : > { %11066 = vmatprep.subr.bf16.mxu1 %v14266_v2  ;;  %v1964_v59 = vld [vmem:[%s14754_s7 + $0x2d68] sm:$0xff]  ;;  %v14433_v2 = vcombine.low %v1968_v61, %v1972_v50 }
 0x2f6   : > { %v1896_v24 = vld [vmem:[%s14754_s7 + $0x2b48] sm:$0xff]  ;;  %v14426_v30 = vcombine.high %v1960_v20, %v1964_v59  ;;  %v14425_v6 = vcombine.low %v1960_v20, %v1964_v59 }
 0x2f7   : > { %11042 = vmatpush2.bf16.msra.mxu0 %v14201_v36  ;;  %v1900_v22 = vld [vmem:[%s14754_s7 + $0x2b68] sm:$0xff] }
 0x2f8   : > { %11067 = vmatpush1.bf16.msra.mxu1 %v14265_v37  ;;  %11043 = vmatprep.subr.bf16.mxu0 %v14194_v39  ;;  %v14362_v36 = vcombine.high %v1896_v24, %v1900_v22  ;;  %v1952_v37 = vld [vmem:[%s14754_s7 + $0x2d08] sm:$0xff]  ;;  %v14361_v57 = vcombine.low %v1896_v24, %v1900_v22 }
 0x2f9   : > { %11068 = vmatprep.subr.bf16.mxu1 %v14258_v41  ;;  %v1888_v41 = vld [vmem:[%s14754_s7 + $0x2b08] sm:$0xff] }
 0x2fa   : > { %v1892_v10 = vld [vmem:[%s14754_s7 + $0x2b28] sm:$0xff] }
 0x2fb   : > { %11044 = vmatpush2.bf16.msra.mxu0 %v14193_v31  ;;  %v14354_v31 = vcombine.high %v1888_v41, %v1892_v10  ;;  %v1884_v61 = vld [vmem:[%s14754_s7 + $0x2ae8] sm:$0xff]  ;;  %v14353_v7 = vcombine.low %v1888_v41, %v1892_v10 }
 0x2fc   : > { %11069 = vmatpush1.bf16.msra.mxu1 %v14257_v53  ;;  %11095 = vmatprep.subr.bf16.mxu0 %v14442_v56  ;;  %v1944_v53 = vld [vmem:[%s14754_s7 + $0x2cc8] sm:$0xff] }
 0x2fd   : > { %11070 = vmatprep.subr.bf16.mxu1 %v14378_v42  ;;  %v1948_v56 = vld [vmem:[%s14754_s7 + $0x2ce8] sm:$0xff] }
 0x2fe   : > { %v10801_v21 = vpop.f32.mrf.mxu0  ;;  %11046 = vmatmul.mubr.bf16.vlgmr.msra.gmra.mxu0 %v15236_v18  ;;  %v1880_v42 = vld [vmem:[%s14754_s7 + $0x2ac8] sm:$0xff]  ;;  %v14410_v8 = vcombine.high %v1944_v53, %v1948_v56  ;;  %v14409_v59 = vcombine.low %v1944_v53, %v1948_v56 }
 0x2ff   : > { %v15757_v23 = vadd.f32 %v10801_v21, %v15717_v19  ;;  %11096 = vmatpush1.bf16.msra.mxu0 %v14441_v51  ;;  %11127 = vmatprep.mubr.bf16.mxu0 %v15245_v33  ;;  %v1956_v19 = vld [vmem:[%s14754_s7 + $0x2d28] sm:$0xff]  ;;  %v14346_v51 = vcombine.high %v1880_v42, %v1884_v61  ;;  %v14345_v21 = vcombine.low %v1880_v42, %v1884_v61 }
 0x300   : > { %11071 = vmatpush2.bf16.msra.mxu1 %v14377_v14  ;;  %v10803_v25 = vpop.f32.mrf.mxu0  ;;  %11097 = vmatprep.subr.bf16.mxu0 %v14434_v26  ;;  %v14417_v50 = vcombine.low %v1952_v37, %v1956_v19  ;;  %v1936_v14 = vld [vmem:[%s14754_s7 + $0x2c88] sm:$0xff] }
 0x301   : > { %v15761_v32 = vadd.f32 %v10803_v25, %v15723_v63  ;;  %11072 = vmatprep.subr.bf16.mxu1 %v14370_v28  ;;  %v14418_v63 = vcombine.high %v1952_v37, %v1956_v19  ;;  %v1940_v26 = vld [vmem:[%s14754_s7 + $0x2ca8] sm:$0xff] }
 0x302   : > { %v10805_v39 = vpop.f32.mrf.mxu0  ;;  %v1872_v28 = vld [vmem:[%s14754_s7 + $0x2a88] sm:$0xff]  ;;  %v14402_v24 = vcombine.high %v1936_v14, %v1940_v26 }
 0x303   : > { %11098 = vmatpush1.bf16.msra.mxu0 %v14433_v2  ;;  %v1876_v20 = vld [vmem:[%s14754_s7 + $0x2aa8] sm:$0xff] }
 0x304   : > { %11073 = vmatpush2.bf16.msra.mxu1 %v14369_v29  ;;  %v10806_v48 = vpop.f32.mrf.mxu0  ;;  %11099 = vmatprep.subr.bf16.mxu0 %v14426_v30  ;;  %v14338_v22 = vcombine.high %v1872_v28, %v1876_v20  ;;  %v1928_v2 = vld [vmem:[%s14754_s7 + $0x2c48] sm:$0xff]  ;;  %v14337_v37 = vcombine.low %v1872_v28, %v1876_v20 }
 0x305   : > { %11074 = vmatprep.subr.bf16.mxu1 %v14362_v36  ;;  %v1932_v25 = vld [vmem:[%s14754_s7 + $0x2c68] sm:$0xff]  ;;  %v14401_v36 = vcombine.low %v1936_v14, %v1940_v26 }
 0x306   : > { %v1864_v29 = vld [vmem:[%s14754_s7 + $0x2a48] sm:$0xff]  ;;  %v14394_v19 = vcombine.high %v1928_v2, %v1932_v25 }
 0x307   : > { %11100 = vmatpush1.bf16.msra.mxu0 %v14425_v6  ;;  %v1868_v30 = vld [vmem:[%s14754_s7 + $0x2a68] sm:$0xff] }
 0x308   : > { %11075 = vmatpush2.bf16.msra.mxu1 %v14361_v57  ;;  %11101 = vmatprep.subr.bf16.mxu0 %v14418_v63  ;;  %v14330_v39 = vcombine.high %v1864_v29, %v1868_v30  ;;  %v1920_v41 = vld [vmem:[%s14754_s7 + $0x2c08] sm:$0xff]  ;;  %v14393_v57 = vcombine.low %v1928_v2, %v1932_v25  ;;  %v14329_v63 = vcombine.low %v1864_v29, %v1868_v30 }
 0x309   : > { %11076 = vmatprep.subr.bf16.mxu1 %v14354_v31  ;;  %v1924_v10 = vld [vmem:[%s14754_s7 + $0x2c28] sm:$0xff] }
 0x30a   : > { %v1856_v6 = vld [vmem:[%s14754_s7 + $0x2a08] sm:$0xff]  ;;  %v14386_v31 = vcombine.high %v1920_v41, %v1924_v10 }
 0x30b   : > { %11102 = vmatpush1.bf16.msra.mxu0 %v14417_v50  ;;  %v1860_v48 = vld [vmem:[%s14754_s7 + $0x2a28] sm:$0xff] }
 0x30c   : > { %11077 = vmatpush2.bf16.msra.mxu1 %v14353_v7  ;;  %11103 = vmatprep.subr.bf16.mxu0 %v14410_v8  ;;  %v14322_v53 = vcombine.high %v1856_v6, %v1860_v48  ;;  %v2040_v56 = vld [vmem:[%s14754_s7 + $0x2fc8] sm:$0xff]  ;;  %v14385_v7 = vcombine.low %v1920_v41, %v1924_v10  ;;  %v14321_v8 = vcombine.low %v1856_v6, %v1860_v48 }
 0x30d   : > { %11078 = vmatprep.subr.bf16.mxu1 %v14346_v51  ;;  %v2044_v42 = vld [vmem:[%s14754_s7 + $0x2fe8] sm:$0xff] }
 0x30e   : > { %v2104_v61 = vld [vmem:[%s14754_s7 + $0x31c8] sm:$0xff]  ;;  %v14506_v51 = vcombine.high %v2040_v56, %v2044_v42 }
 0x30f   : > { %11104 = vmatpush1.bf16.msra.mxu0 %v14409_v59  ;;  %v2108_v50 = vld [vmem:[%s14754_s7 + $0x31e8] sm:$0xff] }
 0x310   : > { %11079 = vmatpush2.bf16.msra.mxu1 %v14345_v21  ;;  %11105 = vmatprep.subr.bf16.mxu0 %v14402_v24  ;;  %v14570_v14 = vcombine.high %v2104_v61, %v2108_v50  ;;  %v2032_v26 = vld [vmem:[%s14754_s7 + $0x2f88] sm:$0xff]  ;;  %v14505_v21 = vcombine.low %v2040_v56, %v2044_v42  ;;  %v14569_v24 = vcombine.low %v2104_v61, %v2108_v50 }
 0x311   : > { %11080 = vmatprep.subr.bf16.mxu1 %v14338_v22  ;;  %v2036_v28 = vld [vmem:[%s14754_s7 + $0x2fa8] sm:$0xff] }
 0x312   : > { %v2096_v20 = vld [vmem:[%s14754_s7 + $0x3188] sm:$0xff]  ;;  %v14498_v22 = vcombine.high %v2032_v26, %v2036_v28 }
 0x313   : > { %11106 = vmatpush1.bf16.msra.mxu0 %v14401_v36  ;;  %v2100_v59 = vld [vmem:[%s14754_s7 + $0x31a8] sm:$0xff] }
 0x314   : > { %11081 = vmatpush2.bf16.msra.mxu1 %v14337_v37  ;;  %11107 = vmatprep.subr.bf16.mxu0 %v14394_v19  ;;  %v14562_v2 = vcombine.high %v2096_v20, %v2100_v59  ;;  %v2024_v25 = vld [vmem:[%s14754_s7 + $0x2f48] sm:$0xff]  ;;  %v14497_v19 = vcombine.low %v2032_v26, %v2036_v28  ;;  %v14561_v41 = vcombine.low %v2096_v20, %v2100_v59 }
 0x315   : > { %11082 = vmatprep.subr.bf16.mxu1 %v14330_v39  ;;  %v2028_v29 = vld [vmem:[%s14754_s7 + $0x2f68] sm:$0xff] }
 0x316   : > { %v2088_v30 = vld [vmem:[%s14754_s7 + $0x3148] sm:$0xff]  ;;  %v14490_v10 = vcombine.high %v2024_v25, %v2028_v29  ;;  %v14489_v42 = vcombine.low %v2024_v25, %v2028_v29 }
 0x317   : > { %11108 = vmatpush1.bf16.msra.mxu0 %v14393_v57  ;;  %v2092_v36 = vld [vmem:[%s14754_s7 + $0x3168] sm:$0xff] }
 0x318   : > { %11083 = vmatpush2.bf16.msra.mxu1 %v14329_v63  ;;  %11109 = vmatprep.subr.bf16.mxu0 %v14386_v31  ;;  %v14554_v48 = vcombine.high %v2088_v30, %v2092_v36  ;;  %v2016_v57 = vld [vmem:[%s14754_s7 + $0x2f08] sm:$0xff]  ;;  %v14553_v61 = vcombine.low %v2088_v30, %v2092_v36 }
 0x319   : > { %11084 = vmatprep.subr.bf16.mxu1 %v14322_v53  ;;  %v2020_v63 = vld [vmem:[%s14754_s7 + $0x2f28] sm:$0xff] }
 0x31a   : > { %v2084_v53 = vld [vmem:[%s14754_s7 + $0x3128] sm:$0xff]  ;;  %v14482_v50 = vcombine.high %v2016_v57, %v2020_v63  ;;  %v14481_v28 = vcombine.low %v2016_v57, %v2020_v63 }
 0x31b   : > { %11110 = vmatpush1.bf16.msra.mxu0 %v14385_v7  ;;  %v2076_v26 = vld [vmem:[%s14754_s7 + $0x30e8] sm:$0xff] }
 0x31c   : > { %11085 = vmatpush2.bf16.msra.mxu1 %v14321_v8  ;;  %11111 = vmatprep.subr.bf16.mxu0 %v14506_v51  ;;  %v2008_v51 = vld [vmem:[%s14754_s7 + $0x2ec8] sm:$0xff] }
 0x31d   : > { %11136 = vmatprep.subr.bf16.mxu1 %v14570_v14  ;;  %v2072_v14 = vld [vmem:[%s14754_s7 + $0x30c8] sm:$0xff] }
 0x31e   : > { %v2068_v25 = vld [vmem:[%s14754_s7 + $0x30a8] sm:$0xff]  ;;  %v14537_v30 = vcombine.low %v2072_v14, %v2076_v26 }
 0x31f   : > { %v10842_v37 = vpop.f32.mrf.mxu1  ;;  %11087 = vmatmul.mubr.bf16.vlgmr.msra.gmra.mxu1 %v15316_v4  ;;  %11112 = vmatpush2.bf16.msra.mxu0 %v14505_v21  ;;  %v14538_v21 = vcombine.high %v2072_v14, %v2076_v26  ;;  %v573_v14 = vld [vmem:[%s14754_s7 + $0x1f0] sm:$0xff] }
 0x320   : > { %v15797_v39 = vadd.f32 %v10842_v37, %v15757_v23  ;;  %11137 = vmatpush1.bf16.msra.mxu1 %v14569_v24  ;;  %11113 = vmatprep.subr.bf16.mxu0 %v14498_v22  ;;  %v2080_v23 = vld [vmem:[%s14754_s7 + $0x3108] sm:$0xff]  ;;  %v697_v26 = vld [vmem:[%s14754_s7 + $0x5d0] sm:$0xff] }
 0x321   : > { %v10844_v6 = vpop.f32.mrf.mxu1  ;;  %11138 = vmatprep.subr.bf16.mxu1 %v14562_v2  ;;  %11168 = vmatprep.mubr.bf16.mxu1 %v14691_v0  ;;  %v14546_v8 = vcombine.high %v2080_v23, %v2084_v53  ;;  %v14545_v20 = vcombine.low %v2080_v23, %v2084_v53  ;;  %v2000_v24 = vld [vmem:[%s14754_s7 + $0x2e88] sm:$0xff] }
 0x322   : > { %v15803_v31 = vadd.f32 %v10844_v6, %v15761_v32  ;;  %v2012_v32 = vld [vmem:[%s14754_s7 + $0x2ee8] sm:$0xff] }
 0x323   : > { %v10846_v56 = vpop.f32.mrf.mxu1  ;;  %11114 = vmatpush2.bf16.msra.mxu0 %v14497_v19  ;;  %v14474_v59 = vcombine.high %v2008_v51, %v2012_v32  ;;  %v2004_v22 = vld [vmem:[%s14754_s7 + $0x2ea8] sm:$0xff]  ;;  %v14473_v29 = vcombine.low %v2008_v51, %v2012_v32  ;;  %v569_v32 = vld [vmem:[%s14754_s7 + $0x1d0] sm:$0xff] }
 0x324   : > { %11139 = vmatpush1.bf16.msra.mxu1 %v14561_v41  ;;  %11115 = vmatprep.subr.bf16.mxu0 %v14490_v10  ;;  %v2064_v2 = vld [vmem:[%s14754_s7 + $0x3088] sm:$0xff]  ;;  %v14466_v36 = vcombine.high %v2000_v24, %v2004_v22 }
 0x325   : > { %v10847_v7 = vpop.f32.mrf.mxu1  ;;  %11140 = vmatprep.subr.bf16.mxu1 %v14554_v48  ;;  %v14530_v37 = vcombine.high %v2064_v2, %v2068_v25  ;;  %v1992_v19 = vld [vmem:[%s14754_s7 + $0x2e48] sm:$0xff]  ;;  %v14465_v48 = vcombine.low %v2000_v24, %v2004_v22  ;;  %v14529_v57 = vcombine.low %v2064_v2, %v2068_v25  ;;  %v561_v22 = vld [vmem:[%s14754_s7 + $0x190] sm:$0xff] }
 0x326   : > { %v1996_v41 = vld [vmem:[%s14754_s7 + $0x2e68] sm:$0xff]  ;;  %v565_v2 = vld [vmem:[%s14754_s7 + $0x1b0] sm:$0xff] }
 0x327   : > { %11116 = vmatpush2.bf16.msra.mxu0 %v14489_v42  ;;  %v2056_v10 = vld [vmem:[%s14754_s7 + $0x3048] sm:$0xff]  ;;  %v14458_v63 = vcombine.high %v1992_v19, %v1996_v41  ;;  %v689_v25 = vld [vmem:[%s14754_s7 + $0x590] sm:$0xff] }
 0x328   : > { %11141 = vmatpush1.bf16.msra.mxu1 %v14553_v61  ;;  %11117 = vmatprep.subr.bf16.mxu0 %v14482_v50  ;;  %v2060_v6 = vld [vmem:[%s14754_s7 + $0x3068] sm:$0xff]  ;;  %v14457_v50 = vcombine.low %v1992_v19, %v1996_v41  ;;  %v553_v41 = vld [vmem:[%s14754_s7 + $0x150] sm:$0xff] }
 0x329   : > { %11142 = vmatprep.subr.bf16.mxu1 %v14546_v8  ;;  %v14522_v23 = vcombine.high %v2056_v10, %v2060_v6  ;;  %v1984_v53 = vld [vmem:[%s14754_s7 + $0x2e08] sm:$0xff]  ;;  %v14521_v7 = vcombine.low %v2056_v10, %v2060_v6  ;;  %v557_v10 = vld [vmem:[%s14754_s7 + $0x170] sm:$0xff] }
 0x32a   : > { %v1988_v56 = vld [vmem:[%s14754_s7 + $0x2e28] sm:$0xff] }
 0x32b   : > { %11118 = vmatpush2.bf16.msra.mxu0 %v14481_v28  ;;  %v2048_v42 = vld [vmem:[%s14754_s7 + $0x3008] sm:$0xff]  ;;  %v14450_v8 = vcombine.high %v1984_v53, %v1988_v56  ;;  %v701_v28 = vld [vmem:[%s14754_s7 + $0x5f0] sm:$0xff] }
 0x32c   : > { %11143 = vmatpush1.bf16.msra.mxu1 %v14545_v20  ;;  %11119 = vmatprep.subr.bf16.mxu0 %v14474_v59  ;;  %v2052_v61 = vld [vmem:[%s14754_s7 + $0x3028] sm:$0xff]  ;;  %v14449_v20 = vcombine.low %v1984_v53, %v1988_v56  ;;  %v13164_v24 = vcombine.high %v697_v26, %v701_v28 }
 0x32d   : > { %11144 = vmatprep.subr.bf16.mxu1 %v14538_v21  ;;  %v14514_v51 = vcombine.high %v2048_v42, %v2052_v61  ;;  %v14513_v59 = vcombine.low %v2048_v42, %v2052_v61  ;;  %v13036_v21 = vcombine.high %v569_v32, %v573_v14  ;;  %v13020_v42 = vcombine.high %v553_v41, %v557_v10 }
 0x32f   : > { %11120 = vmatpush2.bf16.msra.mxu0 %v14473_v29  ;;  %v693_v29 = vld [vmem:[%s14754_s7 + $0x5b0] sm:$0xff] }
 0x330   : > { %11145 = vmatpush1.bf16.msra.mxu1 %v14537_v30  ;;  %11121 = vmatprep.subr.bf16.mxu0 %v14466_v36  ;;  %v13035_v30 = vcombine.low %v569_v32, %v573_v14  ;;  %v13163_v36 = vcombine.low %v697_v26, %v701_v28  ;;  %v13156_v19 = vcombine.high %v689_v25, %v693_v29  ;;  %v677_v32 = vld [vmem:[%s14754_s7 + $0x530] sm:$0xff] }
 0x331   : > { %11146 = vmatprep.subr.bf16.mxu1 %v14530_v37  ;;  %v13028_v37 = vcombine.high %v561_v22, %v565_v2  ;;  %v13155_v56 = vcombine.low %v689_v25, %v693_v29  ;;  %v13019_v14 = vcombine.low %v553_v41, %v557_v10  ;;  %v661_v41 = vld [vmem:[%s14754_s7 + $0x4b0] sm:$0xff] }
 0x333   : > { %11122 = vmatpush2.bf16.msra.mxu0 %v14465_v48  ;;  %v681_v48 = vld [vmem:[%s14754_s7 + $0x550] sm:$0xff] }
 0x334   : > { %11147 = vmatpush1.bf16.msra.mxu1 %v14529_v57  ;;  %11123 = vmatprep.subr.bf16.mxu0 %v14458_v63  ;;  %v685_v57 = vld [vmem:[%s14754_s7 + $0x570] sm:$0xff] }
 0x335   : > { %11148 = vmatprep.subr.bf16.mxu1 %v14522_v23  ;;  %v13027_v23 = vcombine.low %v561_v22, %v565_v2  ;;  %v13147_v26 = vcombine.low %v681_v48, %v685_v57  ;;  %v669_v22 = vld [vmem:[%s14754_s7 + $0x4f0] sm:$0xff] }
 0x337   : > { %11124 = vmatpush2.bf16.msra.mxu0 %v14457_v50  ;;  %v13148_v50 = vcombine.high %v681_v48, %v685_v57 }
 0x338   : > { %11149 = vmatpush1.bf16.msra.mxu1 %v14521_v7  ;;  %11125 = vmatprep.subr.bf16.mxu0 %v14450_v8  ;;  %v545_v7 = vld [vmem:[%s14754_s7 + $0x110] sm:$0xff] }
 0x339   : > { %11150 = vmatprep.subr.bf16.mxu1 %v14514_v51  ;;  %v673_v51 = vld [vmem:[%s14754_s7 + $0x510] sm:$0xff] }
 0x33a   : > { %v13139_v25 = vcombine.low %v673_v51, %v677_v32 }
 0x33b   : > { %11126 = vmatpush2.bf16.msra.mxu0 %v14449_v20  ;;  %v13140_v20 = vcombine.high %v673_v51, %v677_v32  ;;  %v513_v51 = vld [vmem:[%s14754_s7 + $0x10] sm:$0xff] }
 0x33c   : > { %11151 = vmatpush1.bf16.msra.mxu1 %v14513_v59  ;;  %11177 = vmatprep.subr.bf16.mxu0 %v13036_v21  ;;  %v537_v59 = vld [vmem:[%s14754_s7 + $0xd0] sm:$0xff] }
 0x33d   : > { %11218 = vmatprep.subr.bf16.mxu1 %v13164_v24  ;;  %v541_v21 = vld [vmem:[%s14754_s7 + $0xf0] sm:$0xff] }
 0x33e   : > { %v10883_v6 = vpop.f32.mrf.mxu0  ;;  %11128 = vmatmul.mubr.bf16.vlgmr.msra.gmra.mxu0 %v15322_v9  ;;  %v665_v24 = vld [vmem:[%s14754_s7 + $0x4d0] sm:$0xff]  ;;  %v13004_v29 = vcombine.high %v537_v59, %v541_v21  ;;  %v13003_v10 = vcombine.low %v537_v59, %v541_v21 }
 0x33f   : > { %v15837_v63 = vadd.f32 %v10883_v6, %v15797_v39  ;;  %11169 = vmatmul.mubr.bf16.vlgmr.msra.gmra.mxu1 %v15365_v16  ;;  %11178 = vmatpush1.bf16.msra.mxu0 %v13035_v30  ;;  %v549_v39 = vld [vmem:[%s14754_s7 + $0x130] sm:$0xff]  ;;  %v13132_v30 = vcombine.high %v665_v24, %v669_v22  ;;  %v13131_v6 = vcombine.low %v665_v24, %v669_v22 }
 0x340   : > { %11219 = vmatpush1.bf16.msra.mxu1 %v13163_v36  ;;  %v10885_v53 = vpop.f32.mrf.mxu0  ;;  %11179 = vmatprep.subr.bf16.mxu0 %v13028_v37  ;;  %v13012_v28 = vcombine.high %v545_v7, %v549_v39  ;;  %v13011_v2 = vcombine.low %v545_v7, %v549_v39  ;;  %v529_v36 = vld [vmem:[%s14754_s7 + $0x90] sm:$0xff] }
 0x341   : > { %v15841_v61 = vadd.f32 %v10885_v53, %v15803_v31  ;;  %11220 = vmatprep.subr.bf16.mxu1 %v13156_v19  ;;  %11209 = vmatprep.mubr.bf16.mxu0 %v14805_v12  ;;  %v533_v37 = vld [vmem:[%s14754_s7 + $0xb0] sm:$0xff] }
 0x342   : > { %v10887_v8 = vpop.f32.mrf.mxu0  ;;  %11250 = vmatprep.mubr.bf16.mxu1 %v14812_v17  ;;  %v657_v19 = vld [vmem:[%s14754_s7 + $0x490] sm:$0xff]  ;;  %v12996_v48 = vcombine.high %v529_v36, %v533_v37 }
 0x343   : > { %11180 = vmatpush1.bf16.msra.mxu0 %v13027_v23  ;;  %v13124_v57 = vcombine.high %v657_v19, %v661_v41  ;;  %v521_v23 = vld [vmem:[%s14754_s7 + $0x50] sm:$0xff]  ;;  %v13123_v7 = vcombine.low %v657_v19, %v661_v41 }
 0x344   : > { %11221 = vmatpush1.bf16.msra.mxu1 %v13155_v56  ;;  %v10888_v31 = vpop.f32.mrf.mxu0  ;;  %11181 = vmatprep.subr.bf16.mxu0 %v13020_v42  ;;  %v525_v53 = vld [vmem:[%s14754_s7 + $0x70] sm:$0xff] }
 0x345   : > { %11222 = vmatprep.subr.bf16.mxu1 %v13148_v50  ;;  %v649_v56 = vld [vmem:[%s14754_s7 + $0x450] sm:$0xff]  ;;  %v12995_v50 = vcombine.low %v529_v36, %v533_v37  ;;  %v12988_v39 = vcombine.high %v521_v23, %v525_v53 }
 0x346   : > { %v653_v42 = vld [vmem:[%s14754_s7 + $0x470] sm:$0xff] }
 0x347   : > { %11182 = vmatpush1.bf16.msra.mxu0 %v13019_v14  ;;  %v13116_v8 = vcombine.high %v649_v56, %v653_v42  ;;  %v517_v32 = vld [vmem:[%s14754_s7 + $0x30] sm:$0xff] }
 0x348   : > { %11223 = vmatpush1.bf16.msra.mxu1 %v13147_v26  ;;  %11183 = vmatprep.subr.bf16.mxu0 %v13012_v28  ;;  %v641_v14 = vld [vmem:[%s14754_s7 + $0x410] sm:$0xff]  ;;  %v12987_v26 = vcombine.low %v521_v23, %v525_v53  ;;  %v13115_v28 = vcombine.low %v649_v56, %v653_v42 }
 0x349   : > { %11224 = vmatprep.subr.bf16.mxu1 %v13140_v20  ;;  %v645_v31 = vld [vmem:[%s14754_s7 + $0x430] sm:$0xff]  ;;  %v12980_v20 = vcombine.high %v513_v51, %v517_v32 }
 0x34a   : > { %v13108_v59 = vcombine.high %v641_v14, %v645_v31  ;;  %v633_v21 = vld [vmem:[%s14754_s7 + $0x3d0] sm:$0xff] }
 0x34b   : > { %11184 = vmatpush1.bf16.msra.mxu0 %v13011_v2  ;;  %v637_v24 = vld [vmem:[%s14754_s7 + $0x3f0] sm:$0xff] }
 0x34c   : > { %11225 = vmatpush1.bf16.msra.mxu1 %v13139_v25  ;;  %11185 = vmatprep.subr.bf16.mxu0 %v13004_v29  ;;  %v761_v22 = vld [vmem:[%s14754_s7 + $0x7d0] sm:$0xff]  ;;  %v12979_v25 = vcombine.low %v513_v51, %v517_v32  ;;  %v13107_v29 = vcombine.low %v641_v14, %v645_v31 }
 0x34d   : > { %11226 = vmatprep.subr.bf16.mxu1 %v13132_v30  ;;  %v765_v2 = vld [vmem:[%s14754_s7 + $0x7f0] sm:$0xff]  ;;  %v13100_v30 = vcombine.high %v633_v21, %v637_v24 }
 0x34e   : > { %v13228_v36 = vcombine.high %v761_v22, %v765_v2  ;;  %v625_v37 = vld [vmem:[%s14754_s7 + $0x390] sm:$0xff] }
 0x34f   : > { %11186 = vmatpush1.bf16.msra.mxu0 %v13003_v10  ;;  %v629_v19 = vld [vmem:[%s14754_s7 + $0x3b0] sm:$0xff] }
 0x350   : > { %11227 = vmatpush1.bf16.msra.mxu1 %v13131_v6  ;;  %11187 = vmatprep.subr.bf16.mxu0 %v12996_v48  ;;  %v753_v41 = vld [vmem:[%s14754_s7 + $0x790] sm:$0xff]  ;;  %v13099_v6 = vcombine.low %v633_v21, %v637_v24  ;;  %v13227_v48 = vcombine.low %v761_v22, %v765_v2 }
 0x351   : > { %11228 = vmatprep.subr.bf16.mxu1 %v13124_v57  ;;  %v757_v10 = vld [vmem:[%s14754_s7 + $0x7b0] sm:$0xff]  ;;  %v13092_v57 = vcombine.high %v625_v37, %v629_v19 }
 0x352   : > { %v13220_v23 = vcombine.high %v753_v41, %v757_v10  ;;  %v617_v53 = vld [vmem:[%s14754_s7 + $0x350] sm:$0xff]  ;;  %v13219_v51 = vcombine.low %v753_v41, %v757_v10 }
 0x353   : > { %11188 = vmatpush1.bf16.msra.mxu0 %v12995_v50  ;;  %v621_v56 = vld [vmem:[%s14754_s7 + $0x370] sm:$0xff] }
 0x354   : > { %11229 = vmatpush1.bf16.msra.mxu1 %v13123_v7  ;;  %11189 = vmatprep.subr.bf16.mxu0 %v12988_v39  ;;  %v745_v42 = vld [vmem:[%s14754_s7 + $0x750] sm:$0xff]  ;;  %v13091_v39 = vcombine.low %v625_v37, %v629_v19  ;;  %v13084_v32 = vcombine.high %v617_v53, %v621_v56  ;;  %v13083_v24 = vcombine.low %v617_v53, %v621_v56 }
 0x355   : > { %11230 = vmatprep.subr.bf16.mxu1 %v13116_v8  ;;  %v749_v50 = vld [vmem:[%s14754_s7 + $0x770] sm:$0xff] }
 0x356   : > { %v13212_v31 = vcombine.high %v745_v42, %v749_v50  ;;  %v741_v21 = vld [vmem:[%s14754_s7 + $0x730] sm:$0xff]  ;;  %v13211_v22 = vcombine.low %v745_v42, %v749_v50 }
 0x357   : > { %11190 = vmatpush1.bf16.msra.mxu0 %v12987_v26  ;;  %v609_v26 = vld [vmem:[%s14754_s7 + $0x310] sm:$0xff] }
 0x358   : > { %11231 = vmatpush1.bf16.msra.mxu1 %v13115_v28  ;;  %11191 = vmatprep.subr.bf16.mxu0 %v12980_v20  ;;  %v613_v28 = vld [vmem:[%s14754_s7 + $0x330] sm:$0xff] }
 0x359   : > { %11232 = vmatprep.subr.bf16.mxu1 %v13108_v59  ;;  %v737_v59 = vld [vmem:[%s14754_s7 + $0x710] sm:$0xff]  ;;  %v13076_v2 = vcombine.high %v609_v26, %v613_v28  ;;  %v13075_v19 = vcombine.low %v609_v26, %v613_v28 }
 0x35a   : > { %v733_v37 = vld [vmem:[%s14754_s7 + $0x6f0] sm:$0xff]  ;;  %v13203_v41 = vcombine.low %v737_v59, %v741_v21 }
 0x35b   : > { %11192 = vmatpush1.bf16.msra.mxu0 %v12979_v25  ;;  %v725_v53 = vld [vmem:[%s14754_s7 + $0x6b0] sm:$0xff] }
 0x35c   : > { %11233 = vmatpush1.bf16.msra.mxu1 %v13107_v29  ;;  %11193 = vmatprep.subr.bf16.mxu0 %v13100_v30  ;;  %v13204_v29 = vcombine.high %v737_v59, %v741_v21  ;;  %v601_v30 = vld [vmem:[%s14754_s7 + $0x2d0] sm:$0xff] }
 0x35d   : > { %11234 = vmatprep.subr.bf16.mxu1 %v13228_v36  ;;  %v729_v36 = vld [vmem:[%s14754_s7 + $0x6d0] sm:$0xff] }
 0x35e   : > { %v13195_v42 = vcombine.low %v729_v36, %v733_v37  ;;  %v577_v21 = vld [vmem:[%s14754_s7 + $0x210] sm:$0xff] }
 0x35f   : > { %v10924_v7 = vpop.f32.mrf.mxu1  ;;  %11194 = vmatpush2.bf16.msra.mxu0 %v13099_v6  ;;  %v13196_v6 = vcombine.high %v729_v36, %v733_v37  ;;  %v829_v36 = vld [vmem:[%s14754_s7 + $0x9f0] sm:$0xff] }
 0x360   : > { %v15878_v8 = vadd.f32 %v10924_v7, %v15837_v63  ;;  %11235 = vmatpush2.bf16.msra.mxu1 %v13227_v48  ;;  %11195 = vmatprep.subr.bf16.mxu0 %v13092_v57  ;;  %v593_v48 = vld [vmem:[%s14754_s7 + $0x290] sm:$0xff] }
 0x361   : > { %v10926_v14 = vpop.f32.mrf.mxu1  ;;  %11236 = vmatprep.subr.bf16.mxu1 %v13220_v23  ;;  %v597_v57 = vld [vmem:[%s14754_s7 + $0x2b0] sm:$0xff] }
 0x362   : > { %v15883_v20 = vadd.f32 %v10926_v14, %v15841_v61  ;;  %v605_v61 = vld [vmem:[%s14754_s7 + $0x2f0] sm:$0xff]  ;;  %v13060_v50 = vcombine.high %v593_v48, %v597_v57 }
 0x363   : > { %v10928_v63 = vpop.f32.mrf.mxu1  ;;  %11196 = vmatpush2.bf16.msra.mxu0 %v13091_v39  ;;  %v13068_v10 = vcombine.high %v601_v30, %v605_v61  ;;  %v721_v23 = vld [vmem:[%s14754_s7 + $0x690] sm:$0xff]  ;;  %v13067_v56 = vcombine.low %v601_v30, %v605_v61 }
 0x364   : > { %11237 = vmatpush2.bf16.msra.mxu1 %v13219_v51  ;;  %11197 = vmatprep.subr.bf16.mxu0 %v13084_v32  ;;  %v13188_v7 = vcombine.high %v721_v23, %v725_v53  ;;  %v585_v39 = vld [vmem:[%s14754_s7 + $0x250] sm:$0xff]  ;;  %v13187_v26 = vcombine.low %v721_v23, %v725_v53 }
 0x365   : > { %v10929_v25 = vpop.f32.mrf.mxu1  ;;  %11238 = vmatprep.subr.bf16.mxu1 %v13212_v31  ;;  %v589_v51 = vld [vmem:[%s14754_s7 + $0x270] sm:$0xff]  ;;  %v13059_v31 = vcombine.low %v593_v48, %v597_v57 }
 0x366   : > { %v713_v32 = vld [vmem:[%s14754_s7 + $0x650] sm:$0xff]  ;;  %v13052_v28 = vcombine.high %v585_v39, %v589_v51 }
 0x367   : > { %11198 = vmatpush2.bf16.msra.mxu0 %v13083_v24  ;;  %v717_v14 = vld [vmem:[%s14754_s7 + $0x670] sm:$0xff] }
 0x368   : > { %11239 = vmatpush2.bf16.msra.mxu1 %v13211_v22  ;;  %11199 = vmatprep.subr.bf16.mxu0 %v13076_v2  ;;  %v13180_v59 = vcombine.high %v713_v32, %v717_v14  ;;  %v581_v63 = vld [vmem:[%s14754_s7 + $0x230] sm:$0xff]  ;;  %v13051_v2 = vcombine.low %v585_v39, %v589_v51  ;;  %v13179_v25 = vcombine.low %v713_v32, %v717_v14 }
 0x369   : > { %11240 = vmatprep.subr.bf16.mxu1 %v13204_v29  ;;  %v705_v24 = vld [vmem:[%s14754_s7 + $0x610] sm:$0xff]  ;;  %v13044_v29 = vcombine.high %v577_v21, %v581_v63 }
 0x36a   : > { %v709_v22 = vld [vmem:[%s14754_s7 + $0x630] sm:$0xff] }
 0x36b   : > { %11200 = vmatpush2.bf16.msra.mxu0 %v13075_v19  ;;  %v13172_v30 = vcombine.high %v705_v24, %v709_v22  ;;  %v825_v61 = vld [vmem:[%s14754_s7 + $0x9d0] sm:$0xff] }
 0x36c   : > { %11241 = vmatpush2.bf16.msra.mxu1 %v13203_v41  ;;  %11201 = vmatprep.subr.bf16.mxu0 %v13068_v10  ;;  %v953_v37 = vld [vmem:[%s14754_s7 + $0xdd0] sm:$0xff]  ;;  %v13043_v41 = vcombine.low %v577_v21, %v581_v63  ;;  %v13171_v10 = vcombine.low %v705_v24, %v709_v22 }
 0x36d   : > { %11242 = vmatprep.subr.bf16.mxu1 %v13196_v6  ;;  %v957_v19 = vld [vmem:[%s14754_s7 + $0xdf0] sm:$0xff]  ;;  %v13292_v6 = vcombine.high %v825_v61, %v829_v36 }
 0x36e   : > { %v13420_v48 = vcombine.high %v953_v37, %v957_v19  ;;  %v817_v57 = vld [vmem:[%s14754_s7 + $0x990] sm:$0xff] }
 0x36f   : > { %11202 = vmatpush2.bf16.msra.mxu0 %v13067_v56  ;;  %v821_v23 = vld [vmem:[%s14754_s7 + $0x9b0] sm:$0xff] }
 0x370   : > { %11243 = vmatpush2.bf16.msra.mxu1 %v13195_v42  ;;  %11203 = vmatprep.subr.bf16.mxu0 %v13060_v50  ;;  %v945_v53 = vld [vmem:[%s14754_s7 + $0xd90] sm:$0xff]  ;;  %v13291_v42 = vcombine.low %v825_v61, %v829_v36  ;;  %v13419_v50 = vcombine.low %v953_v37, %v957_v19 }
 0x371   : > { %11244 = vmatprep.subr.bf16.mxu1 %v13188_v7  ;;  %v949_v56 = vld [vmem:[%s14754_s7 + $0xdb0] sm:$0xff]  ;;  %v13284_v7 = vcombine.high %v817_v57, %v821_v23 }
 0x372   : > { %v13412_v39 = vcombine.high %v945_v53, %v949_v56  ;;  %v809_v51 = vld [vmem:[%s14754_s7 + $0x950] sm:$0xff]  ;;  %v13411_v63 = vcombine.low %v945_v53, %v949_v56 }
 0x373   : > { %11204 = vmatpush2.bf16.msra.mxu0 %v13059_v31  ;;  %v813_v32 = vld [vmem:[%s14754_s7 + $0x970] sm:$0xff] }
 0x374   : > { %11245 = vmatpush2.bf16.msra.mxu1 %v13187_v26  ;;  %11205 = vmatprep.subr.bf16.mxu0 %v13052_v28  ;;  %v937_v31 = vld [vmem:[%s14754_s7 + $0xd50] sm:$0xff]  ;;  %v13276_v24 = vcombine.high %v809_v51, %v813_v32  ;;  %v13275_v36 = vcombine.low %v809_v51, %v813_v32 }
 0x375   : > { %11246 = vmatprep.subr.bf16.mxu1 %v13180_v59  ;;  %v941_v26 = vld [vmem:[%s14754_s7 + $0xd70] sm:$0xff]  ;;  %v13283_v59 = vcombine.low %v817_v57, %v821_v23 }
 0x376   : > { %v933_v61 = vld [vmem:[%s14754_s7 + $0xd30] sm:$0xff]  ;;  %v13403_v37 = vcombine.low %v937_v31, %v941_v26 }
 0x377   : > { %11206 = vmatpush2.bf16.msra.mxu0 %v13051_v2  ;;  %v13404_v2 = vcombine.high %v937_v31, %v941_v26  ;;  %v925_v57 = vld [vmem:[%s14754_s7 + $0xcf0] sm:$0xff] }
 0x378   : > { %11247 = vmatpush2.bf16.msra.mxu1 %v13179_v25  ;;  %11207 = vmatprep.subr.bf16.mxu0 %v13044_v29  ;;  %v801_v25 = vld [vmem:[%s14754_s7 + $0x910] sm:$0xff] }
 0x379   : > { %11248 = vmatprep.subr.bf16.mxu1 %v13172_v30  ;;  %v929_v30 = vld [vmem:[%s14754_s7 + $0xd10] sm:$0xff] }
 0x37a   : > { %v13395_v53 = vcombine.low %v929_v30, %v933_v61  ;;  %v917_v51 = vld [vmem:[%s14754_s7 + $0xcb0] sm:$0xff] }
 0x37b   : > { %11208 = vmatpush2.bf16.msra.mxu0 %v13043_v41  ;;  %v13396_v41 = vcombine.high %v929_v30, %v933_v61  ;;  %v769_v30 = vld [vmem:[%s14754_s7 + $0x810] sm:$0xff] }
 0x37c   : > { %11249 = vmatpush2.bf16.msra.mxu1 %v13171_v10  ;;  %11259 = vmatprep.subr.bf16.mxu0 %v13292_v6  ;;  %v793_v10 = vld [vmem:[%s14754_s7 + $0x8d0] sm:$0xff] }
 0x37d   : > { %11300 = vmatprep.subr.bf16.mxu1 %v13420_v48  ;;  %v797_v6 = vld [vmem:[%s14754_s7 + $0x8f0] sm:$0xff] }
 0x37e   : > { %v10965_v14 = vpop.f32.mrf.mxu0  ;;  %11210 = vmatmul.mubr.bf16.vlgmr.msra.gmra.mxu0 %v14860_v34  ;;  %v921_v48 = vld [vmem:[%s14754_s7 + $0xcd0] sm:$0xff]  ;;  %v13260_v56 = vcombine.high %v793_v10, %v797_v6  ;;  %v13259_v32 = vcombine.low %v793_v10, %v797_v6 }
 0x37f   : > { %v15917_v28 = vadd.f32 %v10965_v14, %v15878_v8  ;;  %11251 = vmatmul.mubr.bf16.vlgmr.msra.gmra.mxu1 %v14868_v38  ;;  %11260 = vmatpush1.bf16.msra.mxu0 %v13291_v42  ;;  %v805_v8 = vld [vmem:[%s14754_s7 + $0x930] sm:$0xff]  ;;  %v13388_v42 = vcombine.high %v921_v48, %v925_v57  ;;  %v13387_v14 = vcombine.low %v921_v48, %v925_v57 }
 0x380   : > { %11301 = vmatpush1.bf16.msra.mxu1 %v13419_v50  ;;  %v10967_v21 = vpop.f32.mrf.mxu0  ;;  %11261 = vmatprep.subr.bf16.mxu0 %v13284_v7  ;;  %v13268_v19 = vcombine.high %v801_v25, %v805_v8  ;;  %v13267_v23 = vcombine.low %v801_v25, %v805_v8  ;;  %v785_v50 = vld [vmem:[%s14754_s7 + $0x890] sm:$0xff] }
 0x381   : > { %v15921_v22 = vadd.f32 %v10967_v21, %v15883_v20  ;;  %11302 = vmatprep.subr.bf16.mxu1 %v13412_v39  ;;  %11291 = vmatprep.mubr.bf16.mxu0 %v14872_v44  ;;  %v789_v7 = vld [vmem:[%s14754_s7 + $0x8b0] sm:$0xff] }
 0x382   : > { %v10969_v29 = vpop.f32.mrf.mxu0  ;;  %11332 = vmatprep.mubr.bf16.mxu1 %v14877_v47  ;;  %v913_v39 = vld [vmem:[%s14754_s7 + $0xc90] sm:$0xff]  ;;  %v13252_v31 = vcombine.high %v785_v50, %v789_v7 }
 0x383   : > { %11262 = vmatpush1.bf16.msra.mxu0 %v13283_v59  ;;  %v13380_v26 = vcombine.high %v913_v39, %v917_v51  ;;  %v777_v59 = vld [vmem:[%s14754_s7 + $0x850] sm:$0xff]  ;;  %v13379_v25 = vcombine.low %v913_v39, %v917_v51 }
 0x384   : > { %11303 = vmatpush1.bf16.msra.mxu1 %v13411_v63  ;;  %v10970_v20 = vpop.f32.mrf.mxu0  ;;  %11263 = vmatprep.subr.bf16.mxu0 %v13276_v24  ;;  %v781_v21 = vld [vmem:[%s14754_s7 + $0x870] sm:$0xff] }
 0x385   : > { %11304 = vmatprep.subr.bf16.mxu1 %v13404_v2  ;;  %v905_v63 = vld [vmem:[%s14754_s7 + $0xc50] sm:$0xff]  ;;  %v13251_v2 = vcombine.low %v785_v50, %v789_v7  ;;  %v13244_v8 = vcombine.high %v777_v59, %v781_v21 }
 0x386   : > { %v909_v24 = vld [vmem:[%s14754_s7 + $0xc70] sm:$0xff] }
 0x387   : > { %11264 = vmatpush1.bf16.msra.mxu0 %v13275_v36  ;;  %v13372_v29 = vcombine.high %v905_v63, %v909_v24  ;;  %v773_v61 = vld [vmem:[%s14754_s7 + $0x830] sm:$0xff] }
 0x388   : > { %11305 = vmatpush1.bf16.msra.mxu1 %v13403_v37  ;;  %11265 = vmatprep.subr.bf16.mxu0 %v13268_v19  ;;  %v897_v36 = vld [vmem:[%s14754_s7 + $0xc10] sm:$0xff]  ;;  %v13243_v37 = vcombine.low %v777_v59, %v781_v21  ;;  %v13371_v19 = vcombine.low %v905_v63, %v909_v24 }
 0x389   : > { %11306 = vmatprep.subr.bf16.mxu1 %v13396_v41  ;;  %v901_v20 = vld [vmem:[%s14754_s7 + $0xc30] sm:$0xff]  ;;  %v13236_v41 = vcombine.high %v769_v30, %v773_v61 }
 0x38a   : > { %v13364_v10 = vcombine.high %v897_v36, %v901_v20  ;;  %v889_v6 = vld [vmem:[%s14754_s7 + $0xbd0] sm:$0xff] }
 0x38b   : > { %11266 = vmatpush1.bf16.msra.mxu0 %v13267_v23  ;;  %v893_v48 = vld [vmem:[%s14754_s7 + $0xbf0] sm:$0xff] }
 0x38c   : > { %11307 = vmatpush1.bf16.msra.mxu1 %v13395_v53  ;;  %11267 = vmatprep.subr.bf16.mxu0 %v13260_v56  ;;  %v1017_v57 = vld [vmem:[%s14754_s7 + $0xfd0] sm:$0xff]  ;;  %v13235_v53 = vcombine.low %v769_v30, %v773_v61  ;;  %v13363_v56 = vcombine.low %v897_v36, %v901_v20 }
 0x38d   : > { %11308 = vmatprep.subr.bf16.mxu1 %v13388_v42  ;;  %v1021_v23 = vld [vmem:[%s14754_s7 + $0xff0] sm:$0xff]  ;;  %v13356_v42 = vcombine.high %v889_v6, %v893_v48 }
 0x38e   : > { %v13484_v50 = vcombine.high %v1017_v57, %v1021_v23  ;;  %v881_v7 = vld [vmem:[%s14754_s7 + $0xb90] sm:$0xff] }
 0x38f   : > { %11268 = vmatpush1.bf16.msra.mxu0 %v13259_v32  ;;  %v885_v39 = vld [vmem:[%s14754_s7 + $0xbb0] sm:$0xff] }
 0x390   : > { %11309 = vmatpush1.bf16.msra.mxu1 %v13387_v14  ;;  %11269 = vmatprep.subr.bf16.mxu0 %v13252_v31  ;;  %v1009_v51 = vld [vmem:[%s14754_s7 + $0xf90] sm:$0xff]  ;;  %v13355_v14 = vcombine.low %v889_v6, %v893_v48  ;;  %v13483_v31 = vcombine.low %v1017_v57, %v1021_v23 }
 0x391   : > { %11310 = vmatprep.subr.bf16.mxu1 %v13380_v26  ;;  %v1013_v32 = vld [vmem:[%s14754_s7 + $0xfb0] sm:$0xff]  ;;  %v13348_v26 = vcombine.high %v881_v7, %v885_v39 }
 0x392   : > { %v13476_v59 = vcombine.high %v1009_v51, %v1013_v32  ;;  %v873_v21 = vld [vmem:[%s14754_s7 + $0xb50] sm:$0xff]  ;;  %v13475_v30 = vcombine.low %v1009_v51, %v1013_v32 }
 0x393   : > { %11270 = vmatpush1.bf16.msra.mxu0 %v13251_v2  ;;  %v877_v63 = vld [vmem:[%s14754_s7 + $0xb70] sm:$0xff] }
 0x394   : > { %11311 = vmatpush1.bf16.msra.mxu1 %v13379_v25  ;;  %11271 = vmatprep.subr.bf16.mxu0 %v13244_v8  ;;  %v1001_v24 = vld [vmem:[%s14754_s7 + $0xf50] sm:$0xff]  ;;  %v13347_v8 = vcombine.low %v881_v7, %v885_v39  ;;  %v13340_v61 = vcombine.high %v873_v21, %v877_v63  ;;  %v13339_v48 = vcombine.low %v873_v21, %v877_v63 }
 0x395   : > { %11312 = vmatprep.subr.bf16.mxu1 %v13372_v29  ;;  %v1005_v2 = vld [vmem:[%s14754_s7 + $0xf70] sm:$0xff] }
 0x396   : > { %v13468_v20 = vcombine.high %v1001_v24, %v1005_v2  ;;  %v997_v6 = vld [vmem:[%s14754_s7 + $0xf30] sm:$0xff]  ;;  %v13467_v57 = vcombine.low %v1001_v24, %v1005_v2 }
 0x397   : > { %11272 = vmatpush1.bf16.msra.mxu0 %v13243_v37  ;;  %v865_v37 = vld [vmem:[%s14754_s7 + $0xb10] sm:$0xff] }
 0x398   : > { %11313 = vmatpush1.bf16.msra.mxu1 %v13371_v19  ;;  %11273 = vmatprep.subr.bf16.mxu0 %v13236_v41  ;;  %v869_v19 = vld [vmem:[%s14754_s7 + $0xb30] sm:$0xff] }
 0x399   : > { %11314 = vmatprep.subr.bf16.mxu1 %v13364_v10  ;;  %v993_v10 = vld [vmem:[%s14754_s7 + $0xf10] sm:$0xff]  ;;  %v13332_v23 = vcombine.high %v865_v37, %v869_v19  ;;  %v13331_v39 = vcombine.low %v865_v37, %v869_v19 }
 0x39a   : > { %v989_v7 = vld [vmem:[%s14754_s7 + $0xef0] sm:$0xff]  ;;  %v13459_v51 = vcombine.low %v993_v10, %v997_v6 }
 0x39b   : > { %11274 = vmatpush1.bf16.msra.mxu0 %v13235_v53  ;;  %v981_v21 = vld [vmem:[%s14754_s7 + $0xeb0] sm:$0xff] }
 0x39c   : > { %11315 = vmatpush1.bf16.msra.mxu1 %v13363_v56  ;;  %11275 = vmatprep.subr.bf16.mxu0 %v13356_v42  ;;  %v13460_v56 = vcombine.high %v993_v10, %v997_v6  ;;  %v857_v42 = vld [vmem:[%s14754_s7 + $0xad0] sm:$0xff] }
 0x39d   : > { %11316 = vmatprep.subr.bf16.mxu1 %v13484_v50  ;;  %v985_v50 = vld [vmem:[%s14754_s7 + $0xed0] sm:$0xff] }
 0x39e   : > { %v13451_v24 = vcombine.low %v985_v50, %v989_v7  ;;  %v833_v6 = vld [vmem:[%s14754_s7 + $0xa10] sm:$0xff] }
 0x39f   : > { %v11006_v25 = vpop.f32.mrf.mxu1  ;;  %11276 = vmatpush2.bf16.msra.mxu0 %v13355_v14  ;;  %v13452_v14 = vcombine.high %v985_v50, %v989_v7  ;;  %v1085_v50 = vld [vmem:[%s14754_s7 + $0x11f0] sm:$0xff] }
 0x3a0   : > { %v15958_v29 = vadd.f32 %v11006_v25, %v15917_v28  ;;  %11317 = vmatpush2.bf16.msra.mxu1 %v13483_v31  ;;  %11277 = vmatprep.subr.bf16.mxu0 %v13348_v26  ;;  %v849_v31 = vld [vmem:[%s14754_s7 + $0xa90] sm:$0xff] }
 0x3a1   : > { %v11008_v36 = vpop.f32.mrf.mxu1  ;;  %11318 = vmatprep.subr.bf16.mxu1 %v13476_v59  ;;  %v853_v26 = vld [vmem:[%s14754_s7 + $0xab0] sm:$0xff] }
 0x3a2   : > { %v15963_v41 = vadd.f32 %v11008_v36, %v15921_v22  ;;  %v861_v22 = vld [vmem:[%s14754_s7 + $0xaf0] sm:$0xff]  ;;  %v13316_v2 = vcombine.high %v849_v31, %v853_v26 }
 0x3a3   : > { %v11010_v28 = vpop.f32.mrf.mxu1  ;;  %11278 = vmatpush2.bf16.msra.mxu0 %v13347_v8  ;;  %v13324_v32 = vcombine.high %v857_v42, %v861_v22  ;;  %v977_v59 = vld [vmem:[%s14754_s7 + $0xe90] sm:$0xff]  ;;  %v13323_v63 = vcombine.low %v857_v42, %v861_v22 }
 0x3a4   : > { %11319 = vmatpush2.bf16.msra.mxu1 %v13475_v30  ;;  %11279 = vmatprep.subr.bf16.mxu0 %v13340_v61  ;;  %v13444_v25 = vcombine.high %v977_v59, %v981_v21  ;;  %v841_v8 = vld [vmem:[%s14754_s7 + $0xa50] sm:$0xff]  ;;  %v13443_v37 = vcombine.low %v977_v59, %v981_v21 }
 0x3a5   : > { %v11011_v53 = vpop.f32.mrf.mxu1  ;;  %11320 = vmatprep.subr.bf16.mxu1 %v13468_v20  ;;  %v845_v30 = vld [vmem:[%s14754_s7 + $0xa70] sm:$0xff]  ;;  %v13315_v20 = vcombine.low %v849_v31, %v853_v26 }
 0x3a6   : > { %v969_v61 = vld [vmem:[%s14754_s7 + $0xe50] sm:$0xff]  ;;  %v13308_v19 = vcombine.high %v841_v8, %v845_v30 }
 0x3a7   : > { %11280 = vmatpush2.bf16.msra.mxu0 %v13339_v48  ;;  %v973_v36 = vld [vmem:[%s14754_s7 + $0xe70] sm:$0xff] }
 0x3a8   : > { %11321 = vmatpush2.bf16.msra.mxu1 %v13467_v57  ;;  %11281 = vmatprep.subr.bf16.mxu0 %v13332_v23  ;;  %v13436_v10 = vcombine.high %v969_v61, %v973_v36  ;;  %v837_v28 = vld [vmem:[%s14754_s7 + $0xa30] sm:$0xff]  ;;  %v13307_v23 = vcombine.low %v841_v8, %v845_v30  ;;  %v13435_v53 = vcombine.low %v969_v61, %v973_v36 }
 0x3a9   : > { %11322 = vmatprep.subr.bf16.mxu1 %v13460_v56  ;;  %v961_v48 = vld [vmem:[%s14754_s7 + $0xe10] sm:$0xff]  ;;  %v13300_v56 = vcombine.high %v833_v6, %v837_v28 }
 0x3aa   : > { %v965_v57 = vld [vmem:[%s14754_s7 + $0xe30] sm:$0xff] }
 0x3ab   : > { %11282 = vmatpush2.bf16.msra.mxu0 %v13331_v39  ;;  %v13428_v42 = vcombine.high %v961_v48, %v965_v57  ;;  %v1081_v22 = vld [vmem:[%s14754_s7 + $0x11d0] sm:$0xff] }
 0x3ac   : > { %11323 = vmatpush2.bf16.msra.mxu1 %v13459_v51  ;;  %11283 = vmatprep.subr.bf16.mxu0 %v13324_v32  ;;  %v1209_v7 = vld [vmem:[%s14754_s7 + $0x15d0] sm:$0xff]  ;;  %v13299_v51 = vcombine.low %v833_v6, %v837_v28  ;;  %v13427_v32 = vcombine.low %v961_v48, %v965_v57 }
 0x3ad   : > { %11324 = vmatprep.subr.bf16.mxu1 %v13452_v14  ;;  %v1213_v39 = vld [vmem:[%s14754_s7 + $0x15f0] sm:$0xff]  ;;  %v13548_v14 = vcombine.high %v1081_v22, %v1085_v50 }
 0x3ae   : > { %v13676_v31 = vcombine.high %v1209_v7, %v1213_v39  ;;  %v1073_v26 = vld [vmem:[%s14754_s7 + $0x1190] sm:$0xff] }
 0x3af   : > { %11284 = vmatpush2.bf16.msra.mxu0 %v13323_v63  ;;  %v1077_v59 = vld [vmem:[%s14754_s7 + $0x11b0] sm:$0xff] }
 0x3b0   : > { %11325 = vmatpush2.bf16.msra.mxu1 %v13451_v24  ;;  %11285 = vmatprep.subr.bf16.mxu0 %v13316_v2  ;;  %v1201_v21 = vld [vmem:[%s14754_s7 + $0x1590] sm:$0xff]  ;;  %v13547_v24 = vcombine.low %v1081_v22, %v1085_v50  ;;  %v13675_v2 = vcombine.low %v1209_v7, %v1213_v39 }
 0x3b1   : > { %11326 = vmatprep.subr.bf16.mxu1 %v13444_v25  ;;  %v1205_v63 = vld [vmem:[%s14754_s7 + $0x15b0] sm:$0xff]  ;;  %v13540_v25 = vcombine.high %v1073_v26, %v1077_v59 }
 0x3b2   : > { %v13668_v8 = vcombine.high %v1201_v21, %v1205_v63  ;;  %v1065_v30 = vld [vmem:[%s14754_s7 + $0x1150] sm:$0xff]  ;;  %v13667_v6 = vcombine.low %v1201_v21, %v1205_v63 }
 0x3b3   : > { %11286 = vmatpush2.bf16.msra.mxu0 %v13315_v20  ;;  %v1069_v61 = vld [vmem:[%s14754_s7 + $0x1170] sm:$0xff] }
 0x3b4   : > { %11327 = vmatpush2.bf16.msra.mxu1 %v13443_v37  ;;  %11287 = vmatprep.subr.bf16.mxu0 %v13308_v19  ;;  %v1193_v20 = vld [vmem:[%s14754_s7 + $0x1550] sm:$0xff]  ;;  %v13539_v19 = vcombine.low %v1073_v26, %v1077_v59  ;;  %v13532_v28 = vcombine.high %v1065_v30, %v1069_v61  ;;  %v13531_v22 = vcombine.low %v1065_v30, %v1069_v61 }
 0x3b5   : > { %11328 = vmatprep.subr.bf16.mxu1 %v13436_v10  ;;  %v1197_v37 = vld [vmem:[%s14754_s7 + $0x1570] sm:$0xff] }
 0x3b6   : > { %v13660_v48 = vcombine.high %v1193_v20, %v1197_v37  ;;  %v1057_v57 = vld [vmem:[%s14754_s7 + $0x1110] sm:$0xff]  ;;  %v13659_v7 = vcombine.low %v1193_v20, %v1197_v37 }
 0x3b7   : > { %11288 = vmatpush2.bf16.msra.mxu0 %v13307_v23  ;;  %v1061_v23 = vld [vmem:[%s14754_s7 + $0x1130] sm:$0xff] }
 0x3b8   : > { %11329 = vmatpush2.bf16.msra.mxu1 %v13435_v53  ;;  %11289 = vmatprep.subr.bf16.mxu0 %v13300_v56  ;;  %v1185_v56 = vld [vmem:[%s14754_s7 + $0x1510] sm:$0xff]  ;;  %v13524_v39 = vcombine.high %v1057_v57, %v1061_v23  ;;  %v13523_v59 = vcombine.low %v1057_v57, %v1061_v23 }
 0x3b9   : > { %11330 = vmatprep.subr.bf16.mxu1 %v13428_v42  ;;  %v1189_v42 = vld [vmem:[%s14754_s7 + $0x1530] sm:$0xff] }
 0x3ba   : > { %v1181_v26 = vld [vmem:[%s14754_s7 + $0x14f0] sm:$0xff]  ;;  %v13651_v21 = vcombine.low %v1185_v56, %v1189_v42 }
 0x3bb   : > { %11290 = vmatpush2.bf16.msra.mxu0 %v13299_v51  ;;  %v13652_v51 = vcombine.high %v1185_v56, %v1189_v42  ;;  %v1173_v30 = vld [vmem:[%s14754_s7 + $0x14b0] sm:$0xff] }
 0x3bc   : > { %11331 = vmatpush2.bf16.msra.mxu1 %v13427_v32  ;;  %11341 = vmatprep.subr.bf16.mxu0 %v13548_v14  ;;  %v1049_v32 = vld [vmem:[%s14754_s7 + $0x10d0] sm:$0xff] }
 0x3bd   : > { %11382 = vmatprep.subr.bf16.mxu1 %v13676_v31  ;;  %v1053_v14 = vld [vmem:[%s14754_s7 + $0x10f0] sm:$0xff] }
 0x3be   : > { %v15993_v36 = vpop.f32.mrf.mxu0  ;;  %11292 = vmatmul.mubr.bf16.vlgmr.msra.gmra.mxu0 %v14951_v1  ;;  %v1177_v31 = vld [vmem:[%s14754_s7 + $0x14d0] sm:$0xff]  ;;  %v13516_v63 = vcombine.high %v1049_v32, %v1053_v14  ;;  %v13515_v61 = vcombine.low %v1049_v32, %v1053_v14 }
 0x3bf   : > { %11333 = vmatmul.mubr.bf16.vlgmr.msra.gmra.mxu1 %v14959_v5  ;;  %11342 = vmatpush1.bf16.msra.mxu0 %v13547_v24  ;;  %v13644_v24 = vcombine.high %v1177_v31, %v1181_v26  ;;  %v13643_v20 = vcombine.low %v1177_v31, %v1181_v26  ;;  %v1165_v57 = vld [vmem:[%s14754_s7 + $0x1470] sm:$0xff] }
 0x3c0   : > { %11383 = vmatpush1.bf16.msra.mxu1 %v13675_v2  ;;  %v15999_v10 = vpop.f32.mrf.mxu0  ;;  %11343 = vmatprep.subr.bf16.mxu0 %v13540_v25  ;;  %v1041_v2 = vld [vmem:[%s14754_s7 + $0x1090] sm:$0xff] }
 0x3c1   : > { %11384 = vmatprep.subr.bf16.mxu1 %v13668_v8  ;;  %11373 = vmatprep.mubr.bf16.mxu0 %v14963_v13  ;;  %v1045_v25 = vld [vmem:[%s14754_s7 + $0x10b0] sm:$0xff] }
 0x3c2   : > { %v11051_v53 = vpop.f32.mrf.mxu0  ;;  %11414 = vmatprep.mubr.bf16.mxu1 %v14968_v15  ;;  %v1169_v8 = vld [vmem:[%s14754_s7 + $0x1490] sm:$0xff]  ;;  %v13508_v37 = vcombine.high %v1041_v2, %v1045_v25  ;;  %v13507_v23 = vcombine.low %v1041_v2, %v1045_v25 }
 0x3c3   : > { %11344 = vmatpush1.bf16.msra.mxu0 %v13539_v19  ;;  %v13636_v19 = vcombine.high %v1169_v8, %v1173_v30  ;;  %v13635_v53 = vcombine.low %v1169_v8, %v1173_v30  ;;  %v1145_v26 = vld [vmem:[%s14754_s7 + $0x13d0] sm:$0xff] }
 0x3c4   : > { %11385 = vmatpush1.bf16.msra.mxu1 %v13667_v6  ;;  %v11052_v50 = vpop.f32.mrf.mxu0  ;;  %11345 = vmatprep.subr.bf16.mxu0 %v13532_v28  ;;  %v1033_v6 = vld [vmem:[%s14754_s7 + $0x1050] sm:$0xff] }
 0x3c5   : > { %11386 = vmatprep.subr.bf16.mxu1 %v13660_v48  ;;  %v1037_v28 = vld [vmem:[%s14754_s7 + $0x1070] sm:$0xff] }
 0x3c6   : > { %v1161_v48 = vld [vmem:[%s14754_s7 + $0x1450] sm:$0xff]  ;;  %v13500_v56 = vcombine.high %v1033_v6, %v1037_v28 }
 0x3c7   : > { %11346 = vmatpush1.bf16.msra.mxu0 %v13531_v22  ;;  %v13628_v42 = vcombine.high %v1161_v48, %v1165_v57  ;;  %v1025_v22 = vld [vmem:[%s14754_s7 + $0x1010] sm:$0xff]  ;;  %v13627_v32 = vcombine.low %v1161_v48, %v1165_v57 }
 0x3c8   : > { %11387 = vmatpush1.bf16.msra.mxu1 %v13659_v7  ;;  %11347 = vmatprep.subr.bf16.mxu0 %v13524_v39  ;;  %v1029_v50 = vld [vmem:[%s14754_s7 + $0x1030] sm:$0xff] }
 0x3c9   : > { %11388 = vmatprep.subr.bf16.mxu1 %v13652_v51  ;;  %v1153_v7 = vld [vmem:[%s14754_s7 + $0x1410] sm:$0xff]  ;;  %v13499_v51 = vcombine.low %v1033_v6, %v1037_v28  ;;  %v13492_v14 = vcombine.high %v1025_v22, %v1029_v50 }
 0x3ca   : > { %v1157_v39 = vld [vmem:[%s14754_s7 + $0x1430] sm:$0xff] }
 0x3cb   : > { %11348 = vmatpush1.bf16.msra.mxu0 %v13523_v59  ;;  %v13620_v31 = vcombine.high %v1153_v7, %v1157_v39  ;;  %v1149_v59 = vld [vmem:[%s14754_s7 + $0x13f0] sm:$0xff]  ;;  %v13619_v2 = vcombine.low %v1153_v7, %v1157_v39 }
 0x3cc   : > { %11389 = vmatpush1.bf16.msra.mxu1 %v13651_v21  ;;  %11349 = vmatprep.subr.bf16.mxu0 %v13516_v63  ;;  %v1273_v21 = vld [vmem:[%s14754_s7 + $0x17d0] sm:$0xff]  ;;  %v13612_v25 = vcombine.high %v1145_v26, %v1149_v59 }
 0x3cd   : > { %11390 = vmatprep.subr.bf16.mxu1 %v13644_v24  ;;  %v1277_v63 = vld [vmem:[%s14754_s7 + $0x17f0] sm:$0xff]  ;;  %v13491_v24 = vcombine.low %v1025_v22, %v1029_v50 }
 0x3ce   : > { %v13740_v8 = vcombine.high %v1273_v21, %v1277_v63  ;;  %v1137_v30 = vld [vmem:[%s14754_s7 + $0x1390] sm:$0xff]  ;;  %v13739_v6 = vcombine.low %v1273_v21, %v1277_v63 }
 0x3cf   : > { %11350 = vmatpush1.bf16.msra.mxu0 %v13515_v61  ;;  %v1141_v61 = vld [vmem:[%s14754_s7 + $0x13b0] sm:$0xff] }
 0x3d0   : > { %11391 = vmatpush1.bf16.msra.mxu1 %v13643_v20  ;;  %11351 = vmatprep.subr.bf16.mxu0 %v13508_v37  ;;  %v1265_v20 = vld [vmem:[%s14754_s7 + $0x1790] sm:$0xff]  ;;  %v13604_v28 = vcombine.high %v1137_v30, %v1141_v61  ;;  %v13603_v22 = vcombine.low %v1137_v30, %v1141_v61 }
 0x3d1   : > { %11392 = vmatprep.subr.bf16.mxu1 %v13636_v19  ;;  %v1269_v37 = vld [vmem:[%s14754_s7 + $0x17b0] sm:$0xff]  ;;  %v13611_v19 = vcombine.low %v1145_v26, %v1149_v59 }
 0x3d2   : > { %v13732_v48 = vcombine.high %v1265_v20, %v1269_v37  ;;  %v1129_v57 = vld [vmem:[%s14754_s7 + $0x1350] sm:$0xff]  ;;  %v13731_v50 = vcombine.low %v1265_v20, %v1269_v37 }
 0x3d3   : > { %11352 = vmatpush1.bf16.msra.mxu0 %v13507_v23  ;;  %v1133_v23 = vld [vmem:[%s14754_s7 + $0x1370] sm:$0xff] }
 0x3d4   : > { %11393 = vmatpush1.bf16.msra.mxu1 %v13635_v53  ;;  %11353 = vmatprep.subr.bf16.mxu0 %v13500_v56  ;;  %v1257_v53 = vld [vmem:[%s14754_s7 + $0x1750] sm:$0xff]  ;;  %v13596_v7 = vcombine.high %v1129_v57, %v1133_v23  ;;  %v13595_v21 = vcombine.low %v1129_v57, %v1133_v23 }
 0x3d5   : > { %11394 = vmatprep.subr.bf16.mxu1 %v13628_v42  ;;  %v1261_v56 = vld [vmem:[%s14754_s7 + $0x1770] sm:$0xff] }
 0x3d6   : > { %v1253_v26 = vld [vmem:[%s14754_s7 + $0x1730] sm:$0xff]  ;;  %v13723_v63 = vcombine.low %v1257_v53, %v1261_v56 }
 0x3d7   : > { %11354 = vmatpush1.bf16.msra.mxu0 %v13499_v51  ;;  %v13724_v51 = vcombine.high %v1257_v53, %v1261_v56  ;;  %v1117_v30 = vld [vmem:[%s14754_s7 + $0x12f0] sm:$0xff] }
 0x3d8   : > { %11395 = vmatpush1.bf16.msra.mxu1 %v13627_v32  ;;  %11355 = vmatprep.subr.bf16.mxu0 %v13492_v14  ;;  %v1121_v32 = vld [vmem:[%s14754_s7 + $0x1310] sm:$0xff] }
 0x3d9   : > { %11396 = vmatprep.subr.bf16.mxu1 %v13620_v31  ;;  %v1125_v14 = vld [vmem:[%s14754_s7 + $0x1330] sm:$0xff] }
 0x3da   : > { %v1249_v31 = vld [vmem:[%s14754_s7 + $0x1710] sm:$0xff]  ;;  %v13587_v37 = vcombine.low %v1121_v32, %v1125_v14 }
 0x3db   : > { %11356 = vmatpush1.bf16.msra.mxu0 %v13491_v24  ;;  %v13588_v24 = vcombine.high %v1121_v32, %v1125_v14  ;;  %v1241_v61 = vld [vmem:[%s14754_s7 + $0x16d0] sm:$0xff] }
 0x3dc   : > { %11397 = vmatpush1.bf16.msra.mxu1 %v13619_v2  ;;  %11357 = vmatprep.subr.bf16.mxu0 %v13612_v25  ;;  %v13716_v25 = vcombine.high %v1249_v31, %v1253_v26  ;;  %v1245_v20 = vld [vmem:[%s14754_s7 + $0x16f0] sm:$0xff] }
 0x3dd   : > { %11398 = vmatprep.subr.bf16.mxu1 %v13740_v8  ;;  %v1113_v8 = vld [vmem:[%s14754_s7 + $0x12d0] sm:$0xff] }
 0x3de   : > { %v1109_v57 = vld [vmem:[%s14754_s7 + $0x12b0] sm:$0xff]  ;;  %v13579_v56 = vcombine.low %v1113_v8, %v1117_v30 }
 0x3df   : > { %v16035_v42 = vpop.f32.mrf.mxu1  ;;  %11358 = vmatpush2.bf16.msra.mxu0 %v13611_v19  ;;  %v13715_v19 = vcombine.low %v1249_v31, %v1253_v26  ;;  %v1233_v23 = vld [vmem:[%s14754_s7 + $0x1690] sm:$0xff] }
 0x3e0   : > { %11399 = vmatpush2.bf16.msra.mxu1 %v13739_v6  ;;  %11359 = vmatprep.subr.bf16.mxu0 %v13604_v28  ;;  %v13580_v6 = vcombine.high %v1113_v8, %v1117_v30  ;;  %v13708_v28 = vcombine.high %v1241_v61, %v1245_v20  ;;  %v1237_v53 = vld [vmem:[%s14754_s7 + $0x16b0] sm:$0xff] }
 0x3e1   : > { %v16037_v39 = vpop.f32.mrf.mxu1  ;;  %11400 = vmatprep.subr.bf16.mxu1 %v13732_v48  ;;  %v1105_v48 = vld [vmem:[%s14754_s7 + $0x1290] sm:$0xff] }
 0x3e2   : > { %v1101_v32 = vld [vmem:[%s14754_s7 + $0x1270] sm:$0xff]  ;;  %v13571_v26 = vcombine.low %v1105_v48, %v1109_v57 }
 0x3e3   : > { %v11092_v59 = vpop.f32.mrf.mxu1  ;;  %11360 = vmatpush2.bf16.msra.mxu0 %v13603_v22  ;;  %v13707_v22 = vcombine.low %v1241_v61, %v1245_v20  ;;  %v1225_v14 = vld [vmem:[%s14754_s7 + $0x1650] sm:$0xff] }
 0x3e4   : > { %11401 = vmatpush2.bf16.msra.mxu1 %v13731_v50  ;;  %11361 = vmatprep.subr.bf16.mxu0 %v13596_v7  ;;  %v13572_v50 = vcombine.high %v1105_v48, %v1109_v57  ;;  %v13700_v7 = vcombine.high %v1233_v23, %v1237_v53  ;;  %v1229_v31 = vld [vmem:[%s14754_s7 + $0x1670] sm:$0xff]  ;;  %v13699_v59 = vcombine.low %v1233_v23, %v1237_v53 }
 0x3e5   : > { %v11093_v2 = vpop.f32.mrf.mxu1  ;;  %11402 = vmatprep.subr.bf16.mxu1 %v13724_v51  ;;  %v1097_v51 = vld [vmem:[%s14754_s7 + $0x1250] sm:$0xff]  ;;  %v13691_v61 = vcombine.low %v1225_v14, %v1229_v31 }
 0x3e6   : > { %v1093_v2 = vld [vmem:[%s14754_s7 + $0x1230] sm:$0xff]  ;;  %v13563_v30 = vcombine.low %v1097_v51, %v1101_v32 }
 0x3e7   : > { %11362 = vmatpush2.bf16.msra.mxu0 %v13595_v21  ;;  %v13564_v21 = vcombine.high %v1097_v51, %v1101_v32  ;;  %v1221_v8 = vld [vmem:[%s14754_s7 + $0x1630] sm:$0xff]  ;;  %v11048_v32 = vadd.f32 %v15993_v36, %v15958_v29 }
 0x3e8   : > { %11403 = vmatpush2.bf16.msra.mxu1 %v13723_v63  ;;  %11363 = vmatprep.subr.bf16.mxu0 %v13588_v24  ;;  %v13692_v63 = vcombine.high %v1225_v14, %v1229_v31  ;;  %v1089_v24 = vld [vmem:[%s14754_s7 + $0x1210] sm:$0xff] }
 0x3e9   : > { %11404 = vmatprep.subr.bf16.mxu1 %v13716_v25  ;;  %v1217_v25 = vld [vmem:[%s14754_s7 + $0x1610] sm:$0xff]  ;;  %v13556_v20 = vcombine.high %v1089_v24, %v1093_v2  ;;  %v13555_v57 = vcombine.low %v1089_v24, %v1093_v2 }
 0x3ea   : > { %v1469_v48 = vld [vmem:[%s14754_s7 + $0x1df0] sm:$0xff]  ;;  %v13683_v23 = vcombine.low %v1217_v25, %v1221_v8 }
 0x3eb   : > { %11364 = vmatpush2.bf16.msra.mxu0 %v13587_v37  ;;  %v13684_v37 = vcombine.high %v1217_v25, %v1221_v8  ;;  %v1461_v51 = vld [vmem:[%s14754_s7 + $0x1db0] sm:$0xff] }
 0x3ec   : > { %11405 = vmatpush2.bf16.msra.mxu1 %v13715_v19  ;;  %11365 = vmatprep.subr.bf16.mxu0 %v13580_v6  ;;  %v1337_v19 = vld [vmem:[%s14754_s7 + $0x19d0] sm:$0xff] }
 0x3ed   : > { %11406 = vmatprep.subr.bf16.mxu1 %v13708_v28  ;;  %v1341_v6 = vld [vmem:[%s14754_s7 + $0x19f0] sm:$0xff] }
 0x3ee   : > { %v1465_v28 = vld [vmem:[%s14754_s7 + $0x1dd0] sm:$0xff]  ;;  %v13804_v53 = vcombine.high %v1337_v19, %v1341_v6  ;;  %v13803_v14 = vcombine.low %v1337_v19, %v1341_v6 }
 0x3ef   : > { %11366 = vmatpush2.bf16.msra.mxu0 %v13579_v56  ;;  %v13932_v56 = vcombine.high %v1465_v28, %v1469_v48  ;;  %v13931_v31 = vcombine.low %v1465_v28, %v1469_v48  ;;  %v1321_v24 = vld [vmem:[%s14754_s7 + $0x1950] sm:$0xff] }
 0x3f0   : > { %11407 = vmatpush2.bf16.msra.mxu1 %v13707_v22  ;;  %11367 = vmatprep.subr.bf16.mxu0 %v13572_v50  ;;  %v1329_v22 = vld [vmem:[%s14754_s7 + $0x1990] sm:$0xff] }
 0x3f1   : > { %11408 = vmatprep.subr.bf16.mxu1 %v13700_v7  ;;  %v1333_v50 = vld [vmem:[%s14754_s7 + $0x19b0] sm:$0xff] }
 0x3f2   : > { %v1457_v7 = vld [vmem:[%s14754_s7 + $0x1d90] sm:$0xff] }
 0x3f3   : > { %11368 = vmatpush2.bf16.msra.mxu0 %v13571_v26  ;;  %v13796_v26 = vcombine.high %v1329_v22, %v1333_v50  ;;  %v1325_v2 = vld [vmem:[%s14754_s7 + $0x1970] sm:$0xff] }
 0x3f4   : > { %11409 = vmatpush2.bf16.msra.mxu1 %v13699_v59  ;;  %11369 = vmatprep.subr.bf16.mxu0 %v13564_v21  ;;  %v11050_v59 = vadd.f32 %v15999_v10, %v15963_v41  ;;  %v11089_v21 = vadd.f32 %v16035_v42, %v11048_v32  ;;  %v1449_v29 = vld [vmem:[%s14754_s7 + $0x1d50] sm:$0xff]  ;;  %v13795_v41 = vcombine.low %v1329_v22, %v1333_v50 }
 0x3f5   : > { %11410 = vmatprep.subr.bf16.mxu1 %v13692_v63  ;;  %v13924_v63 = vcombine.high %v1457_v7, %v1461_v51  ;;  %v1453_v36 = vld [vmem:[%s14754_s7 + $0x1d70] sm:$0xff]  ;;  %v13923_v42 = vcombine.low %v1457_v7, %v1461_v51  ;;  %v13787_v50 = vcombine.low %v1321_v24, %v1325_v2 }
 0x3f6   : > { %v11091_v8 = vadd.f32 %v16037_v39, %v11050_v59  ;;  %v13916_v6 = vcombine.high %v1449_v29, %v1453_v36  ;;  %v1313_v28 = vld [vmem:[%s14754_s7 + $0x1910] sm:$0xff]  ;;  %v13915_v51 = vcombine.low %v1449_v29, %v1453_v36  ;;  %v336_v36 = vld [vmem:[#allocation2] sm:$0xff] }
 0x3f7   : > { %11370 = vmatpush2.bf16.msra.mxu0 %v13563_v30  ;;  %v1317_v39 = vld [vmem:[%s14754_s7 + $0x1930] sm:$0xff] }
 0x3f8   : > { %11411 = vmatpush2.bf16.msra.mxu1 %v13691_v61  ;;  %11371 = vmatprep.subr.bf16.mxu0 %v13556_v20  ;;  %v13788_v20 = vcombine.high %v1321_v24, %v1325_v2  ;;  %v13780_v32 = vcombine.high %v1313_v28, %v1317_v39  ;;  %v1305_v59 = vld [vmem:[%s14754_s7 + $0x18d0] sm:$0xff]  ;;  %v12259_v24 = vrot.slane %v12251_v3, %v14786_v54 }
 0x3f9   : > { %11412 = vmatprep.subr.bf16.mxu1 %v13684_v37  ;;  %v13779_v29 = vcombine.low %v1313_v28, %v1317_v39  ;;  %v1289_v28 = vld [vmem:[%s14754_s7 + $0x1850] sm:$0xff] }
 0x3fa   : > { %v1293_v39 = vld [vmem:[%s14754_s7 + $0x1870] sm:$0xff] }
 0x3fb   : > { %11372 = vmatpush2.bf16.msra.mxu0 %v13555_v57  ;;  %v1441_v57 = vld [vmem:[%s14754_s7 + $0x1d10] sm:$0xff] }
 0x3fc   : > { %11413 = vmatpush2.bf16.msra.mxu1 %v13683_v23  ;;  %11423 = vmatprep.subr.bf16.mxu0 %v13804_v53  ;;  %v1445_v23 = vld [vmem:[%s14754_s7 + $0x1d30] sm:$0xff] }
 0x3fd   : > { %11464 = vmatprep.subr.bf16.mxu1 %v13932_v56 }
 0x3fe   : > { %v11129_v25 = vpop.f32.mrf.mxu0  ;;  %11374 = vmatmul.mubr.bf16.vlgmr.msra.gmra.mxu0 %v15042_v43 }
 0x3ff   : > { %v11130_v30 = vadd.f32 %v11129_v25, %v11089_v21  ;;  %v11170_v61 = vpop.f32.mrf.mxu1  ;;  %11415 = vmatmul.mubr.bf16.vlgmr.msra.gmra.mxu1 %v15050_v49  ;;  %11424 = vmatpush1.bf16.msra.mxu0 %v13803_v14  ;;  %v1309_v21 = vld [vmem:[%s14754_s7 + $0x18f0] sm:$0xff] }
 0x400   : > { %11465 = vmatpush1.bf16.msra.mxu1 %v13931_v31  ;;  %v11131_v10 = vpop.f32.mrf.mxu0  ;;  %11425 = vmatprep.subr.bf16.mxu0 %v13796_v26  ;;  %v13908_v26 = vcombine.high %v1441_v57, %v1445_v23  ;;  %v1437_v25 = vld [vmem:[%s14754_s7 + $0x1cf0] sm:$0xff] }
 0x401   : > { %v11132_v37 = vadd.f32 %v11131_v10, %v11091_v8  ;;  %v11172_v19 = vpop.f32.mrf.mxu1  ;;  %11466 = vmatprep.subr.bf16.mxu1 %v13924_v63  ;;  %11455 = vmatprep.mubr.bf16.mxu0 %v15054_v58  ;;  %v11171_v53 = vadd.f32 %v11170_v61, %v11130_v30  ;;  %v1433_v63 = vld [vmem:[%s14754_s7 + $0x1cd0] sm:$0xff]  ;;  %v13907_v8 = vcombine.low %v1441_v57, %v1445_v23 }
 0x402   : > { %v11133_v48 = vpop.f32.mrf.mxu0  ;;  %11496 = vmatprep.mubr.bf16.mxu1 %v15059_v60  ;;  %v13772_v30 = vcombine.high %v1305_v59, %v1309_v21  ;;  %v1297_v10 = vld [vmem:[%s14754_s7 + $0x1890] sm:$0xff] }
 0x403   : > { %v11173_v56 = vadd.f32 %v11172_v19, %v11132_v37  ;;  %v11174_v22 = vpop.f32.mrf.mxu1  ;;  %11426 = vmatpush1.bf16.msra.mxu0 %v13795_v41  ;;  %v13900_v41 = vcombine.high %v1433_v63, %v1437_v25  ;;  %v13899_v37 = vcombine.low %v1433_v63, %v1437_v25  ;;  %v1417_v48 = vld [vmem:[%s14754_s7 + $0x1c50] sm:$0xff] }
 0x404   : > { %11467 = vmatpush1.bf16.msra.mxu1 %v13923_v42  ;;  %v11134_v7 = vpop.f32.mrf.mxu0  ;;  %11427 = vmatprep.subr.bf16.mxu0 %v13788_v20  ;;  %v1301_v42 = vld [vmem:[%s14754_s7 + $0x18b0] sm:$0xff]  ;;  %v13771_v20 = vcombine.low %v1305_v59, %v1309_v21 }
 0x405   : > { %v12252_v14 = vcombine.low %v11171_v53, %v11173_v56  ;;  %v11175_v31 = vpop.f32.mrf.mxu1  ;;  %11468 = vmatprep.subr.bf16.mxu1 %v13916_v6  ;;  %v13764_v19 = vcombine.high %v1297_v10, %v1301_v42  ;;  %v13892_v6 = vcombine.high %v1425_v62, %v1429_v55  ;;  %v1421_v57 = vld [vmem:[%s14754_s7 + $0x1c70] sm:$0xff]  ;;  %v13763_v23 = vcombine.low %v1297_v10, %v1301_v42 }
 0x406   : > { %v13891_v53 = vcombine.low %v1425_v62, %v1429_v55  ;;  %v13756_v56 = vcombine.high %v1289_v28, %v1293_v39  ;;  %v13884_v22 = vcombine.high %v1417_v48, %v1421_v57  ;;  %v1285_v7 = vld [vmem:[%s14754_s7 + $0x1830] sm:$0xff]  ;;  %v13883_v31 = vcombine.low %v1417_v48, %v1421_v57 }
 0x407   : > { %v12266_v2 = vrot.slane %v12252_v14, %v14786_v54  ;;  %11428 = vmatpush1.bf16.msra.mxu0 %v13787_v50  ;;  %v1281_v50 = vld [vmem:[%s14754_s7 + $0x1810] sm:$0xff]  ;;  %v13755_v14 = vcombine.low %v1289_v28, %v1293_v39 }
 0x408   : > { %11469 = vmatpush1.bf16.msra.mxu1 %v13915_v51  ;;  %11429 = vmatprep.subr.bf16.mxu0 %v13780_v32  ;;  %v1409_v51 = vld [vmem:[%s14754_s7 + $0x1c10] sm:$0xff] }
 0x409   : > { %v12267_v61 = vcombine.low %v12259_v24, %v12266_v2  ;;  %11470 = vmatprep.subr.bf16.mxu1 %v13908_v26  ;;  %v1413_v32 = vld [vmem:[%s14754_s7 + $0x1c30] sm:$0xff]  ;;  %v13748_v26 = vcombine.high %v1281_v50, %v1285_v7  ;;  %v13747_v2 = vcombine.low %v1281_v50, %v1285_v7 }
 0x40a   : > { %v13876_v59 = vcombine.high %v1409_v51, %v1413_v32  ;;  %v1401_v21 = vld [vmem:[%s14754_s7 + $0x1bd0] sm:$0xff] }
 0x40b   : > { %v12287_v3 = vadd.f32 %v12267_v61, %v336_v36  ;;  %11430 = vmatpush1.bf16.msra.mxu0 %v13779_v29  ;;  %v1405_v63 = vld [vmem:[%s14754_s7 + $0x1bf0] sm:$0xff]  ;;  %v13875_v29 = vcombine.low %v1409_v51, %v1413_v32 }
 0x40c   : > { %11471 = vmatpush1.bf16.msra.mxu1 %v13907_v8  ;;  %11431 = vmatprep.subr.bf16.mxu0 %v13772_v30  ;;  %v1529_v25 = vld [vmem:[%s14754_s7 + $0x1fd0] sm:$0xff]  ;;  %v13868_v36 = vcombine.high %v1401_v21, %v1405_v63  ;;  %v13867_v42 = vcombine.low %v1401_v21, %v1405_v63 }
 0x40d   : > { %12289 = vst [vmem:[#allocation2] sm:$0xff] %v12287_v3  ;;  %11472 = vmatprep.subr.bf16.mxu1 %v13900_v41  ;;  %v1533_v24 = vld [vmem:[%s14754_s7 + $0x1ff0] sm:$0xff] }
 0x40e   : > { %v13996_v8 = vcombine.high %v1529_v25, %v1533_v24  ;;  %v1393_v30 = vld [vmem:[%s14754_s7 + $0x1b90] sm:$0xff]  ;;  %v13995_v62 = vcombine.low %v1529_v25, %v1533_v24 }
 0x40f   : > { %11432 = vmatpush1.bf16.msra.mxu0 %v13771_v20  ;;  %v1397_v61 = vld [vmem:[%s14754_s7 + $0x1bb0] sm:$0xff] }
 0x410   : > { %11473 = vmatpush1.bf16.msra.mxu1 %v13899_v37  ;;  %11433 = vmatprep.subr.bf16.mxu0 %v13764_v19  ;;  %v1521_v41 = vld [vmem:[%s14754_s7 + $0x1f90] sm:$0xff]  ;;  %v13860_v55 = vcombine.high %v1393_v30, %v1397_v61  ;;  %v13859_v28 = vcombine.low %v1393_v30, %v1397_v61 }
 0x411   : > { %11474 = vmatprep.subr.bf16.mxu1 %v13892_v6  ;;  %v1525_v10 = vld [vmem:[%s14754_s7 + $0x1fb0] sm:$0xff] }
 0x412   : > { %v13988_v3 = vcombine.high %v1521_v41, %v1525_v10  ;;  %v1385_v20 = vld [vmem:[%s14754_s7 + $0x1b50] sm:$0xff]  ;;  %v13987_v39 = vcombine.low %v1521_v41, %v1525_v10 }
 0x413   : > { %11434 = vmatpush1.bf16.msra.mxu0 %v13763_v23  ;;  %v1389_v37 = vld [vmem:[%s14754_s7 + $0x1b70] sm:$0xff] }
 0x414   : > { %11475 = vmatpush1.bf16.msra.mxu1 %v13891_v53  ;;  %11435 = vmatprep.subr.bf16.mxu0 %v13756_v56  ;;  %v1513_v19 = vld [vmem:[%s14754_s7 + $0x1f50] sm:$0xff]  ;;  %v13852_v48 = vcombine.high %v1385_v20, %v1389_v37  ;;  %v13851_v50 = vcombine.low %v1385_v20, %v1389_v37 }
 0x415   : > { %11476 = vmatprep.subr.bf16.mxu1 %v13884_v22  ;;  %v1517_v6 = vld [vmem:[%s14754_s7 + $0x1f70] sm:$0xff] }
 0x416   : > { %v13980_v57 = vcombine.high %v1513_v19, %v1517_v6  ;;  %v1377_v23 = vld [vmem:[%s14754_s7 + $0x1b10] sm:$0xff]  ;;  %v13979_v7 = vcombine.low %v1513_v19, %v1517_v6 }
 0x417   : > { %11436 = vmatpush1.bf16.msra.mxu0 %v13755_v14  ;;  %v1381_v53 = vld [vmem:[%s14754_s7 + $0x1b30] sm:$0xff] }
 0x418   : > { %11477 = vmatpush1.bf16.msra.mxu1 %v13883_v31  ;;  %11437 = vmatprep.subr.bf16.mxu0 %v13748_v26  ;;  %v1505_v56 = vld [vmem:[%s14754_s7 + $0x1f10] sm:$0xff]  ;;  %v13844_v51 = vcombine.high %v1377_v23, %v1381_v53  ;;  %v13843_v21 = vcombine.low %v1377_v23, %v1381_v53 }
 0x419   : > { %11478 = vmatprep.subr.bf16.mxu1 %v13876_v59  ;;  %v1509_v22 = vld [vmem:[%s14754_s7 + $0x1f30] sm:$0xff] }
 0x41a   : > { %v13972_v32 = vcombine.high %v1505_v56, %v1509_v22  ;;  %v1369_v14 = vld [vmem:[%s14754_s7 + $0x1ad0] sm:$0xff]  ;;  %v13971_v63 = vcombine.low %v1505_v56, %v1509_v22 }
 0x41b   : > { %11438 = vmatpush1.bf16.msra.mxu0 %v13747_v2  ;;  %v1373_v31 = vld [vmem:[%s14754_s7 + $0x1af0] sm:$0xff] }
 0x41c   : > { %11479 = vmatpush1.bf16.msra.mxu1 %v13875_v29  ;;  %11439 = vmatprep.subr.bf16.mxu0 %v13868_v36  ;;  %v1497_v26 = vld [vmem:[%s14754_s7 + $0x1ed0] sm:$0xff]  ;;  %v13836_v25 = vcombine.high %v1369_v14, %v1373_v31  ;;  %v13835_v30 = vcombine.low %v1369_v14, %v1373_v31 }
 0x41d   : > { %11480 = vmatprep.subr.bf16.mxu1 %v13996_v8  ;;  %v1501_v59 = vld [vmem:[%s14754_s7 + $0x1ef0] sm:$0xff] }
 0x41e   : > { %v13964_v24 = vcombine.high %v1497_v26, %v1501_v59  ;;  %v1361_v2 = vld [vmem:[%s14754_s7 + $0x1a90] sm:$0xff]  ;;  %v13963_v61 = vcombine.low %v1497_v26, %v1501_v59 }
 0x41f   : > { %11440 = vmatpush2.bf16.msra.mxu0 %v13867_v42  ;;  %v1365_v29 = vld [vmem:[%s14754_s7 + $0x1ab0] sm:$0xff] }
 0x420   : > { %11481 = vmatpush2.bf16.msra.mxu1 %v13995_v62  ;;  %11441 = vmatprep.subr.bf16.mxu0 %v13860_v55  ;;  %v1489_v36 = vld [vmem:[%s14754_s7 + $0x1e90] sm:$0xff]  ;;  %v13828_v41 = vcombine.high %v1361_v2, %v1365_v29  ;;  %v13827_v20 = vcombine.low %v1361_v2, %v1365_v29 }
 0x421   : > { %11482 = vmatprep.subr.bf16.mxu1 %v13988_v3  ;;  %v1493_v8 = vld [vmem:[%s14754_s7 + $0x1eb0] sm:$0xff] }
 0x422   : > { %v13956_v10 = vcombine.high %v1489_v36, %v1493_v8  ;;  %v1353_v42 = vld [vmem:[%s14754_s7 + $0x1a50] sm:$0xff]  ;;  %v13955_v37 = vcombine.low %v1489_v36, %v1493_v8 }
 0x423   : > { %11442 = vmatpush2.bf16.msra.mxu0 %v13859_v28  ;;  %v1357_v62 = vld [vmem:[%s14754_s7 + $0x1a70] sm:$0xff] }
 0x424   : > { %11483 = vmatpush2.bf16.msra.mxu1 %v13987_v39  ;;  %11443 = vmatprep.subr.bf16.mxu0 %v13852_v48  ;;  %v1481_v55 = vld [vmem:[%s14754_s7 + $0x1e50] sm:$0xff]  ;;  %v13820_v19 = vcombine.high %v1353_v42, %v1357_v62  ;;  %v13819_v23 = vcombine.low %v1353_v42, %v1357_v62 }
 0x425   : > { %11484 = vmatprep.subr.bf16.mxu1 %v13980_v57  ;;  %v1485_v3 = vld [vmem:[%s14754_s7 + $0x1e70] sm:$0xff] }
 0x426   : > { %v13948_v6 = vcombine.high %v1481_v55, %v1485_v3  ;;  %v1345_v28 = vld [vmem:[%s14754_s7 + $0x1a10] sm:$0xff]  ;;  %v13947_v53 = vcombine.low %v1481_v55, %v1485_v3 }
 0x427   : > { %11444 = vmatpush2.bf16.msra.mxu0 %v13851_v50  ;;  %v1349_v39 = vld [vmem:[%s14754_s7 + $0x1a30] sm:$0xff] }
 0x428   : > { %11485 = vmatpush2.bf16.msra.mxu1 %v13979_v7  ;;  %11445 = vmatprep.subr.bf16.mxu0 %v13844_v51  ;;  %v1473_v48 = vld [vmem:[%s14754_s7 + $0x1e10] sm:$0xff]  ;;  %v13812_v56 = vcombine.high %v1345_v28, %v1349_v39  ;;  %v13811_v14 = vcombine.low %v1345_v28, %v1349_v39 }
 0x429   : > { %11486 = vmatprep.subr.bf16.mxu1 %v13972_v32  ;;  %v1477_v57 = vld [vmem:[%s14754_s7 + $0x1e30] sm:$0xff] }
 0x42a   : > { %v13940_v22 = vcombine.high %v1473_v48, %v1477_v57  ;;  %v1593_v50 = vld [vmem:[%s14754_s7 + $0x21d0] sm:$0xff]  ;;  %v13939_v31 = vcombine.low %v1473_v48, %v1477_v57 }
 0x42b   : > { %11446 = vmatpush2.bf16.msra.mxu0 %v13843_v21  ;;  %v1597_v7 = vld [vmem:[%s14754_s7 + $0x21f0] sm:$0xff] }
 0x42c   : > { %11487 = vmatpush2.bf16.msra.mxu1 %v13971_v63  ;;  %11447 = vmatprep.subr.bf16.mxu0 %v13836_v25  ;;  %v1721_v51 = vld [vmem:[%s14754_s7 + $0x25d0] sm:$0xff]  ;;  %v14060_v26 = vcombine.high %v1593_v50, %v1597_v7  ;;  %v14059_v2 = vcombine.low %v1593_v50, %v1597_v7 }
 0x42d   : > { %11488 = vmatprep.subr.bf16.mxu1 %v13964_v24  ;;  %v1725_v32 = vld [vmem:[%s14754_s7 + $0x25f0] sm:$0xff] }
 0x42e   : > { %v14188_v59 = vcombine.high %v1721_v51, %v1725_v32  ;;  %v1585_v21 = vld [vmem:[%s14754_s7 + $0x2190] sm:$0xff]  ;;  %v14187_v29 = vcombine.low %v1721_v51, %v1725_v32 }
 0x42f   : > { %11448 = vmatpush2.bf16.msra.mxu0 %v13835_v30  ;;  %v1589_v63 = vld [vmem:[%s14754_s7 + $0x21b0] sm:$0xff] }
 0x430   : > { %11489 = vmatpush2.bf16.msra.mxu1 %v13963_v61  ;;  %11449 = vmatprep.subr.bf16.mxu0 %v13828_v41  ;;  %v1713_v25 = vld [vmem:[%s14754_s7 + $0x2590] sm:$0xff]  ;;  %v14052_v36 = vcombine.high %v1585_v21, %v1589_v63  ;;  %v14051_v55 = vcombine.low %v1585_v21, %v1589_v63 }
 0x431   : > { %11490 = vmatprep.subr.bf16.mxu1 %v13956_v10  ;;  %v1717_v24 = vld [vmem:[%s14754_s7 + $0x25b0] sm:$0xff] }
 0x432   : > { %v14180_v8 = vcombine.high %v1713_v25, %v1717_v24  ;;  %v1577_v30 = vld [vmem:[%s14754_s7 + $0x2150] sm:$0xff] }
 0x433   : > { %11450 = vmatpush2.bf16.msra.mxu0 %v13827_v20  ;;  %v1581_v61 = vld [vmem:[%s14754_s7 + $0x2170] sm:$0xff] }
 0x434   : > { %11491 = vmatpush2.bf16.msra.mxu1 %v13955_v37  ;;  %11451 = vmatprep.subr.bf16.mxu0 %v13820_v19  ;;  %v1705_v10 = vld [vmem:[%s14754_s7 + $0x2550] sm:$0xff]  ;;  %v14179_v37 = vcombine.low %v1713_v25, %v1717_v24  ;;  %v14044_v19 = vcombine.high %v1577_v30, %v1581_v61  ;;  %v14043_v50 = vcombine.low %v1577_v30, %v1581_v61 }
 0x435   : > { %11492 = vmatprep.subr.bf16.mxu1 %v13948_v6  ;;  %v1709_v42 = vld [vmem:[%s14754_s7 + $0x2570] sm:$0xff] }
 0x436   : > { %v14172_v28 = vcombine.high %v1705_v10, %v1709_v42  ;;  %v1569_v39 = vld [vmem:[%s14754_s7 + $0x2110] sm:$0xff]  ;;  %v14171_v51 = vcombine.low %v1705_v10, %v1709_v42 }
 0x437   : > { %11452 = vmatpush2.bf16.msra.mxu0 %v13819_v23  ;;  %v1573_v48 = vld [vmem:[%s14754_s7 + $0x2130] sm:$0xff] }
 0x438   : > { %11493 = vmatpush2.bf16.msra.mxu1 %v13947_v53  ;;  %11453 = vmatprep.subr.bf16.mxu0 %v13812_v56  ;;  %v1697_v53 = vld [vmem:[%s14754_s7 + $0x2510] sm:$0xff]  ;;  %v14036_v32 = vcombine.high %v1569_v39, %v1573_v48  ;;  %v14035_v25 = vcombine.low %v1569_v39, %v1573_v48 }
 0x439   : > { %11494 = vmatprep.subr.bf16.mxu1 %v13940_v22  ;;  %v1701_v56 = vld [vmem:[%s14754_s7 + $0x2530] sm:$0xff] }
 0x43a   : > { %v1689_v21 = vld [vmem:[%s14754_s7 + $0x24d0] sm:$0xff]  ;;  %v14163_v24 = vcombine.low %v1697_v53, %v1701_v56 }
 0x43b   : > { %11454 = vmatpush2.bf16.msra.mxu0 %v13811_v14  ;;  %v1693_v63 = vld [vmem:[%s14754_s7 + $0x24f0] sm:$0xff] }
 0x43c   : > { %11495 = vmatpush2.bf16.msra.mxu1 %v13939_v31  ;;  %11505 = vmatprep.subr.bf16.mxu0 %v14060_v26  ;;  %v14164_v31 = vcombine.high %v1697_v53, %v1701_v56  ;;  %v1561_v26 = vld [vmem:[%s14754_s7 + $0x20d0] sm:$0xff]  ;;  %v14155_v10 = vcombine.low %v1689_v21, %v1693_v63 }
 0x43d   : > { %11546 = vmatprep.subr.bf16.mxu1 %v14188_v59  ;;  %v1565_v59 = vld [vmem:[%s14754_s7 + $0x20f0] sm:$0xff] }
 0x43e   : > { %v11211_v41 = vpop.f32.mrf.mxu0  ;;  %11456 = vmatmul.mubr.bf16.vlgmr.msra.gmra.mxu0 %v15133_v40  ;;  %v1681_v30 = vld [vmem:[%s14754_s7 + $0x2490] sm:$0xff] }
 0x43f   : > { %v11252_v62 = vpop.f32.mrf.mxu1  ;;  %11497 = vmatmul.mubr.bf16.vlgmr.msra.gmra.mxu1 %v15141_v46  ;;  %11506 = vmatpush1.bf16.msra.mxu0 %v14059_v2  ;;  %v14028_v2 = vcombine.high %v1561_v26, %v1565_v59  ;;  %v1685_v61 = vld [vmem:[%s14754_s7 + $0x24b0] sm:$0xff] }
 0x440   : > { %v16152_v3 = vadd.f32 %v11252_v62, %v11211_v41  ;;  %11547 = vmatpush1.bf16.msra.mxu1 %v14187_v29  ;;  %v11213_v20 = vpop.f32.mrf.mxu0  ;;  %11507 = vmatprep.subr.bf16.mxu0 %v14052_v36  ;;  %v14156_v29 = vcombine.high %v1689_v21, %v1693_v63  ;;  %v1553_v36 = vld [vmem:[%s14754_s7 + $0x2090] sm:$0xff]  ;;  %v14027_v41 = vcombine.low %v1561_v26, %v1565_v59 }
 0x441   : > { %v11254_v6 = vpop.f32.mrf.mxu1  ;;  %11548 = vmatprep.subr.bf16.mxu1 %v14180_v8  ;;  %11537 = vmatprep.mubr.bf16.mxu0 %v15145_v52  ;;  %v1557_v8 = vld [vmem:[%s14754_s7 + $0x20b0] sm:$0xff]  ;;  %v14148_v62 = vcombine.high %v1681_v30, %v1685_v61 }
 0x442   : > { %v16157_v57 = vadd.f32 %v11254_v6, %v11213_v20  ;;  %v11215_v23 = vpop.f32.mrf.mxu0  ;;  %11578 = vmatprep.mubr.bf16.mxu1 %v15150_v35  ;;  %v14020_v42 = vcombine.high %v1553_v36, %v1557_v8  ;;  %v1549_v20 = vld [vmem:[%s14754_s7 + $0x2070] sm:$0xff]  ;;  %v14019_v6 = vcombine.low %v1553_v36, %v1557_v8 }
 0x443   : > { %v11256_v22 = vpop.f32.mrf.mxu1  ;;  %11508 = vmatpush1.bf16.msra.mxu0 %v14051_v55  ;;  %v1545_v55 = vld [vmem:[%s14754_s7 + $0x2050] sm:$0xff] }
 0x444   : > { %11549 = vmatpush1.bf16.msra.mxu1 %v14179_v37  ;;  %v11216_v7 = vpop.f32.mrf.mxu0  ;;  %11509 = vmatprep.subr.bf16.mxu0 %v14044_v19  ;;  %v1673_v37 = vld [vmem:[%s14754_s7 + $0x2450] sm:$0xff]  ;;  %v14012_v39 = vcombine.high %v1545_v55, %v1549_v20 }
 0x445   : > { %v11257_v14 = vpop.f32.mrf.mxu1  ;;  %11550 = vmatprep.subr.bf16.mxu1 %v14172_v28  ;;  %v1677_v19 = vld [vmem:[%s14754_s7 + $0x2470] sm:$0xff]  ;;  %v14147_v28 = vcombine.low %v1681_v30, %v1685_v61 }
 0x446   : > { %v14140_v48 = vcombine.high %v1673_v37, %v1677_v19  ;;  %v1537_v23 = vld [vmem:[%s14754_s7 + $0x2010] sm:$0xff]  ;;  %v14139_v7 = vcombine.low %v1673_v37, %v1677_v19 }
 0x447   : > { %11510 = vmatpush1.bf16.msra.mxu0 %v14043_v50  ;;  %v1541_v53 = vld [vmem:[%s14754_s7 + $0x2030] sm:$0xff]  ;;  %v14011_v50 = vcombine.low %v1545_v55, %v1549_v20 }
 0x448   : > { %11551 = vmatpush1.bf16.msra.mxu1 %v14171_v51  ;;  %11511 = vmatprep.subr.bf16.mxu0 %v14036_v32  ;;  %v1665_v56 = vld [vmem:[%s14754_s7 + $0x2410] sm:$0xff]  ;;  %v14004_v51 = vcombine.high %v1537_v23, %v1541_v53  ;;  %v14003_v21 = vcombine.low %v1537_v23, %v1541_v53 }
 0x449   : > { %11552 = vmatprep.subr.bf16.mxu1 %v14164_v31  ;;  %v1669_v22 = vld [vmem:[%s14754_s7 + $0x2430] sm:$0xff] }
 0x44a   : > { %v14132_v32 = vcombine.high %v1665_v56, %v1669_v22  ;;  %v1657_v14 = vld [vmem:[%s14754_s7 + $0x23d0] sm:$0xff]  ;;  %v14131_v63 = vcombine.low %v1665_v56, %v1669_v22 }
 0x44b   : > { %11512 = vmatpush1.bf16.msra.mxu0 %v14035_v25  ;;  %v1661_v31 = vld [vmem:[%s14754_s7 + $0x23f0] sm:$0xff] }
 0x44c   : > { %11553 = vmatpush1.bf16.msra.mxu1 %v14163_v24  ;;  %11513 = vmatprep.subr.bf16.mxu0 %v14028_v2  ;;  %v1785_v26 = vld [vmem:[%s14754_s7 + $0x27d0] sm:$0xff]  ;;  %v14124_v25 = vcombine.high %v1657_v14, %v1661_v31  ;;  %v14123_v30 = vcombine.low %v1657_v14, %v1661_v31 }
 0x44d   : > { %11554 = vmatprep.subr.bf16.mxu1 %v14156_v29  ;;  %v1789_v59 = vld [vmem:[%s14754_s7 + $0x27f0] sm:$0xff] }
 0x44e   : > { %v14252_v24 = vcombine.high %v1785_v26, %v1789_v59  ;;  %v1649_v2 = vld [vmem:[%s14754_s7 + $0x2390] sm:$0xff]  ;;  %v14251_v61 = vcombine.low %v1785_v26, %v1789_v59 }
 0x44f   : > { %11514 = vmatpush1.bf16.msra.mxu0 %v14027_v41  ;;  %v1653_v29 = vld [vmem:[%s14754_s7 + $0x23b0] sm:$0xff] }
 0x450   : > { %11555 = vmatpush1.bf16.msra.mxu1 %v14155_v10  ;;  %11515 = vmatprep.subr.bf16.mxu0 %v14020_v42  ;;  %v1777_v36 = vld [vmem:[%s14754_s7 + $0x2790] sm:$0xff]  ;;  %v14116_v41 = vcombine.high %v1649_v2, %v1653_v29  ;;  %v14115_v37 = vcombine.low %v1649_v2, %v1653_v29 }
 0x451   : > { %11556 = vmatprep.subr.bf16.mxu1 %v14148_v62  ;;  %v1781_v8 = vld [vmem:[%s14754_s7 + $0x27b0] sm:$0xff] }
 0x452   : > { %v14244_v10 = vcombine.high %v1777_v36, %v1781_v8  ;;  %v1641_v42 = vld [vmem:[%s14754_s7 + $0x2350] sm:$0xff]  ;;  %v14243_v19 = vcombine.low %v1777_v36, %v1781_v8 }
 0x453   : > { %11516 = vmatpush1.bf16.msra.mxu0 %v14019_v6  ;;  %v1645_v62 = vld [vmem:[%s14754_s7 + $0x2370] sm:$0xff] }
 0x454   : > { %11557 = vmatpush1.bf16.msra.mxu1 %v14147_v28  ;;  %11517 = vmatprep.subr.bf16.mxu0 %v14012_v39  ;;  %v1769_v55 = vld [vmem:[%s14754_s7 + $0x2750] sm:$0xff]  ;;  %v14108_v6 = vcombine.high %v1641_v42, %v1645_v62  ;;  %v14107_v56 = vcombine.low %v1641_v42, %v1645_v62 }
 0x455   : > { %11558 = vmatprep.subr.bf16.mxu1 %v14140_v48  ;;  %v1773_v20 = vld [vmem:[%s14754_s7 + $0x2770] sm:$0xff] }
 0x456   : > { %v14236_v28 = vcombine.high %v1769_v55, %v1773_v20  ;;  %v1633_v39 = vld [vmem:[%s14754_s7 + $0x2310] sm:$0xff]  ;;  %v14235_v22 = vcombine.low %v1769_v55, %v1773_v20 }
 0x457   : > { %11518 = vmatpush1.bf16.msra.mxu0 %v14011_v50  ;;  %v1637_v48 = vld [vmem:[%s14754_s7 + $0x2330] sm:$0xff] }
 0x458   : > { %11559 = vmatpush1.bf16.msra.mxu1 %v14139_v7  ;;  %11519 = vmatprep.subr.bf16.mxu0 %v14004_v51  ;;  %v1761_v23 = vld [vmem:[%s14754_s7 + $0x2710] sm:$0xff]  ;;  %v14100_v50 = vcombine.high %v1633_v39, %v1637_v48  ;;  %v14099_v26 = vcombine.low %v1633_v39, %v1637_v48 }
 0x459   : > { %11560 = vmatprep.subr.bf16.mxu1 %v14132_v32  ;;  %v1765_v53 = vld [vmem:[%s14754_s7 + $0x2730] sm:$0xff] }
 0x45a   : > { %v14228_v7 = vcombine.high %v1761_v23, %v1765_v53  ;;  %v1625_v51 = vld [vmem:[%s14754_s7 + $0x22d0] sm:$0xff]  ;;  %v14227_v59 = vcombine.low %v1761_v23, %v1765_v53 }
 0x45b   : > { %11520 = vmatpush1.bf16.msra.mxu0 %v14003_v21  ;;  %v1629_v32 = vld [vmem:[%s14754_s7 + $0x22f0] sm:$0xff] }
 0x45c   : > { %11561 = vmatpush1.bf16.msra.mxu1 %v14131_v63  ;;  %11521 = vmatprep.subr.bf16.mxu0 %v14124_v25  ;;  %v1753_v14 = vld [vmem:[%s14754_s7 + $0x26d0] sm:$0xff]  ;;  %v14092_v21 = vcombine.high %v1625_v51, %v1629_v32  ;;  %v14091_v36 = vcombine.low %v1625_v51, %v1629_v32 }
 0x45d   : > { %11562 = vmatprep.subr.bf16.mxu1 %v14252_v24  ;;  %v1757_v31 = vld [vmem:[%s14754_s7 + $0x26f0] sm:$0xff] }
 0x45e   : > { %v14220_v63 = vcombine.high %v1753_v14, %v1757_v31  ;;  %v1617_v25 = vld [vmem:[%s14754_s7 + $0x2290] sm:$0xff]  ;;  %v14219_v8 = vcombine.low %v1753_v14, %v1757_v31 }
 0x45f   : > { %11522 = vmatpush2.bf16.msra.mxu0 %v14123_v30  ;;  %v1621_v24 = vld [vmem:[%s14754_s7 + $0x22b0] sm:$0xff] }
 0x460   : > { %11563 = vmatpush2.bf16.msra.mxu1 %v14251_v61  ;;  %11523 = vmatprep.subr.bf16.mxu0 %v14116_v41  ;;  %v1745_v2 = vld [vmem:[%s14754_s7 + $0x2690] sm:$0xff]  ;;  %v14084_v30 = vcombine.high %v1617_v25, %v1621_v24  ;;  %v14083_v55 = vcombine.low %v1617_v25, %v1621_v24 }
 0x461   : > { %11564 = vmatprep.subr.bf16.mxu1 %v14244_v10  ;;  %v1749_v29 = vld [vmem:[%s14754_s7 + $0x26b0] sm:$0xff] }
 0x462   : > { %v14212_v61 = vcombine.high %v1745_v2, %v1749_v29  ;;  %v1609_v41 = vld [vmem:[%s14754_s7 + $0x2250] sm:$0xff]  ;;  %v14211_v20 = vcombine.low %v1745_v2, %v1749_v29 }
 0x463   : > { %11524 = vmatpush2.bf16.msra.mxu0 %v14115_v37  ;;  %v1613_v10 = vld [vmem:[%s14754_s7 + $0x2270] sm:$0xff] }
 0x464   : > { %11565 = vmatpush2.bf16.msra.mxu1 %v14243_v19  ;;  %11525 = vmatprep.subr.bf16.mxu0 %v14108_v6  ;;  %v1737_v42 = vld [vmem:[%s14754_s7 + $0x2650] sm:$0xff]  ;;  %v14076_v37 = vcombine.high %v1609_v41, %v1613_v10  ;;  %v14075_v23 = vcombine.low %v1609_v41, %v1613_v10 }
 0x465   : > { %11566 = vmatprep.subr.bf16.mxu1 %v14236_v28  ;;  %v1741_v62 = vld [vmem:[%s14754_s7 + $0x2670] sm:$0xff] }
 0x466   : > { %v14204_v19 = vcombine.high %v1737_v42, %v1741_v62  ;;  %v1601_v6 = vld [vmem:[%s14754_s7 + $0x2210] sm:$0xff]  ;;  %v14203_v53 = vcombine.low %v1737_v42, %v1741_v62 }
 0x467   : > { %11526 = vmatpush2.bf16.msra.mxu0 %v14107_v56  ;;  %v1605_v28 = vld [vmem:[%s14754_s7 + $0x2230] sm:$0xff] }
 0x468   : > { %11567 = vmatpush2.bf16.msra.mxu1 %v14235_v22  ;;  %11527 = vmatprep.subr.bf16.mxu0 %v14100_v50  ;;  %v1729_v39 = vld [vmem:[%s14754_s7 + $0x2610] sm:$0xff]  ;;  %v14068_v56 = vcombine.high %v1601_v6, %v1605_v28  ;;  %v14067_v14 = vcombine.low %v1601_v6, %v1605_v28 }
 0x469   : > { %11568 = vmatprep.subr.bf16.mxu1 %v14228_v7  ;;  %v1733_v48 = vld [vmem:[%s14754_s7 + $0x2630] sm:$0xff] }
 0x46a   : > { %v14196_v22 = vcombine.high %v1729_v39, %v1733_v48  ;;  %v1849_v50 = vld [vmem:[%s14754_s7 + $0x29d0] sm:$0xff]  ;;  %v14195_v31 = vcombine.low %v1729_v39, %v1733_v48 }
 0x46b   : > { %11528 = vmatpush2.bf16.msra.mxu0 %v14099_v26  ;;  %v1853_v7 = vld [vmem:[%s14754_s7 + $0x29f0] sm:$0xff] }
 0x46c   : > { %11569 = vmatpush2.bf16.msra.mxu1 %v14227_v59  ;;  %11529 = vmatprep.subr.bf16.mxu0 %v14092_v21  ;;  %v1977_v51 = vld [vmem:[%s14754_s7 + $0x2dd0] sm:$0xff]  ;;  %v14316_v26 = vcombine.high %v1849_v50, %v1853_v7  ;;  %v14315_v2 = vcombine.low %v1849_v50, %v1853_v7 }
 0x46d   : > { %11570 = vmatprep.subr.bf16.mxu1 %v14220_v63  ;;  %v1981_v32 = vld [vmem:[%s14754_s7 + $0x2df0] sm:$0xff] }
 0x46e   : > { %v14444_v59 = vcombine.high %v1977_v51, %v1981_v32  ;;  %v1841_v21 = vld [vmem:[%s14754_s7 + $0x2990] sm:$0xff]  ;;  %v14443_v29 = vcombine.low %v1977_v51, %v1981_v32 }
 0x46f   : > { %11530 = vmatpush2.bf16.msra.mxu0 %v14091_v36  ;;  %v1845_v63 = vld [vmem:[%s14754_s7 + $0x29b0] sm:$0xff] }
 0x470   : > { %11571 = vmatpush2.bf16.msra.mxu1 %v14219_v8  ;;  %11531 = vmatprep.subr.bf16.mxu0 %v14084_v30  ;;  %v1969_v25 = vld [vmem:[%s14754_s7 + $0x2d90] sm:$0xff]  ;;  %v14308_v36 = vcombine.high %v1841_v21, %v1845_v63 }
 0x471   : > { %11572 = vmatprep.subr.bf16.mxu1 %v14212_v61  ;;  %v1973_v24 = vld [vmem:[%s14754_s7 + $0x2db0] sm:$0xff] }
 0x472   : > { %v14436_v8 = vcombine.high %v1969_v25, %v1973_v24  ;;  %v1833_v30 = vld [vmem:[%s14754_s7 + $0x2950] sm:$0xff] }
 0x473   : > { %11532 = vmatpush2.bf16.msra.mxu0 %v14083_v55  ;;  %v1837_v61 = vld [vmem:[%s14754_s7 + $0x2970] sm:$0xff] }
 0x474   : > { %11573 = vmatpush2.bf16.msra.mxu1 %v14211_v20  ;;  %11533 = vmatprep.subr.bf16.mxu0 %v14076_v37  ;;  %v1961_v10 = vld [vmem:[%s14754_s7 + $0x2d50] sm:$0xff]  ;;  %v14307_v20 = vcombine.low %v1841_v21, %v1845_v63  ;;  %v14300_v6 = vcombine.high %v1833_v30, %v1837_v61 }
 0x475   : > { %11574 = vmatprep.subr.bf16.mxu1 %v14204_v19  ;;  %v1965_v42 = vld [vmem:[%s14754_s7 + $0x2d70] sm:$0xff]  ;;  %v14435_v19 = vcombine.low %v1969_v25, %v1973_v24 }
 0x476   : > { %v1957_v50 = vld [vmem:[%s14754_s7 + $0x2d30] sm:$0xff] }
 0x477   : > { %11534 = vmatpush2.bf16.msra.mxu0 %v14075_v23  ;;  %v1825_v23 = vld [vmem:[%s14754_s7 + $0x2910] sm:$0xff] }
 0x478   : > { %11575 = vmatpush2.bf16.msra.mxu1 %v14203_v53  ;;  %11535 = vmatprep.subr.bf16.mxu0 %v14068_v56  ;;  %v1829_v53 = vld [vmem:[%s14754_s7 + $0x2930] sm:$0xff] }
 0x479   : > { %11576 = vmatprep.subr.bf16.mxu1 %v14196_v22  ;;  %v1953_v22 = vld [vmem:[%s14754_s7 + $0x2d10] sm:$0xff] }
 0x47a   : > { %v1817_v21 = vld [vmem:[%s14754_s7 + $0x28d0] sm:$0xff] }
 0x47b   : > { %11536 = vmatpush2.bf16.msra.mxu0 %v14067_v14  ;;  %v14427_v14 = vcombine.low %v1961_v10, %v1965_v42  ;;  %v1821_v63 = vld [vmem:[%s14754_s7 + $0x28f0] sm:$0xff] }
 0x47c   : > { %11577 = vmatpush2.bf16.msra.mxu1 %v14195_v31  ;;  %11587 = vmatprep.subr.bf16.mxu0 %v14316_v26  ;;  %v14292_v31 = vcombine.high %v1825_v23, %v1829_v53  ;;  %v1945_v25 = vld [vmem:[%s14754_s7 + $0x2cd0] sm:$0xff] }
 0x47d   : > { %11628 = vmatprep.subr.bf16.mxu1 %v14444_v59  ;;  %v14420_v59 = vcombine.high %v1953_v22, %v1957_v50  ;;  %v1949_v24 = vld [vmem:[%s14754_s7 + $0x2cf0] sm:$0xff] }
 0x47e   : > { %v11293_v41 = vpop.f32.mrf.mxu0  ;;  %11538 = vmatmul.mubr.bf16.vlgmr.msra.gmra.mxu0 %v15228_v11 }
 0x47f   : > { %v11294_v62 = vadd.f32 %v11293_v41, %v16152_v3  ;;  %v11334_v55 = vpop.f32.mrf.mxu1  ;;  %11579 = vmatmul.mubr.bf16.vlgmr.msra.gmra.mxu1 %v15236_v18  ;;  %11588 = vmatpush1.bf16.msra.mxu0 %v14315_v2  ;;  %v14428_v3 = vcombine.high %v1961_v10, %v1965_v42  ;;  %v14291_v2 = vcombine.low %v1825_v23, %v1829_v53  ;;  %v1937_v41 = vld [vmem:[%s14754_s7 + $0x2c90] sm:$0xff] }
 0x480   : > { %11629 = vmatpush1.bf16.msra.mxu1 %v14443_v29  ;;  %v11295_v37 = vpop.f32.mrf.mxu0  ;;  %11589 = vmatprep.subr.bf16.mxu0 %v14308_v36  ;;  %v14419_v29 = vcombine.low %v1953_v22, %v1957_v50  ;;  %v14284_v36 = vcombine.high %v1817_v21, %v1821_v63  ;;  %v1941_v10 = vld [vmem:[%s14754_s7 + $0x2cb0] sm:$0xff]  ;;  %v14283_v42 = vcombine.low %v1817_v21, %v1821_v63 }
 0x481   : > { %v16225_v28 = vadd.f32 %v11334_v55, %v11294_v62  ;;  %v11296_v39 = vadd.f32 %v11295_v37, %v16157_v57  ;;  %v11336_v48 = vpop.f32.mrf.mxu1  ;;  %11630 = vmatprep.subr.bf16.mxu1 %v14436_v8  ;;  %11619 = vmatprep.mubr.bf16.mxu0 %v15240_v27  ;;  %v14299_v57 = vcombine.low %v1833_v30, %v1837_v61  ;;  %v1809_v30 = vld [vmem:[%s14754_s7 + $0x2890] sm:$0xff] }
 0x482   : > { %v11297_v56 = vpop.f32.mrf.mxu0  ;;  %11660 = vmatprep.mubr.bf16.mxu1 %v15245_v33  ;;  %v14412_v8 = vcombine.high %v1945_v25, %v1949_v24  ;;  %v1813_v61 = vld [vmem:[%s14754_s7 + $0x28b0] sm:$0xff]  ;;  %v14411_v62 = vcombine.low %v1945_v25, %v1949_v24 }
 0x483   : > { %v16234_v7 = vadd.f32 %v11336_v48, %v11296_v39  ;;  %v11338_v51 = vpop.f32.mrf.mxu1  ;;  %11590 = vmatpush1.bf16.msra.mxu0 %v14307_v20  ;;  %v14276_v55 = vcombine.high %v1809_v30, %v1813_v61  ;;  %v14404_v20 = vcombine.high %v1937_v41, %v1941_v10  ;;  %v1801_v37 = vld [vmem:[%s14754_s7 + $0x2850] sm:$0xff]  ;;  %v14275_v48 = vcombine.low %v1809_v30, %v1813_v61 }
 0x484   : > { %11631 = vmatpush1.bf16.msra.mxu1 %v14435_v19  ;;  %v11298_v32 = vpop.f32.mrf.mxu0  ;;  %11591 = vmatprep.subr.bf16.mxu0 %v14300_v6  ;;  %v1805_v19 = vld [vmem:[%s14754_s7 + $0x2870] sm:$0xff] }
 0x485   : > { %v11339_v26 = vpop.f32.mrf.mxu1  ;;  %11632 = vmatprep.subr.bf16.mxu1 %v14428_v3  ;;  %v1929_v6 = vld [vmem:[%s14754_s7 + $0x2c50] sm:$0xff]  ;;  %v14403_v3 = vcombine.low %v1937_v41, %v1941_v10  ;;  %v14268_v23 = vcombine.high %v1801_v37, %v1805_v19 }
 0x486   : > { %v1933_v39 = vld [vmem:[%s14754_s7 + $0x2c70] sm:$0xff] }
 0x487   : > { %11592 = vmatpush1.bf16.msra.mxu0 %v14299_v57  ;;  %v14396_v53 = vcombine.high %v1929_v6, %v1933_v39  ;;  %v1793_v56 = vld [vmem:[%s14754_s7 + $0x2810] sm:$0xff]  ;;  %v14267_v57 = vcombine.low %v1801_v37, %v1805_v19  ;;  %v14395_v32 = vcombine.low %v1929_v6, %v1933_v39 }
 0x488   : > { %11633 = vmatpush1.bf16.msra.mxu1 %v14427_v14  ;;  %11593 = vmatprep.subr.bf16.mxu0 %v14292_v31  ;;  %v1797_v22 = vld [vmem:[%s14754_s7 + $0x2830] sm:$0xff] }
 0x489   : > { %11634 = vmatprep.subr.bf16.mxu1 %v14420_v59  ;;  %v1921_v50 = vld [vmem:[%s14754_s7 + $0x2c10] sm:$0xff]  ;;  %v14260_v14 = vcombine.high %v1793_v56, %v1797_v22  ;;  %v14259_v25 = vcombine.low %v1793_v56, %v1797_v22 }
 0x48a   : > { %v1925_v51 = vld [vmem:[%s14754_s7 + $0x2c30] sm:$0xff] }
 0x48b   : > { %11594 = vmatpush1.bf16.msra.mxu0 %v14291_v2  ;;  %v14388_v31 = vcombine.high %v1921_v50, %v1925_v51  ;;  %v1913_v26 = vld [vmem:[%s14754_s7 + $0x2bd0] sm:$0xff]  ;;  %v14387_v24 = vcombine.low %v1921_v50, %v1925_v51 }
 0x48c   : > { %11635 = vmatpush1.bf16.msra.mxu1 %v14419_v29  ;;  %11595 = vmatprep.subr.bf16.mxu0 %v14284_v36  ;;  %v1917_v59 = vld [vmem:[%s14754_s7 + $0x2bf0] sm:$0xff] }
 0x48d   : > { %11636 = vmatprep.subr.bf16.mxu1 %v14412_v8  ;;  %v2041_v21 = vld [vmem:[%s14754_s7 + $0x2fd0] sm:$0xff]  ;;  %v14380_v2 = vcombine.high %v1913_v26, %v1917_v59  ;;  %v14379_v41 = vcombine.low %v1913_v26, %v1917_v59 }
 0x48e   : > { %v2045_v63 = vld [vmem:[%s14754_s7 + $0x2ff0] sm:$0xff] }
 0x48f   : > { %11596 = vmatpush1.bf16.msra.mxu0 %v14283_v42  ;;  %v14508_v29 = vcombine.high %v2041_v21, %v2045_v63  ;;  %v1905_v36 = vld [vmem:[%s14754_s7 + $0x2b90] sm:$0xff]  ;;  %v14507_v10 = vcombine.low %v2041_v21, %v2045_v63 }
 0x490   : > { %11637 = vmatpush1.bf16.msra.mxu1 %v14411_v62  ;;  %11597 = vmatprep.subr.bf16.mxu0 %v14276_v55  ;;  %v1909_v8 = vld [vmem:[%s14754_s7 + $0x2bb0] sm:$0xff] }
 0x491   : > { %11638 = vmatprep.subr.bf16.mxu1 %v14404_v20  ;;  %v2033_v30 = vld [vmem:[%s14754_s7 + $0x2f90] sm:$0xff]  ;;  %v14372_v42 = vcombine.high %v1905_v36, %v1909_v8  ;;  %v14371_v6 = vcombine.low %v1905_v36, %v1909_v8 }
 0x492   : > { %v2037_v61 = vld [vmem:[%s14754_s7 + $0x2fb0] sm:$0xff] }
 0x493   : > { %11598 = vmatpush1.bf16.msra.mxu0 %v14275_v48  ;;  %v14500_v62 = vcombine.high %v2033_v30, %v2037_v61  ;;  %v1897_v55 = vld [vmem:[%s14754_s7 + $0x2b50] sm:$0xff]  ;;  %v14499_v39 = vcombine.low %v2033_v30, %v2037_v61 }
 0x494   : > { %11639 = vmatpush1.bf16.msra.mxu1 %v14403_v3  ;;  %11599 = vmatprep.subr.bf16.mxu0 %v14268_v23  ;;  %v1901_v20 = vld [vmem:[%s14754_s7 + $0x2b70] sm:$0xff] }
 0x495   : > { %11640 = vmatprep.subr.bf16.mxu1 %v14396_v53  ;;  %v2025_v37 = vld [vmem:[%s14754_s7 + $0x2f50] sm:$0xff]  ;;  %v14364_v48 = vcombine.high %v1897_v55, %v1901_v20  ;;  %v14363_v50 = vcombine.low %v1897_v55, %v1901_v20 }
 0x496   : > { %v2029_v19 = vld [vmem:[%s14754_s7 + $0x2f70] sm:$0xff] }
 0x497   : > { %11600 = vmatpush1.bf16.msra.mxu0 %v14267_v57  ;;  %v14492_v3 = vcombine.high %v2025_v37, %v2029_v19  ;;  %v1889_v23 = vld [vmem:[%s14754_s7 + $0x2b10] sm:$0xff]  ;;  %v14491_v51 = vcombine.low %v2025_v37, %v2029_v19 }
 0x498   : > { %11641 = vmatpush1.bf16.msra.mxu1 %v14395_v32  ;;  %11601 = vmatprep.subr.bf16.mxu0 %v14260_v14  ;;  %v1893_v53 = vld [vmem:[%s14754_s7 + $0x2b30] sm:$0xff] }
 0x499   : > { %11642 = vmatprep.subr.bf16.mxu1 %v14388_v31  ;;  %v2017_v56 = vld [vmem:[%s14754_s7 + $0x2f10] sm:$0xff]  ;;  %v14356_v57 = vcombine.high %v1889_v23, %v1893_v53  ;;  %v14355_v21 = vcombine.low %v1889_v23, %v1893_v53 }
 0x49a   : > { %v2021_v22 = vld [vmem:[%s14754_s7 + $0x2f30] sm:$0xff] }
 0x49b   : > { %11602 = vmatpush1.bf16.msra.mxu0 %v14259_v25  ;;  %v14484_v32 = vcombine.high %v2017_v56, %v2021_v22  ;;  %v1881_v14 = vld [vmem:[%s14754_s7 + $0x2ad0] sm:$0xff]  ;;  %v14483_v63 = vcombine.low %v2017_v56, %v2021_v22 }
 0x49c   : > { %11643 = vmatpush1.bf16.msra.mxu1 %v14387_v24  ;;  %11603 = vmatprep.subr.bf16.mxu0 %v14380_v2  ;;  %v1885_v31 = vld [vmem:[%s14754_s7 + $0x2af0] sm:$0xff] }
 0x49d   : > { %11644 = vmatprep.subr.bf16.mxu1 %v14508_v29  ;;  %v2009_v26 = vld [vmem:[%s14754_s7 + $0x2ed0] sm:$0xff]  ;;  %v14348_v25 = vcombine.high %v1881_v14, %v1885_v31  ;;  %v14347_v30 = vcombine.low %v1881_v14, %v1885_v31  ;;  %v570_v14 = vld [vmem:[%s14754_s7 + $0x1d8] sm:$0xff] }
 0x49e   : > { %v2013_v59 = vld [vmem:[%s14754_s7 + $0x2ef0] sm:$0xff]  ;;  %v574_v31 = vld [vmem:[%s14754_s7 + $0x1f8] sm:$0xff] }
 0x49f   : > { %11604 = vmatpush2.bf16.msra.mxu0 %v14379_v41  ;;  %v14476_v24 = vcombine.high %v2009_v26, %v2013_v59  ;;  %v1873_v2 = vld [vmem:[%s14754_s7 + $0x2a90] sm:$0xff]  ;;  %v14475_v61 = vcombine.low %v2009_v26, %v2013_v59 }
 0x4a0   : > { %11645 = vmatpush2.bf16.msra.mxu1 %v14507_v10  ;;  %11605 = vmatprep.subr.bf16.mxu0 %v14372_v42  ;;  %v1877_v29 = vld [vmem:[%s14754_s7 + $0x2ab0] sm:$0xff] }
 0x4a1   : > { %11646 = vmatprep.subr.bf16.mxu1 %v14500_v62  ;;  %v2001_v36 = vld [vmem:[%s14754_s7 + $0x2e90] sm:$0xff]  ;;  %v14340_v41 = vcombine.high %v1873_v2, %v1877_v29  ;;  %v14339_v37 = vcombine.low %v1873_v2, %v1877_v29  ;;  %v562_v2 = vld [vmem:[%s14754_s7 + $0x198] sm:$0xff] }
 0x4a2   : > { %v2005_v8 = vld [vmem:[%s14754_s7 + $0x2eb0] sm:$0xff]  ;;  %v566_v29 = vld [vmem:[%s14754_s7 + $0x1b8] sm:$0xff] }
 0x4a3   : > { %11606 = vmatpush2.bf16.msra.mxu0 %v14371_v6  ;;  %v14468_v10 = vcombine.high %v2001_v36, %v2005_v8  ;;  %v1865_v42 = vld [vmem:[%s14754_s7 + $0x2a50] sm:$0xff]  ;;  %v14467_v19 = vcombine.low %v2001_v36, %v2005_v8  ;;  %v13037_v8 = vcombine.low %v570_v14, %v574_v31 }
 0x4a4   : > { %11647 = vmatpush2.bf16.msra.mxu1 %v14499_v39  ;;  %11607 = vmatprep.subr.bf16.mxu0 %v14364_v48  ;;  %v1869_v62 = vld [vmem:[%s14754_s7 + $0x2a70] sm:$0xff] }
 0x4a5   : > { %11648 = vmatprep.subr.bf16.mxu1 %v14492_v3  ;;  %v1993_v55 = vld [vmem:[%s14754_s7 + $0x2e50] sm:$0xff]  ;;  %v14332_v6 = vcombine.high %v1865_v42, %v1869_v62  ;;  %v14331_v56 = vcombine.low %v1865_v42, %v1869_v62  ;;  %v554_v62 = vld [vmem:[%s14754_s7 + $0x158] sm:$0xff] }
 0x4a6   : > { %v1997_v20 = vld [vmem:[%s14754_s7 + $0x2e70] sm:$0xff] }
 0x4a7   : > { %11608 = vmatpush2.bf16.msra.mxu0 %v14363_v50  ;;  %v14460_v39 = vcombine.high %v1993_v55, %v1997_v20  ;;  %v1857_v48 = vld [vmem:[%s14754_s7 + $0x2a10] sm:$0xff]  ;;  %v14459_v22 = vcombine.low %v1993_v55, %v1997_v20  ;;  %v558_v55 = vld [vmem:[%s14754_s7 + $0x178] sm:$0xff] }
 0x4a8   : > { %11649 = vmatpush2.bf16.msra.mxu1 %v14491_v51  ;;  %11609 = vmatprep.subr.bf16.mxu0 %v14356_v57  ;;  %v1861_v3 = vld [vmem:[%s14754_s7 + $0x2a30] sm:$0xff] }
 0x4a9   : > { %11650 = vmatprep.subr.bf16.mxu1 %v14484_v32  ;;  %v1985_v23 = vld [vmem:[%s14754_s7 + $0x2e10] sm:$0xff]  ;;  %v14324_v50 = vcombine.high %v1857_v48, %v1861_v3  ;;  %v14323_v26 = vcombine.low %v1857_v48, %v1861_v3 }
 0x4aa   : > { %v1989_v53 = vld [vmem:[%s14754_s7 + $0x2e30] sm:$0xff] }
 0x4ab   : > { %11610 = vmatpush2.bf16.msra.mxu0 %v14355_v21  ;;  %v14452_v51 = vcombine.high %v1985_v23, %v1989_v53  ;;  %v2105_v57 = vld [vmem:[%s14754_s7 + $0x31d0] sm:$0xff]  ;;  %v14451_v59 = vcombine.low %v1985_v23, %v1989_v53 }
 0x4ac   : > { %11651 = vmatpush2.bf16.msra.mxu1 %v14483_v63  ;;  %11611 = vmatprep.subr.bf16.mxu0 %v14348_v25  ;;  %v2109_v32 = vld [vmem:[%s14754_s7 + $0x31f0] sm:$0xff]  ;;  %v13038_v63 = vcombine.high %v570_v14, %v574_v31 }
 0x4ad   : > { %11652 = vmatprep.subr.bf16.mxu1 %v14476_v24  ;;  %v14572_v21 = vcombine.high %v2105_v57, %v2109_v32  ;;  %v2097_v25 = vld [vmem:[%s14754_s7 + $0x3190] sm:$0xff]  ;;  %v14571_v36 = vcombine.low %v2105_v57, %v2109_v32  ;;  %v550_v57 = vld [vmem:[%s14754_s7 + $0x138] sm:$0xff] }
 0x4ae   : > { %v2101_v24 = vld [vmem:[%s14754_s7 + $0x31b0] sm:$0xff] }
 0x4af   : > { %11612 = vmatpush2.bf16.msra.mxu0 %v14347_v30  ;;  %v14564_v30 = vcombine.high %v2097_v25, %v2101_v24 }
 0x4b0   : > { %11653 = vmatpush2.bf16.msra.mxu1 %v14475_v61  ;;  %11613 = vmatprep.subr.bf16.mxu0 %v14340_v41  ;;  %v13030_v61 = vcombine.high %v562_v2, %v566_v29  ;;  %v2089_v41 = vld [vmem:[%s14754_s7 + $0x3150] sm:$0xff] }
 0x4b1   : > { %11654 = vmatprep.subr.bf16.mxu1 %v14468_v10  ;;  %v2093_v10 = vld [vmem:[%s14754_s7 + $0x3170] sm:$0xff] }
 0x4b2   : > { %v14556_v48 = vcombine.high %v2089_v41, %v2093_v10 }
 0x4b3   : > { %11614 = vmatpush2.bf16.msra.mxu0 %v14339_v37 }
 0x4b4   : > { %11655 = vmatpush2.bf16.msra.mxu1 %v14467_v19  ;;  %11615 = vmatprep.subr.bf16.mxu0 %v14332_v6  ;;  %v14563_v19 = vcombine.low %v2097_v25, %v2101_v24  ;;  %v2073_v25 = vld [vmem:[%s14754_s7 + $0x30d0] sm:$0xff]  ;;  %v538_v24 = vld [vmem:[%s14754_s7 + $0xd8] sm:$0xff] }
 0x4b5   : > { %11656 = vmatprep.subr.bf16.mxu1 %v14460_v39  ;;  %v13029_v39 = vcombine.low %v562_v2, %v566_v29  ;;  %v542_v2 = vld [vmem:[%s14754_s7 + $0xf8] sm:$0xff] }
 0x4b7   : > { %11616 = vmatpush2.bf16.msra.mxu0 %v14331_v56  ;;  %v2081_v56 = vld [vmem:[%s14754_s7 + $0x3110] sm:$0xff] }
 0x4b8   : > { %11657 = vmatpush2.bf16.msra.mxu1 %v14459_v22  ;;  %11617 = vmatprep.subr.bf16.mxu0 %v14324_v50  ;;  %v2085_v22 = vld [vmem:[%s14754_s7 + $0x3130] sm:$0xff] }
 0x4b9   : > { %11658 = vmatprep.subr.bf16.mxu1 %v14452_v51  ;;  %v546_v51 = vld [vmem:[%s14754_s7 + $0x118] sm:$0xff]  ;;  %v14547_v29 = vcombine.low %v2081_v56, %v2085_v22 }
 0x4bb   : > { %11618 = vmatpush2.bf16.msra.mxu0 %v14323_v26  ;;  %v13021_v26 = vcombine.low %v554_v62, %v558_v55 }
 0x4bc   : > { %11659 = vmatpush2.bf16.msra.mxu1 %v14451_v59  ;;  %11669 = vmatprep.subr.bf16.mxu0 %v14572_v21  ;;  %v14548_v59 = vcombine.high %v2081_v56, %v2085_v22  ;;  %v2049_v22 = vld [vmem:[%s14754_s7 + $0x3010] sm:$0xff] }
 0x4bd   : > { %11710 = vmatprep.subr.bf16.mxu1 %v13038_v63  ;;  %v13014_v63 = vcombine.high %v546_v51, %v550_v57 }
 0x4be   : > { %v11375_v42 = vpop.f32.mrf.mxu0  ;;  %11620 = vmatmul.mubr.bf16.vlgmr.msra.gmra.mxu0 %v15316_v4 }
 0x4bf   : > { %v11376_v20 = vadd.f32 %v11375_v42, %v16225_v28  ;;  %v11416_v37 = vpop.f32.mrf.mxu1  ;;  %11661 = vmatmul.mubr.bf16.vlgmr.msra.gmra.mxu1 %v15322_v9  ;;  %11670 = vmatpush1.bf16.msra.mxu0 %v14571_v36  ;;  %v13022_v28 = vcombine.high %v554_v62, %v558_v55  ;;  %v13013_v36 = vcombine.low %v546_v51, %v550_v57  ;;  %v534_v42 = vld [vmem:[%s14754_s7 + $0xb8] sm:$0xff] }
 0x4c0   : > { %11711 = vmatpush1.bf16.msra.mxu1 %v13037_v8  ;;  %v11377_v6 = vpop.f32.mrf.mxu0  ;;  %11671 = vmatprep.subr.bf16.mxu0 %v14564_v30  ;;  %v13006_v30 = vcombine.high %v538_v24, %v542_v2  ;;  %v13005_v55 = vcombine.low %v538_v24, %v542_v2  ;;  %v514_v51 = vld [vmem:[%s14754_s7 + $0x18] sm:$0xff] }
 0x4c1   : > { %v16299_v3 = vadd.f32 %v11416_v37, %v11376_v20  ;;  %v11378_v23 = vadd.f32 %v11377_v6, %v16234_v7  ;;  %v11418_v53 = vpop.f32.mrf.mxu1  ;;  %11712 = vmatprep.subr.bf16.mxu1 %v13030_v61  ;;  %11701 = vmatprep.mubr.bf16.mxu0 %v14691_v0  ;;  %v14555_v7 = vcombine.low %v2089_v41, %v2093_v10  ;;  %v2065_v61 = vld [vmem:[%s14754_s7 + $0x3090] sm:$0xff]  ;;  %v530_v10 = vld [vmem:[%s14754_s7 + $0x98] sm:$0xff] }
 0x4c2   : > { %v11379_v50 = vpop.f32.mrf.mxu0  ;;  %11742 = vmatprep.mubr.bf16.mxu1 %v14805_v12  ;;  %v2077_v12 = vld [vmem:[%s14754_s7 + $0x30f0] sm:$0xff]  ;;  %v12998_v37 = vcombine.high %v530_v10, %v534_v42  ;;  %v518_v57 = vld [vmem:[%s14754_s7 + $0x38] sm:$0xff] }
 0x4c3   : > { %v16308_v32 = vadd.f32 %v11418_v53, %v11378_v23  ;;  %v11420_v14 = vpop.f32.mrf.mxu1  ;;  %11672 = vmatpush1.bf16.msra.mxu0 %v14563_v19  ;;  %v14540_v8 = vcombine.high %v2073_v25, %v2077_v12  ;;  %v2069_v41 = vld [vmem:[%s14754_s7 + $0x30b0] sm:$0xff]  ;;  %v14539_v62 = vcombine.low %v2073_v25, %v2077_v12  ;;  %v12997_v53 = vcombine.low %v530_v10, %v534_v42  ;;  %v638_v25 = vld [vmem:[%s14754_s7 + $0x3f8] sm:$0xff] }
 0x4c4   : > { %11713 = vmatpush1.bf16.msra.mxu1 %v13029_v39  ;;  %v11380_v31 = vpop.f32.mrf.mxu0  ;;  %11673 = vmatprep.subr.bf16.mxu0 %v14556_v48  ;;  %v14532_v20 = vcombine.high %v2065_v61, %v2069_v41  ;;  %v2057_v19 = vld [vmem:[%s14754_s7 + $0x3050] sm:$0xff]  ;;  %v522_v39 = vld [vmem:[%s14754_s7 + $0x58] sm:$0xff]  ;;  %v14531_v23 = vcombine.low %v2065_v61, %v2069_v41  ;;  %v12981_v24 = vcombine.low %v514_v51, %v518_v57 }
 0x4c5   : > { %v11421_v21 = vpop.f32.mrf.mxu1  ;;  %11714 = vmatprep.subr.bf16.mxu1 %v13022_v28  ;;  %v2061_v6 = vld [vmem:[%s14754_s7 + $0x3070] sm:$0xff]  ;;  %v526_v48 = vld [vmem:[%s14754_s7 + $0x78] sm:$0xff] }
 0x4c6   : > { %v14524_v28 = vcombine.high %v2057_v19, %v2061_v6  ;;  %v12990_v56 = vcombine.high %v522_v39, %v526_v48  ;;  %v2053_v50 = vld [vmem:[%s14754_s7 + $0x3030] sm:$0xff]  ;;  %v14523_v14 = vcombine.low %v2057_v19, %v2061_v6  ;;  %v702_v21 = vld [vmem:[%s14754_s7 + $0x5f8] sm:$0xff] }
 0x4c7   : > { %11674 = vmatpush1.bf16.msra.mxu0 %v14555_v7  ;;  %v12989_v7 = vcombine.low %v522_v39, %v526_v48  ;;  %v14516_v31 = vcombine.high %v2049_v22, %v2053_v50  ;;  %v14515_v12 = vcombine.low %v2049_v22, %v2053_v50  ;;  %v630_v61 = vld [vmem:[%s14754_s7 + $0x3b8] sm:$0xff] }
 0x4c8   : > { %11715 = vmatpush1.bf16.msra.mxu1 %v13021_v26  ;;  %11675 = vmatprep.subr.bf16.mxu0 %v14548_v59  ;;  %v12982_v26 = vcombine.high %v514_v51, %v518_v57  ;;  %v698_v59 = vld [vmem:[%s14754_s7 + $0x5d8] sm:$0xff] }
 0x4c9   : > { %11716 = vmatprep.subr.bf16.mxu1 %v13014_v63  ;;  %v634_v63 = vld [vmem:[%s14754_s7 + $0x3d8] sm:$0xff]  ;;  %v13166_v2 = vcombine.high %v698_v59, %v702_v21  ;;  %v13165_v41 = vcombine.low %v698_v59, %v702_v21 }
 0x4ca   : > { %v13101_v10 = vcombine.low %v634_v63, %v638_v25  ;;  %v622_v19 = vld [vmem:[%s14754_s7 + $0x378] sm:$0xff] }
 0x4cb   : > { %11676 = vmatpush1.bf16.msra.mxu0 %v14547_v29  ;;  %v13102_v29 = vcombine.high %v634_v63, %v638_v25  ;;  %v614_v22 = vld [vmem:[%s14754_s7 + $0x338] sm:$0xff] }
 0x4cc   : > { %11717 = vmatpush1.bf16.msra.mxu1 %v13013_v36  ;;  %11677 = vmatprep.subr.bf16.mxu0 %v14540_v8  ;;  %v690_v36 = vld [vmem:[%s14754_s7 + $0x598] sm:$0xff] }
 0x4cd   : > { %11718 = vmatprep.subr.bf16.mxu1 %v13006_v30  ;;  %v694_v8 = vld [vmem:[%s14754_s7 + $0x5b8] sm:$0xff] }
 0x4ce   : > { %v626_v30 = vld [vmem:[%s14754_s7 + $0x398] sm:$0xff]  ;;  %v13158_v42 = vcombine.high %v690_v36, %v694_v8  ;;  %v13157_v6 = vcombine.low %v690_v36, %v694_v8 }
 0x4cf   : > { %11678 = vmatpush1.bf16.msra.mxu0 %v14539_v62  ;;  %v13094_v62 = vcombine.high %v626_v30, %v630_v61  ;;  %v13093_v39 = vcombine.low %v626_v30, %v630_v61 }
 0x4d0   : > { %11719 = vmatpush1.bf16.msra.mxu1 %v13005_v55  ;;  %11679 = vmatprep.subr.bf16.mxu0 %v14532_v20  ;;  %v682_v55 = vld [vmem:[%s14754_s7 + $0x558] sm:$0xff] }
 0x4d1   : > { %11720 = vmatprep.subr.bf16.mxu1 %v12998_v37  ;;  %v686_v20 = vld [vmem:[%s14754_s7 + $0x578] sm:$0xff] }
 0x4d2   : > { %v618_v37 = vld [vmem:[%s14754_s7 + $0x358] sm:$0xff]  ;;  %v13150_v48 = vcombine.high %v682_v55, %v686_v20  ;;  %v13149_v50 = vcombine.low %v682_v55, %v686_v20 }
 0x4d3   : > { %11680 = vmatpush1.bf16.msra.mxu0 %v14531_v23  ;;  %v13086_v23 = vcombine.high %v618_v37, %v622_v19  ;;  %v13085_v51 = vcombine.low %v618_v37, %v622_v19 }
 0x4d4   : > { %11721 = vmatpush1.bf16.msra.mxu1 %v12997_v53  ;;  %11681 = vmatprep.subr.bf16.mxu0 %v14524_v28  ;;  %v674_v53 = vld [vmem:[%s14754_s7 + $0x518] sm:$0xff] }
 0x4d5   : > { %11722 = vmatprep.subr.bf16.mxu1 %v12990_v56  ;;  %v678_v28 = vld [vmem:[%s14754_s7 + $0x538] sm:$0xff] }
 0x4d6   : > { %v610_v56 = vld [vmem:[%s14754_s7 + $0x318] sm:$0xff]  ;;  %v13141_v59 = vcombine.low %v674_v53, %v678_v28 }
 0x4d7   : > { %11682 = vmatpush1.bf16.msra.mxu0 %v14523_v14  ;;  %v13078_v57 = vcombine.high %v610_v56, %v614_v22  ;;  %v666_v14 = vld [vmem:[%s14754_s7 + $0x4d8] sm:$0xff]  ;;  %v13077_v21 = vcombine.low %v610_v56, %v614_v22 }
 0x4d8   : > { %11723 = vmatpush1.bf16.msra.mxu1 %v12989_v7  ;;  %11683 = vmatprep.subr.bf16.mxu0 %v14516_v31  ;;  %v670_v7 = vld [vmem:[%s14754_s7 + $0x4f8] sm:$0xff] }
 0x4d9   : > { %11724 = vmatprep.subr.bf16.mxu1 %v12982_v26  ;;  %v602_v31 = vld [vmem:[%s14754_s7 + $0x2d8] sm:$0xff]  ;;  %v13134_v63 = vcombine.high %v666_v14, %v670_v7  ;;  %v13133_v36 = vcombine.low %v666_v14, %v670_v7 }
 0x4da   : > { %v606_v26 = vld [vmem:[%s14754_s7 + $0x2f8] sm:$0xff] }
 0x4db   : > { %11684 = vmatpush1.bf16.msra.mxu0 %v14515_v12  ;;  %v13070_v25 = vcombine.high %v602_v31, %v606_v26  ;;  %v658_v12 = vld [vmem:[%s14754_s7 + $0x498] sm:$0xff]  ;;  %v13069_v8 = vcombine.low %v602_v31, %v606_v26 }
 0x4dc   : > { %11725 = vmatpush1.bf16.msra.mxu1 %v12981_v24  ;;  %11751 = vmatprep.subr.bf16.mxu0 %v13166_v2  ;;  %v662_v24 = vld [vmem:[%s14754_s7 + $0x4b8] sm:$0xff] }
 0x4dd   : > { %11726 = vmatprep.subr.bf16.mxu1 %v13102_v29  ;;  %v594_v2 = vld [vmem:[%s14754_s7 + $0x298] sm:$0xff]  ;;  %v13126_v30 = vcombine.high %v658_v12, %v662_v24  ;;  %v13125_v55 = vcombine.low %v658_v12, %v662_v24 }
 0x4de   : > { %11702 = vmatmul.mubr.bf16.vlgmr.msra.gmra.mxu0 %v15365_v16  ;;  %v598_v29 = vld [vmem:[%s14754_s7 + $0x2b8] sm:$0xff] }
 0x4df   : > { %11752 = vmatpush1.bf16.msra.mxu0 %v13165_v41  ;;  %11783 = vmatprep.mubr.bf16.mxu0 %v14812_v17  ;;  %v13142_v17 = vcombine.high %v674_v53, %v678_v28  ;;  %v13062_v61 = vcombine.high %v594_v2, %v598_v29  ;;  %v650_v41 = vld [vmem:[%s14754_s7 + $0x458] sm:$0xff]  ;;  %v13061_v20 = vcombine.low %v594_v2, %v598_v29 }
 0x4e0   : > { %11727 = vmatpush2.bf16.msra.mxu1 %v13101_v10  ;;  %11753 = vmatprep.subr.bf16.mxu0 %v13158_v42  ;;  %v654_v10 = vld [vmem:[%s14754_s7 + $0x478] sm:$0xff] }
 0x4e1   : > { %11728 = vmatprep.subr.bf16.mxu1 %v13094_v62  ;;  %v586_v42 = vld [vmem:[%s14754_s7 + $0x258] sm:$0xff]  ;;  %v13118_v37 = vcombine.high %v650_v41, %v654_v10  ;;  %v13117_v53 = vcombine.low %v650_v41, %v654_v10 }
 0x4e2   : > { %v590_v62 = vld [vmem:[%s14754_s7 + $0x278] sm:$0xff] }
 0x4e3   : > { %11754 = vmatpush1.bf16.msra.mxu0 %v13157_v6  ;;  %v13054_v19 = vcombine.high %v586_v42, %v590_v62  ;;  %v642_v6 = vld [vmem:[%s14754_s7 + $0x418] sm:$0xff]  ;;  %v13053_v28 = vcombine.low %v586_v42, %v590_v62 }
 0x4e4   : > { %11729 = vmatpush2.bf16.msra.mxu1 %v13093_v39  ;;  %11755 = vmatprep.subr.bf16.mxu0 %v13150_v48  ;;  %v646_v39 = vld [vmem:[%s14754_s7 + $0x438] sm:$0xff] }
 0x4e5   : > { %11730 = vmatprep.subr.bf16.mxu1 %v13086_v23  ;;  %v578_v48 = vld [vmem:[%s14754_s7 + $0x218] sm:$0xff]  ;;  %v13110_v56 = vcombine.high %v642_v6, %v646_v39  ;;  %v13109_v14 = vcombine.low %v642_v6, %v646_v39 }
 0x4e6   : > { %v582_v23 = vld [vmem:[%s14754_s7 + $0x238] sm:$0xff] }
 0x4e7   : > { %11756 = vmatpush1.bf16.msra.mxu0 %v13149_v50  ;;  %v13046_v22 = vcombine.high %v578_v48, %v582_v23  ;;  %v762_v50 = vld [vmem:[%s14754_s7 + $0x7d8] sm:$0xff]  ;;  %v13045_v7 = vcombine.low %v578_v48, %v582_v23 }
 0x4e8   : > { %11731 = vmatpush2.bf16.msra.mxu1 %v13085_v51  ;;  %11757 = vmatprep.subr.bf16.mxu0 %v13142_v17  ;;  %v766_v51 = vld [vmem:[%s14754_s7 + $0x7f8] sm:$0xff] }
 0x4e9   : > { %11732 = vmatprep.subr.bf16.mxu1 %v13078_v57  ;;  %v826_v17 = vld [vmem:[%s14754_s7 + $0x9d8] sm:$0xff]  ;;  %v13230_v31 = vcombine.high %v762_v50, %v766_v51  ;;  %v13229_v12 = vcombine.low %v762_v50, %v766_v51 }
 0x4ea   : > { %v830_v57 = vld [vmem:[%s14754_s7 + $0x9f8] sm:$0xff] }
 0x4eb   : > { %11758 = vmatpush1.bf16.msra.mxu0 %v13141_v59  ;;  %v13294_v26 = vcombine.high %v826_v17, %v830_v57  ;;  %v754_v59 = vld [vmem:[%s14754_s7 + $0x798] sm:$0xff]  ;;  %v13293_v24 = vcombine.low %v826_v17, %v830_v57 }
 0x4ec   : > { %11733 = vmatpush2.bf16.msra.mxu1 %v13077_v21  ;;  %11759 = vmatprep.subr.bf16.mxu0 %v13134_v63  ;;  %v758_v21 = vld [vmem:[%s14754_s7 + $0x7b8] sm:$0xff] }
 0x4ed   : > { %11734 = vmatprep.subr.bf16.mxu1 %v13070_v25  ;;  %v818_v63 = vld [vmem:[%s14754_s7 + $0x998] sm:$0xff]  ;;  %v13222_v2 = vcombine.high %v754_v59, %v758_v21  ;;  %v13221_v62 = vcombine.low %v754_v59, %v758_v21 }
 0x4ee   : > { %v822_v25 = vld [vmem:[%s14754_s7 + $0x9b8] sm:$0xff] }
 0x4ef   : > { %11760 = vmatpush1.bf16.msra.mxu0 %v13133_v36  ;;  %v13286_v29 = vcombine.high %v818_v63, %v822_v25  ;;  %v746_v36 = vld [vmem:[%s14754_s7 + $0x758] sm:$0xff] }
 0x4f0   : > { %11735 = vmatpush2.bf16.msra.mxu1 %v13069_v8  ;;  %11761 = vmatprep.subr.bf16.mxu0 %v13126_v30  ;;  %v750_v8 = vld [vmem:[%s14754_s7 + $0x778] sm:$0xff] }
 0x4f1   : > { %11736 = vmatprep.subr.bf16.mxu1 %v13062_v61  ;;  %v810_v61 = vld [vmem:[%s14754_s7 + $0x958] sm:$0xff]  ;;  %v13213_v50 = vcombine.low %v746_v36, %v750_v8 }
 0x4f2   : > { %v814_v41 = vld [vmem:[%s14754_s7 + $0x978] sm:$0xff] }
 0x4f3   : > { %11762 = vmatpush1.bf16.msra.mxu0 %v13125_v55  ;;  %v738_v48 = vld [vmem:[%s14754_s7 + $0x718] sm:$0xff]  ;;  %v13277_v51 = vcombine.low %v810_v61, %v814_v41 }
 0x4f4   : > { %11737 = vmatpush2.bf16.msra.mxu1 %v13061_v20  ;;  %11763 = vmatprep.subr.bf16.mxu0 %v13118_v37  ;;  %v13285_v20 = vcombine.low %v818_v63, %v822_v25  ;;  %v13214_v37 = vcombine.high %v746_v36, %v750_v8  ;;  %v742_v23 = vld [vmem:[%s14754_s7 + $0x738] sm:$0xff] }
 0x4f5   : > { %11738 = vmatprep.subr.bf16.mxu1 %v13054_v19  ;;  %v13206_v17 = vcombine.high %v738_v48, %v742_v23  ;;  %v13205_v59 = vcombine.low %v738_v48, %v742_v23  ;;  %v770_v48 = vld [vmem:[%s14754_s7 + $0x818] sm:$0xff] }
 0x4f6   : > { %v774_v23 = vld [vmem:[%s14754_s7 + $0x838] sm:$0xff] }
 0x4f7   : > { %11764 = vmatpush1.bf16.msra.mxu0 %v13117_v53  ;;  %v802_v53 = vld [vmem:[%s14754_s7 + $0x918] sm:$0xff] }
 0x4f8   : > { %11739 = vmatpush2.bf16.msra.mxu1 %v13053_v28  ;;  %11765 = vmatprep.subr.bf16.mxu0 %v13110_v56  ;;  %v806_v28 = vld [vmem:[%s14754_s7 + $0x938] sm:$0xff] }
 0x4f9   : > { %11740 = vmatprep.subr.bf16.mxu1 %v13046_v22  ;;  %v13269_v21 = vcombine.low %v802_v53, %v806_v28 }
 0x4fb   : > { %11766 = vmatpush1.bf16.msra.mxu0 %v13109_v14  ;;  %v730_v14 = vld [vmem:[%s14754_s7 + $0x6d8] sm:$0xff] }
 0x4fc   : > { %11741 = vmatpush2.bf16.msra.mxu1 %v13045_v7  ;;  %11767 = vmatprep.subr.bf16.mxu0 %v13230_v31  ;;  %v734_v7 = vld [vmem:[%s14754_s7 + $0x6f8] sm:$0xff] }
 0x4fd   : > { %11792 = vmatprep.subr.bf16.mxu1 %v13294_v26  ;;  %v794_v31 = vld [vmem:[%s14754_s7 + $0x8d8] sm:$0xff]  ;;  %v13198_v63 = vcombine.high %v730_v14, %v734_v7  ;;  %v13197_v36 = vcombine.low %v730_v14, %v734_v7 }
 0x4fe   : > { %v11457_v30 = vpop.f32.mrf.mxu0  ;;  %v798_v26 = vld [vmem:[%s14754_s7 + $0x8f8] sm:$0xff] }
 0x4ff   : > { %v11458_v10 = vadd.f32 %v11457_v30, %v16299_v3  ;;  %v11498_v42 = vpop.f32.mrf.mxu1  ;;  %11743 = vmatmul.mubr.bf16.vlgmr.msra.gmra.mxu1 %v14860_v34  ;;  %11768 = vmatpush2.bf16.msra.mxu0 %v13229_v12  ;;  %v13278_v3 = vcombine.high %v810_v61, %v814_v41  ;;  %v13262_v25 = vcombine.high %v794_v31, %v798_v26  ;;  %v722_v12 = vld [vmem:[%s14754_s7 + $0x698] sm:$0xff] }
 0x500   : > { %11793 = vmatpush1.bf16.msra.mxu1 %v13293_v24  ;;  %v11459_v55 = vpop.f32.mrf.mxu0  ;;  %11769 = vmatprep.subr.bf16.mxu0 %v13222_v2  ;;  %v726_v24 = vld [vmem:[%s14754_s7 + $0x6b8] sm:$0xff]  ;;  %v13261_v8 = vcombine.low %v794_v31, %v798_v26 }
 0x501   : > { %v16374_v19 = vadd.f32 %v11498_v42, %v11458_v10  ;;  %v11460_v6 = vadd.f32 %v11459_v55, %v16308_v32  ;;  %v11500_v39 = vpop.f32.mrf.mxu1  ;;  %11794 = vmatprep.subr.bf16.mxu1 %v13286_v29  ;;  %11824 = vmatprep.mubr.bf16.mxu1 %v14872_v44  ;;  %v13270_v44 = vcombine.high %v802_v53, %v806_v28  ;;  %v786_v2 = vld [vmem:[%s14754_s7 + $0x898] sm:$0xff] }
 0x502   : > { %v11461_v34 = vpop.f32.mrf.mxu0  ;;  %v790_v29 = vld [vmem:[%s14754_s7 + $0x8b8] sm:$0xff]  ;;  %v13190_v30 = vcombine.high %v722_v12, %v726_v24  ;;  %v13189_v55 = vcombine.low %v722_v12, %v726_v24 }
 0x503   : > { %v16382_v56 = vadd.f32 %v11500_v39, %v11460_v6  ;;  %v11502_v22 = vpop.f32.mrf.mxu1  ;;  %11770 = vmatpush2.bf16.msra.mxu0 %v13221_v62  ;;  %v13254_v61 = vcombine.high %v786_v2, %v790_v29  ;;  %v714_v41 = vld [vmem:[%s14754_s7 + $0x658] sm:$0xff] }
 0x504   : > { %11795 = vmatpush1.bf16.msra.mxu1 %v13285_v20  ;;  %v11462_v32 = vpop.f32.mrf.mxu0  ;;  %11771 = vmatprep.subr.bf16.mxu0 %v13214_v37  ;;  %v718_v10 = vld [vmem:[%s14754_s7 + $0x678] sm:$0xff]  ;;  %v13253_v20 = vcombine.low %v786_v2, %v790_v29  ;;  %v13238_v22 = vcombine.high %v770_v48, %v774_v23 }
 0x505   : > { %v11503_v57 = vpop.f32.mrf.mxu1  ;;  %11796 = vmatprep.subr.bf16.mxu1 %v13278_v3  ;;  %v778_v42 = vld [vmem:[%s14754_s7 + $0x858] sm:$0xff]  ;;  %v13182_v37 = vcombine.high %v714_v41, %v718_v10  ;;  %v13181_v34 = vcombine.low %v714_v41, %v718_v10 }
 0x506   : > { %v782_v62 = vld [vmem:[%s14754_s7 + $0x878] sm:$0xff] }
 0x507   : > { %11772 = vmatpush2.bf16.msra.mxu0 %v13213_v50  ;;  %v13246_v6 = vcombine.high %v778_v42, %v782_v62  ;;  %v706_v39 = vld [vmem:[%s14754_s7 + $0x618] sm:$0xff]  ;;  %v13245_v53 = vcombine.low %v778_v42, %v782_v62 }
 0x508   : > { %11797 = vmatpush1.bf16.msra.mxu1 %v13277_v51  ;;  %11773 = vmatprep.subr.bf16.mxu0 %v13206_v17  ;;  %v710_v3 = vld [vmem:[%s14754_s7 + $0x638] sm:$0xff] }
 0x509   : > { %11798 = vmatprep.subr.bf16.mxu1 %v13270_v44  ;;  %v13174_v28 = vcombine.high %v706_v39, %v710_v3  ;;  %v954_v50 = vld [vmem:[%s14754_s7 + $0xdd8] sm:$0xff]  ;;  %v13173_v57 = vcombine.low %v706_v39, %v710_v3  ;;  %v13237_v44 = vcombine.low %v770_v48, %v774_v23 }
 0x50a   : > { %v958_v32 = vld [vmem:[%s14754_s7 + $0xdf8] sm:$0xff] }
 0x50b   : > { %11774 = vmatpush2.bf16.msra.mxu0 %v13205_v59  ;;  %v890_v51 = vld [vmem:[%s14754_s7 + $0xbd8] sm:$0xff]  ;;  %v13422_v14 = vcombine.high %v954_v50, %v958_v32 }
 0x50c   : > { %11799 = vmatpush1.bf16.msra.mxu1 %v13269_v21  ;;  %11775 = vmatprep.subr.bf16.mxu0 %v13198_v63  ;;  %v894_v17 = vld [vmem:[%s14754_s7 + $0xbf8] sm:$0xff]  ;;  %v13421_v63 = vcombine.low %v954_v50, %v958_v32 }
 0x50d   : > { %11800 = vmatprep.subr.bf16.mxu1 %v13262_v25  ;;  %v13358_v7 = vcombine.high %v890_v51, %v894_v17  ;;  %v946_v31 = vld [vmem:[%s14754_s7 + $0xd98] sm:$0xff]  ;;  %v13357_v25 = vcombine.low %v890_v51, %v894_v17 }
 0x50e   : > { %v950_v26 = vld [vmem:[%s14754_s7 + $0xdb8] sm:$0xff] }
 0x50f   : > { %11776 = vmatpush2.bf16.msra.mxu0 %v13197_v36  ;;  %v882_v59 = vld [vmem:[%s14754_s7 + $0xb98] sm:$0xff]  ;;  %v13414_v12 = vcombine.high %v946_v31, %v950_v26 }
 0x510   : > { %11801 = vmatpush1.bf16.msra.mxu1 %v13261_v8  ;;  %11777 = vmatprep.subr.bf16.mxu0 %v13190_v30  ;;  %v886_v21 = vld [vmem:[%s14754_s7 + $0xbb8] sm:$0xff]  ;;  %v13413_v30 = vcombine.low %v946_v31, %v950_v26 }
 0x511   : > { %11802 = vmatprep.subr.bf16.mxu1 %v13254_v61  ;;  %v13350_v24 = vcombine.high %v882_v59, %v886_v21  ;;  %v938_v2 = vld [vmem:[%s14754_s7 + $0xd58] sm:$0xff]  ;;  %v13349_v61 = vcombine.low %v882_v59, %v886_v21 }
 0x512   : > { %v942_v29 = vld [vmem:[%s14754_s7 + $0xd78] sm:$0xff] }
 0x513   : > { %11778 = vmatpush2.bf16.msra.mxu0 %v13189_v55  ;;  %v874_v36 = vld [vmem:[%s14754_s7 + $0xb58] sm:$0xff]  ;;  %v13406_v41 = vcombine.high %v938_v2, %v942_v29 }
 0x514   : > { %11803 = vmatpush1.bf16.msra.mxu1 %v13253_v20  ;;  %11779 = vmatprep.subr.bf16.mxu0 %v13182_v37  ;;  %v878_v8 = vld [vmem:[%s14754_s7 + $0xb78] sm:$0xff]  ;;  %v13405_v20 = vcombine.low %v938_v2, %v942_v29 }
 0x515   : > { %11804 = vmatprep.subr.bf16.mxu1 %v13246_v6  ;;  %v13342_v10 = vcombine.high %v874_v36, %v878_v8  ;;  %v930_v42 = vld [vmem:[%s14754_s7 + $0xd18] sm:$0xff]  ;;  %v13341_v37 = vcombine.low %v874_v36, %v878_v8 }
 0x516   : > { %v934_v62 = vld [vmem:[%s14754_s7 + $0xd38] sm:$0xff] }
 0x517   : > { %11780 = vmatpush2.bf16.msra.mxu0 %v13181_v34  ;;  %v866_v55 = vld [vmem:[%s14754_s7 + $0xb18] sm:$0xff]  ;;  %v13397_v34 = vcombine.low %v930_v42, %v934_v62 }
 0x518   : > { %11805 = vmatpush1.bf16.msra.mxu1 %v13245_v53  ;;  %11781 = vmatprep.subr.bf16.mxu0 %v13174_v28  ;;  %v922_v39 = vld [vmem:[%s14754_s7 + $0xcd8] sm:$0xff] }
 0x519   : > { %11806 = vmatprep.subr.bf16.mxu1 %v13238_v22  ;;  %v926_v3 = vld [vmem:[%s14754_s7 + $0xcf8] sm:$0xff] }
 0x51a   : > { %v858_v48 = vld [vmem:[%s14754_s7 + $0xad8] sm:$0xff]  ;;  %v13390_v28 = vcombine.high %v922_v39, %v926_v3 }
 0x51b   : > { %11782 = vmatpush2.bf16.msra.mxu0 %v13173_v57  ;;  %v862_v23 = vld [vmem:[%s14754_s7 + $0xaf8] sm:$0xff]  ;;  %v13389_v57 = vcombine.low %v922_v39, %v926_v3 }
 0x51c   : > { %11807 = vmatpush1.bf16.msra.mxu1 %v13237_v44  ;;  %11833 = vmatprep.subr.bf16.mxu0 %v13422_v14  ;;  %v13326_v22 = vcombine.high %v858_v48, %v862_v23  ;;  %v914_v50 = vld [vmem:[%s14754_s7 + $0xc98] sm:$0xff]  ;;  %v13325_v44 = vcombine.low %v858_v48, %v862_v23 }
 0x51d   : > { %11808 = vmatprep.subr.bf16.mxu1 %v13358_v7  ;;  %v918_v32 = vld [vmem:[%s14754_s7 + $0xcb8] sm:$0xff] }
 0x51e   : > { %11784 = vmatmul.mubr.bf16.vlgmr.msra.gmra.mxu0 %v14868_v38  ;;  %v870_v38 = vld [vmem:[%s14754_s7 + $0xb38] sm:$0xff]  ;;  %v13382_v14 = vcombine.high %v914_v50, %v918_v32 }
 0x51f   : > { %11834 = vmatpush1.bf16.msra.mxu0 %v13421_v63  ;;  %11865 = vmatprep.mubr.bf16.mxu0 %v14877_v47  ;;  %v13398_v47 = vcombine.high %v930_v42, %v934_v62  ;;  %v13334_v6 = vcombine.high %v866_v55, %v870_v38  ;;  %v13333_v53 = vcombine.low %v866_v55, %v870_v38  ;;  %v850_v51 = vld [vmem:[%s14754_s7 + $0xa98] sm:$0xff] }
 0x520   : > { %11809 = vmatpush2.bf16.msra.mxu1 %v13357_v25  ;;  %11835 = vmatprep.subr.bf16.mxu0 %v13414_v12  ;;  %v854_v17 = vld [vmem:[%s14754_s7 + $0xab8] sm:$0xff]  ;;  %v13381_v63 = vcombine.low %v914_v50, %v918_v32 }
 0x521   : > { %11810 = vmatprep.subr.bf16.mxu1 %v13350_v24  ;;  %v13318_v7 = vcombine.high %v850_v51, %v854_v17  ;;  %v906_v31 = vld [vmem:[%s14754_s7 + $0xc58] sm:$0xff]  ;;  %v13317_v25 = vcombine.low %v850_v51, %v854_v17 }
 0x522   : > { %v910_v26 = vld [vmem:[%s14754_s7 + $0xc78] sm:$0xff] }
 0x523   : > { %11836 = vmatpush1.bf16.msra.mxu0 %v13413_v30  ;;  %v842_v59 = vld [vmem:[%s14754_s7 + $0xa58] sm:$0xff]  ;;  %v13374_v12 = vcombine.high %v906_v31, %v910_v26  ;;  %v13373_v30 = vcombine.low %v906_v31, %v910_v26 }
 0x524   : > { %11811 = vmatpush2.bf16.msra.mxu1 %v13349_v61  ;;  %11837 = vmatprep.subr.bf16.mxu0 %v13406_v41  ;;  %v846_v21 = vld [vmem:[%s14754_s7 + $0xa78] sm:$0xff] }
 0x525   : > { %11812 = vmatprep.subr.bf16.mxu1 %v13342_v10  ;;  %v13310_v24 = vcombine.high %v842_v59, %v846_v21  ;;  %v898_v2 = vld [vmem:[%s14754_s7 + $0xc18] sm:$0xff]  ;;  %v13309_v61 = vcombine.low %v842_v59, %v846_v21 }
 0x526   : > { %v902_v29 = vld [vmem:[%s14754_s7 + $0xc38] sm:$0xff] }
 0x527   : > { %11838 = vmatpush1.bf16.msra.mxu0 %v13405_v20  ;;  %v834_v36 = vld [vmem:[%s14754_s7 + $0xa18] sm:$0xff]  ;;  %v13366_v41 = vcombine.high %v898_v2, %v902_v29  ;;  %v13365_v20 = vcombine.low %v898_v2, %v902_v29 }
 0x528   : > { %11813 = vmatpush2.bf16.msra.mxu1 %v13341_v37  ;;  %11839 = vmatprep.subr.bf16.mxu0 %v13398_v47  ;;  %v838_v8 = vld [vmem:[%s14754_s7 + $0xa38] sm:$0xff] }
 0x529   : > { %11814 = vmatprep.subr.bf16.mxu1 %v13334_v6  ;;  %v13302_v10 = vcombine.high %v834_v36, %v838_v8  ;;  %v1018_v42 = vld [vmem:[%s14754_s7 + $0xfd8] sm:$0xff]  ;;  %v13301_v37 = vcombine.low %v834_v36, %v838_v8 }
 0x52a   : > { %v1022_v62 = vld [vmem:[%s14754_s7 + $0xff8] sm:$0xff] }
 0x52b   : > { %11840 = vmatpush1.bf16.msra.mxu0 %v13397_v34  ;;  %v1082_v55 = vld [vmem:[%s14754_s7 + $0x11d8] sm:$0xff]  ;;  %v13486_v47 = vcombine.high %v1018_v42, %v1022_v62  ;;  %v13485_v34 = vcombine.low %v1018_v42, %v1022_v62 }
 0x52c   : > { %11815 = vmatpush2.bf16.msra.mxu1 %v13333_v53  ;;  %11841 = vmatprep.subr.bf16.mxu0 %v13390_v28  ;;  %v1086_v38 = vld [vmem:[%s14754_s7 + $0x11f8] sm:$0xff] }
 0x52d   : > { %11816 = vmatprep.subr.bf16.mxu1 %v13326_v22  ;;  %v13550_v6 = vcombine.high %v1082_v55, %v1086_v38  ;;  %v1010_v39 = vld [vmem:[%s14754_s7 + $0xf98] sm:$0xff]  ;;  %v13549_v53 = vcombine.low %v1082_v55, %v1086_v38 }
 0x52e   : > { %v1014_v3 = vld [vmem:[%s14754_s7 + $0xfb8] sm:$0xff] }
 0x52f   : > { %11842 = vmatpush1.bf16.msra.mxu0 %v13389_v57  ;;  %v1074_v48 = vld [vmem:[%s14754_s7 + $0x1198] sm:$0xff]  ;;  %v13478_v28 = vcombine.high %v1010_v39, %v1014_v3 }
 0x530   : > { %11817 = vmatpush2.bf16.msra.mxu1 %v13325_v44  ;;  %11843 = vmatprep.subr.bf16.mxu0 %v13382_v14  ;;  %v1078_v23 = vld [vmem:[%s14754_s7 + $0x11b8] sm:$0xff] }
 0x531   : > { %11818 = vmatprep.subr.bf16.mxu1 %v13318_v7  ;;  %v13542_v22 = vcombine.high %v1074_v48, %v1078_v23  ;;  %v1002_v50 = vld [vmem:[%s14754_s7 + $0xf58] sm:$0xff]  ;;  %v13477_v7 = vcombine.low %v1010_v39, %v1014_v3  ;;  %v13541_v26 = vcombine.low %v1074_v48, %v1078_v23 }
 0x532   : > { %v1006_v32 = vld [vmem:[%s14754_s7 + $0xf78] sm:$0xff] }
 0x533   : > { %11844 = vmatpush1.bf16.msra.mxu0 %v13381_v63  ;;  %v1066_v17 = vld [vmem:[%s14754_s7 + $0x1158] sm:$0xff]  ;;  %v13470_v59 = vcombine.high %v1002_v50, %v1006_v32 }
 0x534   : > { %11819 = vmatpush2.bf16.msra.mxu1 %v13317_v25  ;;  %11845 = vmatprep.subr.bf16.mxu0 %v13374_v12  ;;  %v1070_v57 = vld [vmem:[%s14754_s7 + $0x1178] sm:$0xff] }
 0x535   : > { %11820 = vmatprep.subr.bf16.mxu1 %v13310_v24  ;;  %v994_v12 = vld [vmem:[%s14754_s7 + $0xf18] sm:$0xff] }
 0x536   : > { %v998_v24 = vld [vmem:[%s14754_s7 + $0xf38] sm:$0xff] }
 0x537   : > { %11846 = vmatpush1.bf16.msra.mxu0 %v13373_v30  ;;  %v1058_v2 = vld [vmem:[%s14754_s7 + $0x1118] sm:$0xff]  ;;  %v13469_v30 = vcombine.low %v1002_v50, %v1006_v32 }
 0x538   : > { %11821 = vmatpush2.bf16.msra.mxu1 %v13309_v61  ;;  %11847 = vmatprep.subr.bf16.mxu0 %v13366_v41  ;;  %v1062_v29 = vld [vmem:[%s14754_s7 + $0x1138] sm:$0xff]  ;;  %v13533_v61 = vcombine.low %v1066_v17, %v1070_v57  ;;  %v13462_v41 = vcombine.high %v994_v12, %v998_v24 }
 0x539   : > { %11822 = vmatprep.subr.bf16.mxu1 %v13302_v10  ;;  %v986_v42 = vld [vmem:[%s14754_s7 + $0xed8] sm:$0xff] }
 0x53a   : > { %v990_v62 = vld [vmem:[%s14754_s7 + $0xef8] sm:$0xff] }
 0x53b   : > { %11848 = vmatpush1.bf16.msra.mxu0 %v13365_v20  ;;  %v1050_v55 = vld [vmem:[%s14754_s7 + $0x10d8] sm:$0xff]  ;;  %v13461_v20 = vcombine.low %v994_v12, %v998_v24 }
 0x53c   : > { %11823 = vmatpush2.bf16.msra.mxu1 %v13301_v37  ;;  %11849 = vmatprep.subr.bf16.mxu0 %v13486_v47  ;;  %v1054_v38 = vld [vmem:[%s14754_s7 + $0x10f8] sm:$0xff]  ;;  %v13525_v37 = vcombine.low %v1058_v2, %v1062_v29  ;;  %v13454_v47 = vcombine.high %v986_v42, %v990_v62 }
 0x53d   : > { %11874 = vmatprep.subr.bf16.mxu1 %v13550_v6  ;;  %v13518_v6 = vcombine.high %v1050_v55, %v1054_v38  ;;  %v978_v39 = vld [vmem:[%s14754_s7 + $0xe98] sm:$0xff] }
 0x53e   : > { %v11539_v51 = vpop.f32.mrf.mxu0  ;;  %v982_v3 = vld [vmem:[%s14754_s7 + $0xeb8] sm:$0xff] }
 0x53f   : > { %v11540_v44 = vadd.f32 %v11539_v51, %v16374_v19  ;;  %v11580_v14 = vpop.f32.mrf.mxu1  ;;  %11825 = vmatmul.mubr.bf16.vlgmr.msra.gmra.mxu1 %v14951_v1  ;;  %11850 = vmatpush2.bf16.msra.mxu0 %v13485_v34  ;;  %v13534_v19 = vcombine.high %v1066_v17, %v1070_v57  ;;  %v1042_v48 = vld [vmem:[%s14754_s7 + $0x1098] sm:$0xff]  ;;  %v13453_v34 = vcombine.low %v986_v42, %v990_v62 }
 0x540   : > { %11875 = vmatpush1.bf16.msra.mxu1 %v13549_v53  ;;  %v11541_v31 = vpop.f32.mrf.mxu0  ;;  %11851 = vmatprep.subr.bf16.mxu0 %v13478_v28  ;;  %v1046_v23 = vld [vmem:[%s14754_s7 + $0x10b8] sm:$0xff]  ;;  %v13517_v53 = vcombine.low %v1050_v55, %v1054_v38  ;;  %v13446_v28 = vcombine.high %v978_v39, %v982_v3  ;;  %v13445_v57 = vcombine.low %v978_v39, %v982_v3 }
 0x541   : > { %v16448_v21 = vadd.f32 %v11580_v14, %v11540_v44  ;;  %v11542_v63 = vadd.f32 %v11541_v31, %v16382_v56  ;;  %v11582_v25 = vpop.f32.mrf.mxu1  ;;  %11876 = vmatprep.subr.bf16.mxu1 %v13542_v22  ;;  %11906 = vmatprep.mubr.bf16.mxu1 %v14963_v13  ;;  %v13526_v13 = vcombine.high %v1058_v2, %v1062_v29  ;;  %v970_v50 = vld [vmem:[%s14754_s7 + $0xe58] sm:$0xff] }
 0x542   : > { %v11543_v1 = vpop.f32.mrf.mxu0  ;;  %v13510_v22 = vcombine.high %v1042_v48, %v1046_v23  ;;  %v974_v32 = vld [vmem:[%s14754_s7 + $0xe78] sm:$0xff]  ;;  %v13509_v44 = vcombine.low %v1042_v48, %v1046_v23 }
 0x543   : > { %v16456_v36 = vadd.f32 %v11582_v25, %v11542_v63  ;;  %v11584_v8 = vpop.f32.mrf.mxu1  ;;  %11852 = vmatpush2.bf16.msra.mxu0 %v13477_v7  ;;  %v1034_v51 = vld [vmem:[%s14754_s7 + $0x1058] sm:$0xff]  ;;  %v13438_v14 = vcombine.high %v970_v50, %v974_v32  ;;  %v13437_v25 = vcombine.low %v970_v50, %v974_v32 }
 0x544   : > { %11877 = vmatpush1.bf16.msra.mxu1 %v13541_v26  ;;  %v11544_v56 = vpop.f32.mrf.mxu0  ;;  %11853 = vmatprep.subr.bf16.mxu0 %v13470_v59  ;;  %v1038_v17 = vld [vmem:[%s14754_s7 + $0x1078] sm:$0xff] }
 0x545   : > { %v11585_v10 = vpop.f32.mrf.mxu1  ;;  %11878 = vmatprep.subr.bf16.mxu1 %v13534_v19  ;;  %v13502_v7 = vcombine.high %v1034_v51, %v1038_v17  ;;  %v962_v31 = vld [vmem:[%s14754_s7 + $0xe18] sm:$0xff]  ;;  %v13501_v19 = vcombine.low %v1034_v51, %v1038_v17 }
 0x546   : > { %v966_v26 = vld [vmem:[%s14754_s7 + $0xe38] sm:$0xff] }
 0x547   : > { %11854 = vmatpush2.bf16.msra.mxu0 %v13469_v30  ;;  %v1026_v59 = vld [vmem:[%s14754_s7 + $0x1018] sm:$0xff]  ;;  %v13430_v12 = vcombine.high %v962_v31, %v966_v26  ;;  %v13429_v30 = vcombine.low %v962_v31, %v966_v26 }
 0x548   : > { %11879 = vmatpush1.bf16.msra.mxu1 %v13533_v61  ;;  %11855 = vmatprep.subr.bf16.mxu0 %v13462_v41  ;;  %v1030_v63 = vld [vmem:[%s14754_s7 + $0x1038] sm:$0xff] }
 0x549   : > { %11880 = vmatprep.subr.bf16.mxu1 %v13526_v13  ;;  %v13494_v24 = vcombine.high %v1026_v59, %v1030_v63  ;;  %v1210_v1 = vld [vmem:[%s14754_s7 + $0x15d8] sm:$0xff]  ;;  %v13493_v56 = vcombine.low %v1026_v59, %v1030_v63 }
 0x54a   : > { %v1214_v2 = vld [vmem:[%s14754_s7 + $0x15f8] sm:$0xff] }
 0x54b   : > { %11856 = vmatpush2.bf16.msra.mxu0 %v13461_v20  ;;  %v1146_v29 = vld [vmem:[%s14754_s7 + $0x13d8] sm:$0xff]  ;;  %v13678_v61 = vcombine.high %v1210_v1, %v1214_v2  ;;  %v13677_v55 = vcombine.low %v1210_v1, %v1214_v2 }
 0x54c   : > { %11881 = vmatpush1.bf16.msra.mxu1 %v13525_v37  ;;  %11857 = vmatprep.subr.bf16.mxu0 %v13454_v47  ;;  %v1150_v8 = vld [vmem:[%s14754_s7 + $0x13f8] sm:$0xff] }
 0x54d   : > { %11882 = vmatprep.subr.bf16.mxu1 %v13518_v6  ;;  %v13614_v41 = vcombine.high %v1146_v29, %v1150_v8  ;;  %v1202_v10 = vld [vmem:[%s14754_s7 + $0x1598] sm:$0xff]  ;;  %v13613_v38 = vcombine.low %v1146_v29, %v1150_v8 }
 0x54e   : > { %v1206_v13 = vld [vmem:[%s14754_s7 + $0x15b8] sm:$0xff] }
 0x54f   : > { %11858 = vmatpush2.bf16.msra.mxu0 %v13453_v34  ;;  %v1138_v42 = vld [vmem:[%s14754_s7 + $0x1398] sm:$0xff]  ;;  %v13670_v20 = vcombine.high %v1202_v10, %v1206_v13  ;;  %v13669_v48 = vcombine.low %v1202_v10, %v1206_v13 }
 0x550   : > { %11883 = vmatpush1.bf16.msra.mxu1 %v13517_v53  ;;  %11859 = vmatprep.subr.bf16.mxu0 %v13446_v28  ;;  %v1142_v62 = vld [vmem:[%s14754_s7 + $0x13b8] sm:$0xff] }
 0x551   : > { %11884 = vmatprep.subr.bf16.mxu1 %v13510_v22  ;;  %v13606_v37 = vcombine.high %v1138_v42, %v1142_v62  ;;  %v1194_v47 = vld [vmem:[%s14754_s7 + $0x1558] sm:$0xff]  ;;  %v13605_v23 = vcombine.low %v1138_v42, %v1142_v62 }
 0x552   : > { %v1198_v6 = vld [vmem:[%s14754_s7 + $0x1578] sm:$0xff] }
 0x553   : > { %11860 = vmatpush2.bf16.msra.mxu0 %v13445_v57  ;;  %v1130_v39 = vld [vmem:[%s14754_s7 + $0x1358] sm:$0xff]  ;;  %v13662_v34 = vcombine.high %v1194_v47, %v1198_v6  ;;  %v13661_v32 = vcombine.low %v1194_v47, %v1198_v6 }
 0x554   : > { %11885 = vmatpush1.bf16.msra.mxu1 %v13509_v44  ;;  %11861 = vmatprep.subr.bf16.mxu0 %v13438_v14  ;;  %v1134_v3 = vld [vmem:[%s14754_s7 + $0x1378] sm:$0xff] }
 0x555   : > { %11886 = vmatprep.subr.bf16.mxu1 %v13502_v7  ;;  %v13598_v53 = vcombine.high %v1130_v39, %v1134_v3  ;;  %v1186_v28 = vld [vmem:[%s14754_s7 + $0x1518] sm:$0xff]  ;;  %v13597_v51 = vcombine.low %v1130_v39, %v1134_v3 }
 0x556   : > { %v1190_v22 = vld [vmem:[%s14754_s7 + $0x1538] sm:$0xff] }
 0x557   : > { %11862 = vmatpush2.bf16.msra.mxu0 %v13437_v25  ;;  %v1122_v50 = vld [vmem:[%s14754_s7 + $0x1318] sm:$0xff]  ;;  %v13653_v31 = vcombine.low %v1186_v28, %v1190_v22 }
 0x558   : > { %11887 = vmatpush1.bf16.msra.mxu1 %v13501_v19  ;;  %11863 = vmatprep.subr.bf16.mxu0 %v13430_v12  ;;  %v1178_v57 = vld [vmem:[%s14754_s7 + $0x14d8] sm:$0xff] }
 0x559   : > { %11888 = vmatprep.subr.bf16.mxu1 %v13494_v24  ;;  %v1182_v44 = vld [vmem:[%s14754_s7 + $0x14f8] sm:$0xff] }
 0x55a   : > { %v1114_v14 = vld [vmem:[%s14754_s7 + $0x12d8] sm:$0xff]  ;;  %v13646_v59 = vcombine.high %v1178_v57, %v1182_v44  ;;  %v13645_v1 = vcombine.low %v1178_v57, %v1182_v44 }
 0x55b   : > { %11864 = vmatpush2.bf16.msra.mxu0 %v13429_v30  ;;  %v1118_v7 = vld [vmem:[%s14754_s7 + $0x12f8] sm:$0xff] }
 0x55c   : > { %11889 = vmatpush1.bf16.msra.mxu1 %v13493_v56  ;;  %11915 = vmatprep.subr.bf16.mxu0 %v13678_v61  ;;  %v13582_v63 = vcombine.high %v1114_v14, %v1118_v7  ;;  %v1170_v25 = vld [vmem:[%s14754_s7 + $0x1498] sm:$0xff]  ;;  %v13581_v2 = vcombine.low %v1114_v14, %v1118_v7 }
 0x55d   : > { %11890 = vmatprep.subr.bf16.mxu1 %v13614_v41  ;;  %v1174_v19 = vld [vmem:[%s14754_s7 + $0x14b8] sm:$0xff] }
 0x55e   : > { %11866 = vmatmul.mubr.bf16.vlgmr.msra.gmra.mxu0 %v14959_v5  ;;  %v1126_v5 = vld [vmem:[%s14754_s7 + $0x1338] sm:$0xff]  ;;  %v13638_v29 = vcombine.high %v1170_v25, %v1174_v19  ;;  %v13637_v10 = vcombine.low %v1170_v25, %v1174_v19 }
 0x55f   : > { %11916 = vmatpush1.bf16.msra.mxu0 %v13677_v55  ;;  %11947 = vmatprep.mubr.bf16.mxu0 %v14968_v15  ;;  %v13654_v15 = vcombine.high %v1186_v28, %v1190_v22  ;;  %v13590_v17 = vcombine.high %v1122_v50, %v1126_v5  ;;  %v13589_v26 = vcombine.low %v1122_v50, %v1126_v5  ;;  %v1106_v12 = vld [vmem:[%s14754_s7 + $0x1298] sm:$0xff] }
 0x560   : > { %11891 = vmatpush2.bf16.msra.mxu1 %v13613_v38  ;;  %11917 = vmatprep.subr.bf16.mxu0 %v13670_v20  ;;  %v1110_v24 = vld [vmem:[%s14754_s7 + $0x12b8] sm:$0xff] }
 0x561   : > { %11892 = vmatprep.subr.bf16.mxu1 %v13606_v37  ;;  %v13574_v8 = vcombine.high %v1106_v12, %v1110_v24  ;;  %v1162_v30 = vld [vmem:[%s14754_s7 + $0x1458] sm:$0xff]  ;;  %v13573_v13 = vcombine.low %v1106_v12, %v1110_v24 }
 0x562   : > { %v1166_v56 = vld [vmem:[%s14754_s7 + $0x1478] sm:$0xff] }
 0x563   : > { %11918 = vmatpush1.bf16.msra.mxu0 %v13669_v48  ;;  %v1098_v61 = vld [vmem:[%s14754_s7 + $0x1258] sm:$0xff]  ;;  %v13630_v42 = vcombine.high %v1162_v30, %v1166_v56  ;;  %v13629_v47 = vcombine.low %v1162_v30, %v1166_v56 }
 0x564   : > { %11893 = vmatpush2.bf16.msra.mxu1 %v13605_v23  ;;  %11919 = vmatprep.subr.bf16.mxu0 %v13662_v34  ;;  %v1102_v41 = vld [vmem:[%s14754_s7 + $0x1278] sm:$0xff] }
 0x565   : > { %11894 = vmatprep.subr.bf16.mxu1 %v13598_v53  ;;  %v13566_v62 = vcombine.high %v1098_v61, %v1102_v41  ;;  %v1154_v55 = vld [vmem:[%s14754_s7 + $0x1418] sm:$0xff]  ;;  %v13565_v6 = vcombine.low %v1098_v61, %v1102_v41 }
 0x566   : > { %v1158_v38 = vld [vmem:[%s14754_s7 + $0x1438] sm:$0xff] }
 0x567   : > { %11920 = vmatpush1.bf16.msra.mxu0 %v13661_v32  ;;  %v1090_v20 = vld [vmem:[%s14754_s7 + $0x1218] sm:$0xff]  ;;  %v13622_v39 = vcombine.high %v1154_v55, %v1158_v38  ;;  %v13621_v28 = vcombine.low %v1154_v55, %v1158_v38 }
 0x568   : > { %11895 = vmatpush2.bf16.msra.mxu1 %v13597_v51  ;;  %11921 = vmatprep.subr.bf16.mxu0 %v13654_v15  ;;  %v1094_v37 = vld [vmem:[%s14754_s7 + $0x1238] sm:$0xff] }
 0x569   : > { %11896 = vmatprep.subr.bf16.mxu1 %v13590_v17  ;;  %v13558_v3 = vcombine.high %v1090_v20, %v1094_v37  ;;  %v1274_v48 = vld [vmem:[%s14754_s7 + $0x17d8] sm:$0xff]  ;;  %v13557_v22 = vcombine.low %v1090_v20, %v1094_v37 }
 0x56a   : > { %v1278_v23 = vld [vmem:[%s14754_s7 + $0x17f8] sm:$0xff] }
 0x56b   : > { %11922 = vmatpush1.bf16.msra.mxu0 %v13653_v31  ;;  %v1338_v34 = vld [vmem:[%s14754_s7 + $0x19d8] sm:$0xff]  ;;  %v13742_v50 = vcombine.high %v1274_v48, %v1278_v23  ;;  %v13741_v57 = vcombine.low %v1274_v48, %v1278_v23 }
 0x56c   : > { %11897 = vmatpush2.bf16.msra.mxu1 %v13589_v26  ;;  %11923 = vmatprep.subr.bf16.mxu0 %v13646_v59  ;;  %v1342_v53 = vld [vmem:[%s14754_s7 + $0x19f8] sm:$0xff] }
 0x56d   : > { %11898 = vmatprep.subr.bf16.mxu1 %v13582_v63  ;;  %v13806_v5 = vcombine.high %v1338_v34, %v1342_v53  ;;  %v1266_v32 = vld [vmem:[%s14754_s7 + $0x1798] sm:$0xff]  ;;  %v13805_v44 = vcombine.low %v1338_v34, %v1342_v53 }
 0x56e   : > { %v1270_v51 = vld [vmem:[%s14754_s7 + $0x17b8] sm:$0xff] }
 0x56f   : > { %11924 = vmatpush1.bf16.msra.mxu0 %v13645_v1  ;;  %v1330_v15 = vld [vmem:[%s14754_s7 + $0x1998] sm:$0xff]  ;;  %v13734_v14 = vcombine.high %v1266_v32, %v1270_v51  ;;  %v13733_v24 = vcombine.low %v1266_v32, %v1270_v51 }
 0x570   : > { %11899 = vmatpush2.bf16.msra.mxu1 %v13581_v2  ;;  %11925 = vmatprep.subr.bf16.mxu0 %v13638_v29  ;;  %v1334_v17 = vld [vmem:[%s14754_s7 + $0x19b8] sm:$0xff] }
 0x571   : > { %11900 = vmatprep.subr.bf16.mxu1 %v13574_v8  ;;  %v13798_v7 = vcombine.high %v1330_v15, %v1334_v17  ;;  %v1258_v31 = vld [vmem:[%s14754_s7 + $0x1758] sm:$0xff]  ;;  %v13797_v2 = vcombine.low %v1330_v15, %v1334_v17 }
 0x572   : > { %v1262_v26 = vld [vmem:[%s14754_s7 + $0x1778] sm:$0xff] }
 0x573   : > { %11926 = vmatpush1.bf16.msra.mxu0 %v13637_v10  ;;  %v1322_v63 = vld [vmem:[%s14754_s7 + $0x1958] sm:$0xff]  ;;  %v13726_v29 = vcombine.high %v1258_v31, %v1262_v26  ;;  %v13725_v55 = vcombine.low %v1258_v31, %v1262_v26 }
 0x574   : > { %11901 = vmatpush2.bf16.msra.mxu1 %v13573_v13  ;;  %11927 = vmatprep.subr.bf16.mxu0 %v13630_v42  ;;  %v1326_v25 = vld [vmem:[%s14754_s7 + $0x1978] sm:$0xff] }
 0x575   : > { %11902 = vmatprep.subr.bf16.mxu1 %v13566_v62  ;;  %v1250_v61 = vld [vmem:[%s14754_s7 + $0x1718] sm:$0xff]  ;;  %v13789_v38 = vcombine.low %v1322_v63, %v1326_v25 }
 0x576   : > { %v1254_v41 = vld [vmem:[%s14754_s7 + $0x1738] sm:$0xff] }
 0x577   : > { %11928 = vmatpush1.bf16.msra.mxu0 %v13629_v47  ;;  %v1314_v10 = vld [vmem:[%s14754_s7 + $0x1918] sm:$0xff]  ;;  %v13718_v20 = vcombine.high %v1250_v61, %v1254_v41  ;;  %v13717_v48 = vcombine.low %v1250_v61, %v1254_v41 }
 0x578   : > { %11903 = vmatpush2.bf16.msra.mxu1 %v13565_v6  ;;  %11929 = vmatprep.subr.bf16.mxu0 %v13622_v39  ;;  %v1318_v13 = vld [vmem:[%s14754_s7 + $0x1938] sm:$0xff] }
 0x579   : > { %11904 = vmatprep.subr.bf16.mxu1 %v13558_v3  ;;  %v1242_v47 = vld [vmem:[%s14754_s7 + $0x16d8] sm:$0xff]  ;;  %v13781_v23 = vcombine.low %v1314_v10, %v1318_v13 }
 0x57a   : > { %v1246_v6 = vld [vmem:[%s14754_s7 + $0x16f8] sm:$0xff] }
 0x57b   : > { %11930 = vmatpush1.bf16.msra.mxu0 %v13621_v28  ;;  %v1306_v39 = vld [vmem:[%s14754_s7 + $0x18d8] sm:$0xff]  ;;  %v13710_v34 = vcombine.high %v1242_v47, %v1246_v6  ;;  %v13709_v32 = vcombine.low %v1242_v47, %v1246_v6 }
 0x57c   : > { %11905 = vmatpush2.bf16.msra.mxu1 %v13557_v22  ;;  %11931 = vmatprep.subr.bf16.mxu0 %v13742_v50  ;;  %v1310_v3 = vld [vmem:[%s14754_s7 + $0x18f8] sm:$0xff] }
 0x57d   : > { %11956 = vmatprep.subr.bf16.mxu1 %v13806_v5  ;;  %v13774_v53 = vcombine.high %v1306_v39, %v1310_v3  ;;  %v1234_v28 = vld [vmem:[%s14754_s7 + $0x1698] sm:$0xff]  ;;  %v13773_v51 = vcombine.low %v1306_v39, %v1310_v3 }
 0x57e   : > { %v11621_v59 = vpop.f32.mrf.mxu0  ;;  %v1238_v22 = vld [vmem:[%s14754_s7 + $0x16b8] sm:$0xff] }
 0x57f   : > { %v11622_v19 = vadd.f32 %v11621_v59, %v16448_v21  ;;  %v11662_v12 = vpop.f32.mrf.mxu1  ;;  %11907 = vmatmul.mubr.bf16.vlgmr.msra.gmra.mxu1 %v15042_v43  ;;  %11932 = vmatpush2.bf16.msra.mxu0 %v13741_v57  ;;  %v13790_v21 = vcombine.high %v1322_v63, %v1326_v25  ;;  %v1298_v50 = vld [vmem:[%s14754_s7 + $0x1898] sm:$0xff]  ;;  %v13702_v15 = vcombine.high %v1234_v28, %v1238_v22 }
 0x580   : > { %11957 = vmatpush1.bf16.msra.mxu1 %v13805_v44  ;;  %v11623_v1 = vpop.f32.mrf.mxu0  ;;  %11933 = vmatprep.subr.bf16.mxu0 %v13734_v14  ;;  %v1302_v5 = vld [vmem:[%s14754_s7 + $0x18b8] sm:$0xff]  ;;  %v13701_v31 = vcombine.low %v1234_v28, %v1238_v22 }
 0x581   : > { %v16522_v8 = vadd.f32 %v11662_v12, %v11622_v19  ;;  %v11624_v30 = vadd.f32 %v11623_v1, %v16456_v36  ;;  %v11664_v56 = vpop.f32.mrf.mxu1  ;;  %11958 = vmatprep.subr.bf16.mxu1 %v13798_v7  ;;  %11988 = vmatprep.mubr.bf16.mxu1 %v15054_v58  ;;  %v13782_v58 = vcombine.high %v1314_v10, %v1318_v13  ;;  %v1226_v57 = vld [vmem:[%s14754_s7 + $0x1658] sm:$0xff] }
 0x582   : > { %v11625_v43 = vpop.f32.mrf.mxu0  ;;  %v13766_v17 = vcombine.high %v1298_v50, %v1302_v5  ;;  %v1230_v44 = vld [vmem:[%s14754_s7 + $0x1678] sm:$0xff]  ;;  %v13765_v26 = vcombine.low %v1298_v50, %v1302_v5 }
 0x583   : > { %v16530_v42 = vadd.f32 %v11664_v56, %v11624_v30  ;;  %v11666_v62 = vpop.f32.mrf.mxu1  ;;  %11934 = vmatpush2.bf16.msra.mxu0 %v13733_v24  ;;  %v1290_v14 = vld [vmem:[%s14754_s7 + $0x1858] sm:$0xff]  ;;  %v13694_v59 = vcombine.high %v1226_v57, %v1230_v44  ;;  %v13693_v1 = vcombine.low %v1226_v57, %v1230_v44 }
 0x584   : > { %11959 = vmatpush1.bf16.msra.mxu1 %v13797_v2  ;;  %v11626_v36 = vpop.f32.mrf.mxu0  ;;  %11935 = vmatprep.subr.bf16.mxu0 %v13726_v29  ;;  %v1294_v7 = vld [vmem:[%s14754_s7 + $0x1878] sm:$0xff] }
 0x585   : > { %v11667_v37 = vpop.f32.mrf.mxu1  ;;  %11960 = vmatprep.subr.bf16.mxu1 %v13790_v21  ;;  %v13758_v63 = vcombine.high %v1290_v14, %v1294_v7  ;;  %v1218_v25 = vld [vmem:[%s14754_s7 + $0x1618] sm:$0xff]  ;;  %v13757_v2 = vcombine.low %v1290_v14, %v1294_v7 }
 0x586   : > { %v1222_v19 = vld [vmem:[%s14754_s7 + $0x1638] sm:$0xff] }
 0x587   : > { %11936 = vmatpush2.bf16.msra.mxu0 %v13725_v55  ;;  %v1282_v12 = vld [vmem:[%s14754_s7 + $0x1818] sm:$0xff]  ;;  %v13686_v29 = vcombine.high %v1218_v25, %v1222_v19  ;;  %v13685_v43 = vcombine.low %v1218_v25, %v1222_v19 }
 0x588   : > { %11961 = vmatpush1.bf16.msra.mxu1 %v13789_v38  ;;  %11937 = vmatprep.subr.bf16.mxu0 %v13718_v20  ;;  %v1286_v24 = vld [vmem:[%s14754_s7 + $0x1838] sm:$0xff] }
 0x589   : > { %11962 = vmatprep.subr.bf16.mxu1 %v13782_v58  ;;  %v13750_v30 = vcombine.high %v1282_v12, %v1286_v24  ;;  %v1466_v56 = vld [vmem:[%s14754_s7 + $0x1dd8] sm:$0xff]  ;;  %v13749_v10 = vcombine.low %v1282_v12, %v1286_v24 }
 0x58a   : > { %v1470_v21 = vld [vmem:[%s14754_s7 + $0x1df8] sm:$0xff] }
 0x58b   : > { %11938 = vmatpush2.bf16.msra.mxu0 %v13717_v48  ;;  %v1402_v61 = vld [vmem:[%s14754_s7 + $0x1bd8] sm:$0xff]  ;;  %v13934_v13 = vcombine.high %v1466_v56, %v1470_v21  ;;  %v13933_v37 = vcombine.low %v1466_v56, %v1470_v21 }
 0x58c   : > { %11963 = vmatpush1.bf16.msra.mxu1 %v13781_v23  ;;  %11939 = vmatprep.subr.bf16.mxu0 %v13710_v34  ;;  %v1406_v41 = vld [vmem:[%s14754_s7 + $0x1bf8] sm:$0xff] }
 0x58d   : > { %11964 = vmatprep.subr.bf16.mxu1 %v13774_v53  ;;  %v13870_v62 = vcombine.high %v1402_v61, %v1406_v41  ;;  %v1458_v55 = vld [vmem:[%s14754_s7 + $0x1d98] sm:$0xff]  ;;  %v13869_v58 = vcombine.low %v1402_v61, %v1406_v41 }
 0x58e   : > { %v1462_v36 = vld [vmem:[%s14754_s7 + $0x1db8] sm:$0xff] }
 0x58f   : > { %11940 = vmatpush2.bf16.msra.mxu0 %v13709_v32  ;;  %v1394_v38 = vld [vmem:[%s14754_s7 + $0x1b98] sm:$0xff]  ;;  %v13926_v47 = vcombine.high %v1458_v55, %v1462_v36  ;;  %v13925_v28 = vcombine.low %v1458_v55, %v1462_v36 }
 0x590   : > { %11965 = vmatpush1.bf16.msra.mxu1 %v13773_v51  ;;  %11941 = vmatprep.subr.bf16.mxu0 %v13702_v15  ;;  %v1398_v20 = vld [vmem:[%s14754_s7 + $0x1bb8] sm:$0xff] }
 0x591   : > { %11966 = vmatprep.subr.bf16.mxu1 %v13766_v17  ;;  %v13862_v6 = vcombine.high %v1394_v38, %v1398_v20  ;;  %v1450_v39 = vld [vmem:[%s14754_s7 + $0x1d58] sm:$0xff]  ;;  %v13861_v50 = vcombine.low %v1394_v38, %v1398_v20 }
 0x592   : > { %v1454_v3 = vld [vmem:[%s14754_s7 + $0x1d78] sm:$0xff] }
 0x593   : > { %11942 = vmatpush2.bf16.msra.mxu0 %v13701_v31  ;;  %v1386_v23 = vld [vmem:[%s14754_s7 + $0x1b58] sm:$0xff]  ;;  %v13918_v5 = vcombine.high %v1450_v39, %v1454_v3  ;;  %v13917_v44 = vcombine.low %v1450_v39, %v1454_v3 }
 0x594   : > { %11967 = vmatpush1.bf16.msra.mxu1 %v13765_v26  ;;  %11943 = vmatprep.subr.bf16.mxu0 %v13694_v59  ;;  %v1390_v34 = vld [vmem:[%s14754_s7 + $0x1b78] sm:$0xff] }
 0x595   : > { %11968 = vmatprep.subr.bf16.mxu1 %v13758_v63  ;;  %v1442_v51 = vld [vmem:[%s14754_s7 + $0x1d18] sm:$0xff] }
 0x596   : > { %v1378_v17 = vld [vmem:[%s14754_s7 + $0x1b18] sm:$0xff] }
 0x597   : > { %11944 = vmatpush2.bf16.msra.mxu0 %v13693_v1  ;;  %v1382_v57 = vld [vmem:[%s14754_s7 + $0x1b38] sm:$0xff] }
 0x598   : > { %11969 = vmatpush1.bf16.msra.mxu1 %v13757_v2  ;;  %11945 = vmatprep.subr.bf16.mxu0 %v13686_v29  ;;  %v13846_v31 = vcombine.high %v1378_v17, %v1382_v57  ;;  %v1434_v26 = vld [vmem:[%s14754_s7 + $0x1cd8] sm:$0xff]  ;;  %v13845_v12 = vcombine.low %v1378_v17, %v1382_v57 }
 0x599   : > { %11970 = vmatprep.subr.bf16.mxu1 %v13750_v30  ;;  %v1438_v59 = vld [vmem:[%s14754_s7 + $0x1cf8] sm:$0xff] }
 0x59a   : > { %v1370_v63 = vld [vmem:[%s14754_s7 + $0x1ad8] sm:$0xff]  ;;  %v13902_v24 = vcombine.high %v1434_v26, %v1438_v59  ;;  %v13901_v21 = vcombine.low %v1434_v26, %v1438_v59 }
 0x59b   : > { %11946 = vmatpush2.bf16.msra.mxu0 %v13685_v43  ;;  %v1374_v25 = vld [vmem:[%s14754_s7 + $0x1af8] sm:$0xff] }
 0x59c   : > { %11971 = vmatpush1.bf16.msra.mxu1 %v13749_v10  ;;  %11997 = vmatprep.subr.bf16.mxu0 %v13934_v13  ;;  %v13838_v1 = vcombine.high %v1370_v63, %v1374_v25  ;;  %v1426_v2 = vld [vmem:[%s14754_s7 + $0x1c98] sm:$0xff]  ;;  %v13837_v61 = vcombine.low %v1370_v63, %v1374_v25 }
 0x59d   : > { %11972 = vmatprep.subr.bf16.mxu1 %v13870_v62  ;;  %v1430_v29 = vld [vmem:[%s14754_s7 + $0x1cb8] sm:$0xff] }
 0x59e   : > { %v11703_v48 = vpop.f32.mrf.mxu0  ;;  %11948 = vmatmul.mubr.bf16.vlgmr.msra.gmra.mxu0 %v15050_v49  ;;  %v13854_v49 = vcombine.high %v1386_v23, %v1390_v34  ;;  %v1362_v30 = vld [vmem:[%s14754_s7 + $0x1a98] sm:$0xff]  ;;  %v13894_v41 = vcombine.high %v1426_v2, %v1430_v29  ;;  %v13893_v36 = vcombine.low %v1426_v2, %v1430_v29 }
 0x59f   : > { %v16562_v53 = vadd.f32 %v11703_v48, %v16522_v8  ;;  %11998 = vmatpush1.bf16.msra.mxu0 %v13933_v37  ;;  %12029 = vmatprep.mubr.bf16.mxu0 %v15059_v60  ;;  %v1446_v8 = vld [vmem:[%s14754_s7 + $0x1d38] sm:$0xff] }
 0x5a0   : > { %11973 = vmatpush2.bf16.msra.mxu1 %v13869_v58  ;;  %v11705_v22 = vpop.f32.mrf.mxu0  ;;  %11999 = vmatprep.subr.bf16.mxu0 %v13926_v47  ;;  %v13910_v7 = vcombine.high %v1442_v51, %v1446_v8  ;;  %v13909_v19 = vcombine.low %v1442_v51, %v1446_v8  ;;  %v1366_v56 = vld [vmem:[%s14754_s7 + $0x1ab8] sm:$0xff] }
 0x5a1   : > { %v16566_v32 = vadd.f32 %v11705_v22, %v16530_v42  ;;  %11974 = vmatprep.subr.bf16.mxu1 %v13862_v6  ;;  %v13853_v42 = vcombine.low %v1386_v23, %v1390_v34  ;;  %v13830_v43 = vcombine.high %v1362_v30, %v1366_v56  ;;  %v1418_v10 = vld [vmem:[%s14754_s7 + $0x1c58] sm:$0xff]  ;;  %v13829_v38 = vcombine.low %v1362_v30, %v1366_v56 }
 0x5a2   : > { %v11707_v15 = vpop.f32.mrf.mxu0  ;;  %v1422_v13 = vld [vmem:[%s14754_s7 + $0x1c78] sm:$0xff] }
 0x5a3   : > { %v12268_v60 = vcombine.low %v16562_v53, %v16566_v32  ;;  %12000 = vmatpush1.bf16.msra.mxu0 %v13925_v28  ;;  %v1354_v62 = vld [vmem:[%s14754_s7 + $0x1a58] sm:$0xff]  ;;  %v13886_v20 = vcombine.high %v1418_v10, %v1422_v13  ;;  %v13885_v3 = vcombine.low %v1418_v10, %v1422_v13 }
 0x5a4   : > { %11975 = vmatpush2.bf16.msra.mxu1 %v13861_v50  ;;  %v11708_v14 = vpop.f32.mrf.mxu0  ;;  %12001 = vmatprep.subr.bf16.mxu0 %v13918_v5  ;;  %v1358_v55 = vld [vmem:[%s14754_s7 + $0x1a78] sm:$0xff] }
 0x5a5   : > { %11976 = vmatprep.subr.bf16.mxu1 %v13854_v49  ;;  %v13822_v37 = vcombine.high %v1354_v62, %v1358_v55  ;;  %v1410_v58 = vld [vmem:[%s14754_s7 + $0x1c18] sm:$0xff]  ;;  %v13821_v48 = vcombine.low %v1354_v62, %v1358_v55 }
 0x5a6   : > { %v1414_v47 = vld [vmem:[%s14754_s7 + $0x1c38] sm:$0xff] }
 0x5a7   : > { %12002 = vmatpush1.bf16.msra.mxu0 %v13917_v44  ;;  %v1346_v6 = vld [vmem:[%s14754_s7 + $0x1a18] sm:$0xff]  ;;  %v13878_v23 = vcombine.high %v1410_v58, %v1414_v47  ;;  %v13877_v49 = vcombine.low %v1410_v58, %v1414_v47 }
 0x5a8   : > { %11977 = vmatpush2.bf16.msra.mxu1 %v13853_v42  ;;  %12003 = vmatprep.subr.bf16.mxu0 %v13910_v7  ;;  %v1350_v39 = vld [vmem:[%s14754_s7 + $0x1a38] sm:$0xff] }
 0x5a9   : > { %11978 = vmatprep.subr.bf16.mxu1 %v13846_v31  ;;  %v13814_v34 = vcombine.high %v1346_v6, %v1350_v39  ;;  %v1530_v28 = vld [vmem:[%s14754_s7 + $0x1fd8] sm:$0xff]  ;;  %v13813_v51 = vcombine.low %v1346_v6, %v1350_v39 }
 0x5aa   : > { %v1534_v22 = vld [vmem:[%s14754_s7 + $0x1ff8] sm:$0xff] }
 0x5ab   : > { %12004 = vmatpush1.bf16.msra.mxu0 %v13909_v19  ;;  %v1594_v50 = vld [vmem:[%s14754_s7 + $0x21d8] sm:$0xff]  ;;  %v13998_v8 = vcombine.high %v1530_v28, %v1534_v22  ;;  %v13997_v42 = vcombine.low %v1530_v28, %v1534_v22 }
 0x5ac   : > { %11979 = vmatpush2.bf16.msra.mxu1 %v13845_v12  ;;  %12005 = vmatprep.subr.bf16.mxu0 %v13902_v24  ;;  %v1598_v5 = vld [vmem:[%s14754_s7 + $0x21f8] sm:$0xff] }
 0x5ad   : > { %11980 = vmatprep.subr.bf16.mxu1 %v13838_v1  ;;  %v14062_v15 = vcombine.high %v1594_v50, %v1598_v5  ;;  %v1522_v17 = vld [vmem:[%s14754_s7 + $0x1f98] sm:$0xff]  ;;  %v14061_v7 = vcombine.low %v1594_v50, %v1598_v5 }
 0x5ae   : > { %v1526_v57 = vld [vmem:[%s14754_s7 + $0x1fb8] sm:$0xff] }
 0x5af   : > { %12006 = vmatpush1.bf16.msra.mxu0 %v13901_v21  ;;  %v1586_v44 = vld [vmem:[%s14754_s7 + $0x2198] sm:$0xff]  ;;  %v13990_v31 = vcombine.high %v1522_v17, %v1526_v57  ;;  %v13989_v24 = vcombine.low %v1522_v17, %v1526_v57 }
 0x5b0   : > { %11981 = vmatpush2.bf16.msra.mxu1 %v13837_v61  ;;  %12007 = vmatprep.subr.bf16.mxu0 %v13894_v41  ;;  %v1590_v14 = vld [vmem:[%s14754_s7 + $0x21b8] sm:$0xff] }
 0x5b1   : > { %11982 = vmatprep.subr.bf16.mxu1 %v13830_v43  ;;  %v14054_v26 = vcombine.high %v1586_v44, %v1590_v14  ;;  %v1514_v59 = vld [vmem:[%s14754_s7 + $0x1f58] sm:$0xff]  ;;  %v14053_v1 = vcombine.low %v1586_v44, %v1590_v14 }
 0x5b2   : > { %v1518_v63 = vld [vmem:[%s14754_s7 + $0x1f78] sm:$0xff] }
 0x5b3   : > { %12008 = vmatpush1.bf16.msra.mxu0 %v13893_v36  ;;  %v1578_v25 = vld [vmem:[%s14754_s7 + $0x2158] sm:$0xff]  ;;  %v13982_v2 = vcombine.high %v1514_v59, %v1518_v63  ;;  %v13981_v43 = vcombine.low %v1514_v59, %v1518_v63 }
 0x5b4   : > { %11983 = vmatpush2.bf16.msra.mxu1 %v13829_v38  ;;  %12009 = vmatprep.subr.bf16.mxu0 %v13886_v20  ;;  %v1582_v19 = vld [vmem:[%s14754_s7 + $0x2178] sm:$0xff] }
 0x5b5   : > { %11984 = vmatprep.subr.bf16.mxu1 %v13822_v37  ;;  %v14046_v30 = vcombine.high %v1578_v25, %v1582_v19  ;;  %v1506_v56 = vld [vmem:[%s14754_s7 + $0x1f18] sm:$0xff]  ;;  %v14045_v10 = vcombine.low %v1578_v25, %v1582_v19 }
 0x5b6   : > { %v1510_v21 = vld [vmem:[%s14754_s7 + $0x1f38] sm:$0xff] }
 0x5b7   : > { %12010 = vmatpush1.bf16.msra.mxu0 %v13885_v3  ;;  %v1570_v61 = vld [vmem:[%s14754_s7 + $0x2118] sm:$0xff]  ;;  %v13974_v13 = vcombine.high %v1506_v56, %v1510_v21  ;;  %v13973_v37 = vcombine.low %v1506_v56, %v1510_v21 }
 0x5b8   : > { %11985 = vmatpush2.bf16.msra.mxu1 %v13821_v48  ;;  %12011 = vmatprep.subr.bf16.mxu0 %v13878_v23  ;;  %v1498_v36 = vld [vmem:[%s14754_s7 + $0x1ed8] sm:$0xff] }
 0x5b9   : > { %11986 = vmatprep.subr.bf16.mxu1 %v13814_v34  ;;  %v1502_v38 = vld [vmem:[%s14754_s7 + $0x1ef8] sm:$0xff] }
 0x5ba   : > { %v1566_v20 = vld [vmem:[%s14754_s7 + $0x20f8] sm:$0xff]  ;;  %v13966_v47 = vcombine.high %v1498_v36, %v1502_v38  ;;  %v13965_v34 = vcombine.low %v1498_v36, %v1502_v38 }
 0x5bb   : > { %12012 = vmatpush1.bf16.msra.mxu0 %v13877_v49  ;;  %v1490_v39 = vld [vmem:[%s14754_s7 + $0x1e98] sm:$0xff] }
 0x5bc   : > { %11987 = vmatpush2.bf16.msra.mxu1 %v13813_v51  ;;  %12013 = vmatprep.subr.bf16.mxu0 %v13998_v8  ;;  %v1494_v3 = vld [vmem:[%s14754_s7 + $0x1eb8] sm:$0xff] }
 0x5bd   : > { %12038 = vmatprep.subr.bf16.mxu1 %v14062_v15  ;;  %v1554_v48 = vld [vmem:[%s14754_s7 + $0x2098] sm:$0xff]  ;;  %v13958_v22 = vcombine.high %v1490_v39, %v1494_v3  ;;  %v13957_v15 = vcombine.low %v1490_v39, %v1494_v3 }
 0x5be   : > { %v1558_v23 = vld [vmem:[%s14754_s7 + $0x20b8] sm:$0xff] }
 0x5bf   : > { %v16602_v12 = vpop.f32.mrf.mxu1  ;;  %11989 = vmatmul.mubr.bf16.vlgmr.msra.gmra.mxu1 %v15133_v40  ;;  %12014 = vmatpush2.bf16.msra.mxu0 %v13997_v42  ;;  %v1574_v40 = vld [vmem:[%s14754_s7 + $0x2138] sm:$0xff]  ;;  %v14022_v50 = vcombine.high %v1554_v48, %v1558_v23  ;;  %v14021_v17 = vcombine.low %v1554_v48, %v1558_v23 }
 0x5c0   : > { %12039 = vmatpush1.bf16.msra.mxu1 %v14061_v7  ;;  %12015 = vmatprep.subr.bf16.mxu0 %v13990_v31  ;;  %v14038_v55 = vcombine.high %v1570_v61, %v1574_v40  ;;  %v14037_v58 = vcombine.low %v1570_v61, %v1574_v40  ;;  %v1482_v5 = vld [vmem:[%s14754_s7 + $0x1e58] sm:$0xff] }
 0x5c1   : > { %v16605_v29 = vpop.f32.mrf.mxu1  ;;  %12040 = vmatprep.subr.bf16.mxu1 %v14054_v26  ;;  %12070 = vmatprep.mubr.bf16.mxu1 %v15145_v52  ;;  %v1562_v52 = vld [vmem:[%s14754_s7 + $0x20d8] sm:$0xff] }
 0x5c2   : > { %v14030_v6 = vcombine.high %v1562_v52, %v1566_v20  ;;  %v14029_v28 = vcombine.low %v1562_v52, %v1566_v20  ;;  %v1486_v49 = vld [vmem:[%s14754_s7 + $0x1e78] sm:$0xff] }
 0x5c3   : > { %v11748_v41 = vpop.f32.mrf.mxu1  ;;  %12016 = vmatpush2.bf16.msra.mxu0 %v13989_v24  ;;  %v1546_v51 = vld [vmem:[%s14754_s7 + $0x2058] sm:$0xff]  ;;  %v13950_v57 = vcombine.high %v1482_v5, %v1486_v49  ;;  %v13949_v26 = vcombine.low %v1482_v5, %v1486_v49 }
 0x5c4   : > { %12041 = vmatpush1.bf16.msra.mxu1 %v14053_v1  ;;  %12017 = vmatprep.subr.bf16.mxu0 %v13982_v2  ;;  %v1550_v8 = vld [vmem:[%s14754_s7 + $0x2078] sm:$0xff] }
 0x5c5   : > { %v11749_v62 = vpop.f32.mrf.mxu1  ;;  %12042 = vmatprep.subr.bf16.mxu1 %v14046_v30  ;;  %v14014_v44 = vcombine.high %v1546_v51, %v1550_v8  ;;  %v1474_v14 = vld [vmem:[%s14754_s7 + $0x1e18] sm:$0xff]  ;;  %v14013_v59 = vcombine.low %v1546_v51, %v1550_v8 }
 0x5c6   : > { %v1478_v42 = vld [vmem:[%s14754_s7 + $0x1e38] sm:$0xff] }
 0x5c7   : > { %12018 = vmatpush2.bf16.msra.mxu0 %v13981_v43  ;;  %v1538_v7 = vld [vmem:[%s14754_s7 + $0x2018] sm:$0xff]  ;;  %v13942_v63 = vcombine.high %v1474_v14, %v1478_v42  ;;  %v13941_v30 = vcombine.low %v1474_v14, %v1478_v42 }
 0x5c8   : > { %12043 = vmatpush1.bf16.msra.mxu1 %v14045_v10  ;;  %12019 = vmatprep.subr.bf16.mxu0 %v13974_v13  ;;  %v1542_v31 = vld [vmem:[%s14754_s7 + $0x2038] sm:$0xff] }
 0x5c9   : > { %12044 = vmatprep.subr.bf16.mxu1 %v14038_v55  ;;  %v14006_v25 = vcombine.high %v1538_v7, %v1542_v31  ;;  %v1722_v19 = vld [vmem:[%s14754_s7 + $0x25d8] sm:$0xff]  ;;  %v14005_v56 = vcombine.low %v1538_v7, %v1542_v31 }
 0x5ca   : > { %v1726_v24 = vld [vmem:[%s14754_s7 + $0x25f8] sm:$0xff] }
 0x5cb   : > { %12020 = vmatpush2.bf16.msra.mxu0 %v13973_v37  ;;  %v1658_v1 = vld [vmem:[%s14754_s7 + $0x23d8] sm:$0xff]  ;;  %v14190_v21 = vcombine.high %v1722_v19, %v1726_v24  ;;  %v14189_v13 = vcombine.low %v1722_v19, %v1726_v24 }
 0x5cc   : > { %12045 = vmatpush1.bf16.msra.mxu1 %v14037_v58  ;;  %12021 = vmatprep.subr.bf16.mxu0 %v13966_v47  ;;  %v1662_v2 = vld [vmem:[%s14754_s7 + $0x23f8] sm:$0xff] }
 0x5cd   : > { %12046 = vmatprep.subr.bf16.mxu1 %v14030_v6  ;;  %v14126_v61 = vcombine.high %v1658_v1, %v1662_v2  ;;  %v1714_v40 = vld [vmem:[%s14754_s7 + $0x2598] sm:$0xff]  ;;  %v14125_v62 = vcombine.low %v1658_v1, %v1662_v2 }
 0x5ce   : > { %v1718_v41 = vld [vmem:[%s14754_s7 + $0x25b8] sm:$0xff] }
 0x5cf   : > { %12022 = vmatpush2.bf16.msra.mxu0 %v13965_v34  ;;  %v1650_v43 = vld [vmem:[%s14754_s7 + $0x2398] sm:$0xff]  ;;  %v14182_v55 = vcombine.high %v1714_v40, %v1718_v41  ;;  %v14181_v6 = vcombine.low %v1714_v40, %v1718_v41 }
 0x5d0   : > { %12047 = vmatpush1.bf16.msra.mxu1 %v14029_v28  ;;  %12023 = vmatprep.subr.bf16.mxu0 %v13958_v22  ;;  %v1654_v10 = vld [vmem:[%s14754_s7 + $0x23b8] sm:$0xff] }
 0x5d1   : > { %12048 = vmatprep.subr.bf16.mxu1 %v14022_v50  ;;  %v14118_v36 = vcombine.high %v1650_v43, %v1654_v10  ;;  %v1706_v38 = vld [vmem:[%s14754_s7 + $0x2558] sm:$0xff]  ;;  %v14117_v3 = vcombine.low %v1650_v43, %v1654_v10 }
 0x5d2   : > { %v1710_v52 = vld [vmem:[%s14754_s7 + $0x2578] sm:$0xff] }
 0x5d3   : > { %12024 = vmatpush2.bf16.msra.mxu0 %v13957_v15  ;;  %v1642_v37 = vld [vmem:[%s14754_s7 + $0x2358] sm:$0xff]  ;;  %v14174_v48 = vcombine.high %v1706_v38, %v1710_v52 }
 0x5d4   : > { %12049 = vmatpush1.bf16.msra.mxu1 %v14021_v17  ;;  %12025 = vmatprep.subr.bf16.mxu0 %v13950_v57  ;;  %v1646_v58 = vld [vmem:[%s14754_s7 + $0x2378] sm:$0xff] }
 0x5d5   : > { %12050 = vmatprep.subr.bf16.mxu1 %v14014_v44  ;;  %v1698_v34 = vld [vmem:[%s14754_s7 + $0x2518] sm:$0xff]  ;;  %v14109_v49 = vcombine.low %v1642_v37, %v1646_v58 }
 0x5d6   : > { %v1634_v22 = vld [vmem:[%s14754_s7 + $0x2318] sm:$0xff] }
 0x5d7   : > { %12026 = vmatpush2.bf16.msra.mxu0 %v13949_v26  ;;  %v1638_v50 = vld [vmem:[%s14754_s7 + $0x2338] sm:$0xff] }
 0x5d8   : > { %12051 = vmatpush1.bf16.msra.mxu1 %v14013_v59  ;;  %12027 = vmatprep.subr.bf16.mxu0 %v13942_v63  ;;  %v14102_v51 = vcombine.high %v1634_v22, %v1638_v50  ;;  %v1690_v8 = vld [vmem:[%s14754_s7 + $0x24d8] sm:$0xff]  ;;  %v14101_v14 = vcombine.low %v1634_v22, %v1638_v50 }
 0x5d9   : > { %12052 = vmatprep.subr.bf16.mxu1 %v14006_v25  ;;  %v1694_v15 = vld [vmem:[%s14754_s7 + $0x24f8] sm:$0xff] }
 0x5da   : > { %v1626_v17 = vld [vmem:[%s14754_s7 + $0x22d8] sm:$0xff]  ;;  %v14158_v42 = vcombine.high %v1690_v8, %v1694_v15  ;;  %v14157_v25 = vcombine.low %v1690_v8, %v1694_v15 }
 0x5db   : > { %12028 = vmatpush2.bf16.msra.mxu0 %v13941_v30  ;;  %v1630_v57 = vld [vmem:[%s14754_s7 + $0x22f8] sm:$0xff] }
 0x5dc   : > { %12053 = vmatpush1.bf16.msra.mxu1 %v14005_v56  ;;  %12079 = vmatprep.subr.bf16.mxu0 %v14190_v21  ;;  %v14094_v7 = vcombine.high %v1626_v17, %v1630_v57  ;;  %v1682_v31 = vld [vmem:[%s14754_s7 + $0x2498] sm:$0xff]  ;;  %v14093_v19 = vcombine.low %v1626_v17, %v1630_v57 }
 0x5dd   : > { %12054 = vmatprep.subr.bf16.mxu1 %v14126_v61  ;;  %v1686_v26 = vld [vmem:[%s14754_s7 + $0x24b8] sm:$0xff] }
 0x5de   : > { %v11785_v20 = vpop.f32.mrf.mxu0  ;;  %12030 = vmatmul.mubr.bf16.vlgmr.msra.gmra.mxu0 %v15141_v46  ;;  %v14110_v46 = vcombine.high %v1642_v37, %v1646_v58  ;;  %v1618_v59 = vld [vmem:[%s14754_s7 + $0x2298] sm:$0xff]  ;;  %v14150_v24 = vcombine.high %v1682_v31, %v1686_v26  ;;  %v14149_v61 = vcombine.low %v1682_v31, %v1686_v26 }
 0x5df   : > { %v16642_v47 = vadd.f32 %v11785_v20, %v16602_v12  ;;  %12080 = vmatpush1.bf16.msra.mxu0 %v14189_v13  ;;  %12111 = vmatprep.mubr.bf16.mxu0 %v15150_v35  ;;  %v1702_v12 = vld [vmem:[%s14754_s7 + $0x2538] sm:$0xff]  ;;  %v14173_v35 = vcombine.low %v1706_v38, %v1710_v52 }
 0x5e0   : > { %12055 = vmatpush2.bf16.msra.mxu1 %v14125_v62  ;;  %v11787_v39 = vpop.f32.mrf.mxu0  ;;  %12081 = vmatprep.subr.bf16.mxu0 %v14182_v55  ;;  %v14165_v44 = vcombine.low %v1698_v34, %v1702_v12  ;;  %v1622_v63 = vld [vmem:[%s14754_s7 + $0x22b8] sm:$0xff] }
 0x5e1   : > { %v16646_v23 = vadd.f32 %v11787_v39, %v16605_v29  ;;  %12056 = vmatprep.subr.bf16.mxu1 %v14118_v36  ;;  %v14166_v29 = vcombine.high %v1698_v34, %v1702_v12  ;;  %v14086_v1 = vcombine.high %v1618_v59, %v1622_v63  ;;  %v1674_v2 = vld [vmem:[%s14754_s7 + $0x2458] sm:$0xff]  ;;  %v14085_v40 = vcombine.low %v1618_v59, %v1622_v63 }
 0x5e2   : > { %v11789_v28 = vpop.f32.mrf.mxu0  ;;  %v1678_v30 = vld [vmem:[%s14754_s7 + $0x2478] sm:$0xff] }
 0x5e3   : > { %12082 = vmatpush1.bf16.msra.mxu0 %v14181_v6  ;;  %v1610_v56 = vld [vmem:[%s14754_s7 + $0x2258] sm:$0xff]  ;;  %v14142_v41 = vcombine.high %v1674_v2, %v1678_v30  ;;  %v14141_v36 = vcombine.low %v1674_v2, %v1678_v30 }
 0x5e4   : > { %12057 = vmatpush2.bf16.msra.mxu1 %v14117_v3  ;;  %v11790_v5 = vpop.f32.mrf.mxu0  ;;  %12083 = vmatprep.subr.bf16.mxu0 %v14174_v48  ;;  %v1614_v21 = vld [vmem:[%s14754_s7 + $0x2278] sm:$0xff] }
 0x5e5   : > { %12058 = vmatprep.subr.bf16.mxu1 %v14110_v46  ;;  %v14078_v43 = vcombine.high %v1610_v56, %v1614_v21  ;;  %v1666_v10 = vld [vmem:[%s14754_s7 + $0x2418] sm:$0xff]  ;;  %v14077_v38 = vcombine.low %v1610_v56, %v1614_v21 }
 0x5e6   : > { %v1670_v13 = vld [vmem:[%s14754_s7 + $0x2438] sm:$0xff] }
 0x5e7   : > { %12084 = vmatpush1.bf16.msra.mxu0 %v14173_v35  ;;  %v1602_v62 = vld [vmem:[%s14754_s7 + $0x2218] sm:$0xff]  ;;  %v14134_v52 = vcombine.high %v1666_v10, %v1670_v13  ;;  %v14133_v3 = vcombine.low %v1666_v10, %v1670_v13 }
 0x5e8   : > { %12059 = vmatpush2.bf16.msra.mxu1 %v14109_v49  ;;  %12085 = vmatprep.subr.bf16.mxu0 %v14166_v29  ;;  %v1606_v55 = vld [vmem:[%s14754_s7 + $0x2238] sm:$0xff] }
 0x5e9   : > { %12060 = vmatprep.subr.bf16.mxu1 %v14102_v51  ;;  %v14070_v20 = vcombine.high %v1602_v62, %v1606_v55  ;;  %v1786_v37 = vld [vmem:[%s14754_s7 + $0x27d8] sm:$0xff]  ;;  %v14069_v48 = vcombine.low %v1602_v62, %v1606_v55 }
 0x5ea   : > { %v1790_v58 = vld [vmem:[%s14754_s7 + $0x27f8] sm:$0xff] }
 0x5eb   : > { %12086 = vmatpush1.bf16.msra.mxu0 %v14165_v44  ;;  %v1850_v6 = vld [vmem:[%s14754_s7 + $0x29d8] sm:$0xff]  ;;  %v14254_v46 = vcombine.high %v1786_v37, %v1790_v58  ;;  %v14253_v35 = vcombine.low %v1786_v37, %v1790_v58 }
 0x5ec   : > { %12061 = vmatpush2.bf16.msra.mxu1 %v14101_v14  ;;  %12087 = vmatprep.subr.bf16.mxu0 %v14158_v42  ;;  %v1854_v39 = vld [vmem:[%s14754_s7 + $0x29f8] sm:$0xff] }
 0x5ed   : > { %12062 = vmatprep.subr.bf16.mxu1 %v14094_v7  ;;  %v14318_v34 = vcombine.high %v1850_v6, %v1854_v39  ;;  %v1778_v12 = vld [vmem:[%s14754_s7 + $0x2798] sm:$0xff]  ;;  %v14317_v5 = vcombine.low %v1850_v6, %v1854_v39 }
 0x5ee   : > { %v1782_v28 = vld [vmem:[%s14754_s7 + $0x27b8] sm:$0xff] }
 0x5ef   : > { %12088 = vmatpush1.bf16.msra.mxu0 %v14157_v25  ;;  %v1842_v22 = vld [vmem:[%s14754_s7 + $0x2998] sm:$0xff]  ;;  %v14246_v49 = vcombine.high %v1778_v12, %v1782_v28  ;;  %v14245_v44 = vcombine.low %v1778_v12, %v1782_v28 }
 0x5f0   : > { %12063 = vmatpush2.bf16.msra.mxu1 %v14093_v19  ;;  %12089 = vmatprep.subr.bf16.mxu0 %v14150_v24  ;;  %v1846_v50 = vld [vmem:[%s14754_s7 + $0x29b8] sm:$0xff] }
 0x5f1   : > { %12064 = vmatprep.subr.bf16.mxu1 %v14086_v1  ;;  %v14310_v29 = vcombine.high %v1842_v22, %v1846_v50  ;;  %v1770_v51 = vld [vmem:[%s14754_s7 + $0x2758] sm:$0xff]  ;;  %v14309_v42 = vcombine.low %v1842_v22, %v1846_v50 }
 0x5f2   : > { %v1774_v8 = vld [vmem:[%s14754_s7 + $0x2778] sm:$0xff] }
 0x5f3   : > { %12090 = vmatpush1.bf16.msra.mxu0 %v14149_v61  ;;  %v1834_v15 = vld [vmem:[%s14754_s7 + $0x2958] sm:$0xff]  ;;  %v14238_v7 = vcombine.high %v1770_v51, %v1774_v8  ;;  %v14237_v24 = vcombine.low %v1770_v51, %v1774_v8 }
 0x5f4   : > { %12065 = vmatpush2.bf16.msra.mxu1 %v14085_v40  ;;  %12091 = vmatprep.subr.bf16.mxu0 %v14142_v41  ;;  %v1838_v17 = vld [vmem:[%s14754_s7 + $0x2978] sm:$0xff] }
 0x5f5   : > { %12066 = vmatprep.subr.bf16.mxu1 %v14078_v43  ;;  %v14302_v26 = vcombine.high %v1834_v15, %v1838_v17  ;;  %v1762_v59 = vld [vmem:[%s14754_s7 + $0x2718] sm:$0xff]  ;;  %v14301_v1 = vcombine.low %v1834_v15, %v1838_v17 }
 0x5f6   : > { %v1766_v63 = vld [vmem:[%s14754_s7 + $0x2738] sm:$0xff] }
 0x5f7   : > { %12092 = vmatpush1.bf16.msra.mxu0 %v14141_v36  ;;  %v1830_v25 = vld [vmem:[%s14754_s7 + $0x2938] sm:$0xff]  ;;  %v14230_v2 = vcombine.high %v1762_v59, %v1766_v63  ;;  %v14229_v40 = vcombine.low %v1762_v59, %v1766_v63 }
 0x5f8   : > { %12067 = vmatpush2.bf16.msra.mxu1 %v14077_v38  ;;  %12093 = vmatprep.subr.bf16.mxu0 %v14134_v52  ;;  %v1754_v56 = vld [vmem:[%s14754_s7 + $0x26d8] sm:$0xff] }
 0x5f9   : > { %12068 = vmatprep.subr.bf16.mxu1 %v14070_v20  ;;  %v1818_v21 = vld [vmem:[%s14754_s7 + $0x28d8] sm:$0xff] }
 0x5fa   : > { %v1822_v61 = vld [vmem:[%s14754_s7 + $0x28f8] sm:$0xff] }
 0x5fb   : > { %12094 = vmatpush1.bf16.msra.mxu0 %v14133_v3  ;;  %v14286_v10 = vcombine.high %v1818_v21, %v1822_v61  ;;  %v1746_v13 = vld [vmem:[%s14754_s7 + $0x2698] sm:$0xff]  ;;  %v14285_v52 = vcombine.low %v1818_v21, %v1822_v61 }
 0x5fc   : > { %12069 = vmatpush2.bf16.msra.mxu1 %v14069_v48  ;;  %12095 = vmatprep.subr.bf16.mxu0 %v14254_v46  ;;  %v1750_v62 = vld [vmem:[%s14754_s7 + $0x26b8] sm:$0xff] }
 0x5fd   : > { %12120 = vmatprep.subr.bf16.mxu1 %v14318_v34  ;;  %v1810_v55 = vld [vmem:[%s14754_s7 + $0x2898] sm:$0xff]  ;;  %v14214_v20 = vcombine.high %v1746_v13, %v1750_v62  ;;  %v14213_v48 = vcombine.low %v1746_v13, %v1750_v62 }
 0x5fe   : > { %v1814_v36 = vld [vmem:[%s14754_s7 + $0x28b8] sm:$0xff] }
 0x5ff   : > { %v11826_v57 = vpop.f32.mrf.mxu1  ;;  %12071 = vmatmul.mubr.bf16.vlgmr.msra.gmra.mxu1 %v15228_v11  ;;  %12096 = vmatpush2.bf16.msra.mxu0 %v14253_v35  ;;  %v14278_v37 = vcombine.high %v1810_v55, %v1814_v36  ;;  %v1738_v58 = vld [vmem:[%s14754_s7 + $0x2658] sm:$0xff]  ;;  %v14277_v46 = vcombine.low %v1810_v55, %v1814_v36 }
 0x600   : > { %v16682_v14 = vadd.f32 %v11826_v57, %v16642_v47  ;;  %12121 = vmatpush1.bf16.msra.mxu1 %v14317_v5  ;;  %12097 = vmatprep.subr.bf16.mxu0 %v14246_v49  ;;  %v1826_v47 = vld [vmem:[%s14754_s7 + $0x2918] sm:$0xff] }
 0x601   : > { %v11828_v31 = vpop.f32.mrf.mxu1  ;;  %12122 = vmatprep.subr.bf16.mxu1 %v14310_v29  ;;  %12152 = vmatprep.mubr.bf16.mxu1 %v15240_v27  ;;  %v14294_v27 = vcombine.high %v1826_v47, %v1830_v25  ;;  %v14293_v41 = vcombine.low %v1826_v47, %v1830_v25  ;;  %v1742_v6 = vld [vmem:[%s14754_s7 + $0x2678] sm:$0xff] }
 0x602   : > { %v16688_v11 = vadd.f32 %v11828_v31, %v16646_v23  ;;  %v1758_v23 = vld [vmem:[%s14754_s7 + $0x26f8] sm:$0xff]  ;;  %v14206_v34 = vcombine.high %v1738_v58, %v1742_v6  ;;  %v14205_v5 = vcombine.low %v1738_v58, %v1742_v6 }
 0x603   : > { %v11830_v19 = vpop.f32.mrf.mxu1  ;;  %12098 = vmatpush2.bf16.msra.mxu0 %v14245_v44  ;;  %v14222_v43 = vcombine.high %v1754_v56, %v1758_v23  ;;  %v14221_v38 = vcombine.low %v1754_v56, %v1758_v23  ;;  %v1802_v39 = vld [vmem:[%s14754_s7 + $0x2858] sm:$0xff] }
 0x604   : > { %12123 = vmatpush1.bf16.msra.mxu1 %v14309_v42  ;;  %12099 = vmatprep.subr.bf16.mxu0 %v14238_v7  ;;  %v1806_v3 = vld [vmem:[%s14754_s7 + $0x2878] sm:$0xff] }
 0x605   : > { %v11831_v30 = vpop.f32.mrf.mxu1  ;;  %12124 = vmatprep.subr.bf16.mxu1 %v14302_v26  ;;  %v14270_v12 = vcombine.high %v1802_v39, %v1806_v3  ;;  %v1730_v28 = vld [vmem:[%s14754_s7 + $0x2618] sm:$0xff]  ;;  %v14269_v49 = vcombine.low %v1802_v39, %v1806_v3 }
 0x606   : > { %v1734_v22 = vld [vmem:[%s14754_s7 + $0x2638] sm:$0xff] }
 0x607   : > { %12100 = vmatpush2.bf16.msra.mxu0 %v14237_v24  ;;  %v1794_v50 = vld [vmem:[%s14754_s7 + $0x2818] sm:$0xff]  ;;  %v14198_v29 = vcombine.high %v1730_v28, %v1734_v22  ;;  %v14197_v44 = vcombine.low %v1730_v28, %v1734_v22 }
 0x608   : > { %12125 = vmatpush1.bf16.msra.mxu1 %v14301_v1  ;;  %12101 = vmatprep.subr.bf16.mxu0 %v14230_v2  ;;  %v1798_v35 = vld [vmem:[%s14754_s7 + $0x2838] sm:$0xff] }
 0x609   : > { %12126 = vmatprep.subr.bf16.mxu1 %v14294_v27  ;;  %v14262_v51 = vcombine.high %v1794_v50, %v1798_v35  ;;  %v1978_v8 = vld [vmem:[%s14754_s7 + $0x2dd8] sm:$0xff]  ;;  %v14261_v42 = vcombine.low %v1794_v50, %v1798_v35 }
 0x60a   : > { %v1982_v15 = vld [vmem:[%s14754_s7 + $0x2df8] sm:$0xff] }
 0x60b   : > { %12102 = vmatpush2.bf16.msra.mxu0 %v14229_v40  ;;  %v1914_v17 = vld [vmem:[%s14754_s7 + $0x2bd8] sm:$0xff]  ;;  %v14446_v7 = vcombine.high %v1978_v8, %v1982_v15  ;;  %v14445_v25 = vcombine.low %v1978_v8, %v1982_v15 }
 0x60c   : > { %12127 = vmatpush1.bf16.msra.mxu1 %v14293_v41  ;;  %12103 = vmatprep.subr.bf16.mxu0 %v14222_v43  ;;  %v1918_v57 = vld [vmem:[%s14754_s7 + $0x2bf8] sm:$0xff] }
 0x60d   : > { %12128 = vmatprep.subr.bf16.mxu1 %v14286_v10  ;;  %v14382_v31 = vcombine.high %v1914_v17, %v1918_v57  ;;  %v1970_v26 = vld [vmem:[%s14754_s7 + $0x2d98] sm:$0xff]  ;;  %v14381_v19 = vcombine.low %v1914_v17, %v1918_v57 }
 0x60e   : > { %v1974_v59 = vld [vmem:[%s14754_s7 + $0x2db8] sm:$0xff] }
 0x60f   : > { %12104 = vmatpush2.bf16.msra.mxu0 %v14221_v38  ;;  %v1906_v63 = vld [vmem:[%s14754_s7 + $0x2b98] sm:$0xff]  ;;  %v14438_v24 = vcombine.high %v1970_v26, %v1974_v59  ;;  %v14437_v61 = vcombine.low %v1970_v26, %v1974_v59 }
 0x610   : > { %12129 = vmatpush1.bf16.msra.mxu1 %v14285_v52  ;;  %12105 = vmatprep.subr.bf16.mxu0 %v14214_v20  ;;  %v1910_v47 = vld [vmem:[%s14754_s7 + $0x2bb8] sm:$0xff] }
 0x611   : > { %12130 = vmatprep.subr.bf16.mxu1 %v14278_v37  ;;  %v14374_v1 = vcombine.high %v1906_v63, %v1910_v47  ;;  %v1962_v2 = vld [vmem:[%s14754_s7 + $0x2d58] sm:$0xff]  ;;  %v14373_v41 = vcombine.low %v1906_v63, %v1910_v47 }
 0x612   : > { %v1966_v30 = vld [vmem:[%s14754_s7 + $0x2d78] sm:$0xff] }
 0x613   : > { %12106 = vmatpush2.bf16.msra.mxu0 %v14213_v48  ;;  %v1898_v56 = vld [vmem:[%s14754_s7 + $0x2b58] sm:$0xff]  ;;  %v14430_v43 = vcombine.high %v1962_v2, %v1966_v30 }
 0x614   : > { %12131 = vmatpush1.bf16.msra.mxu1 %v14277_v46  ;;  %12107 = vmatprep.subr.bf16.mxu0 %v14206_v34  ;;  %v1902_v23 = vld [vmem:[%s14754_s7 + $0x2b78] sm:$0xff] }
 0x615   : > { %12132 = vmatprep.subr.bf16.mxu1 %v14270_v12  ;;  %v1954_v13 = vld [vmem:[%s14754_s7 + $0x2d18] sm:$0xff]  ;;  %v14365_v52 = vcombine.low %v1898_v56, %v1902_v23 }
 0x616   : > { %v1890_v55 = vld [vmem:[%s14754_s7 + $0x2b18] sm:$0xff] }
 0x617   : > { %12108 = vmatpush2.bf16.msra.mxu0 %v14205_v5  ;;  %v1894_v36 = vld [vmem:[%s14754_s7 + $0x2b38] sm:$0xff] }
 0x618   : > { %12133 = vmatpush1.bf16.msra.mxu1 %v14269_v49  ;;  %12109 = vmatprep.subr.bf16.mxu0 %v14198_v29  ;;  %v14358_v20 = vcombine.high %v1890_v55, %v1894_v36  ;;  %v1946_v37 = vld [vmem:[%s14754_s7 + $0x2cd8] sm:$0xff]  ;;  %v14357_v48 = vcombine.low %v1890_v55, %v1894_v36 }
 0x619   : > { %12134 = vmatprep.subr.bf16.mxu1 %v14262_v51  ;;  %v1950_v58 = vld [vmem:[%s14754_s7 + $0x2cf8] sm:$0xff] }
 0x61a   : > { %v1882_v6 = vld [vmem:[%s14754_s7 + $0x2ad8] sm:$0xff]  ;;  %v14414_v46 = vcombine.high %v1946_v37, %v1950_v58  ;;  %v14413_v35 = vcombine.low %v1946_v37, %v1950_v58 }
 0x61b   : > { %12110 = vmatpush2.bf16.msra.mxu0 %v14197_v44  ;;  %v1886_v39 = vld [vmem:[%s14754_s7 + $0x2af8] sm:$0xff] }
 0x61c   : > { %12135 = vmatpush1.bf16.msra.mxu1 %v14261_v42  ;;  %12161 = vmatprep.subr.bf16.mxu0 %v14446_v7  ;;  %v14350_v34 = vcombine.high %v1882_v6, %v1886_v39  ;;  %v1938_v12 = vld [vmem:[%s14754_s7 + $0x2c98] sm:$0xff]  ;;  %v14349_v5 = vcombine.low %v1882_v6, %v1886_v39 }
 0x61d   : > { %12136 = vmatprep.subr.bf16.mxu1 %v14382_v31  ;;  %v1942_v28 = vld [vmem:[%s14754_s7 + $0x2cb8] sm:$0xff] }
 0x61e   : > { %v11867_v27 = vpop.f32.mrf.mxu0  ;;  %12112 = vmatmul.mubr.bf16.vlgmr.msra.gmra.mxu0 %v15236_v18  ;;  %v14366_v18 = vcombine.high %v1898_v56, %v1902_v23  ;;  %v1874_v22 = vld [vmem:[%s14754_s7 + $0x2a98] sm:$0xff]  ;;  %v14406_v49 = vcombine.high %v1938_v12, %v1942_v28  ;;  %v14405_v57 = vcombine.low %v1938_v12, %v1942_v28 }
 0x61f   : > { %v16722_v21 = vadd.f32 %v11867_v27, %v16682_v14  ;;  %12162 = vmatpush1.bf16.msra.mxu0 %v14445_v25  ;;  %12193 = vmatprep.mubr.bf16.mxu0 %v15245_v33  ;;  %v1958_v14 = vld [vmem:[%s14754_s7 + $0x2d38] sm:$0xff]  ;;  %v14429_v33 = vcombine.low %v1962_v2, %v1966_v30 }
 0x620   : > { %12137 = vmatpush2.bf16.msra.mxu1 %v14381_v19  ;;  %v11869_v40 = vpop.f32.mrf.mxu0  ;;  %12163 = vmatprep.subr.bf16.mxu0 %v14438_v24  ;;  %v14421_v3 = vcombine.low %v1954_v13, %v1958_v14  ;;  %v1878_v50 = vld [vmem:[%s14754_s7 + $0x2ab8] sm:$0xff] }
 0x621   : > { %v16726_v10 = vadd.f32 %v11869_v40, %v16688_v11  ;;  %12138 = vmatprep.subr.bf16.mxu1 %v14374_v1  ;;  %v14422_v11 = vcombine.high %v1954_v13, %v1958_v14  ;;  %v14342_v29 = vcombine.high %v1874_v22, %v1878_v50  ;;  %v1930_v51 = vld [vmem:[%s14754_s7 + $0x2c58] sm:$0xff]  ;;  %v14341_v44 = vcombine.low %v1874_v22, %v1878_v50 }
 0x622   : > { %v11871_v62 = vpop.f32.mrf.mxu0  ;;  %v1934_v8 = vld [vmem:[%s14754_s7 + $0x2c78] sm:$0xff] }
 0x623   : > { %12164 = vmatpush1.bf16.msra.mxu0 %v14437_v61  ;;  %v1866_v15 = vld [vmem:[%s14754_s7 + $0x2a58] sm:$0xff]  ;;  %v14398_v42 = vcombine.high %v1930_v51, %v1934_v8  ;;  %v14397_v47 = vcombine.low %v1930_v51, %v1934_v8 }
 0x624   : > { %12139 = vmatpush2.bf16.msra.mxu1 %v14373_v41  ;;  %v11872_v38 = vpop.f32.mrf.mxu0  ;;  %12165 = vmatprep.subr.bf16.mxu0 %v14430_v43  ;;  %v1870_v17 = vld [vmem:[%s14754_s7 + $0x2a78] sm:$0xff] }
 0x625   : > { %12140 = vmatprep.subr.bf16.mxu1 %v14366_v18  ;;  %v14334_v7 = vcombine.high %v1866_v15, %v1870_v17  ;;  %v1922_v31 = vld [vmem:[%s14754_s7 + $0x2c18] sm:$0xff]  ;;  %v14333_v25 = vcombine.low %v1866_v15, %v1870_v17 }
 0x626   : > { %v1926_v26 = vld [vmem:[%s14754_s7 + $0x2c38] sm:$0xff] }
 0x627   : > { %12166 = vmatpush1.bf16.msra.mxu0 %v14429_v33  ;;  %v1858_v59 = vld [vmem:[%s14754_s7 + $0x2a18] sm:$0xff]  ;;  %v14390_v19 = vcombine.high %v1922_v31, %v1926_v26  ;;  %v14389_v56 = vcombine.low %v1922_v31, %v1926_v26 }
 0x628   : > { %12141 = vmatpush2.bf16.msra.mxu1 %v14365_v52  ;;  %12167 = vmatprep.subr.bf16.mxu0 %v14422_v11  ;;  %v1862_v63 = vld [vmem:[%s14754_s7 + $0x2a38] sm:$0xff] }
 0x629   : > { %12142 = vmatprep.subr.bf16.mxu1 %v14358_v20  ;;  %v14326_v24 = vcombine.high %v1858_v59, %v1862_v63  ;;  %v2042_v1 = vld [vmem:[%s14754_s7 + $0x2fd8] sm:$0xff]  ;;  %v14325_v23 = vcombine.low %v1858_v59, %v1862_v63 }
 0x62a   : > { %v2046_v2 = vld [vmem:[%s14754_s7 + $0x2ff8] sm:$0xff] }
 0x62b   : > { %12168 = vmatpush1.bf16.msra.mxu0 %v14421_v3  ;;  %v2106_v30 = vld [vmem:[%s14754_s7 + $0x31d8] sm:$0xff]  ;;  %v14510_v61 = vcombine.high %v2042_v1, %v2046_v2  ;;  %v14509_v14 = vcombine.low %v2042_v1, %v2046_v2 }
 0x62c   : > { %12143 = vmatpush2.bf16.msra.mxu1 %v14357_v48  ;;  %12169 = vmatprep.subr.bf16.mxu0 %v14414_v46  ;;  %v2110_v27 = vld [vmem:[%s14754_s7 + $0x31f8] sm:$0xff] }
 0x62d   : > { %12144 = vmatprep.subr.bf16.mxu1 %v14350_v34  ;;  %v14574_v40 = vcombine.high %v2106_v30, %v2110_v27  ;;  %v2034_v41 = vld [vmem:[%s14754_s7 + $0x2f98] sm:$0xff]  ;;  %v14573_v62 = vcombine.low %v2106_v30, %v2110_v27 }
 0x62e   : > { %v2038_v43 = vld [vmem:[%s14754_s7 + $0x2fb8] sm:$0xff] }
 0x62f   : > { %12170 = vmatpush1.bf16.msra.mxu0 %v14413_v35  ;;  %v2098_v18 = vld [vmem:[%s14754_s7 + $0x3198] sm:$0xff]  ;;  %v14502_v55 = vcombine.high %v2034_v41, %v2038_v43  ;;  %v14501_v37 = vcombine.low %v2034_v41, %v2038_v43 }
 0x630   : > { %12145 = vmatpush2.bf16.msra.mxu1 %v14349_v5  ;;  %12171 = vmatprep.subr.bf16.mxu0 %v14406_v49  ;;  %v2102_v13 = vld [vmem:[%s14754_s7 + $0x31b8] sm:$0xff] }
 0x631   : > { %12146 = vmatprep.subr.bf16.mxu1 %v14342_v29  ;;  %v14566_v36 = vcombine.high %v2098_v18, %v2102_v13  ;;  %v2026_v33 = vld [vmem:[%s14754_s7 + $0x2f58] sm:$0xff]  ;;  %v14565_v6 = vcombine.low %v2098_v18, %v2102_v13 }
 0x632   : > { %v2030_v38 = vld [vmem:[%s14754_s7 + $0x2f78] sm:$0xff] }
 0x633   : > { %12172 = vmatpush1.bf16.msra.mxu0 %v14405_v57  ;;  %v2090_v52 = vld [vmem:[%s14754_s7 + $0x3158] sm:$0xff]  ;;  %v14494_v39 = vcombine.high %v2026_v33, %v2030_v38  ;;  %v14493_v22 = vcombine.low %v2026_v33, %v2030_v38 }
 0x634   : > { %12147 = vmatpush2.bf16.msra.mxu1 %v14341_v44  ;;  %12173 = vmatprep.subr.bf16.mxu0 %v14398_v42  ;;  %v2094_v11 = vld [vmem:[%s14754_s7 + $0x3178] sm:$0xff] }
 0x635   : > { %12148 = vmatprep.subr.bf16.mxu1 %v14334_v7  ;;  %v14558_v48 = vcombine.high %v2090_v52, %v2094_v11  ;;  %v2018_v46 = vld [vmem:[%s14754_s7 + $0x2f18] sm:$0xff]  ;;  %v14557_v50 = vcombine.low %v2090_v52, %v2094_v11 }
 0x636   : > { %v2022_v34 = vld [vmem:[%s14754_s7 + $0x2f38] sm:$0xff] }
 0x637   : > { %12174 = vmatpush1.bf16.msra.mxu0 %v14397_v47  ;;  %v2086_v12 = vld [vmem:[%s14754_s7 + $0x3138] sm:$0xff]  ;;  %v14486_v35 = vcombine.high %v2018_v46, %v2022_v34  ;;  %v14485_v8 = vcombine.low %v2018_v46, %v2022_v34 }
 0x638   : > { %12149 = vmatpush2.bf16.msra.mxu1 %v14333_v25  ;;  %12175 = vmatprep.subr.bf16.mxu0 %v14390_v19  ;;  %v2010_v49 = vld [vmem:[%s14754_s7 + $0x2ed8] sm:$0xff] }
 0x639   : > { %12150 = vmatprep.subr.bf16.mxu1 %v14326_v24  ;;  %v2074_v29 = vld [vmem:[%s14754_s7 + $0x30d8] sm:$0xff] }
 0x63a   : > { %v2078_v51 = vld [vmem:[%s14754_s7 + $0x30f8] sm:$0xff] }
 0x63b   : > { %12176 = vmatpush1.bf16.msra.mxu0 %v14389_v56  ;;  %v14542_v57 = vcombine.high %v2074_v29, %v2078_v51  ;;  %v2002_v44 = vld [vmem:[%s14754_s7 + $0x2e98] sm:$0xff]  ;;  %v14541_v59 = vcombine.low %v2074_v29, %v2078_v51 }
 0x63c   : > { %12151 = vmatpush2.bf16.msra.mxu1 %v14325_v23  ;;  %12177 = vmatprep.subr.bf16.mxu0 %v14510_v61  ;;  %v2006_v42 = vld [vmem:[%s14754_s7 + $0x2eb8] sm:$0xff] }
 0x63d   : > { %12202 = vmatprep.subr.bf16.mxu1 %v14574_v40  ;;  %v2066_v7 = vld [vmem:[%s14754_s7 + $0x3098] sm:$0xff]  ;;  %v14470_v63 = vcombine.high %v2002_v44, %v2006_v42  ;;  %v14469_v2 = vcombine.low %v2002_v44, %v2006_v42 }
 0x63e   : > { %v2070_v31 = vld [vmem:[%s14754_s7 + $0x30b8] sm:$0xff] }
 0x63f   : > { %v11908_v20 = vpop.f32.mrf.mxu1  ;;  %12153 = vmatmul.mubr.bf16.vlgmr.msra.gmra.mxu1 %v15316_v4  ;;  %12178 = vmatpush2.bf16.msra.mxu0 %v14509_v14  ;;  %v14534_v47 = vcombine.high %v2066_v7, %v2070_v31  ;;  %v1994_v25 = vld [vmem:[%s14754_s7 + $0x2e58] sm:$0xff]  ;;  %v14533_v30 = vcombine.low %v2066_v7, %v2070_v31 }
 0x640   : > { %v16762_v58 = vadd.f32 %v11908_v20, %v16722_v21  ;;  %12203 = vmatpush1.bf16.msra.mxu1 %v14573_v62  ;;  %12179 = vmatprep.subr.bf16.mxu0 %v14502_v55  ;;  %v2082_v21 = vld [vmem:[%s14754_s7 + $0x3118] sm:$0xff] }
 0x641   : > { %v11910_v3 = vpop.f32.mrf.mxu1  ;;  %12204 = vmatprep.subr.bf16.mxu1 %v14566_v36  ;;  %12234 = vmatprep.mubr.bf16.mxu1 %v14691_v0  ;;  %v14550_v0 = vcombine.high %v2082_v21, %v2086_v12  ;;  %v14549_v15 = vcombine.low %v2082_v21, %v2086_v12  ;;  %v1998_v19 = vld [vmem:[%s14754_s7 + $0x2e78] sm:$0xff] }
 0x642   : > { %v16768_v4 = vadd.f32 %v11910_v3, %v16726_v10  ;;  %v2014_v10 = vld [vmem:[%s14754_s7 + $0x2ef8] sm:$0xff]  ;;  %v14462_v27 = vcombine.high %v1994_v25, %v1998_v19  ;;  %v14461_v43 = vcombine.low %v1994_v25, %v1998_v19 }
 0x643   : > { %v11912_v28 = vpop.f32.mrf.mxu1  ;;  %12180 = vmatpush2.bf16.msra.mxu0 %v14501_v37  ;;  %v14478_v17 = vcombine.high %v2010_v49, %v2014_v10  ;;  %v14477_v26 = vcombine.low %v2010_v49, %v2014_v10  ;;  %v2058_v24 = vld [vmem:[%s14754_s7 + $0x3058] sm:$0xff] }
 0x644   : > { %12205 = vmatpush1.bf16.msra.mxu1 %v14565_v6  ;;  %12181 = vmatprep.subr.bf16.mxu0 %v14494_v39  ;;  %v2062_v1 = vld [vmem:[%s14754_s7 + $0x3078] sm:$0xff] }
 0x645   : > { %v11913_v5 = vpop.f32.mrf.mxu1  ;;  %12206 = vmatprep.subr.bf16.mxu1 %v14558_v48  ;;  %v14526_v56 = vcombine.high %v2058_v24, %v2062_v1  ;;  %v1986_v23 = vld [vmem:[%s14754_s7 + $0x2e18] sm:$0xff]  ;;  %v14525_v18 = vcombine.low %v2058_v24, %v2062_v1 }
 0x646   : > { %v1990_v61 = vld [vmem:[%s14754_s7 + $0x2e38] sm:$0xff] }
 0x647   : > { %12182 = vmatpush2.bf16.msra.mxu0 %v14493_v22  ;;  %v2050_v40 = vld [vmem:[%s14754_s7 + $0x3018] sm:$0xff]  ;;  %v14454_v13 = vcombine.high %v1986_v23, %v1990_v61  ;;  %v14453_v62 = vcombine.low %v1986_v23, %v1990_v61  ;;  %v12276_v23 = vrot.slane %v12268_v60, %v14786_v54 }
 0x648   : > { %12207 = vmatpush1.bf16.msra.mxu1 %v14557_v50  ;;  %12183 = vmatprep.subr.bf16.mxu0 %v14486_v35  ;;  %v2054_v41 = vld [vmem:[%s14754_s7 + $0x3038] sm:$0xff] }
 0x649   : > { %12208 = vmatprep.subr.bf16.mxu1 %v14550_v0  ;;  %v14518_v14 = vcombine.high %v2050_v40, %v2054_v41  ;;  %v14517_v55 = vcombine.low %v2050_v40, %v2054_v41  ;;  %v337_v40 = vld [vmem:[#allocation2 + $0x8] sm:$0xff] }
 0x64b   : > { %12184 = vmatpush2.bf16.msra.mxu0 %v14485_v8 }
 0x64c   : > { %12209 = vmatpush1.bf16.msra.mxu1 %v14549_v15  ;;  %12185 = vmatprep.subr.bf16.mxu0 %v14478_v17 }
 0x64d   : > { %12210 = vmatprep.subr.bf16.mxu1 %v14542_v57 }
 0x64f   : > { %12186 = vmatpush2.bf16.msra.mxu0 %v14477_v26 }
 0x650   : > { %12211 = vmatpush1.bf16.msra.mxu1 %v14541_v59  ;;  %12187 = vmatprep.subr.bf16.mxu0 %v14470_v63 }
 0x651   : > { %12212 = vmatprep.subr.bf16.mxu1 %v14534_v47 }
 0x653   : > { %12188 = vmatpush2.bf16.msra.mxu0 %v14469_v2 }
 0x654   : > { %12213 = vmatpush1.bf16.msra.mxu1 %v14533_v30  ;;  %12189 = vmatprep.subr.bf16.mxu0 %v14462_v27 }
 0x655   : > { %12214 = vmatprep.subr.bf16.mxu1 %v14526_v56 }
 0x657   : > { %12190 = vmatpush2.bf16.msra.mxu0 %v14461_v43 }
 0x658   : > { %12215 = vmatpush1.bf16.msra.mxu1 %v14525_v18  ;;  %12191 = vmatprep.subr.bf16.mxu0 %v14454_v13 }
 0x659   : > { %12216 = vmatprep.subr.bf16.mxu1 %v14518_v14 }
 0x65b   : > { %12192 = vmatpush2.bf16.msra.mxu0 %v14453_v62 }
 0x65c   : > { %12217 = vmatpush1.bf16.msra.mxu1 %v14517_v55 }
 0x65e   : > { %v11949_v36 = vpop.f32.mrf.mxu0  ;;  %12194 = vmatmul.mubr.bf16.vlgmr.msra.gmra.mxu0 %v15322_v9 }
 0x65f   : > { %v11950_v33 = vadd.f32 %v11949_v36, %v16762_v58  ;;  %12235 = vmatmul.mubr.bf16.vlgmr.msra.gmra.mxu1 %v15365_v16 }
 0x660   : > { %v11951_v38 = vpop.f32.mrf.mxu0 }
 0x661   : > { %v11952_v52 = vadd.f32 %v11951_v38, %v16768_v4 }
 0x662   : > { %v11953_v11 = vpop.f32.mrf.mxu0 }
 0x664   : > { %v11954_v20 = vpop.f32.mrf.mxu0 }
 0x67f   : > { %v11990_v37 = vpop.f32.mrf.mxu1 }
 0x680   : > { %v11991_v6 = vadd.f32 %v11990_v37, %v11950_v33 }
 0x681   : > { %v11992_v39 = vpop.f32.mrf.mxu1 }
 0x682   : > { %v11993_v3 = vadd.f32 %v11992_v39, %v11952_v52 }
 0x683   : > { %v11994_v48 = vpop.f32.mrf.mxu1 }
 0x685   : > { %v11995_v46 = vpop.f32.mrf.mxu1 }
 0x69e   : > { %v12031_v34 = vpop.f32.mrf.mxu0 }
 0x69f   : > { %v12032_v21 = vadd.f32 %v12031_v34, %v11991_v6 }
 0x6a0   : > { %v12033_v12 = vpop.f32.mrf.mxu0 }
 0x6a1   : > { %v12034_v28 = vadd.f32 %v12033_v12, %v11993_v3 }
 0x6a2   : > { %v12035_v9 = vpop.f32.mrf.mxu0 }
 0x6a4   : > { %v12036_v22 = vpop.f32.mrf.mxu0 }
 0x6bf   : > { %v12072_v58 = vpop.f32.mrf.mxu1 }
 0x6c0   : > { %v12073_v50 = vadd.f32 %v12072_v58, %v12032_v21 }
 0x6c1   : > { %v12074_v16 = vpop.f32.mrf.mxu1 }
 0x6c2   : > { %v12075_v35 = vadd.f32 %v12074_v16, %v12034_v28 }
 0x6c3   : > { %v12076_v5 = vpop.f32.mrf.mxu1 }
 0x6c5   : > { %v12077_v4 = vpop.f32.mrf.mxu1 }
 0x6de   : > { %v12113_v0 = vpop.f32.mrf.mxu0 }
 0x6df   : > { %v12114_v57 = vadd.f32 %v12113_v0, %v12073_v50 }
 0x6e0   : > { %v12115_v49 = vpop.f32.mrf.mxu0 }
 0x6e1   : > { %v12116_v44 = vadd.f32 %v12115_v49, %v12075_v35 }
 0x6e2   : > { %v12117_v10 = vpop.f32.mrf.mxu0 }
 0x6e4   : > { %v12118_v29 = vpop.f32.mrf.mxu0 }
 0x6ff   : > { %v12154_v51 = vpop.f32.mrf.mxu1 }
 0x700   : > { %v12155_v42 = vadd.f32 %v12154_v51, %v12114_v57 }
 0x701   : > { %v12156_v8 = vpop.f32.mrf.mxu1 }
 0x702   : > { %v12157_v31 = vadd.f32 %v12156_v8, %v12116_v44 }
 0x703   : > { %v12158_v15 = vpop.f32.mrf.mxu1 }
 0x705   : > { %v12159_v17 = vpop.f32.mrf.mxu1 }
 0x71e   : > { %v12195_v7 = vpop.f32.mrf.mxu0 }
 0x71f   : > { %v12196_v26 = vadd.f32 %v12195_v7, %v12155_v42  ;;  %v12236_v59 = vpop.f32.mrf.mxu1 }
 0x720   : > { %v12197_v63 = vpop.f32.mrf.mxu0 }
 0x721   : > { %v12198_v47 = vadd.f32 %v12197_v63, %v12157_v31  ;;  %v12238_v25 = vpop.f32.mrf.mxu1  ;;  %v12237_v24 = vadd.f32 %v12236_v59, %v12196_v26 }
 0x722   : > { %v12199_v19 = vpop.f32.mrf.mxu0 }
 0x723   : > { %v12239_v1 = vadd.f32 %v12238_v25, %v12198_v47  ;;  %v12240_v2 = vpop.f32.mrf.mxu1 }
 0x724   : > { %v12200_v30 = vpop.f32.mrf.mxu0 }
 0x725   : > { %v12269_v27 = vcombine.low %v12237_v24, %v12239_v1  ;;  %v12241_v56 = vpop.f32.mrf.mxu1 }
 0x727   : > { %v12283_v61 = vrot.slane %v12269_v27, %v14786_v54 }
 0x729   : > { %v12284_v41 = vcombine.low %v12276_v23, %v12283_v61  ;;  %12294 = sbr.rel (%p14575_p7) target bundleno = 1940 (0x794), region = 48 }
 0x72b   : > { %v12288_v43 = vadd.f32 %v12284_v41, %v337_v40 }
 0x72d   : > { %12290 = vst [vmem:[#allocation2 + $0x8] sm:$0xff] %v12288_v43 }
 0x72e   : > { %v12297_v18 = vld [vmem:[%s16992_s2] sm:$0xff]  ;;  %v16802_v13 = vsub.s32 0, %v14779_v45  ;;  %v16805_v14 = vsub.s32 1, %v14779_v45  ;;  %v16808_v53 = vsub.s32 2, %v14779_v45  ;;  %v16811_v32 = vsub.s32 3, %v14779_v45 }
 0x72f   : > { %v16814_v60 = vsub.s32 4, %v14779_v45  ;;  %v16817_v62 = vsub.s32 5, %v14779_v45  ;;  %v16820_v55 = vsub.s32 6, %v14779_v45  ;;  %v12697_v36 = vld [vmem:[%s16993_s3] sm:$0xff]  ;;  %v16829_v11 = vsub.s32 7, %v14779_v45 }
 0x730   : > { %v12302_v33 = vrot.slane %v12297_v18, %v16802_v13  ;;  %v12306_v38 = vrot.slane %v12297_v18, %v16805_v14  ;;  %v12310_v52 = vrot.slane %v12297_v18, %v16808_v53  ;;  %v12314_v20 = vrot.slane %v12297_v18, %v16811_v32  ;;  %v16845_v50 = vld [vmem:[%s16994_s4] sm:$0xff] }
 0x731   : > { %v12318_v37 = vrot.slane %v12297_v18, %v16814_v60  ;;  %v12322_v6 = vrot.slane %v12297_v18, %v16817_v62  ;;  %v12326_v39 = vrot.slane %v12297_v18, %v16820_v55  ;;  %v12330_v3 = vrot.slane %v12297_v18, %v16829_v11  ;;  %v12295_v0 = vld [vmem:[#allocation2] sm:$0xff] }
 0x732   : > { %v12331_v48 = vcombine.low %v12302_v33, %v12306_v38  ;;  %vm12413_vm0 = vcmask 1041408   ;;  %v12702_v46 = vrot.slane %v12697_v36, %v16802_v13  ;;  %v12332_v34 = vcombine.low %v12310_v52, %v12314_v20 }
 0x733   : > { %v12348_v21 = vcombine.low %v12318_v37, %v12322_v6  ;;  %v12706_v12 = vrot.slane %v12697_v36, %v16805_v14  ;;  %v12710_v45 = vrot.slane %v12697_v36, %v16808_v53  ;;  %v12349_v9 = vcombine.low %v12326_v39, %v12330_v3 }
 0x734   : > { %v12339_v28 = vrot.slane %v12331_v48, %v14786_v54  ;;  %v12714_v22 = vrot.slane %v12697_v36, %v16811_v32  ;;  %v12718_v58 = vrot.slane %v12697_v36, %v16814_v60  ;;  %v12346_v16 = vrot.slane %v12332_v34, %v14786_v54  ;;  %v12296_v8 = vld [vmem:[#allocation2 + $0x8] sm:$0xff] }
 0x735   : > { %v12356_v35 = vrot.slane %v12348_v21, %v14786_v54  ;;  %v12722_v5 = vrot.slane %v12697_v36, %v16817_v62  ;;  %v12726_v4 = vrot.slane %v12697_v36, %v16820_v55  ;;  %v12363_v49 = vrot.slane %v12349_v9, %v14786_v54 }
 0x736   : > { %v12730_v10 = vrot.slane %v12697_v36, %v16829_v11  ;;  %v12731_v29 = vcombine.low %v12702_v46, %v12706_v12  ;;  %v12732_v51 = vcombine.low %v12710_v45, %v12714_v22  ;;  %v12347_v15 = vcombine.low %v12339_v28, %v12346_v16 }
 0x737   : > { %v12748_v17 = vcombine.low %v12718_v58, %v12722_v5  ;;  %v12774_v57 = vrot.slane %v16845_v50, %v16802_v13  ;;  %v12778_v44 = vrot.slane %v16845_v50, %v16805_v14  ;;  %v12364_v42 = vcombine.low %v12356_v35, %v12363_v49 }
 0x738   : > { %v12739_v7 = vrot.slane %v12731_v29, %v14786_v54  ;;  %v12746_v31 = vrot.slane %v12732_v51, %v14786_v54  ;;  %v12749_v26 = vcombine.low %v12726_v4, %v12730_v10  ;;  %v16859_v59 = vadd.f32 %v12347_v15, %v12295_v0 }
 0x739   : > { %v12756_v63 = vrot.slane %v12748_v17, %v14786_v54  ;;  %v12782_v47 = vrot.slane %v16845_v50, %v16808_v53  ;;  %v12786_v25 = vrot.slane %v16845_v50, %v16811_v32  ;;  %v16866_v19 = vadd.f32 %v12364_v42, %v12296_v8 }
 0x73a   : > { %v16868_v24 = vcombine.low %v12739_v7, %v12746_v31  ;;  %v12763_v1 = vrot.slane %v12749_v26, %v14786_v54  ;;  %v12790_v2 = vrot.slane %v16845_v50, %v16814_v60  ;;  %v12371_v30 = vcombine.high %v16859_v59, %v16859_v59 }
 0x73b   : > { %v12378_v27 = vrot.slane %v16859_v59, %v14786_v54  ;;  %v12794_v56 = vrot.slane %v16845_v50, %v16817_v62  ;;  %v12798_v23 = vrot.slane %v16845_v50, %v16820_v55  ;;  %v12388_v61 = vcombine.high %v16866_v19, %v16866_v19 }
 0x73c   : > { %v12395_v40 = vrot.slane %v16866_v19, %v14786_v54  ;;  %v16885_v41 = vcombine.low %v12756_v63, %v12763_v1  ;;  %v12802_v43 = vrot.slane %v16845_v50, %v16829_v11  ;;  %v12385_v18 = vrot.slane %v12371_v30, %v14786_v54 }
 0x73d   : > { %v12386_v13 = vcombine.high %v12378_v27, %v12378_v27  ;;  %v12414_v14 = vsel %vm12413_vm0, %v12378_v27, 0.0  ;;  %v16891_v36 = vcombine.low %v12774_v57, %v12778_v44  ;;  %v12402_v33 = vrot.slane %v12388_v61, %v14786_v54 }
 0x73e   : > { %v12403_v38 = vcombine.high %v12395_v40, %v12395_v40  ;;  %v12415_v52 = vrot.slane %v12414_v14, 4  ;;  %v12442_v20 = vsel %vm12413_vm0, %v12395_v40, 0.0  ;;  %v12387_v37 = vcombine.high %v12385_v18, %v12385_v18 }
 0x73f   : > { %v12421_v6 = vsel %vm12413_vm0, %v12386_v13, 0.0  ;;  %v12428_v39 = vsel %vm12413_vm0, %v12385_v18, 0.0  ;;  %v12443_v3 = vrot.slane %v12442_v20, 4  ;;  %v12404_v48 = vcombine.high %v12402_v33, %v12402_v33 }
 0x740   : > { %v12416_v46 = vadd.f32 %v12415_v52, %v12414_v14  ;;  %v12422_v34 = vrot.slane %v12421_v6, 4  ;;  %v12429_v21 = vrot.slane %v12428_v39, 4  ;;  %v12435_v12 = vsel %vm12413_vm0, %v12387_v37, 0.0 }
 0x741   : > { %v12444_v45 = vadd.f32 %v12443_v3, %v12442_v20  ;;  %v12449_v28 = vsel %vm12413_vm0, %v12403_v38, 0.0  ;;  %v12456_v9 = vsel %vm12413_vm0, %v12402_v33, 0.0  ;;  %v12436_v35 = vrot.slane %v12435_v12, 4 }
 0x742   : > { %v12417_v22 = vrot.slane %v12416_v46, 2  ;;  %v12423_v58 = vadd.f32 %v12422_v34, %v12421_v6  ;;  %v12430_v16 = vadd.f32 %v12429_v21, %v12428_v39  ;;  %v12450_v4 = vrot.slane %v12449_v28, 4 }
 0x743   : > { %v12445_v5 = vrot.slane %v12444_v45, 2  ;;  %v12457_v0 = vrot.slane %v12456_v9, 4  ;;  %v12463_v49 = vsel %vm12413_vm0, %v12404_v48, 0.0  ;;  %v12437_v8 = vadd.f32 %v12436_v35, %v12435_v12 }
 0x744   : > { %v12418_v10 = vadd.f32 %v12417_v22, %v12416_v46  ;;  %v12424_v29 = vrot.slane %v12423_v58, 2  ;;  %v12431_v51 = vrot.slane %v12430_v16, 2  ;;  %v12451_v17 = vadd.f32 %v12450_v4, %v12449_v28 }
 0x745   : > { %v12446_v15 = vadd.f32 %v12445_v5, %v12444_v45  ;;  %v12458_v57 = vadd.f32 %v12457_v0, %v12456_v9  ;;  %v12464_v44 = vrot.slane %v12463_v49, 4  ;;  %v12438_v26 = vrot.slane %v12437_v8, 2 }
 0x746   : > { %v12419_v42 = vrot.slane %v12418_v10, 1  ;;  %v12425_v7 = vadd.f32 %v12424_v29, %v12423_v58  ;;  %v12432_v31 = vadd.f32 %v12431_v51, %v12430_v16  ;;  %v12452_v1 = vrot.slane %v12451_v17, 2 }
 0x747   : > { %v12447_v63 = vrot.slane %v12446_v15, 1  ;;  %v12459_v30 = vrot.slane %v12458_v57, 2  ;;  %v12465_v27 = vadd.f32 %v12464_v44, %v12463_v49  ;;  %v12439_v13 = vadd.f32 %v12438_v26, %v12437_v8 }
 0x748   : > { %v12420_v61 = vadd.f32 %v12419_v42, %v12418_v10  ;;  %v12426_v40 = vrot.slane %v12425_v7, 1  ;;  %v12433_v18 = vrot.slane %v12432_v31, 1  ;;  %v12453_v33 = vadd.f32 %v12452_v1, %v12451_v17 }
 0x749   : > { %v12448_v14 = vadd.f32 %v12447_v63, %v12446_v15  ;;  %v12460_v38 = vadd.f32 %v12459_v30, %v12458_v57  ;;  %v12466_v52 = vrot.slane %v12465_v27, 2  ;;  %v12440_v6 = vrot.slane %v12439_v13, 1 }
 0x74a   : > { %v12427_v20 = vadd.f32 %v12426_v40, %v12425_v7  ;;  %v12434_v37 = vadd.f32 %v12433_v18, %v12432_v31  ;;  %v12471_v39 = vmul.f32 0.5, %v12420_v61  ;;  %v12454_v3 = vrot.slane %v12453_v33, 1 }
 0x74b   : > { %v12461_v48 = vrot.slane %v12460_v38, 1  ;;  %v12467_v46 = vadd.f32 %v12466_v52, %v12465_v27  ;;  %v12475_v34 = vmul.f32 0.5, %v12448_v14  ;;  %v12441_v21 = vadd.f32 %v12440_v6, %v12439_v13 }
 0x74c   : > { %v12472_v12 = vmul.f32 0.5, %v12427_v20  ;;  %v12473_v45 = vmul.f32 0.5, %v12434_v37  ;;  %v12804_v28 = vcombine.low %v12782_v47, %v12786_v25  ;;  %v12455_v9 = vadd.f32 %v12454_v3, %v12453_v33 }
 0x74d   : > { %v12462_v22 = vadd.f32 %v12461_v48, %v12460_v38  ;;  %v12468_v58 = vrot.slane %v12467_v46, 1  ;;  %v12811_v16 = vrot.slane %v16891_v36, %v14786_v54  ;;  %v12474_v35 = vmul.f32 0.5, %v12441_v21 }
 0x74e   : > { %v12487_v5 = vcombine.low %v12471_v39, %v12472_v12  ;;  %v12818_v4 = vrot.slane %v12804_v28, %v14786_v54  ;;  %v12820_v32 = vcombine.low %v12790_v2, %v12794_v56  ;;  %v12476_v53 = vmul.f32 0.5, %v12455_v9 }
 0x74f   : > { %v12469_v0 = vadd.f32 %v12468_v58, %v12467_v46  ;;  %v12477_v47 = vmul.f32 0.5, %v12462_v22  ;;  %v12821_v25 = vcombine.low %v12798_v23, %v12802_v43  ;;  %v12488_v36 = vcombine.low %v12473_v45, %v12474_v35 }
 0x750   : > { %v12495_v49 = vrot.slane %v12487_v5, %v14786_v54  ;;  %v16923_v10 = vcombine.low %v12811_v16, %v12818_v4  ;;  %v12828_v62 = vrot.slane %v12820_v32, %v14786_v54  ;;  %v12504_v60 = vcombine.low %v12475_v34, %v12476_v53 }
 0x751   : > { %v12478_v29 = vmul.f32 0.5, %v12469_v0  ;;  %v12835_v2 = vrot.slane %v12821_v25, %v14786_v54  ;;  %v12502_v56 = vrot.slane %v12488_v36, %v14786_v54 }
 0x752   : > { %v12512_v11 = vrot.slane %v12504_v60, %v14786_v54 }
 0x753   : > { %v12505_v51 = vcombine.low %v12477_v47, %v12478_v29  ;;  %v16929_v8 = vcombine.low %v12828_v62, %v12835_v2  ;;  %v12503_v55 = vcombine.low %v12495_v49, %v12502_v56 }
 0x755   : > { %v12519_v50 = vrot.slane %v12505_v51, %v14786_v54  ;;  %v16933_v23 = vsub.f32 %v16859_v59, %v12503_v55 }
 0x757   : > { %v12520_v43 = vcombine.low %v12512_v11, %v12519_v50  ;;  %v12525_v15 = vmul.f32 %v16933_v23, %v16933_v23 }
 0x759   : > { %v16938_v17 = vsub.f32 %v16866_v19, %v12520_v43  ;;  %v12529_v57 = vcombine.high %v12525_v15, %v12525_v15  ;;  %v12536_v44 = vrot.slane %v12525_v15, %v14786_v54 }
 0x75b   : > { %v12526_v42 = vmul.f32 %v16938_v17, %v16938_v17  ;;  %v12543_v7 = vrot.slane %v12529_v57, %v14786_v54  ;;  %v12544_v31 = vcombine.high %v12536_v44, %v12536_v44  ;;  %v12571_v26 = vsel %vm12413_vm0, %v12536_v44, 0.0 }
 0x75c   : > { %v12572_v1 = vrot.slane %v12571_v26, 4 }
 0x75d   : > { %v12546_v59 = vcombine.high %v12526_v42, %v12526_v42  ;;  %v12553_v63 = vrot.slane %v12526_v42, %v14786_v54  ;;  %v12545_v30 = vcombine.high %v12543_v7, %v12543_v7  ;;  %v12578_v27 = vsel %vm12413_vm0, %v12544_v31, 0.0 }
 0x75e   : > { %v12585_v19 = vsel %vm12413_vm0, %v12543_v7, 0.0  ;;  %v12573_v18 = vadd.f32 %v12572_v1, %v12571_v26  ;;  %v12579_v13 = vrot.slane %v12578_v27, 4 }
 0x75f   : > { %v12560_v61 = vrot.slane %v12546_v59, %v14786_v54  ;;  %v12561_v40 = vcombine.high %v12553_v63, %v12553_v63  ;;  %v12586_v14 = vrot.slane %v12585_v19, 4  ;;  %v12592_v33 = vsel %vm12413_vm0, %v12545_v30, 0.0 }
 0x760   : > { %v12599_v38 = vsel %vm12413_vm0, %v12553_v63, 0.0  ;;  %v12574_v20 = vrot.slane %v12573_v18, 2  ;;  %v12580_v37 = vadd.f32 %v12579_v13, %v12578_v27  ;;  %v12593_v6 = vrot.slane %v12592_v33, 4 }
 0x761   : > { %v12562_v52 = vcombine.high %v12560_v61, %v12560_v61  ;;  %v12587_v39 = vadd.f32 %v12586_v14, %v12585_v19  ;;  %v12600_v3 = vrot.slane %v12599_v38, 4  ;;  %v12606_v48 = vsel %vm12413_vm0, %v12561_v40, 0.0 }
 0x762   : > { %v12613_v46 = vsel %vm12413_vm0, %v12560_v61, 0.0  ;;  %v12575_v34 = vadd.f32 %v12574_v20, %v12573_v18  ;;  %v12581_v21 = vrot.slane %v12580_v37, 2  ;;  %v12594_v12 = vadd.f32 %v12593_v6, %v12592_v33 }
 0x763   : > { %v12607_v45 = vrot.slane %v12606_v48, 4  ;;  %v12588_v28 = vrot.slane %v12587_v39, 2  ;;  %v12601_v9 = vadd.f32 %v12600_v3, %v12599_v38  ;;  %v12614_v22 = vrot.slane %v12613_v46, 4 }
 0x764   : > { %v12620_v58 = vsel %vm12413_vm0, %v12562_v52, 0.0  ;;  %v12576_v16 = vrot.slane %v12575_v34, 1  ;;  %v12582_v35 = vadd.f32 %v12581_v21, %v12580_v37  ;;  %v12595_v5 = vrot.slane %v12594_v12, 2 }
 0x765   : > { %v12608_v4 = vadd.f32 %v12607_v45, %v12606_v48  ;;  %v12589_v32 = vadd.f32 %v12588_v28, %v12587_v39  ;;  %v12602_v0 = vrot.slane %v12601_v9, 2  ;;  %v12615_v53 = vadd.f32 %v12614_v22, %v12613_v46 }
 0x766   : > { %v12621_v47 = vrot.slane %v12620_v58, 4  ;;  %v12577_v25 = vadd.f32 %v12576_v16, %v12575_v34  ;;  %v12583_v36 = vrot.slane %v12582_v35, 1  ;;  %v12596_v49 = vadd.f32 %v12595_v5, %v12594_v12 }
 0x767   : > { %v12609_v62 = vrot.slane %v12608_v4, 2  ;;  %v12590_v29 = vrot.slane %v12589_v32, 1  ;;  %v12603_v60 = vadd.f32 %v12602_v0, %v12601_v9  ;;  %v12616_v2 = vrot.slane %v12615_v53, 2 }
 0x768   : > { %v12622_v56 = vadd.f32 %v12621_v47, %v12620_v58  ;;  %v12584_v51 = vadd.f32 %v12583_v36, %v12582_v35  ;;  %v12597_v11 = vrot.slane %v12596_v49, 1  ;;  %v12627_v50 = vmul.f32 0.5, %v12577_v25 }
 0x769   : > { %v12610_v55 = vadd.f32 %v12609_v62, %v12608_v4  ;;  %v12591_v43 = vadd.f32 %v12590_v29, %v12589_v32  ;;  %v12604_v15 = vrot.slane %v12603_v60, 1  ;;  %v12617_v57 = vadd.f32 %v12616_v2, %v12615_v53 }
 0x76a   : > { %v12623_v44 = vrot.slane %v12622_v56, 2  ;;  %v12598_v42 = vadd.f32 %v12597_v11, %v12596_v49  ;;  %v12628_v31 = vmul.f32 0.5, %v12584_v51  ;;  %v12635_v26 = vadd.f32 1e-05, %v12627_v50 }
 0x76b   : > { %v12611_v7 = vrot.slane %v12610_v55, 1  ;;  %v12605_v59 = vadd.f32 %v12604_v15, %v12603_v60  ;;  %v12618_v63 = vrot.slane %v12617_v57, 1  ;;  %v12629_v30 = vmul.f32 0.5, %v12591_v43 }
 0x76c   : > { %v12624_v1 = vadd.f32 %v12623_v44, %v12622_v56  ;;  %v12630_v19 = vmul.f32 0.5, %v12598_v42  ;;  %v12636_v61 = vadd.f32 1e-05, %v12628_v31  ;;  %14621 = vrsqrt.f32 %v12635_v26 }
 0x76d   : > { %v12612_v27 = vadd.f32 %v12611_v7, %v12610_v55  ;;  %v12619_v40 = vadd.f32 %v12618_v63, %v12617_v57  ;;  %v12631_v13 = vmul.f32 0.5, %v12605_v59  ;;  %v12637_v14 = vadd.f32 1e-05, %v12629_v30 }
 0x76e   : > { %v12625_v18 = vrot.slane %v12624_v1, 1  ;;  %v12638_v38 = vadd.f32 1e-05, %v12630_v19  ;;  %14623 = vrsqrt.f32 %v12636_v61 }
 0x76f   : > { %v12632_v33 = vmul.f32 0.5, %v12612_v27  ;;  %v12633_v20 = vmul.f32 0.5, %v12619_v40  ;;  %v12639_v37 = vadd.f32 1e-05, %v12631_v13  ;;  %14625 = vrsqrt.f32 %v12637_v14 }
 0x770   : > { %v12626_v52 = vadd.f32 %v12625_v18, %v12624_v1  ;;  %14627 = vrsqrt.f32 %v12638_v38 }
 0x771   : > { %v12640_v6 = vadd.f32 1e-05, %v12632_v33  ;;  %v12641_v3 = vadd.f32 1e-05, %v12633_v20  ;;  %14629 = vrsqrt.f32 %v12639_v37 }
 0x772   : > { %v12634_v39 = vmul.f32 0.5, %v12626_v52 }
 0x773   : > { %14631 = vrsqrt.f32 %v12640_v6 }
 0x774   : > { %v12642_v48 = vadd.f32 1e-05, %v12634_v39  ;;  %14633 = vrsqrt.f32 %v12641_v3 }
 0x776   : > { %14635 = vrsqrt.f32 %v12642_v48 }
 0x779   : > { %v14622_v46 = vpop.eup %14621 }
 0x77b   : > { %v14624_v34 = vpop.eup %14623 }
 0x77c   : > { %v14626_v21 = vpop.eup %14625  ;;  %v12659_v12 = vcombine.low %v14622_v46, %v14624_v34 }
 0x77d   : > { %v14628_v45 = vpop.eup %14627 }
 0x77e   : > { %v14630_v28 = vpop.eup %14629  ;;  %v12660_v9 = vcombine.low %v14626_v21, %v14628_v45  ;;  %v12667_v22 = vrot.slane %v12659_v12, %v14786_v54 }
 0x780   : > { %v14632_v58 = vpop.eup %14631  ;;  %v12674_v35 = vrot.slane %v12660_v9, %v14786_v54 }
 0x781   : > { %v14634_v16 = vpop.eup %14633  ;;  %v12676_v5 = vcombine.low %v14630_v28, %v14632_v58 }
 0x782   : > { %v12675_v32 = vcombine.low %v12667_v22, %v12674_v35 }
 0x783   : > { %v14636_v4 = vpop.eup %14635  ;;  %v12684_v53 = vrot.slane %v12676_v5, %v14786_v54 }
 0x784   : > { %v12677_v0 = vcombine.low %v14634_v16, %v14636_v4  ;;  %v12695_v47 = vmul.f32 %v12675_v32, %v16933_v23 }
 0x786   : > { %v12691_v25 = vrot.slane %v12677_v0, %v14786_v54  ;;  %v12767_v36 = vmul.f32 %v16868_v24, %v12695_v47 }
 0x788   : > { %v12692_v49 = vcombine.low %v12684_v53, %v12691_v25  ;;  %v12839_v62 = vadd.f32 %v16923_v10, %v12767_v36 }
 0x78a   : > { %v12696_v29 = vmul.f32 %v12692_v49, %v16938_v17  ;;  %vm12841_vm1 = vcmp.ge.f32.partialorder %v12839_v62, 0.0  ;;  %v12843_v60 = vmul.f32 0.2, %v12839_v62 }
 0x78c   : > { %v12768_v2 = vmul.f32 %v16885_v41, %v12696_v29  ;;  %v12845_v56 = vsel %vm12841_vm1, %v12839_v62, %v12843_v60 }
 0x78d   : > { %12847 = vst [vmem:[#allocation2] sm:$0xff] %v12845_v56 }
 0x78e   : > { %v12840_v51 = vadd.f32 %v16929_v8, %v12768_v2 }
 0x790   : > { %vm12842_vm2 = vcmp.ge.f32.partialorder %v12840_v51, 0.0  ;;  %v12844_v11 = vmul.f32 0.2, %v12840_v51 }
 0x792   : > { %v12846_v23 = vsel %vm12842_vm2, %v12840_v51, %v12844_v11 }
 0x793   : > { %12848 = vst [vmem:[#allocation2 + $0x8] sm:$0xff] %v12846_v23 }
 0x794 PF: > { %p16966_p8 = scmp.eq.s32.totalorder %s12963_s21, 1  ;;  %s14692_s15 = smov [#allocation2]  }
 0x795   : > { %s12859_s16 = sshll.u32 %s14692_s15, 4  ;;  %s12860_s16 = int_to_ptr.vmem [resolvable:$true] %s12859_s16 }
 0x796   : > { %s14637_s17 = scalar_lea.vmem %s12860_s16, 256  ;;  %p14644_p12 = scmp.lt.s32.totalorder %s12860_s16, %s12860_s16 }
 0x797   : > { %p14638_p9 = scmp.ne.s32.totalorder %s12860_s16, %s14637_s17  ;;  %p14645_p13 = scmp.lt.s32.totalorder %s14637_s17, %s14637_s17 }
 0x799   : > { %p14639_p10 = pnand %p14638_p9, %p16966_p8  ;;  %p14646_p0 = por %p14645_p13, %p14644_p12 }
 0x79b   : > { %p14640_p11 = pneg %p14639_p10 }
 0x79d   : > { %p14647_p1 = pnand %p14646_p0, %p14640_p11 }
 0x79f   : > { %14650 = shalt.err (!%p14647_p1)
}
 0x7a0   : > { %14582 = dma.vmem_to_hbm [thread:$0]  (%p16966_p8), %s12860_s16, 256, %s16995_s5, [#allocation3]  }
 0x7a1   : > { %14674 = dma.done.wait (%p16966_p8), [#allocation3], 256  }
 0x7a2   : > { %14676 = vsyncadd (%p16966_p8), [#allocation3], 4294967040 }
 0x7a3 PF: > { %s16_s20 = sadd.s32 1, %s14687_s20   ;;  %s16997_s18 = smov %s14683_s19 }
 0x7a4   : > { %p13_p2 = scmp.ge.s32.totalorder %s16_s20, 4   ;;  %s16998_s19 = smov %s17000_s22 }
 0x7a6   :  { %15 = sbr.rel (!%p13_p2) target bundleno = 2 (0x2), region = 88 }
 0x7ab   :  { %12872 = vsyncpa [#allocation3], 1 }
 0x7ac   :  { %12874 = vsyncpa [#allocation3 + $0x1], 1 }

</bundles_post_ra>
